<compile_context>
chip_gen: v5e
topology: v5e:2x2
jax: 0.10.0
libtpu: 0.0.40
codegen_flags: <defaults>
</compile_context>

<pallas_src>
import jax
import jax.numpy as jnp
from jax.experimental import pallas as pl
from jax.experimental.pallas import tpu as pltpu


LANE = 128              # padded spatial width (10x10 conv2 grid -> 128 lanes)
NCONV2 = 32
FC1_K = NCONV2 * LANE   # 4096
FC1_N = 256
P1_W = 5 * LANE         # 4 parity planes + 1 zero guard plane = 640 lanes


# ---------------------------------------------------------------------------
# Fused Pallas kernel: conv1 + conv2 (im2col in VMEM) + fc1 + fc2.
# ---------------------------------------------------------------------------
def _policy_cnn_kernel(p1_ref, w1_ref, b1_ref, w2_ref, b2_ref,
                       wf1_hbm, bf1_ref, wf2_ref, bf2_ref,
                       out_ref, p2_ref, fcin_ref, wf1_vmem, wf1_sem):
    cdtype = w1_ref.dtype

    # Kick off the big fc1-weight DMA first so it overlaps conv1/conv2.
    wf1_copy = pltpu.make_async_copy(wf1_hbm, wf1_vmem, wf1_sem)
    wf1_copy.start()

    # conv1: one fused matmul over all four parity planes.
    # p1 lanes [128p, 128p+100) hold the patches of parity plane p = 2r+s,
    # i.e. conv1 outputs at (oh, ow) = (2i+r, 2j+s), plane column 10i+j.
    x1 = jnp.dot(w1_ref[...], p1_ref[...],
                 preferred_element_type=jnp.float32)            # (16, 640)
    x1 = jnp.maximum(x1 + b1_ref[...], 0.0)                     # float32

    # conv2 im2col built with 16 full-width unmasked stores:
    #   P2[(kh*4+kw)*16 + c, col] = plane_p[c, col + d]
    # with p = 2*(kh%2)+(kw%2) and d = 10*(kh//2)+(kw//2) in {0, 1, 10, 11}.
    # The shifted slice is taken from the 640-lane-wide x1, so its tail lanes
    # are finite junk that only multiplies exact zeros in the padded fc1
    # weight (no uninitialized VMEM, no zero-fill pass, no masked stores).
    for kh in range(4):
        for kw in range(4):
            p = 2 * (kh % 2) + (kw % 2)
            d = 10 * (kh // 2) + (kw // 2)
            start = LANE * p + d
            blk = kh * 4 + kw
            p2_ref[blk * 16:(blk + 1) * 16, :] = (
                x1[:, start:start + LANE].astype(cdtype))

    # conv2: relu(W2 @ P2 + b2) -> (32, 128); valid columns are 10*oh2 + ow2
    # with oh2, ow2 in [0, 9); the rest are junk on zero fc1 rows.
    out2 = jnp.dot(w2_ref[...], p2_ref[...],
                   preferred_element_type=jnp.float32)
    out2 = jnp.maximum(out2 + b2_ref[...], 0.0)                 # (32, 128) f32

    # Stage out2 channel-major into one flat (1, 4096) VMEM row so fc1 is a
    # single K=4096 contraction (replaces 32 M=1 matmuls, 32 per-row casts
    # and a 32-deep dependent accumulate chain).
    for c in range(NCONV2):
        fcin_ref[0:1, c * LANE:(c + 1) * LANE] = out2[c:c + 1, :]

    # fc1 + fc2 (fc1 weight arrives via the manual DMA started above).
    wf1_copy.wait()
    fc1_lhs = fcin_ref[...].astype(cdtype)                      # cast once
    h = jnp.dot(fc1_lhs, wf1_vmem[...], preferred_element_type=jnp.float32)
    h = jnp.maximum(h + bf1_ref[...], 0.0).astype(cdtype)       # (1, 256)
    q = jnp.dot(h, wf2_ref[...],
                preferred_element_type=jnp.float32) + bf2_ref[...]
    out_ref[...] = q.astype(out_ref.dtype)


# ---------------------------------------------------------------------------
# One-time weight re-layout (no per-forward transposes / pads).
# ---------------------------------------------------------------------------
def prepare_params(params, compute_dtype=jnp.bfloat16):
    num_actions = params["fc2_b"].shape[0]
    # conv1: (16, 4, 8, 8) -> (16, 256), columns ordered (c, kh, kw).
    w1 = params["conv1_w"].reshape(16, 256).astype(compute_dtype)
    b1 = params["conv1_b"].reshape(16, 1).astype(jnp.float32)
    # conv2: (32, 16, 4, 4) -> (32, 256), columns ordered (kh, kw, c).
    w2 = (params["conv2_w"].transpose(0, 2, 3, 1)
          .reshape(32, 256).astype(compute_dtype))
    b2 = params["conv2_b"].reshape(32, 1).astype(jnp.float32)
    # fc1: (256, 32*9*9) -> (32*128, 256), flat row index c*128 + 10*oh2 + ow2.
    # Spatial padded 9x9 -> 10x10 -> 128 with zeros so every junk column of
    # the padded conv2 output is multiplied by an exact zero.
    wf1 = params["fc1_w"].reshape(256, 32, 9, 9)
    wf1 = jnp.pad(wf1, ((0, 0), (0, 0), (0, 1), (0, 1)))        # (256,32,10,10)
    wf1 = wf1.reshape(256, 32, 100)
    wf1 = jnp.pad(wf1, ((0, 0), (0, 0), (0, LANE - 100)))       # (256,32,128)
    wf1 = wf1.transpose(1, 2, 0).reshape(FC1_K, FC1_N).astype(compute_dtype)
    bf1 = params["fc1_b"].reshape(1, 256).astype(jnp.float32)
    # fc2: (A, 256) -> (256, A)
    wf2 = params["fc2_w"].T.astype(compute_dtype)
    bf2 = params["fc2_b"].reshape(1, num_actions).astype(jnp.float32)
    return {"w1": w1, "b1": b1, "w2": w2, "b2": b2,
            "wf1": wf1, "bf1": bf1, "wf2": wf2, "bf2": bf2}


# ---------------------------------------------------------------------------
# conv1 patch extraction (static slices + reshapes + transposes only):
#   P1[c*64 + kh*8 + kw, 128*(2r+s) + 10i + j] = obs[0, c, 8i+4r+kh, 8j+4s+kw]
# Plane (r, s) holds conv1 patches for output pixels (oh, ow) = (2i+r, 2j+s).
# A trailing all-zero plane guarantees the in-kernel shifted slices (shift
# <= 11 lanes) never run past the end of the conv1 result.
# ---------------------------------------------------------------------------
def _build_conv1_patches(obs, dtype):
    assert obs.shape == (1, 4, 84, 84), obs.shape
    x = obs[0]
    planes = []
    for r in range(2):
        for s in range(2):
            t = x[:, 4 * r:4 * r + 80, 4 * s:4 * s + 80]        # (4, 80, 80)
            t = t.reshape(4, 10, 8, 10, 8)                      # (c,i,kh,j,kw)
            t = t.transpose(0, 2, 4, 1, 3).reshape(256, 100)    # (c*64+kh*8+kw, 10i+j)
            planes.append(jnp.pad(t, ((0, 0), (0, LANE - 100))))
    planes.append(jnp.zeros((256, LANE), x.dtype))              # guard plane
    return jnp.concatenate(planes, axis=1).astype(dtype)        # (256, 640)


def _full_spec(shape):
    nd = len(shape)
    return pl.BlockSpec(tuple(shape), lambda: (0,) * nd)


# ---------------------------------------------------------------------------
# PolicyCNN.forward — one fused pallas_call.
# ---------------------------------------------------------------------------
def policy_cnn_forward(prepped, obs):
    cdtype = prepped["w1"].dtype
    num_actions = prepped["bf2"].shape[1]
    p1 = _build_conv1_patches(obs, cdtype)
    inputs = (p1, prepped["w1"], prepped["b1"], prepped["w2"], prepped["b2"],
              prepped["wf1"], prepped["bf1"], prepped["wf2"], prepped["bf2"])
    in_specs = [
        _full_spec(p1.shape),
        _full_spec(prepped["w1"].shape),
        _full_spec(prepped["b1"].shape),
        _full_spec(prepped["w2"].shape),
        _full_spec(prepped["b2"].shape),
        pl.BlockSpec(memory_space=pl.ANY),   # wf1 stays in HBM; manual DMA
        _full_spec(prepped["bf1"].shape),
        _full_spec(prepped["wf2"].shape),
        _full_spec(prepped["bf2"].shape),
    ]
    # TODO(synk): for batched observations add a leading "parallel" grid axis
    # (second v7x TensorCore); batch is pinned to 1 by the module's reshape.
    return pl.pallas_call(
        _policy_cnn_kernel,
        out_shape=jax.ShapeDtypeStruct((1, num_actions), jnp.float32),
        in_specs=in_specs,
        out_specs=pl.BlockSpec((1, num_actions), lambda: (0, 0)),
        scratch_shapes=[
            pltpu.VMEM((256, LANE), cdtype),          # conv2 im2col matrix
            pltpu.VMEM((1, FC1_K), jnp.float32),      # flat fc1 input row
            pltpu.VMEM((FC1_K, FC1_N), cdtype),       # fc1 weight (manual DMA)
            pltpu.SemaphoreType.DMA(()),              # fc1 weight DMA sem
        ],
    )(*inputs)


# ---------------------------------------------------------------------------
# Deterministic init (uniform +-bound; bound scaled 4x vs PyTorch default so
# activations stay O(1) and the numerical check below is meaningful).
# ---------------------------------------------------------------------------
def init_params(key, num_actions, scale=4.0):
    ks = jax.random.split(key, 8)

    def u(k, shape, fan_in):
        bound = scale / jnp.sqrt(jnp.float32(fan_in))
        return jax.random.uniform(k, shape, jnp.float32, -bound, bound)

    return {
        "conv1_w": u(ks[0], (16, 4, 8, 8), 4 * 8 * 8),
        "conv1_b": u(ks[1], (16,), 4 * 8 * 8),
        "conv2_w": u(ks[2], (32, 16, 4, 4), 16 * 4 * 4),
        "conv2_b": u(ks[3], (32,), 16 * 4 * 4),
        "fc1_w": u(ks[4], (256, 32 * 9 * 9), 32 * 9 * 9),
        "fc1_b": u(ks[5], (256,), 32 * 9 * 9),
        "fc2_w": u(ks[6], (num_actions, 256), 256),
        "fc2_b": u(ks[7], (num_actions,), 256),
    }


# ---------------------------------------------------------------------------
# Pure-JAX reference (mirrors the PyTorch module exactly).
# ---------------------------------------------------------------------------
def reference_forward(params, obs):
    hp = jax.lax.Precision.HIGHEST
    x = jax.lax.conv_general_dilated(
        obs, params["conv1_w"], (4, 4), "VALID",
        dimension_numbers=("NCHW", "OIHW", "NCHW"), precision=hp)
    x = jax.nn.relu(x + params["conv1_b"][None, :, None, None])
    x = jax.lax.conv_general_dilated(
        x, params["conv2_w"], (2, 2), "VALID",
        dimension_numbers=("NCHW", "OIHW", "NCHW"), precision=hp)
    x = jax.nn.relu(x + params["conv2_b"][None, :, None, None])
    x = x.reshape(1, -1)
    x = jax.nn.relu(jnp.dot(x, params["fc1_w"].T, precision=hp) + params["fc1_b"])
    x = jnp.dot(x, params["fc2_w"].T, precision=hp) + params["fc2_b"]
    return x


if __name__ == "__main__":
    num_actions = 6  # PolicyCNN(num_actions=6, epsilon=...); epsilon unused in forward
    key = jax.random.PRNGKey(0)
    pkey, okey = jax.random.split(key)

    params = init_params(pkey, num_actions)
    obs = jax.random.uniform(okey, (1, 4, 84, 84), jnp.float32)

    q_ref = jax.block_until_ready(reference_forward(params, obs))
    ref_scale = float(jnp.max(jnp.abs(q_ref)))

    forward = jax.jit(policy_cnn_forward)

    # Check both an f32 variant (tight tolerance, catches layout/shift bugs)
    # and the shipped bf16-weight variant (looser tolerance for rounding).
    for cdtype, rel_tol in ((jnp.float32, 3e-2), (jnp.bfloat16, 1e-1)):
        prepped = prepare_params(params, compute_dtype=cdtype)
        q = jax.block_until_ready(forward(prepped, obs))
        assert q.shape == (1, num_actions), q.shape
        err = float(jnp.max(jnp.abs(q - q_ref)))
        assert err <= rel_tol * ref_scale + 1e-3, (str(cdtype), err, ref_scale)

    print("KERNEL_OK")
</pallas_src>

<mosaic_0001>
module attributes {stable_mosaic.version = 11 : i64} {
  func.func @_policy_cnn_kernel(%arg0: memref<256x640xf32, #tpu.memory_space<vmem>>, %arg1: memref<16x256xf32, #tpu.memory_space<vmem>>, %arg2: memref<16x1xf32, #tpu.memory_space<vmem>>, %arg3: memref<32x256xf32, #tpu.memory_space<vmem>>, %arg4: memref<32x1xf32, #tpu.memory_space<vmem>>, %arg5: memref<4096x256xf32, #tpu.memory_space<any>>, %arg6: memref<1x256xf32, #tpu.memory_space<vmem>>, %arg7: memref<256x6xf32, #tpu.memory_space<vmem>>, %arg8: memref<1x6xf32, #tpu.memory_space<vmem>>, %arg9: memref<1x6xf32, #tpu.memory_space<vmem>>, %arg10: memref<256x128xf32, #tpu.memory_space<vmem>>, %arg11: memref<1x4096xf32, #tpu.memory_space<vmem>>, %arg12: memref<4096x256xf32, #tpu.memory_space<vmem>>, %arg13: memref<!tpu.dma_semaphore, #tpu.memory_space<semaphore_mem>>) attributes {dimension_semantics = [], scalar_prefetch = 0 : i64, scratch_operands = 4 : i64, tpu.core_type = #tpu.core_type<tc>} {
    tpu.enqueue_dma source(%arg5 : memref<4096x256xf32, #tpu.memory_space<any>>) target(%arg12 : memref<4096x256xf32, #tpu.memory_space<vmem>>) target_semaphore(%arg13 : memref<!tpu.dma_semaphore, #tpu.memory_space<semaphore_mem>>)
    %c0 = arith.constant 0 : index
    %c0_0 = arith.constant 0 : index
    %0 = vector.load %arg1[%c0, %c0_0] : memref<16x256xf32, #tpu.memory_space<vmem>>, vector<16x256xf32>
    %c0_1 = arith.constant 0 : index
    %c0_2 = arith.constant 0 : index
    %1 = vector.load %arg0[%c0_1, %c0_2] : memref<256x640xf32, #tpu.memory_space<vmem>>, vector<256x640xf32>
    %cst = arith.constant dense<0.000000e+00> : vector<16x640xf32>
    %2 = tpu.matmul %0, %1, %cst {dimension_numbers = #tpu.dot_dimension_numbers<[1], [0], [0], [1], [0, 0, 1, 1], [], []>} : vector<16x256xf32>, vector<256x640xf32>, vector<16x640xf32> -> vector<16x640xf32>
    %c0_3 = arith.constant 0 : index
    %c0_4 = arith.constant 0 : index
    %3 = vector.load %arg2[%c0_3, %c0_4] : memref<16x1xf32, #tpu.memory_space<vmem>>, vector<16x1xf32>
    %4 = vector.broadcast %3 : vector<16x1xf32> to vector<16x640xf32>
    %5 = arith.addf %2, %4 : vector<16x640xf32>
    %cst_5 = arith.constant 0.000000e+00 : f32
    %6 = vector.broadcast %cst_5 : f32 to vector<16x640xf32>
    %7 = arith.maximumf %5, %6 : vector<16x640xf32>
    %8 = vector.extract_strided_slice %7 {offsets = [0, 0], sizes = [16, 128], strides = [1, 1]} : vector<16x640xf32> to vector<16x128xf32>
    %c0_6 = arith.constant 0 : index
    %c0_7 = arith.constant 0 : index
    %9 = vector.load %arg10[%c0_6, %c0_7] : memref<256x128xf32, #tpu.memory_space<vmem>>, vector<16x128xf32>
    tpu.vector_store %arg10[%c0_6, %c0_7], %8 {strides = array<i32>} : memref<256x128xf32, #tpu.memory_space<vmem>>, vector<16x128xf32>,
    %10 = vector.extract_strided_slice %7 {offsets = [0, 128], sizes = [16, 128], strides = [1, 1]} : vector<16x640xf32> to vector<16x128xf32>
    %c16 = arith.constant 16 : index
    %c0_8 = arith.constant 0 : index
    %11 = vector.load %arg10[%c16, %c0_8] : memref<256x128xf32, #tpu.memory_space<vmem>>, vector<16x128xf32>
    tpu.vector_store %arg10[%c16, %c0_8], %10 {strides = array<i32>} : memref<256x128xf32, #tpu.memory_space<vmem>>, vector<16x128xf32>,
    %12 = vector.extract_strided_slice %7 {offsets = [0, 1], sizes = [16, 128], strides = [1, 1]} : vector<16x640xf32> to vector<16x128xf32>
    %c32 = arith.constant 32 : index
    %c0_9 = arith.constant 0 : index
    %13 = vector.load %arg10[%c32, %c0_9] : memref<256x128xf32, #tpu.memory_space<vmem>>, vector<16x128xf32>
    tpu.vector_store %arg10[%c32, %c0_9], %12 {strides = array<i32>} : memref<256x128xf32, #tpu.memory_space<vmem>>, vector<16x128xf32>,
    %14 = vector.extract_strided_slice %7 {offsets = [0, 129], sizes = [16, 128], strides = [1, 1]} : vector<16x640xf32> to vector<16x128xf32>
    %c48 = arith.constant 48 : index
    %c0_10 = arith.constant 0 : index
    %15 = vector.load %arg10[%c48, %c0_10] : memref<256x128xf32, #tpu.memory_space<vmem>>, vector<16x128xf32>
    tpu.vector_store %arg10[%c48, %c0_10], %14 {strides = array<i32>} : memref<256x128xf32, #tpu.memory_space<vmem>>, vector<16x128xf32>,
    %16 = vector.extract_strided_slice %7 {offsets = [0, 256], sizes = [16, 128], strides = [1, 1]} : vector<16x640xf32> to vector<16x128xf32>
    %c64 = arith.constant 64 : index
    %c0_11 = arith.constant 0 : index
    %17 = vector.load %arg10[%c64, %c0_11] : memref<256x128xf32, #tpu.memory_space<vmem>>, vector<16x128xf32>
    tpu.vector_store %arg10[%c64, %c0_11], %16 {strides = array<i32>} : memref<256x128xf32, #tpu.memory_space<vmem>>, vector<16x128xf32>,
    %18 = vector.extract_strided_slice %7 {offsets = [0, 384], sizes = [16, 128], strides = [1, 1]} : vector<16x640xf32> to vector<16x128xf32>
    %c80 = arith.constant 80 : index
    %c0_12 = arith.constant 0 : index
    %19 = vector.load %arg10[%c80, %c0_12] : memref<256x128xf32, #tpu.memory_space<vmem>>, vector<16x128xf32>
    tpu.vector_store %arg10[%c80, %c0_12], %18 {strides = array<i32>} : memref<256x128xf32, #tpu.memory_space<vmem>>, vector<16x128xf32>,
    %20 = vector.extract_strided_slice %7 {offsets = [0, 257], sizes = [16, 128], strides = [1, 1]} : vector<16x640xf32> to vector<16x128xf32>
    %c96 = arith.constant 96 : index
    %c0_13 = arith.constant 0 : index
    %21 = vector.load %arg10[%c96, %c0_13] : memref<256x128xf32, #tpu.memory_space<vmem>>, vector<16x128xf32>
    tpu.vector_store %arg10[%c96, %c0_13], %20 {strides = array<i32>} : memref<256x128xf32, #tpu.memory_space<vmem>>, vector<16x128xf32>,
    %22 = vector.extract_strided_slice %7 {offsets = [0, 385], sizes = [16, 128], strides = [1, 1]} : vector<16x640xf32> to vector<16x128xf32>
    %c112 = arith.constant 112 : index
    %c0_14 = arith.constant 0 : index
    %23 = vector.load %arg10[%c112, %c0_14] : memref<256x128xf32, #tpu.memory_space<vmem>>, vector<16x128xf32>
    tpu.vector_store %arg10[%c112, %c0_14], %22 {strides = array<i32>} : memref<256x128xf32, #tpu.memory_space<vmem>>, vector<16x128xf32>,
    %24 = vector.extract_strided_slice %7 {offsets = [0, 10], sizes = [16, 128], strides = [1, 1]} : vector<16x640xf32> to vector<16x128xf32>
    %c128 = arith.constant 128 : index
    %c0_15 = arith.constant 0 : index
    %25 = vector.load %arg10[%c128, %c0_15] : memref<256x128xf32, #tpu.memory_space<vmem>>, vector<16x128xf32>
    tpu.vector_store %arg10[%c128, %c0_15], %24 {strides = array<i32>} : memref<256x128xf32, #tpu.memory_space<vmem>>, vector<16x128xf32>,
    %26 = vector.extract_strided_slice %7 {offsets = [0, 138], sizes = [16, 128], strides = [1, 1]} : vector<16x640xf32> to vector<16x128xf32>
    %c144 = arith.constant 144 : index
    %c0_16 = arith.constant 0 : index
    %27 = vector.load %arg10[%c144, %c0_16] : memref<256x128xf32, #tpu.memory_space<vmem>>, vector<16x128xf32>
    tpu.vector_store %arg10[%c144, %c0_16], %26 {strides = array<i32>} : memref<256x128xf32, #tpu.memory_space<vmem>>, vector<16x128xf32>,
    %28 = vector.extract_strided_slice %7 {offsets = [0, 11], sizes = [16, 128], strides = [1, 1]} : vector<16x640xf32> to vector<16x128xf32>
    %c160 = arith.constant 160 : index
    %c0_17 = arith.constant 0 : index
    %29 = vector.load %arg10[%c160, %c0_17] : memref<256x128xf32, #tpu.memory_space<vmem>>, vector<16x128xf32>
    tpu.vector_store %arg10[%c160, %c0_17], %28 {strides = array<i32>} : memref<256x128xf32, #tpu.memory_space<vmem>>, vector<16x128xf32>,
    %30 = vector.extract_strided_slice %7 {offsets = [0, 139], sizes = [16, 128], strides = [1, 1]} : vector<16x640xf32> to vector<16x128xf32>
    %c176 = arith.constant 176 : index
    %c0_18 = arith.constant 0 : index
    %31 = vector.load %arg10[%c176, %c0_18] : memref<256x128xf32, #tpu.memory_space<vmem>>, vector<16x128xf32>
    tpu.vector_store %arg10[%c176, %c0_18], %30 {strides = array<i32>} : memref<256x128xf32, #tpu.memory_space<vmem>>, vector<16x128xf32>,
    %32 = vector.extract_strided_slice %7 {offsets = [0, 266], sizes = [16, 128], strides = [1, 1]} : vector<16x640xf32> to vector<16x128xf32>
    %c192 = arith.constant 192 : index
    %c0_19 = arith.constant 0 : index
    %33 = vector.load %arg10[%c192, %c0_19] : memref<256x128xf32, #tpu.memory_space<vmem>>, vector<16x128xf32>
    tpu.vector_store %arg10[%c192, %c0_19], %32 {strides = array<i32>} : memref<256x128xf32, #tpu.memory_space<vmem>>, vector<16x128xf32>,
    %34 = vector.extract_strided_slice %7 {offsets = [0, 394], sizes = [16, 128], strides = [1, 1]} : vector<16x640xf32> to vector<16x128xf32>
    %c208 = arith.constant 208 : index
    %c0_20 = arith.constant 0 : index
    %35 = vector.load %arg10[%c208, %c0_20] : memref<256x128xf32, #tpu.memory_space<vmem>>, vector<16x128xf32>
    tpu.vector_store %arg10[%c208, %c0_20], %34 {strides = array<i32>} : memref<256x128xf32, #tpu.memory_space<vmem>>, vector<16x128xf32>,
    %36 = vector.extract_strided_slice %7 {offsets = [0, 267], sizes = [16, 128], strides = [1, 1]} : vector<16x640xf32> to vector<16x128xf32>
    %c224 = arith.constant 224 : index
    %c0_21 = arith.constant 0 : index
    %37 = vector.load %arg10[%c224, %c0_21] : memref<256x128xf32, #tpu.memory_space<vmem>>, vector<16x128xf32>
    tpu.vector_store %arg10[%c224, %c0_21], %36 {strides = array<i32>} : memref<256x128xf32, #tpu.memory_space<vmem>>, vector<16x128xf32>,
    %38 = vector.extract_strided_slice %7 {offsets = [0, 395], sizes = [16, 128], strides = [1, 1]} : vector<16x640xf32> to vector<16x128xf32>
    %c240 = arith.constant 240 : index
    %c0_22 = arith.constant 0 : index
    %39 = vector.load %arg10[%c240, %c0_22] : memref<256x128xf32, #tpu.memory_space<vmem>>, vector<16x128xf32>
    tpu.vector_store %arg10[%c240, %c0_22], %38 {strides = array<i32>} : memref<256x128xf32, #tpu.memory_space<vmem>>, vector<16x128xf32>,
    %c0_23 = arith.constant 0 : index
    %c0_24 = arith.constant 0 : index
    %40 = vector.load %arg3[%c0_23, %c0_24] : memref<32x256xf32, #tpu.memory_space<vmem>>, vector<32x256xf32>
    %c0_25 = arith.constant 0 : index
    %c0_26 = arith.constant 0 : index
    %41 = vector.load %arg10[%c0_25, %c0_26] : memref<256x128xf32, #tpu.memory_space<vmem>>, vector<256x128xf32>
    %cst_27 = arith.constant dense<0.000000e+00> : vector<32x128xf32>
    %42 = tpu.matmul %40, %41, %cst_27 {dimension_numbers = #tpu.dot_dimension_numbers<[1], [0], [0], [1], [0, 0, 1, 1], [], []>} : vector<32x256xf32>, vector<256x128xf32>, vector<32x128xf32> -> vector<32x128xf32>
    %c0_28 = arith.constant 0 : index
    %c0_29 = arith.constant 0 : index
    %43 = vector.load %arg4[%c0_28, %c0_29] : memref<32x1xf32, #tpu.memory_space<vmem>>, vector<32x1xf32>
    %44 = vector.broadcast %43 : vector<32x1xf32> to vector<32x128xf32>
    %45 = arith.addf %42, %44 : vector<32x128xf32>
    %cst_30 = arith.constant 0.000000e+00 : f32
    %46 = vector.broadcast %cst_30 : f32 to vector<32x128xf32>
    %47 = arith.maximumf %45, %46 : vector<32x128xf32>
    %48 = vector.extract_strided_slice %47 {offsets = [0, 0], sizes = [1, 128], strides = [1, 1]} : vector<32x128xf32> to vector<1x128xf32>
    %c0_31 = arith.constant 0 : index
    %c0_32 = arith.constant 0 : index
    %49 = vector.load %arg11[%c0_31, %c0_32] : memref<1x4096xf32, #tpu.memory_space<vmem>>, vector<1x128xf32>
    tpu.vector_store %arg11[%c0_31, %c0_32], %48 {strides = array<i32>} : memref<1x4096xf32, #tpu.memory_space<vmem>>, vector<1x128xf32>,
    %50 = vector.extract_strided_slice %47 {offsets = [1, 0], sizes = [1, 128], strides = [1, 1]} : vector<32x128xf32> to vector<1x128xf32>
    %c0_33 = arith.constant 0 : index
    %c128_34 = arith.constant 128 : index
    %51 = vector.load %arg11[%c0_33, %c128_34] : memref<1x4096xf32, #tpu.memory_space<vmem>>, vector<1x128xf32>
    tpu.vector_store %arg11[%c0_33, %c128_34], %50 {strides = array<i32>} : memref<1x4096xf32, #tpu.memory_space<vmem>>, vector<1x128xf32>,
    %52 = vector.extract_strided_slice %47 {offsets = [2, 0], sizes = [1, 128], strides = [1, 1]} : vector<32x128xf32> to vector<1x128xf32>
    %c0_35 = arith.constant 0 : index
    %c256 = arith.constant 256 : index
    %53 = vector.load %arg11[%c0_35, %c256] : memref<1x4096xf32, #tpu.memory_space<vmem>>, vector<1x128xf32>
    tpu.vector_store %arg11[%c0_35, %c256], %52 {strides = array<i32>} : memref<1x4096xf32, #tpu.memory_space<vmem>>, vector<1x128xf32>,
    %54 = vector.extract_strided_slice %47 {offsets = [3, 0], sizes = [1, 128], strides = [1, 1]} : vector<32x128xf32> to vector<1x128xf32>
    %c0_36 = arith.constant 0 : index
    %c384 = arith.constant 384 : index
    %55 = vector.load %arg11[%c0_36, %c384] : memref<1x4096xf32, #tpu.memory_space<vmem>>, vector<1x128xf32>
    tpu.vector_store %arg11[%c0_36, %c384], %54 {strides = array<i32>} : memref<1x4096xf32, #tpu.memory_space<vmem>>, vector<1x128xf32>,
    %56 = vector.extract_strided_slice %47 {offsets = [4, 0], sizes = [1, 128], strides = [1, 1]} : vector<32x128xf32> to vector<1x128xf32>
    %c0_37 = arith.constant 0 : index
    %c512 = arith.constant 512 : index
    %57 = vector.load %arg11[%c0_37, %c512] : memref<1x4096xf32, #tpu.memory_space<vmem>>, vector<1x128xf32>
    tpu.vector_store %arg11[%c0_37, %c512], %56 {strides = array<i32>} : memref<1x4096xf32, #tpu.memory_space<vmem>>, vector<1x128xf32>,
    %58 = vector.extract_strided_slice %47 {offsets = [5, 0], sizes = [1, 128], strides = [1, 1]} : vector<32x128xf32> to vector<1x128xf32>
    %c0_38 = arith.constant 0 : index
    %c640 = arith.constant 640 : index
    %59 = vector.load %arg11[%c0_38, %c640] : memref<1x4096xf32, #tpu.memory_space<vmem>>, vector<1x128xf32>
    tpu.vector_store %arg11[%c0_38, %c640], %58 {strides = array<i32>} : memref<1x4096xf32, #tpu.memory_space<vmem>>, vector<1x128xf32>,
    %60 = vector.extract_strided_slice %47 {offsets = [6, 0], sizes = [1, 128], strides = [1, 1]} : vector<32x128xf32> to vector<1x128xf32>
    %c0_39 = arith.constant 0 : index
    %c768 = arith.constant 768 : index
    %61 = vector.load %arg11[%c0_39, %c768] : memref<1x4096xf32, #tpu.memory_space<vmem>>, vector<1x128xf32>
    tpu.vector_store %arg11[%c0_39, %c768], %60 {strides = array<i32>} : memref<1x4096xf32, #tpu.memory_space<vmem>>, vector<1x128xf32>,
    %62 = vector.extract_strided_slice %47 {offsets = [7, 0], sizes = [1, 128], strides = [1, 1]} : vector<32x128xf32> to vector<1x128xf32>
    %c0_40 = arith.constant 0 : index
    %c896 = arith.constant 896 : index
    %63 = vector.load %arg11[%c0_40, %c896] : memref<1x4096xf32, #tpu.memory_space<vmem>>, vector<1x128xf32>
    tpu.vector_store %arg11[%c0_40, %c896], %62 {strides = array<i32>} : memref<1x4096xf32, #tpu.memory_space<vmem>>, vector<1x128xf32>,
    %64 = vector.extract_strided_slice %47 {offsets = [8, 0], sizes = [1, 128], strides = [1, 1]} : vector<32x128xf32> to vector<1x128xf32>
    %c0_41 = arith.constant 0 : index
    %c1024 = arith.constant 1024 : index
    %65 = vector.load %arg11[%c0_41, %c1024] : memref<1x4096xf32, #tpu.memory_space<vmem>>, vector<1x128xf32>
    tpu.vector_store %arg11[%c0_41, %c1024], %64 {strides = array<i32>} : memref<1x4096xf32, #tpu.memory_space<vmem>>, vector<1x128xf32>,
    %66 = vector.extract_strided_slice %47 {offsets = [9, 0], sizes = [1, 128], strides = [1, 1]} : vector<32x128xf32> to vector<1x128xf32>
    %c0_42 = arith.constant 0 : index
    %c1152 = arith.constant 1152 : index
    %67 = vector.load %arg11[%c0_42, %c1152] : memref<1x4096xf32, #tpu.memory_space<vmem>>, vector<1x128xf32>
    tpu.vector_store %arg11[%c0_42, %c1152], %66 {strides = array<i32>} : memref<1x4096xf32, #tpu.memory_space<vmem>>, vector<1x128xf32>,
    %68 = vector.extract_strided_slice %47 {offsets = [10, 0], sizes = [1, 128], strides = [1, 1]} : vector<32x128xf32> to vector<1x128xf32>
    %c0_43 = arith.constant 0 : index
    %c1280 = arith.constant 1280 : index
    %69 = vector.load %arg11[%c0_43, %c1280] : memref<1x4096xf32, #tpu.memory_space<vmem>>, vector<1x128xf32>
    tpu.vector_store %arg11[%c0_43, %c1280], %68 {strides = array<i32>} : memref<1x4096xf32, #tpu.memory_space<vmem>>, vector<1x128xf32>,
    %70 = vector.extract_strided_slice %47 {offsets = [11, 0], sizes = [1, 128], strides = [1, 1]} : vector<32x128xf32> to vector<1x128xf32>
    %c0_44 = arith.constant 0 : index
    %c1408 = arith.constant 1408 : index
    %71 = vector.load %arg11[%c0_44, %c1408] : memref<1x4096xf32, #tpu.memory_space<vmem>>, vector<1x128xf32>
    tpu.vector_store %arg11[%c0_44, %c1408], %70 {strides = array<i32>} : memref<1x4096xf32, #tpu.memory_space<vmem>>, vector<1x128xf32>,
    %72 = vector.extract_strided_slice %47 {offsets = [12, 0], sizes = [1, 128], strides = [1, 1]} : vector<32x128xf32> to vector<1x128xf32>
    %c0_45 = arith.constant 0 : index
    %c1536 = arith.constant 1536 : index
    %73 = vector.load %arg11[%c0_45, %c1536] : memref<1x4096xf32, #tpu.memory_space<vmem>>, vector<1x128xf32>
    tpu.vector_store %arg11[%c0_45, %c1536], %72 {strides = array<i32>} : memref<1x4096xf32, #tpu.memory_space<vmem>>, vector<1x128xf32>,
    %74 = vector.extract_strided_slice %47 {offsets = [13, 0], sizes = [1, 128], strides = [1, 1]} : vector<32x128xf32> to vector<1x128xf32>
    %c0_46 = arith.constant 0 : index
    %c1664 = arith.constant 1664 : index
    %75 = vector.load %arg11[%c0_46, %c1664] : memref<1x4096xf32, #tpu.memory_space<vmem>>, vector<1x128xf32>
    tpu.vector_store %arg11[%c0_46, %c1664], %74 {strides = array<i32>} : memref<1x4096xf32, #tpu.memory_space<vmem>>, vector<1x128xf32>,
    %76 = vector.extract_strided_slice %47 {offsets = [14, 0], sizes = [1, 128], strides = [1, 1]} : vector<32x128xf32> to vector<1x128xf32>
    %c0_47 = arith.constant 0 : index
    %c1792 = arith.constant 1792 : index
    %77 = vector.load %arg11[%c0_47, %c1792] : memref<1x4096xf32, #tpu.memory_space<vmem>>, vector<1x128xf32>
    tpu.vector_store %arg11[%c0_47, %c1792], %76 {strides = array<i32>} : memref<1x4096xf32, #tpu.memory_space<vmem>>, vector<1x128xf32>,
    %78 = vector.extract_strided_slice %47 {offsets = [15, 0], sizes = [1, 128], strides = [1, 1]} : vector<32x128xf32> to vector<1x128xf32>
    %c0_48 = arith.constant 0 : index
    %c1920 = arith.constant 1920 : index
    %79 = vector.load %arg11[%c0_48, %c1920] : memref<1x4096xf32, #tpu.memory_space<vmem>>, vector<1x128xf32>
    tpu.vector_store %arg11[%c0_48, %c1920], %78 {strides = array<i32>} : memref<1x4096xf32, #tpu.memory_space<vmem>>, vector<1x128xf32>,
    %80 = vector.extract_strided_slice %47 {offsets = [16, 0], sizes = [1, 128], strides = [1, 1]} : vector<32x128xf32> to vector<1x128xf32>
    %c0_49 = arith.constant 0 : index
    %c2048 = arith.constant 2048 : index
    %81 = vector.load %arg11[%c0_49, %c2048] : memref<1x4096xf32, #tpu.memory_space<vmem>>, vector<1x128xf32>
    tpu.vector_store %arg11[%c0_49, %c2048], %80 {strides = array<i32>} : memref<1x4096xf32, #tpu.memory_space<vmem>>, vector<1x128xf32>,
    %82 = vector.extract_strided_slice %47 {offsets = [17, 0], sizes = [1, 128], strides = [1, 1]} : vector<32x128xf32> to vector<1x128xf32>
    %c0_50 = arith.constant 0 : index
    %c2176 = arith.constant 2176 : index
    %83 = vector.load %arg11[%c0_50, %c2176] : memref<1x4096xf32, #tpu.memory_space<vmem>>, vector<1x128xf32>
    tpu.vector_store %arg11[%c0_50, %c2176], %82 {strides = array<i32>} : memref<1x4096xf32, #tpu.memory_space<vmem>>, vector<1x128xf32>,
    %84 = vector.extract_strided_slice %47 {offsets = [18, 0], sizes = [1, 128], strides = [1, 1]} : vector<32x128xf32> to vector<1x128xf32>
    %c0_51 = arith.constant 0 : index
    %c2304 = arith.constant 2304 : index
    %85 = vector.load %arg11[%c0_51, %c2304] : memref<1x4096xf32, #tpu.memory_space<vmem>>, vector<1x128xf32>
    tpu.vector_store %arg11[%c0_51, %c2304], %84 {strides = array<i32>} : memref<1x4096xf32, #tpu.memory_space<vmem>>, vector<1x128xf32>,
    %86 = vector.extract_strided_slice %47 {offsets = [19, 0], sizes = [1, 128], strides = [1, 1]} : vector<32x128xf32> to vector<1x128xf32>
    %c0_52 = arith.constant 0 : index
    %c2432 = arith.constant 2432 : index
    %87 = vector.load %arg11[%c0_52, %c2432] : memref<1x4096xf32, #tpu.memory_space<vmem>>, vector<1x128xf32>
    tpu.vector_store %arg11[%c0_52, %c2432], %86 {strides = array<i32>} : memref<1x4096xf32, #tpu.memory_space<vmem>>, vector<1x128xf32>,
    %88 = vector.extract_strided_slice %47 {offsets = [20, 0], sizes = [1, 128], strides = [1, 1]} : vector<32x128xf32> to vector<1x128xf32>
    %c0_53 = arith.constant 0 : index
    %c2560 = arith.constant 2560 : index
    %89 = vector.load %arg11[%c0_53, %c2560] : memref<1x4096xf32, #tpu.memory_space<vmem>>, vector<1x128xf32>
    tpu.vector_store %arg11[%c0_53, %c2560], %88 {strides = array<i32>} : memref<1x4096xf32, #tpu.memory_space<vmem>>, vector<1x128xf32>,
    %90 = vector.extract_strided_slice %47 {offsets = [21, 0], sizes = [1, 128], strides = [1, 1]} : vector<32x128xf32> to vector<1x128xf32>
    %c0_54 = arith.constant 0 : index
    %c2688 = arith.constant 2688 : index
    %91 = vector.load %arg11[%c0_54, %c2688] : memref<1x4096xf32, #tpu.memory_space<vmem>>, vector<1x128xf32>
    tpu.vector_store %arg11[%c0_54, %c2688], %90 {strides = array<i32>} : memref<1x4096xf32, #tpu.memory_space<vmem>>, vector<1x128xf32>,
    %92 = vector.extract_strided_slice %47 {offsets = [22, 0], sizes = [1, 128], strides = [1, 1]} : vector<32x128xf32> to vector<1x128xf32>
    %c0_55 = arith.constant 0 : index
    %c2816 = arith.constant 2816 : index
    %93 = vector.load %arg11[%c0_55, %c2816] : memref<1x4096xf32, #tpu.memory_space<vmem>>, vector<1x128xf32>
    tpu.vector_store %arg11[%c0_55, %c2816], %92 {strides = array<i32>} : memref<1x4096xf32, #tpu.memory_space<vmem>>, vector<1x128xf32>,
    %94 = vector.extract_strided_slice %47 {offsets = [23, 0], sizes = [1, 128], strides = [1, 1]} : vector<32x128xf32> to vector<1x128xf32>
    %c0_56 = arith.constant 0 : index
    %c2944 = arith.constant 2944 : index
    %95 = vector.load %arg11[%c0_56, %c2944] : memref<1x4096xf32, #tpu.memory_space<vmem>>, vector<1x128xf32>
    tpu.vector_store %arg11[%c0_56, %c2944], %94 {strides = array<i32>} : memref<1x4096xf32, #tpu.memory_space<vmem>>, vector<1x128xf32>,
    %96 = vector.extract_strided_slice %47 {offsets = [24, 0], sizes = [1, 128], strides = [1, 1]} : vector<32x128xf32> to vector<1x128xf32>
    %c0_57 = arith.constant 0 : index
    %c3072 = arith.constant 3072 : index
    %97 = vector.load %arg11[%c0_57, %c3072] : memref<1x4096xf32, #tpu.memory_space<vmem>>, vector<1x128xf32>
    tpu.vector_store %arg11[%c0_57, %c3072], %96 {strides = array<i32>} : memref<1x4096xf32, #tpu.memory_space<vmem>>, vector<1x128xf32>,
    %98 = vector.extract_strided_slice %47 {offsets = [25, 0], sizes = [1, 128], strides = [1, 1]} : vector<32x128xf32> to vector<1x128xf32>
    %c0_58 = arith.constant 0 : index
    %c3200 = arith.constant 3200 : index
    %99 = vector.load %arg11[%c0_58, %c3200] : memref<1x4096xf32, #tpu.memory_space<vmem>>, vector<1x128xf32>
    tpu.vector_store %arg11[%c0_58, %c3200], %98 {strides = array<i32>} : memref<1x4096xf32, #tpu.memory_space<vmem>>, vector<1x128xf32>,
    %100 = vector.extract_strided_slice %47 {offsets = [26, 0], sizes = [1, 128], strides = [1, 1]} : vector<32x128xf32> to vector<1x128xf32>
    %c0_59 = arith.constant 0 : index
    %c3328 = arith.constant 3328 : index
    %101 = vector.load %arg11[%c0_59, %c3328] : memref<1x4096xf32, #tpu.memory_space<vmem>>, vector<1x128xf32>
    tpu.vector_store %arg11[%c0_59, %c3328], %100 {strides = array<i32>} : memref<1x4096xf32, #tpu.memory_space<vmem>>, vector<1x128xf32>,
    %102 = vector.extract_strided_slice %47 {offsets = [27, 0], sizes = [1, 128], strides = [1, 1]} : vector<32x128xf32> to vector<1x128xf32>
    %c0_60 = arith.constant 0 : index
    %c3456 = arith.constant 3456 : index
    %103 = vector.load %arg11[%c0_60, %c3456] : memref<1x4096xf32, #tpu.memory_space<vmem>>, vector<1x128xf32>
    tpu.vector_store %arg11[%c0_60, %c3456], %102 {strides = array<i32>} : memref<1x4096xf32, #tpu.memory_space<vmem>>, vector<1x128xf32>,
    %104 = vector.extract_strided_slice %47 {offsets = [28, 0], sizes = [1, 128], strides = [1, 1]} : vector<32x128xf32> to vector<1x128xf32>
    %c0_61 = arith.constant 0 : index
    %c3584 = arith.constant 3584 : index
    %105 = vector.load %arg11[%c0_61, %c3584] : memref<1x4096xf32, #tpu.memory_space<vmem>>, vector<1x128xf32>
    tpu.vector_store %arg11[%c0_61, %c3584], %104 {strides = array<i32>} : memref<1x4096xf32, #tpu.memory_space<vmem>>, vector<1x128xf32>,
    %106 = vector.extract_strided_slice %47 {offsets = [29, 0], sizes = [1, 128], strides = [1, 1]} : vector<32x128xf32> to vector<1x128xf32>
    %c0_62 = arith.constant 0 : index
    %c3712 = arith.constant 3712 : index
    %107 = vector.load %arg11[%c0_62, %c3712] : memref<1x4096xf32, #tpu.memory_space<vmem>>, vector<1x128xf32>
    tpu.vector_store %arg11[%c0_62, %c3712], %106 {strides = array<i32>} : memref<1x4096xf32, #tpu.memory_space<vmem>>, vector<1x128xf32>,
    %108 = vector.extract_strided_slice %47 {offsets = [30, 0], sizes = [1, 128], strides = [1, 1]} : vector<32x128xf32> to vector<1x128xf32>
    %c0_63 = arith.constant 0 : index
    %c3840 = arith.constant 3840 : index
    %109 = vector.load %arg11[%c0_63, %c3840] : memref<1x4096xf32, #tpu.memory_space<vmem>>, vector<1x128xf32>
    tpu.vector_store %arg11[%c0_63, %c3840], %108 {strides = array<i32>} : memref<1x4096xf32, #tpu.memory_space<vmem>>, vector<1x128xf32>,
    %110 = vector.extract_strided_slice %47 {offsets = [31, 0], sizes = [1, 128], strides = [1, 1]} : vector<32x128xf32> to vector<1x128xf32>
    %c0_64 = arith.constant 0 : index
    %c3968 = arith.constant 3968 : index
    %111 = vector.load %arg11[%c0_64, %c3968] : memref<1x4096xf32, #tpu.memory_space<vmem>>, vector<1x128xf32>
    tpu.vector_store %arg11[%c0_64, %c3968], %110 {strides = array<i32>} : memref<1x4096xf32, #tpu.memory_space<vmem>>, vector<1x128xf32>,
    tpu.wait_dma2 semaphore(%arg13 : memref<!tpu.dma_semaphore, #tpu.memory_space<semaphore_mem>>) src(%arg5 : memref<4096x256xf32, #tpu.memory_space<any>>) dst(%arg12 : memref<4096x256xf32, #tpu.memory_space<vmem>>)
    %c0_65 = arith.constant 0 : index
    %c0_66 = arith.constant 0 : index
    %112 = vector.load %arg11[%c0_65, %c0_66] : memref<1x4096xf32, #tpu.memory_space<vmem>>, vector<1x4096xf32>
    %c0_67 = arith.constant 0 : index
    %c0_68 = arith.constant 0 : index
    %113 = vector.load %arg12[%c0_67, %c0_68] : memref<4096x256xf32, #tpu.memory_space<vmem>>, vector<4096x256xf32>
    %cst_69 = arith.constant dense<0.000000e+00> : vector<1x256xf32>
    %114 = tpu.matmul %112, %113, %cst_69 {dimension_numbers = #tpu.dot_dimension_numbers<[1], [0], [0], [1], [0, 0, 1, 1], [], []>} : vector<1x4096xf32>, vector<4096x256xf32>, vector<1x256xf32> -> vector<1x256xf32>
    %c0_70 = arith.constant 0 : index
    %c0_71 = arith.constant 0 : index
    %115 = vector.load %arg6[%c0_70, %c0_71] : memref<1x256xf32, #tpu.memory_space<vmem>>, vector<1x256xf32>
    %116 = arith.addf %114, %115 : vector<1x256xf32>
    %cst_72 = arith.constant 0.000000e+00 : f32
    %117 = vector.broadcast %cst_72 : f32 to vector<1x256xf32>
    %118 = arith.maximumf %116, %117 : vector<1x256xf32>
    %c0_73 = arith.constant 0 : index
    %c0_74 = arith.constant 0 : index
    %119 = vector.load %arg7[%c0_73, %c0_74] : memref<256x6xf32, #tpu.memory_space<vmem>>, vector<256x6xf32>
    %cst_75 = arith.constant dense<0.000000e+00> : vector<1x6xf32>
    %120 = tpu.matmul %118, %119, %cst_75 {dimension_numbers = #tpu.dot_dimension_numbers<[1], [0], [0], [1], [0, 0, 1, 1], [], []>} : vector<1x256xf32>, vector<256x6xf32>, vector<1x6xf32> -> vector<1x6xf32>
    %c0_76 = arith.constant 0 : index
    %c0_77 = arith.constant 0 : index
    %121 = vector.load %arg8[%c0_76, %c0_77] : memref<1x6xf32, #tpu.memory_space<vmem>>, vector<1x6xf32>
    %122 = arith.addf %120, %121 : vector<1x6xf32>
    %c0_78 = arith.constant 0 : index
    %c0_79 = arith.constant 0 : index
    %123 = vector.load %arg9[%c0_78, %c0_79] : memref<1x6xf32, #tpu.memory_space<vmem>>, vector<1x6xf32>
    tpu.vector_store %arg9[%c0_78, %c0_79], %122 {strides = array<i32>} : memref<1x6xf32, #tpu.memory_space<vmem>>, vector<1x6xf32>,
    return
  }
}

</mosaic_0001>

<bundles_post_ra>
// kernel: policy_cnn_forward.1
= control target key start
LH: loop header
LB: loop body
LE: loop exit
PB: predicated region body
PF: predicated region fallthrough
CT: control target
= control target key end

     0   :  { %14 = vsyncpa [#allocation7], 0  ;;  %s12753_s0 = inlined_call_operand.vmem [shape: f32[256,640], index: 0, kind: input, shape index: {}]   ;;  %s12754_s1 = inlined_call_operand.vmem [shape: f32[16,256], index: 1, kind: input, shape index: {}]   ;;  %s12755_s2 = inlined_call_operand.vmem [shape: f32[16,1], index: 2, kind: input, shape index: {}]   ;;  %s12756_s3 = inlined_call_operand.vmem [shape: f32[32,256], index: 3, kind: input, shape index: {}]   ;;  %s12757_s4 = inlined_call_operand.vmem [shape: f32[32,1], index: 4, kind: input, shape index: {}]   ;;  %s12758_s5 = inlined_call_operand.vmem [shape: f32[4096,256], index: 5, kind: input, shape index: {}]   ;;  %s12759_s6 = inlined_call_operand.vmem [shape: f32[1,256], index: 6, kind: input, shape index: {}]   ;;  %s12760_s7 = inlined_call_operand.vmem [shape: f32[256,6], index: 7, kind: input, shape index: {}]   ;;  %s12761_s8 = inlined_call_operand.vmem [shape: f32[1,6], index: 8, kind: input, shape index: {}]   ;;  %s12762_s9 = inlined_call_operand.hbm [shape: f32[1,6], index: 9, kind: output, shape index: {}]  }
   0x1   :  { %v5601_v0 = vld [vmem:[%s12758_s5] sm:$0xff]  ;;  %v5606_v1 = vld [vmem:[%s12758_s5 + $0x8] sm:$0xff]  ;;  %v5611_v2 = vld [vmem:[%s12758_s5 + $0x10] sm:$0xff] }
   0x2   :  { %12771 = vst [vmem:[#allocation11_spill] sm:$0xff] %v5601_v0  ;;  %v5616_v3 = vld [vmem:[%s12758_s5 + $0x18] sm:$0xff]  ;;  %v5621_v4 = vld [vmem:[%s12758_s5 + $0x20] sm:$0xff]  ;;  %v5626_v5 = vld [vmem:[%s12758_s5 + $0x28] sm:$0xff] }
   0x3   :  { %12772 = vst [vmem:[#allocation12_spill] sm:$0xff] %v5606_v1  ;;  %v5631_v6 = vld [vmem:[%s12758_s5 + $0x30] sm:$0xff]  ;;  %v5636_v7 = vld [vmem:[%s12758_s5 + $0x38] sm:$0xff]  ;;  %v5641_v8 = vld [vmem:[%s12758_s5 + $0x40] sm:$0xff] }
   0x4   :  { %12773 = vst [vmem:[#allocation13_spill] sm:$0xff] %v5611_v2  ;;  %v5646_v9 = vld [vmem:[%s12758_s5 + $0x48] sm:$0xff]  ;;  %v5651_v10 = vld [vmem:[%s12758_s5 + $0x50] sm:$0xff]  ;;  %v5656_v11 = vld [vmem:[%s12758_s5 + $0x58] sm:$0xff] }
   0x5   :  { %12774 = vst [vmem:[#allocation14_spill] sm:$0xff] %v5616_v3  ;;  %v5661_v12 = vld [vmem:[%s12758_s5 + $0x60] sm:$0xff]  ;;  %v5666_v13 = vld [vmem:[%s12758_s5 + $0x68] sm:$0xff]  ;;  %v5671_v14 = vld [vmem:[%s12758_s5 + $0x70] sm:$0xff] }
   0x6   :  { %12775 = vst [vmem:[#allocation15_spill] sm:$0xff] %v5621_v4  ;;  %v5676_v15 = vld [vmem:[%s12758_s5 + $0x78] sm:$0xff]  ;;  %v5681_v16 = vld [vmem:[%s12758_s5 + $0x80] sm:$0xff]  ;;  %v5686_v17 = vld [vmem:[%s12758_s5 + $0x88] sm:$0xff] }
   0x7   :  { %12776 = vst [vmem:[#allocation16_spill] sm:$0xff] %v5626_v5  ;;  %v5691_v18 = vld [vmem:[%s12758_s5 + $0x90] sm:$0xff]  ;;  %v5696_v19 = vld [vmem:[%s12758_s5 + $0x98] sm:$0xff]  ;;  %v5701_v20 = vld [vmem:[%s12758_s5 + $0xa0] sm:$0xff] }
   0x8   :  { %12777 = vst [vmem:[#allocation17_spill] sm:$0xff] %v5631_v6  ;;  %v5706_v21 = vld [vmem:[%s12758_s5 + $0xa8] sm:$0xff]  ;;  %v5711_v22 = vld [vmem:[%s12758_s5 + $0xb0] sm:$0xff]  ;;  %v5716_v23 = vld [vmem:[%s12758_s5 + $0xb8] sm:$0xff] }
   0x9   :  { %12778 = vst [vmem:[#allocation18_spill] sm:$0xff] %v5636_v7  ;;  %v5721_v24 = vld [vmem:[%s12758_s5 + $0xc0] sm:$0xff]  ;;  %v5726_v25 = vld [vmem:[%s12758_s5 + $0xc8] sm:$0xff]  ;;  %v5731_v26 = vld [vmem:[%s12758_s5 + $0xd0] sm:$0xff] }
   0xa   :  { %12779 = vst [vmem:[#allocation19_spill] sm:$0xff] %v5641_v8  ;;  %v5736_v27 = vld [vmem:[%s12758_s5 + $0xd8] sm:$0xff]  ;;  %v5741_v28 = vld [vmem:[%s12758_s5 + $0xe0] sm:$0xff]  ;;  %v5746_v29 = vld [vmem:[%s12758_s5 + $0xe8] sm:$0xff] }
   0xb   :  { %12780 = vst [vmem:[#allocation20_spill] sm:$0xff] %v5646_v9  ;;  %v5751_v30 = vld [vmem:[%s12758_s5 + $0xf0] sm:$0xff]  ;;  %v5756_v31 = vld [vmem:[%s12758_s5 + $0xf8] sm:$0xff]  ;;  %v5761_v32 = vld [vmem:[%s12758_s5 + $0x100] sm:$0xff] }
   0xc   :  { %12781 = vst [vmem:[#allocation21_spill] sm:$0xff] %v5651_v10  ;;  %v5766_v33 = vld [vmem:[%s12758_s5 + $0x108] sm:$0xff]  ;;  %v5771_v34 = vld [vmem:[%s12758_s5 + $0x110] sm:$0xff]  ;;  %v5776_v35 = vld [vmem:[%s12758_s5 + $0x118] sm:$0xff] }
   0xd   :  { %12782 = vst [vmem:[#allocation22_spill] sm:$0xff] %v5656_v11  ;;  %v5781_v36 = vld [vmem:[%s12758_s5 + $0x120] sm:$0xff]  ;;  %v5786_v37 = vld [vmem:[%s12758_s5 + $0x128] sm:$0xff]  ;;  %v5791_v38 = vld [vmem:[%s12758_s5 + $0x130] sm:$0xff] }
   0xe   :  { %12783 = vst [vmem:[#allocation23_spill] sm:$0xff] %v5661_v12  ;;  %v5796_v39 = vld [vmem:[%s12758_s5 + $0x138] sm:$0xff]  ;;  %v5801_v40 = vld [vmem:[%s12758_s5 + $0x140] sm:$0xff]  ;;  %v5806_v41 = vld [vmem:[%s12758_s5 + $0x148] sm:$0xff] }
   0xf   :  { %12784 = vst [vmem:[#allocation24_spill] sm:$0xff] %v5666_v13  ;;  %v5811_v42 = vld [vmem:[%s12758_s5 + $0x150] sm:$0xff]  ;;  %v5816_v43 = vld [vmem:[%s12758_s5 + $0x158] sm:$0xff]  ;;  %v5821_v44 = vld [vmem:[%s12758_s5 + $0x160] sm:$0xff] }
  0x10   :  { %12785 = vst [vmem:[#allocation25_spill] sm:$0xff] %v5676_v15  ;;  %v5826_v45 = vld [vmem:[%s12758_s5 + $0x168] sm:$0xff]  ;;  %v5831_v46 = vld [vmem:[%s12758_s5 + $0x170] sm:$0xff]  ;;  %v5836_v47 = vld [vmem:[%s12758_s5 + $0x178] sm:$0xff] }
  0x11   :  { %12786 = vst [vmem:[#allocation26_spill] sm:$0xff] %v5686_v17  ;;  %v5841_v48 = vld [vmem:[%s12758_s5 + $0x180] sm:$0xff]  ;;  %v5846_v49 = vld [vmem:[%s12758_s5 + $0x188] sm:$0xff]  ;;  %v5851_v50 = vld [vmem:[%s12758_s5 + $0x190] sm:$0xff] }
  0x12   :  { %12787 = vst [vmem:[#allocation27_spill] sm:$0xff] %v5696_v19  ;;  %v5856_v51 = vld [vmem:[%s12758_s5 + $0x198] sm:$0xff]  ;;  %v5861_v52 = vld [vmem:[%s12758_s5 + $0x1a0] sm:$0xff]  ;;  %v5866_v53 = vld [vmem:[%s12758_s5 + $0x1a8] sm:$0xff] }
  0x13   :  { %12788 = vst [vmem:[#allocation28_spill] sm:$0xff] %v5706_v21  ;;  %v5871_v54 = vld [vmem:[%s12758_s5 + $0x1b0] sm:$0xff]  ;;  %v5876_v55 = vld [vmem:[%s12758_s5 + $0x1b8] sm:$0xff]  ;;  %v5881_v56 = vld [vmem:[%s12758_s5 + $0x1c0] sm:$0xff] }
  0x14   :  { %12789 = vst [vmem:[#allocation29_spill] sm:$0xff] %v5716_v23  ;;  %v5886_v57 = vld [vmem:[%s12758_s5 + $0x1c8] sm:$0xff]  ;;  %v5891_v58 = vld [vmem:[%s12758_s5 + $0x1d0] sm:$0xff]  ;;  %v5896_v59 = vld [vmem:[%s12758_s5 + $0x1d8] sm:$0xff] }
  0x15   :  { %12790 = vst [vmem:[#allocation30_spill] sm:$0xff] %v5726_v25  ;;  %v5901_v60 = vld [vmem:[%s12758_s5 + $0x1e0] sm:$0xff]  ;;  %v5906_v61 = vld [vmem:[%s12758_s5 + $0x1e8] sm:$0xff]  ;;  %v5911_v62 = vld [vmem:[%s12758_s5 + $0x1f0] sm:$0xff] }
  0x16   :  { %12791 = vst [vmem:[#allocation31_spill] sm:$0xff] %v5736_v27  ;;  %v5916_v63 = vld [vmem:[%s12758_s5 + $0x1f8] sm:$0xff]  ;;  %v5931_v1 = vld [vmem:[%s12758_s5 + $0x210] sm:$0xff]  ;;  %v5941_v3 = vld [vmem:[%s12758_s5 + $0x220] sm:$0xff] }
  0x17   :  { %12792 = vst [vmem:[#allocation32_spill] sm:$0xff] %v5746_v29  ;;  %v5956_v5 = vld [vmem:[%s12758_s5 + $0x238] sm:$0xff]  ;;  %v6011_v11 = vld [vmem:[%s12758_s5 + $0x290] sm:$0xff]  ;;  %v6026_v13 = vld [vmem:[%s12758_s5 + $0x2a8] sm:$0xff] }
  0x18   :  { %12793 = vst [vmem:[#allocation33_spill] sm:$0xff] %v5756_v31  ;;  %v5976_v7 = vld [vmem:[%s12758_s5 + $0x258] sm:$0xff]  ;;  %v6041_v15 = vld [vmem:[%s12758_s5 + $0x2c0] sm:$0xff]  ;;  %v6071_v19 = vld [vmem:[%s12758_s5 + $0x2f0] sm:$0xff] }
  0x19   :  { %12794 = vst [vmem:[#allocation34_spill] sm:$0xff] %v5761_v32  ;;  %v5996_v9 = vld [vmem:[%s12758_s5 + $0x278] sm:$0xff]  ;;  %v6086_v21 = vld [vmem:[%s12758_s5 + $0x308] sm:$0xff]  ;;  %v6101_v23 = vld [vmem:[%s12758_s5 + $0x320] sm:$0xff] }
  0x1a   :  { %12795 = vst [vmem:[#allocation35_spill] sm:$0xff] %v5766_v33  ;;  %v5921_v33 = vld [vmem:[%s12758_s5 + $0x200] sm:$0xff]  ;;  %v6056_v17 = vld [vmem:[%s12758_s5 + $0x2d8] sm:$0xff]  ;;  %v6126_v25 = vld [vmem:[%s12758_s5 + $0x348] sm:$0xff] }
  0x1b   :  { %12796 = vst [vmem:[#allocation36_spill] sm:$0xff] %v5771_v34  ;;  %v6156_v27 = vld [vmem:[%s12758_s5 + $0x378] sm:$0xff]  ;;  %v6186_v29 = vld [vmem:[%s12758_s5 + $0x3a8] sm:$0xff] }
  0x1c   :  { %12797 = vst [vmem:[#allocation37_spill] sm:$0xff] %v5776_v35  ;;  %v5926_v35 = vld [vmem:[%s12758_s5 + $0x208] sm:$0xff] }
  0x1d   :  { %12798 = vst [vmem:[#allocation38_spill] sm:$0xff] %v5781_v36  ;;  %v6206_v31 = vld [vmem:[%s12758_s5 + $0x3c8] sm:$0xff] }
  0x1e   :  { %12799 = vst [vmem:[#allocation39_spill] sm:$0xff] %v5786_v37  ;;  %v5936_v37 = vld [vmem:[%s12758_s5 + $0x218] sm:$0xff]  ;;  %v6226_v32 = vld [vmem:[%s12758_s5 + $0x3e8] sm:$0xff] }
  0x1f   :  { %12800 = vst [vmem:[#allocation40_spill] sm:$0xff] %v5791_v38  ;;  %v6246_v0 = vld [vmem:[%s12758_s5 + $0x408] sm:$0xff] }
  0x20   :  { %12801 = vst [vmem:[#allocation41_spill] sm:$0xff] %v5796_v39  ;;  %v5946_v39 = vld [vmem:[%s12758_s5 + $0x228] sm:$0xff] }
  0x21   :  { %12802 = vst [vmem:[#allocation42_spill] sm:$0xff] %v5801_v40 }
  0x22   :  { %12803 = vst [vmem:[#allocation43_spill] sm:$0xff] %v5806_v41  ;;  %v5966_v41 = vld [vmem:[%s12758_s5 + $0x248] sm:$0xff] }
  0x23   :  { %12804 = vst [vmem:[#allocation44_spill] sm:$0xff] %v5811_v42 }
  0x24   :  { %12805 = vst [vmem:[#allocation45_spill] sm:$0xff] %v5816_v43  ;;  %v5986_v43 = vld [vmem:[%s12758_s5 + $0x268] sm:$0xff] }
  0x25   :  { %12806 = vst [vmem:[#allocation46_spill] sm:$0xff] %v5821_v44 }
  0x26   :  { %12807 = vst [vmem:[#allocation47_spill] sm:$0xff] %v5826_v45  ;;  %v6006_v45 = vld [vmem:[%s12758_s5 + $0x288] sm:$0xff] }
  0x27   :  { %12808 = vst [vmem:[#allocation48_spill] sm:$0xff] %v5836_v47  ;;  %v6021_v47 = vld [vmem:[%s12758_s5 + $0x2a0] sm:$0xff] }
  0x28   :  { %12809 = vst [vmem:[#allocation49_spill] sm:$0xff] %v5846_v49  ;;  %v6036_v49 = vld [vmem:[%s12758_s5 + $0x2b8] sm:$0xff] }
  0x29   :  { %12810 = vst [vmem:[#allocation50_spill] sm:$0xff] %v5856_v51  ;;  %v6051_v51 = vld [vmem:[%s12758_s5 + $0x2d0] sm:$0xff] }
  0x2a   :  { %12811 = vst [vmem:[#allocation51_spill] sm:$0xff] %v5866_v53  ;;  %v6066_v53 = vld [vmem:[%s12758_s5 + $0x2e8] sm:$0xff] }
  0x2b   :  { %12812 = vst [vmem:[#allocation52_spill] sm:$0xff] %v5876_v55  ;;  %v6081_v55 = vld [vmem:[%s12758_s5 + $0x300] sm:$0xff] }
  0x2c   :  { %12813 = vst [vmem:[#allocation53_spill] sm:$0xff] %v5886_v57  ;;  %v6096_v57 = vld [vmem:[%s12758_s5 + $0x318] sm:$0xff] }
  0x2d   :  { %12814 = vst [vmem:[#allocation54_spill] sm:$0xff] %v5896_v59  ;;  %v6116_v59 = vld [vmem:[%s12758_s5 + $0x338] sm:$0xff] }
  0x2e   :  { %12815 = vst [vmem:[#allocation55_spill] sm:$0xff] %v5906_v61  ;;  %v6146_v61 = vld [vmem:[%s12758_s5 + $0x368] sm:$0xff] }
  0x2f   :  { %12816 = vst [vmem:[#allocation56_spill] sm:$0xff] %v5916_v63  ;;  %v6176_v63 = vld [vmem:[%s12758_s5 + $0x398] sm:$0xff] }
  0x30   :  { %12817 = vst [vmem:[#allocation57_spill] sm:$0xff] %v5921_v33  ;;  %v6236_v33 = vld [vmem:[%s12758_s5 + $0x3f8] sm:$0xff] }
  0x31   :  { %12818 = vst [vmem:[#allocation58_spill] sm:$0xff] %v5926_v35  ;;  %v5951_v35 = vld [vmem:[%s12758_s5 + $0x230] sm:$0xff] }
  0x32   :  { %12819 = vst [vmem:[#allocation59_spill] sm:$0xff] %v5931_v1 }
  0x33   :  { %12820 = vst [vmem:[#allocation60_spill] sm:$0xff] %v5936_v37  ;;  %v5961_v37 = vld [vmem:[%s12758_s5 + $0x240] sm:$0xff] }
  0x34   :  { %12821 = vst [vmem:[#allocation61_spill] sm:$0xff] %v5941_v3 }
  0x35   :  { %12822 = vst [vmem:[#allocation62_spill] sm:$0xff] %v5946_v39  ;;  %v5971_v39 = vld [vmem:[%s12758_s5 + $0x250] sm:$0xff] }
  0x36   :  { %12823 = vst [vmem:[#allocation63_spill] sm:$0xff] %v5951_v35 }
  0x37   :  { %12824 = vst [vmem:[#allocation64_spill] sm:$0xff] %v5956_v5  ;;  %v5981_v5 = vld [vmem:[%s12758_s5 + $0x260] sm:$0xff] }
  0x38   :  { %12825 = vst [vmem:[#allocation65_spill] sm:$0xff] %v5961_v37 }
  0x39   :  { %12826 = vst [vmem:[#allocation66_spill] sm:$0xff] %v5966_v41  ;;  %v5991_v41 = vld [vmem:[%s12758_s5 + $0x270] sm:$0xff] }
  0x3a   :  { %12827 = vst [vmem:[#allocation67_spill] sm:$0xff] %v5971_v39 }
  0x3b   :  { %12828 = vst [vmem:[#allocation68_spill] sm:$0xff] %v5976_v7  ;;  %v6001_v7 = vld [vmem:[%s12758_s5 + $0x280] sm:$0xff] }
  0x3c   :  { %12829 = vst [vmem:[#allocation69_spill] sm:$0xff] %v5981_v5 }
  0x3d   :  { %12830 = vst [vmem:[#allocation70_spill] sm:$0xff] %v5986_v43  ;;  %v6016_v43 = vld [vmem:[%s12758_s5 + $0x298] sm:$0xff] }
  0x3e   :  { %12831 = vst [vmem:[#allocation71_spill] sm:$0xff] %v5996_v9  ;;  %v6031_v9 = vld [vmem:[%s12758_s5 + $0x2b0] sm:$0xff] }
  0x3f   :  { %12832 = vst [vmem:[#allocation72_spill] sm:$0xff] %v6006_v45  ;;  %v6046_v45 = vld [vmem:[%s12758_s5 + $0x2c8] sm:$0xff] }
  0x40   :  { %12833 = vst [vmem:[#allocation73_spill] sm:$0xff] %v6016_v43  ;;  %v6061_v43 = vld [vmem:[%s12758_s5 + $0x2e0] sm:$0xff] }
  0x41   :  { %12834 = vst [vmem:[#allocation74_spill] sm:$0xff] %v6026_v13  ;;  %v6076_v13 = vld [vmem:[%s12758_s5 + $0x2f8] sm:$0xff] }
  0x42   :  { %12835 = vst [vmem:[#allocation75_spill] sm:$0xff] %v6036_v49  ;;  %v6091_v49 = vld [vmem:[%s12758_s5 + $0x310] sm:$0xff] }
  0x43   :  { %12836 = vst [vmem:[#allocation76_spill] sm:$0xff] %v6046_v45  ;;  %v6106_v45 = vld [vmem:[%s12758_s5 + $0x328] sm:$0xff] }
  0x44   :  { %12837 = vst [vmem:[#allocation77_spill] sm:$0xff] %v6056_v17  ;;  %v6136_v17 = vld [vmem:[%s12758_s5 + $0x358] sm:$0xff] }
  0x45   :  { %12838 = vst [vmem:[#allocation78_spill] sm:$0xff] %v6066_v53  ;;  %v6166_v53 = vld [vmem:[%s12758_s5 + $0x388] sm:$0xff] }
  0x46   :  { %12839 = vst [vmem:[#allocation79_spill] sm:$0xff] %v6076_v13  ;;  %v6196_v13 = vld [vmem:[%s12758_s5 + $0x3b8] sm:$0xff] }
  0x47   :  { %12840 = vst [vmem:[#allocation80_spill] sm:$0xff] %v6081_v55  ;;  %v6216_v55 = vld [vmem:[%s12758_s5 + $0x3d8] sm:$0xff] }
  0x48   :  { %12841 = vst [vmem:[#allocation81_spill] sm:$0xff] %v6086_v21  ;;  %v6111_v21 = vld [vmem:[%s12758_s5 + $0x330] sm:$0xff] }
  0x49   :  { %12842 = vst [vmem:[#allocation82_spill] sm:$0xff] %v6091_v49  ;;  %v6256_v49 = vld [vmem:[%s12758_s5 + $0x418] sm:$0xff] }
  0x4a   :  { %12843 = vst [vmem:[#allocation83_spill] sm:$0xff] %v6096_v57  ;;  %v6121_v57 = vld [vmem:[%s12758_s5 + $0x340] sm:$0xff] }
  0x4b   :  { %12844 = vst [vmem:[#allocation84_spill] sm:$0xff] %v6101_v23 }
  0x4c   :  { %12845 = vst [vmem:[#allocation85_spill] sm:$0xff] %v6106_v45  ;;  %v6131_v45 = vld [vmem:[%s12758_s5 + $0x350] sm:$0xff] }
  0x4d   :  { %12846 = vst [vmem:[#allocation86_spill] sm:$0xff] %v6111_v21 }
  0x4e   :  { %12847 = vst [vmem:[#allocation87_spill] sm:$0xff] %v6116_v59  ;;  %v6141_v59 = vld [vmem:[%s12758_s5 + $0x360] sm:$0xff] }
  0x4f   :  { %12848 = vst [vmem:[#allocation88_spill] sm:$0xff] %v6121_v57 }
  0x50   :  { %12849 = vst [vmem:[#allocation89_spill] sm:$0xff] %v6126_v25  ;;  %v6151_v25 = vld [vmem:[%s12758_s5 + $0x370] sm:$0xff] }
  0x51   :  { %12850 = vst [vmem:[#allocation90_spill] sm:$0xff] %v6131_v45 }
  0x52   :  { %12851 = vst [vmem:[#allocation91_spill] sm:$0xff] %v6136_v17  ;;  %v6161_v17 = vld [vmem:[%s12758_s5 + $0x380] sm:$0xff] }
  0x53   :  { %12852 = vst [vmem:[#allocation92_spill] sm:$0xff] %v6141_v59 }
  0x54   :  { %12853 = vst [vmem:[#allocation93_spill] sm:$0xff] %v6146_v61  ;;  %v6171_v61 = vld [vmem:[%s12758_s5 + $0x390] sm:$0xff] }
  0x55   :  { %12854 = vst [vmem:[#allocation94_spill] sm:$0xff] %v6151_v25 }
  0x56   :  { %12855 = vst [vmem:[#allocation95_spill] sm:$0xff] %v6156_v27  ;;  %v6181_v27 = vld [vmem:[%s12758_s5 + $0x3a0] sm:$0xff] }
  0x57   :  { %12856 = vst [vmem:[#allocation96_spill] sm:$0xff] %v6166_v53  ;;  %v6191_v53 = vld [vmem:[%s12758_s5 + $0x3b0] sm:$0xff] }
  0x58   :  { %12857 = vst [vmem:[#allocation97_spill] sm:$0xff] %v6176_v63  ;;  %v6201_v63 = vld [vmem:[%s12758_s5 + $0x3c0] sm:$0xff] }
  0x59   :  { %12858 = vst [vmem:[#allocation98_spill] sm:$0xff] %v6186_v29  ;;  %v6211_v29 = vld [vmem:[%s12758_s5 + $0x3d0] sm:$0xff] }
  0x5a   :  { %12859 = vst [vmem:[#allocation99_spill] sm:$0xff] %v6196_v13  ;;  %v6221_v13 = vld [vmem:[%s12758_s5 + $0x3e0] sm:$0xff] }
  0x5b   :  { %12860 = vst [vmem:[#allocation100_spill] sm:$0xff] %v6206_v31  ;;  %v6231_v31 = vld [vmem:[%s12758_s5 + $0x3f0] sm:$0xff] }
  0x5c   :  { %12861 = vst [vmem:[#allocation101_spill] sm:$0xff] %v6216_v55  ;;  %v6241_v55 = vld [vmem:[%s12758_s5 + $0x400] sm:$0xff] }
  0x5d   :  { %12862 = vst [vmem:[#allocation102_spill] sm:$0xff] %v6226_v32  ;;  %v6251_v32 = vld [vmem:[%s12758_s5 + $0x410] sm:$0xff] }
  0x5e   :  { %12863 = vst [vmem:[#allocation103_spill] sm:$0xff] %v6236_v33  ;;  %v6261_v33 = vld [vmem:[%s12758_s5 + $0x420] sm:$0xff] }
  0x5f   :  { %12864 = vst [vmem:[#allocation104_spill] sm:$0xff] %v6241_v55  ;;  %v6266_v55 = vld [vmem:[%s12758_s5 + $0x428] sm:$0xff] }
  0x60   :  { %12865 = vst [vmem:[#allocation105_spill] sm:$0xff] %v6246_v0  ;;  %v6271_v0 = vld [vmem:[%s12758_s5 + $0x430] sm:$0xff] }
  0x61   :  { %12866 = vst [vmem:[#allocation106_spill] sm:$0xff] %v6251_v32  ;;  %v6276_v32 = vld [vmem:[%s12758_s5 + $0x438] sm:$0xff] }
  0x62   :  { %12867 = vst [vmem:[#allocation107_spill] sm:$0xff] %v6256_v49  ;;  %v6281_v49 = vld [vmem:[%s12758_s5 + $0x440] sm:$0xff] }
  0x63   :  { %12868 = vst [vmem:[#allocation108_spill] sm:$0xff] %v6261_v33  ;;  %v6286_v33 = vld [vmem:[%s12758_s5 + $0x448] sm:$0xff] }
  0x64   :  { %12869 = vst [vmem:[#allocation109_spill] sm:$0xff] %v6266_v55  ;;  %v6291_v55 = vld [vmem:[%s12758_s5 + $0x450] sm:$0xff] }
  0x65   :  { %12870 = vst [vmem:[#allocation110_spill] sm:$0xff] %v6271_v0  ;;  %v6296_v0 = vld [vmem:[%s12758_s5 + $0x458] sm:$0xff] }
  0x66   :  { %12871 = vst [vmem:[#allocation111_spill] sm:$0xff] %v6276_v32  ;;  %v6301_v32 = vld [vmem:[%s12758_s5 + $0x460] sm:$0xff] }
  0x67   :  { %12872 = vst [vmem:[#allocation112_spill] sm:$0xff] %v6281_v49  ;;  %v6306_v49 = vld [vmem:[%s12758_s5 + $0x468] sm:$0xff] }
  0x68   :  { %12873 = vst [vmem:[#allocation113_spill] sm:$0xff] %v6286_v33  ;;  %v6311_v33 = vld [vmem:[%s12758_s5 + $0x470] sm:$0xff] }
  0x69   :  { %12874 = vst [vmem:[#allocation114_spill] sm:$0xff] %v6291_v55  ;;  %v6316_v55 = vld [vmem:[%s12758_s5 + $0x478] sm:$0xff] }
  0x6a   :  { %12875 = vst [vmem:[#allocation115_spill] sm:$0xff] %v6296_v0  ;;  %v6321_v0 = vld [vmem:[%s12758_s5 + $0x480] sm:$0xff] }
  0x6b   :  { %12876 = vst [vmem:[#allocation116_spill] sm:$0xff] %v6301_v32  ;;  %v6326_v32 = vld [vmem:[%s12758_s5 + $0x488] sm:$0xff] }
  0x6c   :  { %12877 = vst [vmem:[#allocation117_spill] sm:$0xff] %v6306_v49  ;;  %v6331_v49 = vld [vmem:[%s12758_s5 + $0x490] sm:$0xff] }
  0x6d   :  { %12878 = vst [vmem:[#allocation118_spill] sm:$0xff] %v6311_v33  ;;  %v6336_v33 = vld [vmem:[%s12758_s5 + $0x498] sm:$0xff] }
  0x6e   :  { %12879 = vst [vmem:[#allocation119_spill] sm:$0xff] %v6316_v55  ;;  %v6341_v55 = vld [vmem:[%s12758_s5 + $0x4a0] sm:$0xff] }
  0x6f   :  { %12880 = vst [vmem:[#allocation120_spill] sm:$0xff] %v6321_v0  ;;  %v6346_v0 = vld [vmem:[%s12758_s5 + $0x4a8] sm:$0xff] }
  0x70   :  { %12881 = vst [vmem:[#allocation121_spill] sm:$0xff] %v6326_v32  ;;  %v6351_v32 = vld [vmem:[%s12758_s5 + $0x4b0] sm:$0xff] }
  0x71   :  { %12882 = vst [vmem:[#allocation122_spill] sm:$0xff] %v6331_v49  ;;  %v6356_v49 = vld [vmem:[%s12758_s5 + $0x4b8] sm:$0xff] }
  0x72   :  { %12883 = vst [vmem:[#allocation123_spill] sm:$0xff] %v6336_v33  ;;  %v6361_v33 = vld [vmem:[%s12758_s5 + $0x4c0] sm:$0xff] }
  0x73   :  { %12884 = vst [vmem:[#allocation124_spill] sm:$0xff] %v6341_v55  ;;  %v6366_v55 = vld [vmem:[%s12758_s5 + $0x4c8] sm:$0xff] }
  0x74   :  { %12885 = vst [vmem:[#allocation125_spill] sm:$0xff] %v6346_v0  ;;  %v6371_v0 = vld [vmem:[%s12758_s5 + $0x4d0] sm:$0xff] }
  0x75   :  { %12886 = vst [vmem:[#allocation126_spill] sm:$0xff] %v6351_v32  ;;  %v6376_v32 = vld [vmem:[%s12758_s5 + $0x4d8] sm:$0xff] }
  0x76   :  { %12887 = vst [vmem:[#allocation127_spill] sm:$0xff] %v6356_v49  ;;  %v6381_v49 = vld [vmem:[%s12758_s5 + $0x4e0] sm:$0xff] }
  0x77   :  { %12888 = vst [vmem:[#allocation128_spill] sm:$0xff] %v6361_v33  ;;  %v6386_v33 = vld [vmem:[%s12758_s5 + $0x4e8] sm:$0xff] }
  0x78   :  { %12889 = vst [vmem:[#allocation129_spill] sm:$0xff] %v6366_v55  ;;  %v6391_v55 = vld [vmem:[%s12758_s5 + $0x4f0] sm:$0xff] }
  0x79   :  { %12890 = vst [vmem:[#allocation130_spill] sm:$0xff] %v6371_v0  ;;  %v6396_v0 = vld [vmem:[%s12758_s5 + $0x4f8] sm:$0xff] }
  0x7a   :  { %12891 = vst [vmem:[#allocation131_spill] sm:$0xff] %v6376_v32  ;;  %v6401_v32 = vld [vmem:[%s12758_s5 + $0x500] sm:$0xff] }
  0x7b   :  { %12892 = vst [vmem:[#allocation132_spill] sm:$0xff] %v6381_v49  ;;  %v6406_v49 = vld [vmem:[%s12758_s5 + $0x508] sm:$0xff] }
  0x7c   :  { %12893 = vst [vmem:[#allocation133_spill] sm:$0xff] %v6386_v33  ;;  %v6411_v33 = vld [vmem:[%s12758_s5 + $0x510] sm:$0xff] }
  0x7d   :  { %12894 = vst [vmem:[#allocation134_spill] sm:$0xff] %v6391_v55  ;;  %v6416_v55 = vld [vmem:[%s12758_s5 + $0x518] sm:$0xff] }
  0x7e   :  { %12895 = vst [vmem:[#allocation135_spill] sm:$0xff] %v6396_v0  ;;  %v6421_v0 = vld [vmem:[%s12758_s5 + $0x520] sm:$0xff] }
  0x7f   :  { %12896 = vst [vmem:[#allocation136_spill] sm:$0xff] %v6401_v32  ;;  %v6426_v32 = vld [vmem:[%s12758_s5 + $0x528] sm:$0xff] }
  0x80   :  { %12897 = vst [vmem:[#allocation137_spill] sm:$0xff] %v6406_v49  ;;  %v6431_v49 = vld [vmem:[%s12758_s5 + $0x530] sm:$0xff] }
  0x81   :  { %12898 = vst [vmem:[#allocation138_spill] sm:$0xff] %v6411_v33  ;;  %v6436_v33 = vld [vmem:[%s12758_s5 + $0x538] sm:$0xff] }
  0x82   :  { %12899 = vst [vmem:[#allocation139_spill] sm:$0xff] %v6416_v55  ;;  %v6441_v55 = vld [vmem:[%s12758_s5 + $0x540] sm:$0xff] }
  0x83   :  { %12900 = vst [vmem:[#allocation140_spill] sm:$0xff] %v6421_v0  ;;  %v6446_v0 = vld [vmem:[%s12758_s5 + $0x548] sm:$0xff] }
  0x84   :  { %12901 = vst [vmem:[#allocation141_spill] sm:$0xff] %v6426_v32  ;;  %v6451_v32 = vld [vmem:[%s12758_s5 + $0x550] sm:$0xff] }
  0x85   :  { %12902 = vst [vmem:[#allocation142_spill] sm:$0xff] %v6431_v49  ;;  %v6456_v49 = vld [vmem:[%s12758_s5 + $0x558] sm:$0xff] }
  0x86   :  { %12903 = vst [vmem:[#allocation143_spill] sm:$0xff] %v6436_v33  ;;  %v6461_v33 = vld [vmem:[%s12758_s5 + $0x560] sm:$0xff] }
  0x87   :  { %12904 = vst [vmem:[#allocation144_spill] sm:$0xff] %v6441_v55  ;;  %v6466_v55 = vld [vmem:[%s12758_s5 + $0x568] sm:$0xff] }
  0x88   :  { %12905 = vst [vmem:[#allocation145_spill] sm:$0xff] %v6446_v0  ;;  %v6471_v0 = vld [vmem:[%s12758_s5 + $0x570] sm:$0xff] }
  0x89   :  { %12906 = vst [vmem:[#allocation146_spill] sm:$0xff] %v6451_v32  ;;  %v6476_v32 = vld [vmem:[%s12758_s5 + $0x578] sm:$0xff] }
  0x8a   :  { %12907 = vst [vmem:[#allocation147_spill] sm:$0xff] %v6456_v49  ;;  %v6481_v49 = vld [vmem:[%s12758_s5 + $0x580] sm:$0xff] }
  0x8b   :  { %12908 = vst [vmem:[#allocation148_spill] sm:$0xff] %v6461_v33  ;;  %v6486_v33 = vld [vmem:[%s12758_s5 + $0x588] sm:$0xff] }
  0x8c   :  { %12909 = vst [vmem:[#allocation149_spill] sm:$0xff] %v6466_v55  ;;  %v6491_v55 = vld [vmem:[%s12758_s5 + $0x590] sm:$0xff] }
  0x8d   :  { %12910 = vst [vmem:[#allocation150_spill] sm:$0xff] %v6471_v0  ;;  %v6496_v0 = vld [vmem:[%s12758_s5 + $0x598] sm:$0xff] }
  0x8e   :  { %12911 = vst [vmem:[#allocation151_spill] sm:$0xff] %v6476_v32  ;;  %v6501_v32 = vld [vmem:[%s12758_s5 + $0x5a0] sm:$0xff] }
  0x8f   :  { %12912 = vst [vmem:[#allocation152_spill] sm:$0xff] %v6481_v49  ;;  %v6506_v49 = vld [vmem:[%s12758_s5 + $0x5a8] sm:$0xff] }
  0x90   :  { %12913 = vst [vmem:[#allocation153_spill] sm:$0xff] %v6486_v33  ;;  %v6511_v33 = vld [vmem:[%s12758_s5 + $0x5b0] sm:$0xff] }
  0x91   :  { %12914 = vst [vmem:[#allocation154_spill] sm:$0xff] %v6491_v55  ;;  %v6516_v55 = vld [vmem:[%s12758_s5 + $0x5b8] sm:$0xff] }
  0x92   :  { %12915 = vst [vmem:[#allocation155_spill] sm:$0xff] %v6496_v0  ;;  %v6521_v0 = vld [vmem:[%s12758_s5 + $0x5c0] sm:$0xff] }
  0x93   :  { %12916 = vst [vmem:[#allocation156_spill] sm:$0xff] %v6501_v32  ;;  %v6526_v32 = vld [vmem:[%s12758_s5 + $0x5c8] sm:$0xff] }
  0x94   :  { %12917 = vst [vmem:[#allocation157_spill] sm:$0xff] %v6506_v49  ;;  %v6531_v49 = vld [vmem:[%s12758_s5 + $0x5d0] sm:$0xff] }
  0x95   :  { %12918 = vst [vmem:[#allocation158_spill] sm:$0xff] %v6511_v33  ;;  %v6536_v33 = vld [vmem:[%s12758_s5 + $0x5d8] sm:$0xff] }
  0x96   :  { %12919 = vst [vmem:[#allocation159_spill] sm:$0xff] %v6516_v55  ;;  %v6541_v55 = vld [vmem:[%s12758_s5 + $0x5e0] sm:$0xff] }
  0x97   :  { %12920 = vst [vmem:[#allocation160_spill] sm:$0xff] %v6521_v0  ;;  %v6546_v0 = vld [vmem:[%s12758_s5 + $0x5e8] sm:$0xff] }
  0x98   :  { %12921 = vst [vmem:[#allocation161_spill] sm:$0xff] %v6526_v32  ;;  %v6551_v32 = vld [vmem:[%s12758_s5 + $0x5f0] sm:$0xff] }
  0x99   :  { %12922 = vst [vmem:[#allocation162_spill] sm:$0xff] %v6531_v49  ;;  %v6556_v49 = vld [vmem:[%s12758_s5 + $0x5f8] sm:$0xff] }
  0x9a   :  { %12923 = vst [vmem:[#allocation163_spill] sm:$0xff] %v6536_v33  ;;  %v6561_v33 = vld [vmem:[%s12758_s5 + $0x600] sm:$0xff] }
  0x9b   :  { %12924 = vst [vmem:[#allocation164_spill] sm:$0xff] %v6541_v55  ;;  %v6566_v55 = vld [vmem:[%s12758_s5 + $0x608] sm:$0xff] }
  0x9c   :  { %12925 = vst [vmem:[#allocation165_spill] sm:$0xff] %v6546_v0  ;;  %v6571_v0 = vld [vmem:[%s12758_s5 + $0x610] sm:$0xff] }
  0x9d   :  { %12926 = vst [vmem:[#allocation166_spill] sm:$0xff] %v6551_v32  ;;  %v6576_v32 = vld [vmem:[%s12758_s5 + $0x618] sm:$0xff] }
  0x9e   :  { %12927 = vst [vmem:[#allocation167_spill] sm:$0xff] %v6556_v49  ;;  %v6581_v49 = vld [vmem:[%s12758_s5 + $0x620] sm:$0xff] }
  0x9f   :  { %12928 = vst [vmem:[#allocation168_spill] sm:$0xff] %v6561_v33  ;;  %v6586_v33 = vld [vmem:[%s12758_s5 + $0x628] sm:$0xff] }
  0xa0   :  { %12929 = vst [vmem:[#allocation169_spill] sm:$0xff] %v6566_v55  ;;  %v6591_v55 = vld [vmem:[%s12758_s5 + $0x630] sm:$0xff] }
  0xa1   :  { %12930 = vst [vmem:[#allocation170_spill] sm:$0xff] %v6571_v0  ;;  %v6596_v0 = vld [vmem:[%s12758_s5 + $0x638] sm:$0xff] }
  0xa2   :  { %12931 = vst [vmem:[#allocation171_spill] sm:$0xff] %v6576_v32  ;;  %v6601_v32 = vld [vmem:[%s12758_s5 + $0x640] sm:$0xff] }
  0xa3   :  { %12932 = vst [vmem:[#allocation172_spill] sm:$0xff] %v6581_v49  ;;  %v6606_v49 = vld [vmem:[%s12758_s5 + $0x648] sm:$0xff] }
  0xa4   :  { %12933 = vst [vmem:[#allocation173_spill] sm:$0xff] %v6586_v33  ;;  %v6611_v33 = vld [vmem:[%s12758_s5 + $0x650] sm:$0xff] }
  0xa5   :  { %12934 = vst [vmem:[#allocation174_spill] sm:$0xff] %v6591_v55  ;;  %v6616_v55 = vld [vmem:[%s12758_s5 + $0x658] sm:$0xff] }
  0xa6   :  { %12935 = vst [vmem:[#allocation175_spill] sm:$0xff] %v6596_v0  ;;  %v6621_v0 = vld [vmem:[%s12758_s5 + $0x660] sm:$0xff] }
  0xa7   :  { %12936 = vst [vmem:[#allocation176_spill] sm:$0xff] %v6601_v32  ;;  %v6626_v32 = vld [vmem:[%s12758_s5 + $0x668] sm:$0xff] }
  0xa8   :  { %12937 = vst [vmem:[#allocation177_spill] sm:$0xff] %v6606_v49  ;;  %v6631_v49 = vld [vmem:[%s12758_s5 + $0x670] sm:$0xff] }
  0xa9   :  { %12938 = vst [vmem:[#allocation178_spill] sm:$0xff] %v6611_v33  ;;  %v6636_v33 = vld [vmem:[%s12758_s5 + $0x678] sm:$0xff] }
  0xaa   :  { %12939 = vst [vmem:[#allocation179_spill] sm:$0xff] %v6616_v55  ;;  %v6641_v55 = vld [vmem:[%s12758_s5 + $0x680] sm:$0xff] }
  0xab   :  { %12940 = vst [vmem:[#allocation180_spill] sm:$0xff] %v6621_v0  ;;  %v6646_v0 = vld [vmem:[%s12758_s5 + $0x688] sm:$0xff] }
  0xac   :  { %12941 = vst [vmem:[#allocation181_spill] sm:$0xff] %v6626_v32  ;;  %v6651_v32 = vld [vmem:[%s12758_s5 + $0x690] sm:$0xff] }
  0xad   :  { %12942 = vst [vmem:[#allocation182_spill] sm:$0xff] %v6631_v49  ;;  %v6656_v49 = vld [vmem:[%s12758_s5 + $0x698] sm:$0xff] }
  0xae   :  { %12943 = vst [vmem:[#allocation183_spill] sm:$0xff] %v6636_v33  ;;  %v6661_v33 = vld [vmem:[%s12758_s5 + $0x6a0] sm:$0xff] }
  0xaf   :  { %12944 = vst [vmem:[#allocation184_spill] sm:$0xff] %v6641_v55  ;;  %v6666_v55 = vld [vmem:[%s12758_s5 + $0x6a8] sm:$0xff] }
  0xb0   :  { %12945 = vst [vmem:[#allocation185_spill] sm:$0xff] %v6646_v0  ;;  %v6671_v0 = vld [vmem:[%s12758_s5 + $0x6b0] sm:$0xff] }
  0xb1   :  { %12946 = vst [vmem:[#allocation186_spill] sm:$0xff] %v6651_v32  ;;  %v6676_v32 = vld [vmem:[%s12758_s5 + $0x6b8] sm:$0xff] }
  0xb2   :  { %12947 = vst [vmem:[#allocation187_spill] sm:$0xff] %v6656_v49  ;;  %v6681_v49 = vld [vmem:[%s12758_s5 + $0x6c0] sm:$0xff] }
  0xb3   :  { %12948 = vst [vmem:[#allocation188_spill] sm:$0xff] %v6661_v33  ;;  %v6686_v33 = vld [vmem:[%s12758_s5 + $0x6c8] sm:$0xff] }
  0xb4   :  { %12949 = vst [vmem:[#allocation189_spill] sm:$0xff] %v6666_v55  ;;  %v6691_v55 = vld [vmem:[%s12758_s5 + $0x6d0] sm:$0xff] }
  0xb5   :  { %12950 = vst [vmem:[#allocation190_spill] sm:$0xff] %v6671_v0  ;;  %v6696_v0 = vld [vmem:[%s12758_s5 + $0x6d8] sm:$0xff] }
  0xb6   :  { %12951 = vst [vmem:[#allocation191_spill] sm:$0xff] %v6676_v32  ;;  %v6701_v32 = vld [vmem:[%s12758_s5 + $0x6e0] sm:$0xff] }
  0xb7   :  { %12952 = vst [vmem:[#allocation192_spill] sm:$0xff] %v6681_v49  ;;  %v6706_v49 = vld [vmem:[%s12758_s5 + $0x6e8] sm:$0xff] }
  0xb8   :  { %12953 = vst [vmem:[#allocation193_spill] sm:$0xff] %v6686_v33  ;;  %v6711_v33 = vld [vmem:[%s12758_s5 + $0x6f0] sm:$0xff] }
  0xb9   :  { %12954 = vst [vmem:[#allocation194_spill] sm:$0xff] %v6691_v55  ;;  %v6716_v55 = vld [vmem:[%s12758_s5 + $0x6f8] sm:$0xff] }
  0xba   :  { %12955 = vst [vmem:[#allocation195_spill] sm:$0xff] %v6696_v0  ;;  %v6721_v0 = vld [vmem:[%s12758_s5 + $0x700] sm:$0xff] }
  0xbb   :  { %12956 = vst [vmem:[#allocation196_spill] sm:$0xff] %v6701_v32  ;;  %v6726_v32 = vld [vmem:[%s12758_s5 + $0x708] sm:$0xff] }
  0xbc   :  { %12957 = vst [vmem:[#allocation197_spill] sm:$0xff] %v6706_v49  ;;  %v6731_v49 = vld [vmem:[%s12758_s5 + $0x710] sm:$0xff] }
  0xbd   :  { %12958 = vst [vmem:[#allocation198_spill] sm:$0xff] %v6711_v33  ;;  %v6736_v33 = vld [vmem:[%s12758_s5 + $0x718] sm:$0xff] }
  0xbe   :  { %12959 = vst [vmem:[#allocation199_spill] sm:$0xff] %v6716_v55  ;;  %v6741_v55 = vld [vmem:[%s12758_s5 + $0x720] sm:$0xff] }
  0xbf   :  { %12960 = vst [vmem:[#allocation200_spill] sm:$0xff] %v6721_v0  ;;  %v6746_v0 = vld [vmem:[%s12758_s5 + $0x728] sm:$0xff] }
  0xc0   :  { %12961 = vst [vmem:[#allocation201_spill] sm:$0xff] %v6726_v32  ;;  %v6751_v32 = vld [vmem:[%s12758_s5 + $0x730] sm:$0xff] }
  0xc1   :  { %12962 = vst [vmem:[#allocation202_spill] sm:$0xff] %v6731_v49  ;;  %v6756_v49 = vld [vmem:[%s12758_s5 + $0x738] sm:$0xff] }
  0xc2   :  { %12963 = vst [vmem:[#allocation203_spill] sm:$0xff] %v6736_v33  ;;  %v6761_v33 = vld [vmem:[%s12758_s5 + $0x740] sm:$0xff] }
  0xc3   :  { %12964 = vst [vmem:[#allocation204_spill] sm:$0xff] %v6741_v55  ;;  %v6766_v55 = vld [vmem:[%s12758_s5 + $0x748] sm:$0xff] }
  0xc4   :  { %12965 = vst [vmem:[#allocation205_spill] sm:$0xff] %v6746_v0  ;;  %v6771_v0 = vld [vmem:[%s12758_s5 + $0x750] sm:$0xff] }
  0xc5   :  { %12966 = vst [vmem:[#allocation206_spill] sm:$0xff] %v6751_v32  ;;  %v6776_v32 = vld [vmem:[%s12758_s5 + $0x758] sm:$0xff] }
  0xc6   :  { %12967 = vst [vmem:[#allocation207_spill] sm:$0xff] %v6756_v49  ;;  %v6781_v49 = vld [vmem:[%s12758_s5 + $0x760] sm:$0xff] }
  0xc7   :  { %12968 = vst [vmem:[#allocation208_spill] sm:$0xff] %v6761_v33  ;;  %v6786_v33 = vld [vmem:[%s12758_s5 + $0x768] sm:$0xff] }
  0xc8   :  { %12969 = vst [vmem:[#allocation209_spill] sm:$0xff] %v6766_v55  ;;  %v6791_v55 = vld [vmem:[%s12758_s5 + $0x770] sm:$0xff] }
  0xc9   :  { %12970 = vst [vmem:[#allocation210_spill] sm:$0xff] %v6771_v0  ;;  %v6796_v0 = vld [vmem:[%s12758_s5 + $0x778] sm:$0xff] }
  0xca   :  { %12971 = vst [vmem:[#allocation211_spill] sm:$0xff] %v6776_v32  ;;  %v6801_v32 = vld [vmem:[%s12758_s5 + $0x780] sm:$0xff] }
  0xcb   :  { %12972 = vst [vmem:[#allocation212_spill] sm:$0xff] %v6781_v49  ;;  %v6806_v49 = vld [vmem:[%s12758_s5 + $0x788] sm:$0xff] }
  0xcc   :  { %12973 = vst [vmem:[#allocation213_spill] sm:$0xff] %v6786_v33  ;;  %v6811_v33 = vld [vmem:[%s12758_s5 + $0x790] sm:$0xff] }
  0xcd   :  { %12974 = vst [vmem:[#allocation214_spill] sm:$0xff] %v6791_v55  ;;  %v6816_v55 = vld [vmem:[%s12758_s5 + $0x798] sm:$0xff] }
  0xce   :  { %12975 = vst [vmem:[#allocation215_spill] sm:$0xff] %v6796_v0  ;;  %v6821_v0 = vld [vmem:[%s12758_s5 + $0x7a0] sm:$0xff] }
  0xcf   :  { %12976 = vst [vmem:[#allocation216_spill] sm:$0xff] %v6801_v32  ;;  %v6826_v32 = vld [vmem:[%s12758_s5 + $0x7a8] sm:$0xff] }
  0xd0   :  { %12977 = vst [vmem:[#allocation217_spill] sm:$0xff] %v6806_v49  ;;  %v6831_v49 = vld [vmem:[%s12758_s5 + $0x7b0] sm:$0xff] }
  0xd1   :  { %12978 = vst [vmem:[#allocation218_spill] sm:$0xff] %v6811_v33  ;;  %v6836_v33 = vld [vmem:[%s12758_s5 + $0x7b8] sm:$0xff] }
  0xd2   :  { %12979 = vst [vmem:[#allocation219_spill] sm:$0xff] %v6816_v55  ;;  %v6841_v55 = vld [vmem:[%s12758_s5 + $0x7c0] sm:$0xff] }
  0xd3   :  { %12980 = vst [vmem:[#allocation220_spill] sm:$0xff] %v6821_v0  ;;  %v6846_v0 = vld [vmem:[%s12758_s5 + $0x7c8] sm:$0xff] }
  0xd4   :  { %12981 = vst [vmem:[#allocation221_spill] sm:$0xff] %v6826_v32  ;;  %v6851_v32 = vld [vmem:[%s12758_s5 + $0x7d0] sm:$0xff] }
  0xd5   :  { %12982 = vst [vmem:[#allocation222_spill] sm:$0xff] %v6831_v49  ;;  %v6856_v49 = vld [vmem:[%s12758_s5 + $0x7d8] sm:$0xff] }
  0xd6   :  { %12983 = vst [vmem:[#allocation223_spill] sm:$0xff] %v6836_v33  ;;  %v6861_v33 = vld [vmem:[%s12758_s5 + $0x7e0] sm:$0xff] }
  0xd7   :  { %12984 = vst [vmem:[#allocation224_spill] sm:$0xff] %v6841_v55  ;;  %v6866_v55 = vld [vmem:[%s12758_s5 + $0x7e8] sm:$0xff] }
  0xd8   :  { %12985 = vst [vmem:[#allocation225_spill] sm:$0xff] %v6846_v0  ;;  %v6871_v0 = vld [vmem:[%s12758_s5 + $0x7f0] sm:$0xff] }
  0xd9   :  { %12986 = vst [vmem:[#allocation226_spill] sm:$0xff] %v6851_v32  ;;  %v6876_v32 = vld [vmem:[%s12758_s5 + $0x7f8] sm:$0xff] }
  0xda   :  { %12987 = vst [vmem:[#allocation227_spill] sm:$0xff] %v6856_v49  ;;  %v6881_v49 = vld [vmem:[%s12758_s5 + $0x800] sm:$0xff] }
  0xdb   :  { %12988 = vst [vmem:[#allocation228_spill] sm:$0xff] %v6861_v33  ;;  %v6886_v33 = vld [vmem:[%s12758_s5 + $0x808] sm:$0xff] }
  0xdc   :  { %12989 = vst [vmem:[#allocation229_spill] sm:$0xff] %v6866_v55  ;;  %v6891_v55 = vld [vmem:[%s12758_s5 + $0x810] sm:$0xff] }
  0xdd   :  { %12990 = vst [vmem:[#allocation230_spill] sm:$0xff] %v6871_v0  ;;  %v6896_v0 = vld [vmem:[%s12758_s5 + $0x818] sm:$0xff] }
  0xde   :  { %12991 = vst [vmem:[#allocation231_spill] sm:$0xff] %v6876_v32  ;;  %v6901_v32 = vld [vmem:[%s12758_s5 + $0x820] sm:$0xff] }
  0xdf   :  { %12992 = vst [vmem:[#allocation232_spill] sm:$0xff] %v6881_v49  ;;  %v6906_v49 = vld [vmem:[%s12758_s5 + $0x828] sm:$0xff] }
  0xe0   :  { %12993 = vst [vmem:[#allocation233_spill] sm:$0xff] %v6886_v33  ;;  %v6911_v33 = vld [vmem:[%s12758_s5 + $0x830] sm:$0xff] }
  0xe1   :  { %12994 = vst [vmem:[#allocation234_spill] sm:$0xff] %v6891_v55  ;;  %v6916_v55 = vld [vmem:[%s12758_s5 + $0x838] sm:$0xff] }
  0xe2   :  { %12995 = vst [vmem:[#allocation235_spill] sm:$0xff] %v6896_v0  ;;  %v6921_v0 = vld [vmem:[%s12758_s5 + $0x840] sm:$0xff] }
  0xe3   :  { %12996 = vst [vmem:[#allocation236_spill] sm:$0xff] %v6901_v32  ;;  %v6926_v32 = vld [vmem:[%s12758_s5 + $0x848] sm:$0xff] }
  0xe4   :  { %12997 = vst [vmem:[#allocation237_spill] sm:$0xff] %v6906_v49  ;;  %v6931_v49 = vld [vmem:[%s12758_s5 + $0x850] sm:$0xff] }
  0xe5   :  { %12998 = vst [vmem:[#allocation238_spill] sm:$0xff] %v6911_v33  ;;  %v6936_v33 = vld [vmem:[%s12758_s5 + $0x858] sm:$0xff] }
  0xe6   :  { %12999 = vst [vmem:[#allocation239_spill] sm:$0xff] %v6916_v55  ;;  %v6941_v55 = vld [vmem:[%s12758_s5 + $0x860] sm:$0xff] }
  0xe7   :  { %13000 = vst [vmem:[#allocation240_spill] sm:$0xff] %v6921_v0  ;;  %v6946_v0 = vld [vmem:[%s12758_s5 + $0x868] sm:$0xff] }
  0xe8   :  { %13001 = vst [vmem:[#allocation241_spill] sm:$0xff] %v6926_v32  ;;  %v6951_v32 = vld [vmem:[%s12758_s5 + $0x870] sm:$0xff] }
  0xe9   :  { %13002 = vst [vmem:[#allocation242_spill] sm:$0xff] %v6931_v49  ;;  %v6956_v49 = vld [vmem:[%s12758_s5 + $0x878] sm:$0xff] }
  0xea   :  { %13003 = vst [vmem:[#allocation243_spill] sm:$0xff] %v6936_v33  ;;  %v6961_v33 = vld [vmem:[%s12758_s5 + $0x880] sm:$0xff] }
  0xeb   :  { %13004 = vst [vmem:[#allocation244_spill] sm:$0xff] %v6941_v55  ;;  %v6966_v55 = vld [vmem:[%s12758_s5 + $0x888] sm:$0xff] }
  0xec   :  { %13005 = vst [vmem:[#allocation245_spill] sm:$0xff] %v6946_v0  ;;  %v6971_v0 = vld [vmem:[%s12758_s5 + $0x890] sm:$0xff] }
  0xed   :  { %13006 = vst [vmem:[#allocation246_spill] sm:$0xff] %v6951_v32  ;;  %v6976_v32 = vld [vmem:[%s12758_s5 + $0x898] sm:$0xff] }
  0xee   :  { %13007 = vst [vmem:[#allocation247_spill] sm:$0xff] %v6956_v49  ;;  %v6981_v49 = vld [vmem:[%s12758_s5 + $0x8a0] sm:$0xff] }
  0xef   :  { %13008 = vst [vmem:[#allocation248_spill] sm:$0xff] %v6961_v33  ;;  %v6986_v33 = vld [vmem:[%s12758_s5 + $0x8a8] sm:$0xff] }
  0xf0   :  { %13009 = vst [vmem:[#allocation249_spill] sm:$0xff] %v6966_v55  ;;  %v6991_v55 = vld [vmem:[%s12758_s5 + $0x8b0] sm:$0xff] }
  0xf1   :  { %13010 = vst [vmem:[#allocation250_spill] sm:$0xff] %v6971_v0  ;;  %v6996_v0 = vld [vmem:[%s12758_s5 + $0x8b8] sm:$0xff] }
  0xf2   :  { %13011 = vst [vmem:[#allocation251_spill] sm:$0xff] %v6976_v32  ;;  %v7001_v32 = vld [vmem:[%s12758_s5 + $0x8c0] sm:$0xff] }
  0xf3   :  { %13012 = vst [vmem:[#allocation252_spill] sm:$0xff] %v6981_v49  ;;  %v7006_v49 = vld [vmem:[%s12758_s5 + $0x8c8] sm:$0xff] }
  0xf4   :  { %13013 = vst [vmem:[#allocation253_spill] sm:$0xff] %v6986_v33  ;;  %v7011_v33 = vld [vmem:[%s12758_s5 + $0x8d0] sm:$0xff] }
  0xf5   :  { %13014 = vst [vmem:[#allocation254_spill] sm:$0xff] %v6991_v55  ;;  %v7016_v55 = vld [vmem:[%s12758_s5 + $0x8d8] sm:$0xff] }
  0xf6   :  { %13015 = vst [vmem:[#allocation255_spill] sm:$0xff] %v6996_v0  ;;  %v7021_v0 = vld [vmem:[%s12758_s5 + $0x8e0] sm:$0xff] }
  0xf7   :  { %13016 = vst [vmem:[#allocation256_spill] sm:$0xff] %v7001_v32  ;;  %v7026_v32 = vld [vmem:[%s12758_s5 + $0x8e8] sm:$0xff] }
  0xf8   :  { %13017 = vst [vmem:[#allocation257_spill] sm:$0xff] %v7006_v49  ;;  %v7031_v49 = vld [vmem:[%s12758_s5 + $0x8f0] sm:$0xff] }
  0xf9   :  { %13018 = vst [vmem:[#allocation258_spill] sm:$0xff] %v7011_v33  ;;  %v7036_v33 = vld [vmem:[%s12758_s5 + $0x8f8] sm:$0xff] }
  0xfa   :  { %13019 = vst [vmem:[#allocation259_spill] sm:$0xff] %v7016_v55  ;;  %v7041_v55 = vld [vmem:[%s12758_s5 + $0x900] sm:$0xff] }
  0xfb   :  { %13020 = vst [vmem:[#allocation260_spill] sm:$0xff] %v7021_v0  ;;  %v7046_v0 = vld [vmem:[%s12758_s5 + $0x908] sm:$0xff] }
  0xfc   :  { %13021 = vst [vmem:[#allocation261_spill] sm:$0xff] %v7026_v32  ;;  %v7051_v32 = vld [vmem:[%s12758_s5 + $0x910] sm:$0xff] }
  0xfd   :  { %13022 = vst [vmem:[#allocation262_spill] sm:$0xff] %v7031_v49  ;;  %v7056_v49 = vld [vmem:[%s12758_s5 + $0x918] sm:$0xff] }
  0xfe   :  { %13023 = vst [vmem:[#allocation263_spill] sm:$0xff] %v7036_v33  ;;  %v7061_v33 = vld [vmem:[%s12758_s5 + $0x920] sm:$0xff] }
  0xff   :  { %13024 = vst [vmem:[#allocation264_spill] sm:$0xff] %v7041_v55  ;;  %v7066_v55 = vld [vmem:[%s12758_s5 + $0x928] sm:$0xff] }
 0x100   :  { %13025 = vst [vmem:[#allocation265_spill] sm:$0xff] %v7046_v0  ;;  %v7071_v0 = vld [vmem:[%s12758_s5 + $0x930] sm:$0xff] }
 0x101   :  { %13026 = vst [vmem:[#allocation266_spill] sm:$0xff] %v7051_v32  ;;  %v7076_v32 = vld [vmem:[%s12758_s5 + $0x938] sm:$0xff] }
 0x102   :  { %13027 = vst [vmem:[#allocation267_spill] sm:$0xff] %v7056_v49  ;;  %v7081_v49 = vld [vmem:[%s12758_s5 + $0x940] sm:$0xff] }
 0x103   :  { %13028 = vst [vmem:[#allocation268_spill] sm:$0xff] %v7061_v33  ;;  %v7086_v33 = vld [vmem:[%s12758_s5 + $0x948] sm:$0xff] }
 0x104   :  { %13029 = vst [vmem:[#allocation269_spill] sm:$0xff] %v7066_v55  ;;  %v7091_v55 = vld [vmem:[%s12758_s5 + $0x950] sm:$0xff] }
 0x105   :  { %13030 = vst [vmem:[#allocation270_spill] sm:$0xff] %v7071_v0  ;;  %v7096_v0 = vld [vmem:[%s12758_s5 + $0x958] sm:$0xff] }
 0x106   :  { %13031 = vst [vmem:[#allocation271_spill] sm:$0xff] %v7076_v32  ;;  %v7101_v32 = vld [vmem:[%s12758_s5 + $0x960] sm:$0xff] }
 0x107   :  { %13032 = vst [vmem:[#allocation272_spill] sm:$0xff] %v7081_v49  ;;  %v7106_v49 = vld [vmem:[%s12758_s5 + $0x968] sm:$0xff] }
 0x108   :  { %13033 = vst [vmem:[#allocation273_spill] sm:$0xff] %v7086_v33  ;;  %v7111_v33 = vld [vmem:[%s12758_s5 + $0x970] sm:$0xff] }
 0x109   :  { %13034 = vst [vmem:[#allocation274_spill] sm:$0xff] %v7091_v55  ;;  %v7116_v55 = vld [vmem:[%s12758_s5 + $0x978] sm:$0xff] }
 0x10a   :  { %13035 = vst [vmem:[#allocation275_spill] sm:$0xff] %v7096_v0  ;;  %v7121_v0 = vld [vmem:[%s12758_s5 + $0x980] sm:$0xff] }
 0x10b   :  { %13036 = vst [vmem:[#allocation276_spill] sm:$0xff] %v7101_v32  ;;  %v7126_v32 = vld [vmem:[%s12758_s5 + $0x988] sm:$0xff] }
 0x10c   :  { %13037 = vst [vmem:[#allocation277_spill] sm:$0xff] %v7106_v49  ;;  %v7131_v49 = vld [vmem:[%s12758_s5 + $0x990] sm:$0xff] }
 0x10d   :  { %13038 = vst [vmem:[#allocation278_spill] sm:$0xff] %v7111_v33  ;;  %v7136_v33 = vld [vmem:[%s12758_s5 + $0x998] sm:$0xff] }
 0x10e   :  { %13039 = vst [vmem:[#allocation279_spill] sm:$0xff] %v7116_v55  ;;  %v7141_v55 = vld [vmem:[%s12758_s5 + $0x9a0] sm:$0xff] }
 0x10f   :  { %13040 = vst [vmem:[#allocation280_spill] sm:$0xff] %v7121_v0  ;;  %v7146_v0 = vld [vmem:[%s12758_s5 + $0x9a8] sm:$0xff] }
 0x110   :  { %13041 = vst [vmem:[#allocation281_spill] sm:$0xff] %v7126_v32  ;;  %v7151_v32 = vld [vmem:[%s12758_s5 + $0x9b0] sm:$0xff] }
 0x111   :  { %13042 = vst [vmem:[#allocation282_spill] sm:$0xff] %v7131_v49  ;;  %v7156_v49 = vld [vmem:[%s12758_s5 + $0x9b8] sm:$0xff] }
 0x112   :  { %13043 = vst [vmem:[#allocation283_spill] sm:$0xff] %v7136_v33  ;;  %v7161_v33 = vld [vmem:[%s12758_s5 + $0x9c0] sm:$0xff] }
 0x113   :  { %13044 = vst [vmem:[#allocation284_spill] sm:$0xff] %v7141_v55  ;;  %v7166_v55 = vld [vmem:[%s12758_s5 + $0x9c8] sm:$0xff] }
 0x114   :  { %13045 = vst [vmem:[#allocation285_spill] sm:$0xff] %v7146_v0  ;;  %v7171_v0 = vld [vmem:[%s12758_s5 + $0x9d0] sm:$0xff] }
 0x115   :  { %13046 = vst [vmem:[#allocation286_spill] sm:$0xff] %v7151_v32  ;;  %v7176_v32 = vld [vmem:[%s12758_s5 + $0x9d8] sm:$0xff] }
 0x116   :  { %13047 = vst [vmem:[#allocation287_spill] sm:$0xff] %v7156_v49  ;;  %v7181_v49 = vld [vmem:[%s12758_s5 + $0x9e0] sm:$0xff] }
 0x117   :  { %13048 = vst [vmem:[#allocation288_spill] sm:$0xff] %v7161_v33  ;;  %v7186_v33 = vld [vmem:[%s12758_s5 + $0x9e8] sm:$0xff] }
 0x118   :  { %13049 = vst [vmem:[#allocation289_spill] sm:$0xff] %v7166_v55  ;;  %v7191_v55 = vld [vmem:[%s12758_s5 + $0x9f0] sm:$0xff] }
 0x119   :  { %13050 = vst [vmem:[#allocation290_spill] sm:$0xff] %v7171_v0  ;;  %v7196_v0 = vld [vmem:[%s12758_s5 + $0x9f8] sm:$0xff] }
 0x11a   :  { %13051 = vst [vmem:[#allocation291_spill] sm:$0xff] %v7176_v32  ;;  %v7201_v32 = vld [vmem:[%s12758_s5 + $0xa00] sm:$0xff] }
 0x11b   :  { %13052 = vst [vmem:[#allocation292_spill] sm:$0xff] %v7181_v49  ;;  %v7206_v49 = vld [vmem:[%s12758_s5 + $0xa08] sm:$0xff] }
 0x11c   :  { %13053 = vst [vmem:[#allocation293_spill] sm:$0xff] %v7186_v33  ;;  %v7211_v33 = vld [vmem:[%s12758_s5 + $0xa10] sm:$0xff] }
 0x11d   :  { %13054 = vst [vmem:[#allocation294_spill] sm:$0xff] %v7191_v55  ;;  %v7216_v55 = vld [vmem:[%s12758_s5 + $0xa18] sm:$0xff] }
 0x11e   :  { %13055 = vst [vmem:[#allocation295_spill] sm:$0xff] %v7196_v0  ;;  %v7221_v0 = vld [vmem:[%s12758_s5 + $0xa20] sm:$0xff] }
 0x11f   :  { %13056 = vst [vmem:[#allocation296_spill] sm:$0xff] %v7201_v32  ;;  %v7226_v32 = vld [vmem:[%s12758_s5 + $0xa28] sm:$0xff] }
 0x120   :  { %13057 = vst [vmem:[#allocation297_spill] sm:$0xff] %v7206_v49  ;;  %v7231_v49 = vld [vmem:[%s12758_s5 + $0xa30] sm:$0xff] }
 0x121   :  { %13058 = vst [vmem:[#allocation298_spill] sm:$0xff] %v7211_v33  ;;  %v7236_v33 = vld [vmem:[%s12758_s5 + $0xa38] sm:$0xff] }
 0x122   :  { %13059 = vst [vmem:[#allocation299_spill] sm:$0xff] %v7216_v55  ;;  %v7241_v55 = vld [vmem:[%s12758_s5 + $0xa40] sm:$0xff] }
 0x123   :  { %13060 = vst [vmem:[#allocation300_spill] sm:$0xff] %v7221_v0  ;;  %v7246_v0 = vld [vmem:[%s12758_s5 + $0xa48] sm:$0xff] }
 0x124   :  { %13061 = vst [vmem:[#allocation301_spill] sm:$0xff] %v7226_v32  ;;  %v7251_v32 = vld [vmem:[%s12758_s5 + $0xa50] sm:$0xff] }
 0x125   :  { %13062 = vst [vmem:[#allocation302_spill] sm:$0xff] %v7231_v49  ;;  %v7256_v49 = vld [vmem:[%s12758_s5 + $0xa58] sm:$0xff] }
 0x126   :  { %13063 = vst [vmem:[#allocation303_spill] sm:$0xff] %v7236_v33  ;;  %v7261_v33 = vld [vmem:[%s12758_s5 + $0xa60] sm:$0xff] }
 0x127   :  { %13064 = vst [vmem:[#allocation304_spill] sm:$0xff] %v7241_v55  ;;  %v7266_v55 = vld [vmem:[%s12758_s5 + $0xa68] sm:$0xff] }
 0x128   :  { %13065 = vst [vmem:[#allocation305_spill] sm:$0xff] %v7246_v0  ;;  %v7271_v0 = vld [vmem:[%s12758_s5 + $0xa70] sm:$0xff] }
 0x129   :  { %13066 = vst [vmem:[#allocation306_spill] sm:$0xff] %v7251_v32  ;;  %v7276_v32 = vld [vmem:[%s12758_s5 + $0xa78] sm:$0xff] }
 0x12a   :  { %13067 = vst [vmem:[#allocation307_spill] sm:$0xff] %v7256_v49  ;;  %v7281_v49 = vld [vmem:[%s12758_s5 + $0xa80] sm:$0xff] }
 0x12b   :  { %13068 = vst [vmem:[#allocation308_spill] sm:$0xff] %v7261_v33  ;;  %v7286_v33 = vld [vmem:[%s12758_s5 + $0xa88] sm:$0xff] }
 0x12c   :  { %13069 = vst [vmem:[#allocation309_spill] sm:$0xff] %v7266_v55  ;;  %v7291_v55 = vld [vmem:[%s12758_s5 + $0xa90] sm:$0xff] }
 0x12d   :  { %13070 = vst [vmem:[#allocation310_spill] sm:$0xff] %v7271_v0  ;;  %v7296_v0 = vld [vmem:[%s12758_s5 + $0xa98] sm:$0xff] }
 0x12e   :  { %13071 = vst [vmem:[#allocation311_spill] sm:$0xff] %v7276_v32  ;;  %v7301_v32 = vld [vmem:[%s12758_s5 + $0xaa0] sm:$0xff] }
 0x12f   :  { %13072 = vst [vmem:[#allocation312_spill] sm:$0xff] %v7281_v49  ;;  %v7306_v49 = vld [vmem:[%s12758_s5 + $0xaa8] sm:$0xff] }
 0x130   :  { %13073 = vst [vmem:[#allocation313_spill] sm:$0xff] %v7286_v33  ;;  %v7311_v33 = vld [vmem:[%s12758_s5 + $0xab0] sm:$0xff] }
 0x131   :  { %13074 = vst [vmem:[#allocation314_spill] sm:$0xff] %v7291_v55  ;;  %v7316_v55 = vld [vmem:[%s12758_s5 + $0xab8] sm:$0xff] }
 0x132   :  { %13075 = vst [vmem:[#allocation315_spill] sm:$0xff] %v7296_v0  ;;  %v7321_v0 = vld [vmem:[%s12758_s5 + $0xac0] sm:$0xff] }
 0x133   :  { %13076 = vst [vmem:[#allocation316_spill] sm:$0xff] %v7301_v32  ;;  %v7326_v32 = vld [vmem:[%s12758_s5 + $0xac8] sm:$0xff] }
 0x134   :  { %13077 = vst [vmem:[#allocation317_spill] sm:$0xff] %v7306_v49  ;;  %v7331_v49 = vld [vmem:[%s12758_s5 + $0xad0] sm:$0xff] }
 0x135   :  { %13078 = vst [vmem:[#allocation318_spill] sm:$0xff] %v7311_v33  ;;  %v7336_v33 = vld [vmem:[%s12758_s5 + $0xad8] sm:$0xff] }
 0x136   :  { %13079 = vst [vmem:[#allocation319_spill] sm:$0xff] %v7316_v55  ;;  %v7341_v55 = vld [vmem:[%s12758_s5 + $0xae0] sm:$0xff] }
 0x137   :  { %13080 = vst [vmem:[#allocation320_spill] sm:$0xff] %v7321_v0  ;;  %v7346_v0 = vld [vmem:[%s12758_s5 + $0xae8] sm:$0xff] }
 0x138   :  { %13081 = vst [vmem:[#allocation321_spill] sm:$0xff] %v7326_v32  ;;  %v7351_v32 = vld [vmem:[%s12758_s5 + $0xaf0] sm:$0xff] }
 0x139   :  { %13082 = vst [vmem:[#allocation322_spill] sm:$0xff] %v7331_v49  ;;  %v7356_v49 = vld [vmem:[%s12758_s5 + $0xaf8] sm:$0xff] }
 0x13a   :  { %13083 = vst [vmem:[#allocation323_spill] sm:$0xff] %v7336_v33  ;;  %v7361_v33 = vld [vmem:[%s12758_s5 + $0xb00] sm:$0xff] }
 0x13b   :  { %13084 = vst [vmem:[#allocation324_spill] sm:$0xff] %v7341_v55  ;;  %v7366_v55 = vld [vmem:[%s12758_s5 + $0xb08] sm:$0xff] }
 0x13c   :  { %13085 = vst [vmem:[#allocation325_spill] sm:$0xff] %v7346_v0  ;;  %v7371_v0 = vld [vmem:[%s12758_s5 + $0xb10] sm:$0xff] }
 0x13d   :  { %13086 = vst [vmem:[#allocation326_spill] sm:$0xff] %v7351_v32  ;;  %v7376_v32 = vld [vmem:[%s12758_s5 + $0xb18] sm:$0xff] }
 0x13e   :  { %13087 = vst [vmem:[#allocation327_spill] sm:$0xff] %v7356_v49  ;;  %v7381_v49 = vld [vmem:[%s12758_s5 + $0xb20] sm:$0xff] }
 0x13f   :  { %13088 = vst [vmem:[#allocation328_spill] sm:$0xff] %v7361_v33  ;;  %v7386_v33 = vld [vmem:[%s12758_s5 + $0xb28] sm:$0xff] }
 0x140   :  { %13089 = vst [vmem:[#allocation329_spill] sm:$0xff] %v7366_v55  ;;  %v7391_v55 = vld [vmem:[%s12758_s5 + $0xb30] sm:$0xff] }
 0x141   :  { %13090 = vst [vmem:[#allocation330_spill] sm:$0xff] %v7371_v0  ;;  %v7396_v0 = vld [vmem:[%s12758_s5 + $0xb38] sm:$0xff] }
 0x142   :  { %13091 = vst [vmem:[#allocation331_spill] sm:$0xff] %v7376_v32  ;;  %v7401_v32 = vld [vmem:[%s12758_s5 + $0xb40] sm:$0xff] }
 0x143   :  { %13092 = vst [vmem:[#allocation332_spill] sm:$0xff] %v7381_v49  ;;  %v7406_v49 = vld [vmem:[%s12758_s5 + $0xb48] sm:$0xff] }
 0x144   :  { %13093 = vst [vmem:[#allocation333_spill] sm:$0xff] %v7386_v33  ;;  %v7411_v33 = vld [vmem:[%s12758_s5 + $0xb50] sm:$0xff] }
 0x145   :  { %13094 = vst [vmem:[#allocation334_spill] sm:$0xff] %v7391_v55  ;;  %v7416_v55 = vld [vmem:[%s12758_s5 + $0xb58] sm:$0xff] }
 0x146   :  { %13095 = vst [vmem:[#allocation335_spill] sm:$0xff] %v7396_v0  ;;  %v7421_v0 = vld [vmem:[%s12758_s5 + $0xb60] sm:$0xff] }
 0x147   :  { %13096 = vst [vmem:[#allocation336_spill] sm:$0xff] %v7401_v32  ;;  %v7426_v32 = vld [vmem:[%s12758_s5 + $0xb68] sm:$0xff] }
 0x148   :  { %13097 = vst [vmem:[#allocation337_spill] sm:$0xff] %v7406_v49  ;;  %v7431_v49 = vld [vmem:[%s12758_s5 + $0xb70] sm:$0xff] }
 0x149   :  { %13098 = vst [vmem:[#allocation338_spill] sm:$0xff] %v7411_v33  ;;  %v7436_v33 = vld [vmem:[%s12758_s5 + $0xb78] sm:$0xff] }
 0x14a   :  { %13099 = vst [vmem:[#allocation339_spill] sm:$0xff] %v7416_v55  ;;  %v7441_v55 = vld [vmem:[%s12758_s5 + $0xb80] sm:$0xff] }
 0x14b   :  { %13100 = vst [vmem:[#allocation340_spill] sm:$0xff] %v7421_v0  ;;  %v7446_v0 = vld [vmem:[%s12758_s5 + $0xb88] sm:$0xff] }
 0x14c   :  { %13101 = vst [vmem:[#allocation341_spill] sm:$0xff] %v7426_v32  ;;  %v7451_v32 = vld [vmem:[%s12758_s5 + $0xb90] sm:$0xff] }
 0x14d   :  { %13102 = vst [vmem:[#allocation342_spill] sm:$0xff] %v7431_v49  ;;  %v7456_v49 = vld [vmem:[%s12758_s5 + $0xb98] sm:$0xff] }
 0x14e   :  { %13103 = vst [vmem:[#allocation343_spill] sm:$0xff] %v7436_v33  ;;  %v7461_v33 = vld [vmem:[%s12758_s5 + $0xba0] sm:$0xff] }
 0x14f   :  { %13104 = vst [vmem:[#allocation344_spill] sm:$0xff] %v7441_v55  ;;  %v7466_v55 = vld [vmem:[%s12758_s5 + $0xba8] sm:$0xff] }
 0x150   :  { %13105 = vst [vmem:[#allocation345_spill] sm:$0xff] %v7446_v0  ;;  %v7471_v0 = vld [vmem:[%s12758_s5 + $0xbb0] sm:$0xff] }
 0x151   :  { %13106 = vst [vmem:[#allocation346_spill] sm:$0xff] %v7451_v32  ;;  %v7476_v32 = vld [vmem:[%s12758_s5 + $0xbb8] sm:$0xff] }
 0x152   :  { %13107 = vst [vmem:[#allocation347_spill] sm:$0xff] %v7456_v49  ;;  %v7481_v49 = vld [vmem:[%s12758_s5 + $0xbc0] sm:$0xff] }
 0x153   :  { %13108 = vst [vmem:[#allocation348_spill] sm:$0xff] %v7461_v33  ;;  %v7486_v33 = vld [vmem:[%s12758_s5 + $0xbc8] sm:$0xff] }
 0x154   :  { %13109 = vst [vmem:[#allocation349_spill] sm:$0xff] %v7466_v55  ;;  %v7491_v55 = vld [vmem:[%s12758_s5 + $0xbd0] sm:$0xff] }
 0x155   :  { %13110 = vst [vmem:[#allocation350_spill] sm:$0xff] %v7471_v0  ;;  %v7496_v0 = vld [vmem:[%s12758_s5 + $0xbd8] sm:$0xff] }
 0x156   :  { %13111 = vst [vmem:[#allocation351_spill] sm:$0xff] %v7476_v32  ;;  %v7501_v32 = vld [vmem:[%s12758_s5 + $0xbe0] sm:$0xff] }
 0x157   :  { %13112 = vst [vmem:[#allocation352_spill] sm:$0xff] %v7481_v49  ;;  %v7506_v49 = vld [vmem:[%s12758_s5 + $0xbe8] sm:$0xff] }
 0x158   :  { %13113 = vst [vmem:[#allocation353_spill] sm:$0xff] %v7486_v33  ;;  %v7511_v33 = vld [vmem:[%s12758_s5 + $0xbf0] sm:$0xff] }
 0x159   :  { %13114 = vst [vmem:[#allocation354_spill] sm:$0xff] %v7491_v55  ;;  %v7516_v55 = vld [vmem:[%s12758_s5 + $0xbf8] sm:$0xff] }
 0x15a   :  { %13115 = vst [vmem:[#allocation355_spill] sm:$0xff] %v7496_v0  ;;  %v7521_v0 = vld [vmem:[%s12758_s5 + $0xc00] sm:$0xff] }
 0x15b   :  { %13116 = vst [vmem:[#allocation356_spill] sm:$0xff] %v7501_v32  ;;  %v7526_v32 = vld [vmem:[%s12758_s5 + $0xc08] sm:$0xff] }
 0x15c   :  { %13117 = vst [vmem:[#allocation357_spill] sm:$0xff] %v7506_v49  ;;  %v7531_v49 = vld [vmem:[%s12758_s5 + $0xc10] sm:$0xff] }
 0x15d   :  { %13118 = vst [vmem:[#allocation358_spill] sm:$0xff] %v7511_v33  ;;  %v7536_v33 = vld [vmem:[%s12758_s5 + $0xc18] sm:$0xff] }
 0x15e   :  { %13119 = vst [vmem:[#allocation359_spill] sm:$0xff] %v7516_v55  ;;  %v7541_v55 = vld [vmem:[%s12758_s5 + $0xc20] sm:$0xff] }
 0x15f   :  { %13120 = vst [vmem:[#allocation360_spill] sm:$0xff] %v7521_v0  ;;  %v7546_v0 = vld [vmem:[%s12758_s5 + $0xc28] sm:$0xff] }
 0x160   :  { %13121 = vst [vmem:[#allocation361_spill] sm:$0xff] %v7526_v32  ;;  %v7551_v32 = vld [vmem:[%s12758_s5 + $0xc30] sm:$0xff] }
 0x161   :  { %13122 = vst [vmem:[#allocation362_spill] sm:$0xff] %v7531_v49  ;;  %v7556_v49 = vld [vmem:[%s12758_s5 + $0xc38] sm:$0xff] }
 0x162   :  { %13123 = vst [vmem:[#allocation363_spill] sm:$0xff] %v7536_v33  ;;  %v7561_v33 = vld [vmem:[%s12758_s5 + $0xc40] sm:$0xff] }
 0x163   :  { %13124 = vst [vmem:[#allocation364_spill] sm:$0xff] %v7541_v55  ;;  %v7566_v55 = vld [vmem:[%s12758_s5 + $0xc48] sm:$0xff] }
 0x164   :  { %13125 = vst [vmem:[#allocation365_spill] sm:$0xff] %v7546_v0  ;;  %v7571_v0 = vld [vmem:[%s12758_s5 + $0xc50] sm:$0xff] }
 0x165   :  { %13126 = vst [vmem:[#allocation366_spill] sm:$0xff] %v7551_v32  ;;  %v7576_v32 = vld [vmem:[%s12758_s5 + $0xc58] sm:$0xff] }
 0x166   :  { %13127 = vst [vmem:[#allocation367_spill] sm:$0xff] %v7556_v49  ;;  %v7581_v49 = vld [vmem:[%s12758_s5 + $0xc60] sm:$0xff] }
 0x167   :  { %13128 = vst [vmem:[#allocation368_spill] sm:$0xff] %v7561_v33  ;;  %v7586_v33 = vld [vmem:[%s12758_s5 + $0xc68] sm:$0xff] }
 0x168   :  { %13129 = vst [vmem:[#allocation369_spill] sm:$0xff] %v7566_v55  ;;  %v7591_v55 = vld [vmem:[%s12758_s5 + $0xc70] sm:$0xff] }
 0x169   :  { %13130 = vst [vmem:[#allocation370_spill] sm:$0xff] %v7571_v0  ;;  %v7596_v0 = vld [vmem:[%s12758_s5 + $0xc78] sm:$0xff] }
 0x16a   :  { %13131 = vst [vmem:[#allocation371_spill] sm:$0xff] %v7576_v32  ;;  %v7601_v32 = vld [vmem:[%s12758_s5 + $0xc80] sm:$0xff] }
 0x16b   :  { %13132 = vst [vmem:[#allocation372_spill] sm:$0xff] %v7581_v49  ;;  %v7606_v49 = vld [vmem:[%s12758_s5 + $0xc88] sm:$0xff] }
 0x16c   :  { %13133 = vst [vmem:[#allocation373_spill] sm:$0xff] %v7586_v33  ;;  %v7611_v33 = vld [vmem:[%s12758_s5 + $0xc90] sm:$0xff] }
 0x16d   :  { %13134 = vst [vmem:[#allocation374_spill] sm:$0xff] %v7591_v55  ;;  %v7616_v55 = vld [vmem:[%s12758_s5 + $0xc98] sm:$0xff] }
 0x16e   :  { %13135 = vst [vmem:[#allocation375_spill] sm:$0xff] %v7596_v0  ;;  %v7621_v0 = vld [vmem:[%s12758_s5 + $0xca0] sm:$0xff] }
 0x16f   :  { %13136 = vst [vmem:[#allocation376_spill] sm:$0xff] %v7601_v32  ;;  %v7626_v32 = vld [vmem:[%s12758_s5 + $0xca8] sm:$0xff] }
 0x170   :  { %13137 = vst [vmem:[#allocation377_spill] sm:$0xff] %v7606_v49  ;;  %v7631_v49 = vld [vmem:[%s12758_s5 + $0xcb0] sm:$0xff] }
 0x171   :  { %13138 = vst [vmem:[#allocation378_spill] sm:$0xff] %v7611_v33  ;;  %v7636_v33 = vld [vmem:[%s12758_s5 + $0xcb8] sm:$0xff] }
 0x172   :  { %13139 = vst [vmem:[#allocation379_spill] sm:$0xff] %v7616_v55  ;;  %v7641_v55 = vld [vmem:[%s12758_s5 + $0xcc0] sm:$0xff] }
 0x173   :  { %13140 = vst [vmem:[#allocation380_spill] sm:$0xff] %v7621_v0  ;;  %v7646_v0 = vld [vmem:[%s12758_s5 + $0xcc8] sm:$0xff] }
 0x174   :  { %13141 = vst [vmem:[#allocation381_spill] sm:$0xff] %v7626_v32  ;;  %v7651_v32 = vld [vmem:[%s12758_s5 + $0xcd0] sm:$0xff] }
 0x175   :  { %13142 = vst [vmem:[#allocation382_spill] sm:$0xff] %v7631_v49  ;;  %v7656_v49 = vld [vmem:[%s12758_s5 + $0xcd8] sm:$0xff] }
 0x176   :  { %13143 = vst [vmem:[#allocation383_spill] sm:$0xff] %v7636_v33  ;;  %v7661_v33 = vld [vmem:[%s12758_s5 + $0xce0] sm:$0xff] }
 0x177   :  { %13144 = vst [vmem:[#allocation384_spill] sm:$0xff] %v7641_v55  ;;  %v7666_v55 = vld [vmem:[%s12758_s5 + $0xce8] sm:$0xff] }
 0x178   :  { %13145 = vst [vmem:[#allocation385_spill] sm:$0xff] %v7646_v0  ;;  %v7671_v0 = vld [vmem:[%s12758_s5 + $0xcf0] sm:$0xff] }
 0x179   :  { %13146 = vst [vmem:[#allocation386_spill] sm:$0xff] %v7651_v32  ;;  %v7676_v32 = vld [vmem:[%s12758_s5 + $0xcf8] sm:$0xff] }
 0x17a   :  { %13147 = vst [vmem:[#allocation387_spill] sm:$0xff] %v7656_v49  ;;  %v7681_v49 = vld [vmem:[%s12758_s5 + $0xd00] sm:$0xff] }
 0x17b   :  { %13148 = vst [vmem:[#allocation388_spill] sm:$0xff] %v7661_v33  ;;  %v7686_v33 = vld [vmem:[%s12758_s5 + $0xd08] sm:$0xff] }
 0x17c   :  { %13149 = vst [vmem:[#allocation389_spill] sm:$0xff] %v7666_v55  ;;  %v7691_v55 = vld [vmem:[%s12758_s5 + $0xd10] sm:$0xff] }
 0x17d   :  { %13150 = vst [vmem:[#allocation390_spill] sm:$0xff] %v7671_v0  ;;  %v7696_v0 = vld [vmem:[%s12758_s5 + $0xd18] sm:$0xff] }
 0x17e   :  { %13151 = vst [vmem:[#allocation391_spill] sm:$0xff] %v7676_v32  ;;  %v7701_v32 = vld [vmem:[%s12758_s5 + $0xd20] sm:$0xff] }
 0x17f   :  { %13152 = vst [vmem:[#allocation392_spill] sm:$0xff] %v7681_v49  ;;  %v7706_v49 = vld [vmem:[%s12758_s5 + $0xd28] sm:$0xff] }
 0x180   :  { %13153 = vst [vmem:[#allocation393_spill] sm:$0xff] %v7686_v33  ;;  %v7711_v33 = vld [vmem:[%s12758_s5 + $0xd30] sm:$0xff] }
 0x181   :  { %13154 = vst [vmem:[#allocation394_spill] sm:$0xff] %v7691_v55  ;;  %v7716_v55 = vld [vmem:[%s12758_s5 + $0xd38] sm:$0xff] }
 0x182   :  { %13155 = vst [vmem:[#allocation395_spill] sm:$0xff] %v7696_v0  ;;  %v7721_v0 = vld [vmem:[%s12758_s5 + $0xd40] sm:$0xff] }
 0x183   :  { %13156 = vst [vmem:[#allocation396_spill] sm:$0xff] %v7701_v32  ;;  %v7726_v32 = vld [vmem:[%s12758_s5 + $0xd48] sm:$0xff] }
 0x184   :  { %13157 = vst [vmem:[#allocation397_spill] sm:$0xff] %v7706_v49  ;;  %v7731_v49 = vld [vmem:[%s12758_s5 + $0xd50] sm:$0xff] }
 0x185   :  { %13158 = vst [vmem:[#allocation398_spill] sm:$0xff] %v7711_v33  ;;  %v7736_v33 = vld [vmem:[%s12758_s5 + $0xd58] sm:$0xff] }
 0x186   :  { %13159 = vst [vmem:[#allocation399_spill] sm:$0xff] %v7716_v55  ;;  %v7741_v55 = vld [vmem:[%s12758_s5 + $0xd60] sm:$0xff] }
 0x187   :  { %13160 = vst [vmem:[#allocation400_spill] sm:$0xff] %v7721_v0  ;;  %v7746_v0 = vld [vmem:[%s12758_s5 + $0xd68] sm:$0xff] }
 0x188   :  { %13161 = vst [vmem:[#allocation401_spill] sm:$0xff] %v7726_v32  ;;  %v7751_v32 = vld [vmem:[%s12758_s5 + $0xd70] sm:$0xff] }
 0x189   :  { %13162 = vst [vmem:[#allocation402_spill] sm:$0xff] %v7731_v49  ;;  %v7756_v49 = vld [vmem:[%s12758_s5 + $0xd78] sm:$0xff] }
 0x18a   :  { %13163 = vst [vmem:[#allocation403_spill] sm:$0xff] %v7736_v33  ;;  %v7761_v33 = vld [vmem:[%s12758_s5 + $0xd80] sm:$0xff] }
 0x18b   :  { %13164 = vst [vmem:[#allocation404_spill] sm:$0xff] %v7741_v55  ;;  %v7766_v55 = vld [vmem:[%s12758_s5 + $0xd88] sm:$0xff] }
 0x18c   :  { %13165 = vst [vmem:[#allocation405_spill] sm:$0xff] %v7746_v0  ;;  %v7771_v0 = vld [vmem:[%s12758_s5 + $0xd90] sm:$0xff] }
 0x18d   :  { %13166 = vst [vmem:[#allocation406_spill] sm:$0xff] %v7751_v32  ;;  %v7776_v32 = vld [vmem:[%s12758_s5 + $0xd98] sm:$0xff] }
 0x18e   :  { %13167 = vst [vmem:[#allocation407_spill] sm:$0xff] %v7756_v49  ;;  %v7781_v49 = vld [vmem:[%s12758_s5 + $0xda0] sm:$0xff] }
 0x18f   :  { %13168 = vst [vmem:[#allocation408_spill] sm:$0xff] %v7761_v33  ;;  %v7786_v33 = vld [vmem:[%s12758_s5 + $0xda8] sm:$0xff] }
 0x190   :  { %13169 = vst [vmem:[#allocation409_spill] sm:$0xff] %v7766_v55  ;;  %v7791_v55 = vld [vmem:[%s12758_s5 + $0xdb0] sm:$0xff] }
 0x191   :  { %13170 = vst [vmem:[#allocation410_spill] sm:$0xff] %v7771_v0  ;;  %v7796_v0 = vld [vmem:[%s12758_s5 + $0xdb8] sm:$0xff] }
 0x192   :  { %13171 = vst [vmem:[#allocation411_spill] sm:$0xff] %v7776_v32  ;;  %v7801_v32 = vld [vmem:[%s12758_s5 + $0xdc0] sm:$0xff] }
 0x193   :  { %13172 = vst [vmem:[#allocation412_spill] sm:$0xff] %v7781_v49  ;;  %v7806_v49 = vld [vmem:[%s12758_s5 + $0xdc8] sm:$0xff] }
 0x194   :  { %13173 = vst [vmem:[#allocation413_spill] sm:$0xff] %v7786_v33  ;;  %v7811_v33 = vld [vmem:[%s12758_s5 + $0xdd0] sm:$0xff] }
 0x195   :  { %13174 = vst [vmem:[#allocation414_spill] sm:$0xff] %v7791_v55  ;;  %v7816_v55 = vld [vmem:[%s12758_s5 + $0xdd8] sm:$0xff] }
 0x196   :  { %13175 = vst [vmem:[#allocation415_spill] sm:$0xff] %v7796_v0  ;;  %v7821_v0 = vld [vmem:[%s12758_s5 + $0xde0] sm:$0xff] }
 0x197   :  { %13176 = vst [vmem:[#allocation416_spill] sm:$0xff] %v7801_v32  ;;  %v7826_v32 = vld [vmem:[%s12758_s5 + $0xde8] sm:$0xff] }
 0x198   :  { %13177 = vst [vmem:[#allocation417_spill] sm:$0xff] %v7806_v49  ;;  %v7831_v49 = vld [vmem:[%s12758_s5 + $0xdf0] sm:$0xff] }
 0x199   :  { %13178 = vst [vmem:[#allocation418_spill] sm:$0xff] %v7811_v33  ;;  %v7836_v33 = vld [vmem:[%s12758_s5 + $0xdf8] sm:$0xff] }
 0x19a   :  { %13179 = vst [vmem:[#allocation419_spill] sm:$0xff] %v7816_v55  ;;  %v7841_v55 = vld [vmem:[%s12758_s5 + $0xe00] sm:$0xff] }
 0x19b   :  { %13180 = vst [vmem:[#allocation420_spill] sm:$0xff] %v7821_v0  ;;  %v7846_v0 = vld [vmem:[%s12758_s5 + $0xe08] sm:$0xff] }
 0x19c   :  { %13181 = vst [vmem:[#allocation421_spill] sm:$0xff] %v7826_v32  ;;  %v7851_v32 = vld [vmem:[%s12758_s5 + $0xe10] sm:$0xff] }
 0x19d   :  { %13182 = vst [vmem:[#allocation422_spill] sm:$0xff] %v7831_v49  ;;  %v7856_v49 = vld [vmem:[%s12758_s5 + $0xe18] sm:$0xff] }
 0x19e   :  { %13183 = vst [vmem:[#allocation423_spill] sm:$0xff] %v7836_v33  ;;  %v7861_v33 = vld [vmem:[%s12758_s5 + $0xe20] sm:$0xff] }
 0x19f   :  { %13184 = vst [vmem:[#allocation424_spill] sm:$0xff] %v7841_v55  ;;  %v7866_v55 = vld [vmem:[%s12758_s5 + $0xe28] sm:$0xff] }
 0x1a0   :  { %13185 = vst [vmem:[#allocation425_spill] sm:$0xff] %v7846_v0  ;;  %v7871_v0 = vld [vmem:[%s12758_s5 + $0xe30] sm:$0xff] }
 0x1a1   :  { %13186 = vst [vmem:[#allocation426_spill] sm:$0xff] %v7851_v32  ;;  %v7876_v32 = vld [vmem:[%s12758_s5 + $0xe38] sm:$0xff] }
 0x1a2   :  { %13187 = vst [vmem:[#allocation427_spill] sm:$0xff] %v7856_v49  ;;  %v7881_v49 = vld [vmem:[%s12758_s5 + $0xe40] sm:$0xff] }
 0x1a3   :  { %13188 = vst [vmem:[#allocation428_spill] sm:$0xff] %v7861_v33  ;;  %v7886_v33 = vld [vmem:[%s12758_s5 + $0xe48] sm:$0xff] }
 0x1a4   :  { %13189 = vst [vmem:[#allocation429_spill] sm:$0xff] %v7866_v55  ;;  %v7891_v55 = vld [vmem:[%s12758_s5 + $0xe50] sm:$0xff] }
 0x1a5   :  { %13190 = vst [vmem:[#allocation430_spill] sm:$0xff] %v7871_v0  ;;  %v7896_v0 = vld [vmem:[%s12758_s5 + $0xe58] sm:$0xff] }
 0x1a6   :  { %13191 = vst [vmem:[#allocation431_spill] sm:$0xff] %v7876_v32  ;;  %v7901_v32 = vld [vmem:[%s12758_s5 + $0xe60] sm:$0xff] }
 0x1a7   :  { %13192 = vst [vmem:[#allocation432_spill] sm:$0xff] %v7881_v49  ;;  %v7906_v49 = vld [vmem:[%s12758_s5 + $0xe68] sm:$0xff] }
 0x1a8   :  { %13193 = vst [vmem:[#allocation433_spill] sm:$0xff] %v7886_v33  ;;  %v7911_v33 = vld [vmem:[%s12758_s5 + $0xe70] sm:$0xff] }
 0x1a9   :  { %13194 = vst [vmem:[#allocation434_spill] sm:$0xff] %v7891_v55  ;;  %v7916_v55 = vld [vmem:[%s12758_s5 + $0xe78] sm:$0xff] }
 0x1aa   :  { %13195 = vst [vmem:[#allocation435_spill] sm:$0xff] %v7896_v0  ;;  %v7921_v0 = vld [vmem:[%s12758_s5 + $0xe80] sm:$0xff] }
 0x1ab   :  { %13196 = vst [vmem:[#allocation436_spill] sm:$0xff] %v7901_v32  ;;  %v7926_v32 = vld [vmem:[%s12758_s5 + $0xe88] sm:$0xff] }
 0x1ac   :  { %13197 = vst [vmem:[#allocation437_spill] sm:$0xff] %v7906_v49  ;;  %v7931_v49 = vld [vmem:[%s12758_s5 + $0xe90] sm:$0xff] }
 0x1ad   :  { %13198 = vst [vmem:[#allocation438_spill] sm:$0xff] %v7911_v33  ;;  %v7936_v33 = vld [vmem:[%s12758_s5 + $0xe98] sm:$0xff] }
 0x1ae   :  { %13199 = vst [vmem:[#allocation439_spill] sm:$0xff] %v7916_v55  ;;  %v7941_v55 = vld [vmem:[%s12758_s5 + $0xea0] sm:$0xff] }
 0x1af   :  { %13200 = vst [vmem:[#allocation440_spill] sm:$0xff] %v7921_v0  ;;  %v7946_v0 = vld [vmem:[%s12758_s5 + $0xea8] sm:$0xff] }
 0x1b0   :  { %13201 = vst [vmem:[#allocation441_spill] sm:$0xff] %v7926_v32  ;;  %v7951_v32 = vld [vmem:[%s12758_s5 + $0xeb0] sm:$0xff] }
 0x1b1   :  { %13202 = vst [vmem:[#allocation442_spill] sm:$0xff] %v7931_v49  ;;  %v7956_v49 = vld [vmem:[%s12758_s5 + $0xeb8] sm:$0xff] }
 0x1b2   :  { %13203 = vst [vmem:[#allocation443_spill] sm:$0xff] %v7936_v33  ;;  %v7961_v33 = vld [vmem:[%s12758_s5 + $0xec0] sm:$0xff] }
 0x1b3   :  { %13204 = vst [vmem:[#allocation444_spill] sm:$0xff] %v7941_v55  ;;  %v7966_v55 = vld [vmem:[%s12758_s5 + $0xec8] sm:$0xff] }
 0x1b4   :  { %13205 = vst [vmem:[#allocation445_spill] sm:$0xff] %v7946_v0  ;;  %v7971_v0 = vld [vmem:[%s12758_s5 + $0xed0] sm:$0xff] }
 0x1b5   :  { %13206 = vst [vmem:[#allocation446_spill] sm:$0xff] %v7951_v32  ;;  %v7976_v32 = vld [vmem:[%s12758_s5 + $0xed8] sm:$0xff] }
 0x1b6   :  { %13207 = vst [vmem:[#allocation447_spill] sm:$0xff] %v7956_v49  ;;  %v7981_v49 = vld [vmem:[%s12758_s5 + $0xee0] sm:$0xff] }
 0x1b7   :  { %13208 = vst [vmem:[#allocation448_spill] sm:$0xff] %v7961_v33  ;;  %v7986_v33 = vld [vmem:[%s12758_s5 + $0xee8] sm:$0xff] }
 0x1b8   :  { %13209 = vst [vmem:[#allocation449_spill] sm:$0xff] %v7966_v55  ;;  %v7991_v55 = vld [vmem:[%s12758_s5 + $0xef0] sm:$0xff] }
 0x1b9   :  { %13210 = vst [vmem:[#allocation450_spill] sm:$0xff] %v7971_v0  ;;  %v7996_v0 = vld [vmem:[%s12758_s5 + $0xef8] sm:$0xff] }
 0x1ba   :  { %13211 = vst [vmem:[#allocation451_spill] sm:$0xff] %v7976_v32  ;;  %v8001_v32 = vld [vmem:[%s12758_s5 + $0xf00] sm:$0xff] }
 0x1bb   :  { %13212 = vst [vmem:[#allocation452_spill] sm:$0xff] %v7981_v49  ;;  %v8006_v49 = vld [vmem:[%s12758_s5 + $0xf08] sm:$0xff] }
 0x1bc   :  { %13213 = vst [vmem:[#allocation453_spill] sm:$0xff] %v7986_v33  ;;  %v8011_v33 = vld [vmem:[%s12758_s5 + $0xf10] sm:$0xff] }
 0x1bd   :  { %13214 = vst [vmem:[#allocation454_spill] sm:$0xff] %v7991_v55  ;;  %v8016_v55 = vld [vmem:[%s12758_s5 + $0xf18] sm:$0xff] }
 0x1be   :  { %13215 = vst [vmem:[#allocation455_spill] sm:$0xff] %v7996_v0  ;;  %v8021_v0 = vld [vmem:[%s12758_s5 + $0xf20] sm:$0xff] }
 0x1bf   :  { %13216 = vst [vmem:[#allocation456_spill] sm:$0xff] %v8001_v32  ;;  %v8026_v32 = vld [vmem:[%s12758_s5 + $0xf28] sm:$0xff] }
 0x1c0   :  { %13217 = vst [vmem:[#allocation457_spill] sm:$0xff] %v8006_v49  ;;  %v8031_v49 = vld [vmem:[%s12758_s5 + $0xf30] sm:$0xff] }
 0x1c1   :  { %13218 = vst [vmem:[#allocation458_spill] sm:$0xff] %v8011_v33  ;;  %v8036_v33 = vld [vmem:[%s12758_s5 + $0xf38] sm:$0xff] }
 0x1c2   :  { %13219 = vst [vmem:[#allocation459_spill] sm:$0xff] %v8016_v55  ;;  %v8041_v55 = vld [vmem:[%s12758_s5 + $0xf40] sm:$0xff] }
 0x1c3   :  { %13220 = vst [vmem:[#allocation460_spill] sm:$0xff] %v8021_v0  ;;  %v8046_v0 = vld [vmem:[%s12758_s5 + $0xf48] sm:$0xff] }
 0x1c4   :  { %13221 = vst [vmem:[#allocation461_spill] sm:$0xff] %v8026_v32  ;;  %v8051_v32 = vld [vmem:[%s12758_s5 + $0xf50] sm:$0xff] }
 0x1c5   :  { %13222 = vst [vmem:[#allocation462_spill] sm:$0xff] %v8031_v49  ;;  %v8056_v49 = vld [vmem:[%s12758_s5 + $0xf58] sm:$0xff] }
 0x1c6   :  { %13223 = vst [vmem:[#allocation463_spill] sm:$0xff] %v8036_v33  ;;  %v8061_v33 = vld [vmem:[%s12758_s5 + $0xf60] sm:$0xff] }
 0x1c7   :  { %13224 = vst [vmem:[#allocation464_spill] sm:$0xff] %v8041_v55  ;;  %v8066_v55 = vld [vmem:[%s12758_s5 + $0xf68] sm:$0xff] }
 0x1c8   :  { %13225 = vst [vmem:[#allocation465_spill] sm:$0xff] %v8046_v0  ;;  %v8071_v0 = vld [vmem:[%s12758_s5 + $0xf70] sm:$0xff] }
 0x1c9   :  { %13226 = vst [vmem:[#allocation466_spill] sm:$0xff] %v8051_v32  ;;  %v8076_v32 = vld [vmem:[%s12758_s5 + $0xf78] sm:$0xff] }
 0x1ca   :  { %13227 = vst [vmem:[#allocation467_spill] sm:$0xff] %v8056_v49  ;;  %v8081_v49 = vld [vmem:[%s12758_s5 + $0xf80] sm:$0xff] }
 0x1cb   :  { %13228 = vst [vmem:[#allocation468_spill] sm:$0xff] %v8061_v33  ;;  %v8086_v33 = vld [vmem:[%s12758_s5 + $0xf88] sm:$0xff] }
 0x1cc   :  { %13229 = vst [vmem:[#allocation469_spill] sm:$0xff] %v8066_v55  ;;  %v8091_v55 = vld [vmem:[%s12758_s5 + $0xf90] sm:$0xff] }
 0x1cd   :  { %13230 = vst [vmem:[#allocation470_spill] sm:$0xff] %v8071_v0  ;;  %v8096_v0 = vld [vmem:[%s12758_s5 + $0xf98] sm:$0xff] }
 0x1ce   :  { %13231 = vst [vmem:[#allocation471_spill] sm:$0xff] %v8076_v32  ;;  %v8101_v32 = vld [vmem:[%s12758_s5 + $0xfa0] sm:$0xff] }
 0x1cf   :  { %13232 = vst [vmem:[#allocation472_spill] sm:$0xff] %v8081_v49  ;;  %v8106_v49 = vld [vmem:[%s12758_s5 + $0xfa8] sm:$0xff] }
 0x1d0   :  { %13233 = vst [vmem:[#allocation473_spill] sm:$0xff] %v8086_v33  ;;  %v8111_v33 = vld [vmem:[%s12758_s5 + $0xfb0] sm:$0xff] }
 0x1d1   :  { %13234 = vst [vmem:[#allocation474_spill] sm:$0xff] %v8091_v55  ;;  %v8116_v55 = vld [vmem:[%s12758_s5 + $0xfb8] sm:$0xff] }
 0x1d2   :  { %13235 = vst [vmem:[#allocation475_spill] sm:$0xff] %v8096_v0  ;;  %v8121_v0 = vld [vmem:[%s12758_s5 + $0xfc0] sm:$0xff] }
 0x1d3   :  { %13236 = vst [vmem:[#allocation476_spill] sm:$0xff] %v8101_v32  ;;  %v8126_v32 = vld [vmem:[%s12758_s5 + $0xfc8] sm:$0xff] }
 0x1d4   :  { %13237 = vst [vmem:[#allocation477_spill] sm:$0xff] %v8106_v49  ;;  %v8131_v49 = vld [vmem:[%s12758_s5 + $0xfd0] sm:$0xff] }
 0x1d5   :  { %13238 = vst [vmem:[#allocation478_spill] sm:$0xff] %v8111_v33  ;;  %v8136_v33 = vld [vmem:[%s12758_s5 + $0xfd8] sm:$0xff] }
 0x1d6   :  { %13239 = vst [vmem:[#allocation479_spill] sm:$0xff] %v8116_v55  ;;  %v8141_v55 = vld [vmem:[%s12758_s5 + $0xfe0] sm:$0xff] }
 0x1d7   :  { %13240 = vst [vmem:[#allocation480_spill] sm:$0xff] %v8121_v0  ;;  %v8146_v0 = vld [vmem:[%s12758_s5 + $0xfe8] sm:$0xff] }
 0x1d8   :  { %13241 = vst [vmem:[#allocation481_spill] sm:$0xff] %v8126_v32  ;;  %v8151_v32 = vld [vmem:[%s12758_s5 + $0xff0] sm:$0xff] }
 0x1d9   :  { %13242 = vst [vmem:[#allocation482_spill] sm:$0xff] %v8131_v49  ;;  %v8156_v49 = vld [vmem:[%s12758_s5 + $0xff8] sm:$0xff] }
 0x1da   :  { %13243 = vst [vmem:[#allocation483_spill] sm:$0xff] %v8136_v33  ;;  %v8161_v33 = vld [vmem:[%s12758_s5 + $0x1000] sm:$0xff] }
 0x1db   :  { %13244 = vst [vmem:[#allocation484_spill] sm:$0xff] %v8141_v55  ;;  %v8166_v55 = vld [vmem:[%s12758_s5 + $0x1008] sm:$0xff] }
 0x1dc   :  { %13245 = vst [vmem:[#allocation485_spill] sm:$0xff] %v8146_v0  ;;  %v8171_v0 = vld [vmem:[%s12758_s5 + $0x1010] sm:$0xff] }
 0x1dd   :  { %13246 = vst [vmem:[#allocation486_spill] sm:$0xff] %v8151_v32  ;;  %v8176_v32 = vld [vmem:[%s12758_s5 + $0x1018] sm:$0xff] }
 0x1de   :  { %13247 = vst [vmem:[#allocation487_spill] sm:$0xff] %v8156_v49  ;;  %v8181_v49 = vld [vmem:[%s12758_s5 + $0x1020] sm:$0xff] }
 0x1df   :  { %13248 = vst [vmem:[#allocation488_spill] sm:$0xff] %v8161_v33  ;;  %v8186_v33 = vld [vmem:[%s12758_s5 + $0x1028] sm:$0xff] }
 0x1e0   :  { %13249 = vst [vmem:[#allocation489_spill] sm:$0xff] %v8166_v55  ;;  %v8191_v55 = vld [vmem:[%s12758_s5 + $0x1030] sm:$0xff] }
 0x1e1   :  { %13250 = vst [vmem:[#allocation490_spill] sm:$0xff] %v8171_v0  ;;  %v8196_v0 = vld [vmem:[%s12758_s5 + $0x1038] sm:$0xff] }
 0x1e2   :  { %13251 = vst [vmem:[#allocation491_spill] sm:$0xff] %v8176_v32  ;;  %v8201_v32 = vld [vmem:[%s12758_s5 + $0x1040] sm:$0xff] }
 0x1e3   :  { %13252 = vst [vmem:[#allocation492_spill] sm:$0xff] %v8181_v49  ;;  %v8206_v49 = vld [vmem:[%s12758_s5 + $0x1048] sm:$0xff] }
 0x1e4   :  { %13253 = vst [vmem:[#allocation493_spill] sm:$0xff] %v8186_v33  ;;  %v8211_v33 = vld [vmem:[%s12758_s5 + $0x1050] sm:$0xff] }
 0x1e5   :  { %13254 = vst [vmem:[#allocation494_spill] sm:$0xff] %v8191_v55  ;;  %v8216_v55 = vld [vmem:[%s12758_s5 + $0x1058] sm:$0xff] }
 0x1e6   :  { %13255 = vst [vmem:[#allocation495_spill] sm:$0xff] %v8196_v0  ;;  %v8221_v0 = vld [vmem:[%s12758_s5 + $0x1060] sm:$0xff] }
 0x1e7   :  { %13256 = vst [vmem:[#allocation496_spill] sm:$0xff] %v8201_v32  ;;  %v8226_v32 = vld [vmem:[%s12758_s5 + $0x1068] sm:$0xff] }
 0x1e8   :  { %13257 = vst [vmem:[#allocation497_spill] sm:$0xff] %v8206_v49  ;;  %v8231_v49 = vld [vmem:[%s12758_s5 + $0x1070] sm:$0xff] }
 0x1e9   :  { %13258 = vst [vmem:[#allocation498_spill] sm:$0xff] %v8211_v33  ;;  %v8236_v33 = vld [vmem:[%s12758_s5 + $0x1078] sm:$0xff] }
 0x1ea   :  { %13259 = vst [vmem:[#allocation499_spill] sm:$0xff] %v8216_v55  ;;  %v8241_v55 = vld [vmem:[%s12758_s5 + $0x1080] sm:$0xff] }
 0x1eb   :  { %13260 = vst [vmem:[#allocation500_spill] sm:$0xff] %v8221_v0  ;;  %v8246_v0 = vld [vmem:[%s12758_s5 + $0x1088] sm:$0xff] }
 0x1ec   :  { %13261 = vst [vmem:[#allocation501_spill] sm:$0xff] %v8226_v32  ;;  %v8251_v32 = vld [vmem:[%s12758_s5 + $0x1090] sm:$0xff] }
 0x1ed   :  { %13262 = vst [vmem:[#allocation502_spill] sm:$0xff] %v8231_v49  ;;  %v8256_v49 = vld [vmem:[%s12758_s5 + $0x1098] sm:$0xff] }
 0x1ee   :  { %13263 = vst [vmem:[#allocation503_spill] sm:$0xff] %v8236_v33  ;;  %v8261_v33 = vld [vmem:[%s12758_s5 + $0x10a0] sm:$0xff] }
 0x1ef   :  { %13264 = vst [vmem:[#allocation504_spill] sm:$0xff] %v8241_v55  ;;  %v8266_v55 = vld [vmem:[%s12758_s5 + $0x10a8] sm:$0xff] }
 0x1f0   :  { %13265 = vst [vmem:[#allocation505_spill] sm:$0xff] %v8246_v0  ;;  %v8271_v0 = vld [vmem:[%s12758_s5 + $0x10b0] sm:$0xff] }
 0x1f1   :  { %13266 = vst [vmem:[#allocation506_spill] sm:$0xff] %v8251_v32  ;;  %v8276_v32 = vld [vmem:[%s12758_s5 + $0x10b8] sm:$0xff] }
 0x1f2   :  { %13267 = vst [vmem:[#allocation507_spill] sm:$0xff] %v8256_v49  ;;  %v8281_v49 = vld [vmem:[%s12758_s5 + $0x10c0] sm:$0xff] }
 0x1f3   :  { %13268 = vst [vmem:[#allocation508_spill] sm:$0xff] %v8261_v33  ;;  %v8286_v33 = vld [vmem:[%s12758_s5 + $0x10c8] sm:$0xff] }
 0x1f4   :  { %13269 = vst [vmem:[#allocation509_spill] sm:$0xff] %v8266_v55  ;;  %v8291_v55 = vld [vmem:[%s12758_s5 + $0x10d0] sm:$0xff] }
 0x1f5   :  { %13270 = vst [vmem:[#allocation510_spill] sm:$0xff] %v8271_v0  ;;  %v8296_v0 = vld [vmem:[%s12758_s5 + $0x10d8] sm:$0xff] }
 0x1f6   :  { %13271 = vst [vmem:[#allocation511_spill] sm:$0xff] %v8276_v32  ;;  %v8301_v32 = vld [vmem:[%s12758_s5 + $0x10e0] sm:$0xff] }
 0x1f7   :  { %13272 = vst [vmem:[#allocation512_spill] sm:$0xff] %v8281_v49  ;;  %v8306_v49 = vld [vmem:[%s12758_s5 + $0x10e8] sm:$0xff] }
 0x1f8   :  { %13273 = vst [vmem:[#allocation513_spill] sm:$0xff] %v8286_v33  ;;  %v8311_v33 = vld [vmem:[%s12758_s5 + $0x10f0] sm:$0xff] }
 0x1f9   :  { %13274 = vst [vmem:[#allocation514_spill] sm:$0xff] %v8291_v55  ;;  %v8316_v55 = vld [vmem:[%s12758_s5 + $0x10f8] sm:$0xff] }
 0x1fa   :  { %13275 = vst [vmem:[#allocation515_spill] sm:$0xff] %v8296_v0  ;;  %v8321_v0 = vld [vmem:[%s12758_s5 + $0x1100] sm:$0xff] }
 0x1fb   :  { %13276 = vst [vmem:[#allocation516_spill] sm:$0xff] %v8301_v32  ;;  %v8326_v32 = vld [vmem:[%s12758_s5 + $0x1108] sm:$0xff] }
 0x1fc   :  { %13277 = vst [vmem:[#allocation517_spill] sm:$0xff] %v8306_v49  ;;  %v8331_v49 = vld [vmem:[%s12758_s5 + $0x1110] sm:$0xff] }
 0x1fd   :  { %13278 = vst [vmem:[#allocation518_spill] sm:$0xff] %v8311_v33  ;;  %v8336_v33 = vld [vmem:[%s12758_s5 + $0x1118] sm:$0xff] }
 0x1fe   :  { %13279 = vst [vmem:[#allocation519_spill] sm:$0xff] %v8316_v55  ;;  %v8341_v55 = vld [vmem:[%s12758_s5 + $0x1120] sm:$0xff] }
 0x1ff   :  { %13280 = vst [vmem:[#allocation520_spill] sm:$0xff] %v8321_v0  ;;  %v8346_v0 = vld [vmem:[%s12758_s5 + $0x1128] sm:$0xff] }
 0x200   :  { %13281 = vst [vmem:[#allocation521_spill] sm:$0xff] %v8326_v32  ;;  %v8351_v32 = vld [vmem:[%s12758_s5 + $0x1130] sm:$0xff] }
 0x201   :  { %13282 = vst [vmem:[#allocation522_spill] sm:$0xff] %v8331_v49  ;;  %v8356_v49 = vld [vmem:[%s12758_s5 + $0x1138] sm:$0xff] }
 0x202   :  { %13283 = vst [vmem:[#allocation523_spill] sm:$0xff] %v8336_v33  ;;  %v8361_v33 = vld [vmem:[%s12758_s5 + $0x1140] sm:$0xff] }
 0x203   :  { %13284 = vst [vmem:[#allocation524_spill] sm:$0xff] %v8341_v55  ;;  %v8366_v55 = vld [vmem:[%s12758_s5 + $0x1148] sm:$0xff] }
 0x204   :  { %13285 = vst [vmem:[#allocation525_spill] sm:$0xff] %v8346_v0  ;;  %v8371_v0 = vld [vmem:[%s12758_s5 + $0x1150] sm:$0xff] }
 0x205   :  { %13286 = vst [vmem:[#allocation526_spill] sm:$0xff] %v8351_v32  ;;  %v8376_v32 = vld [vmem:[%s12758_s5 + $0x1158] sm:$0xff] }
 0x206   :  { %13287 = vst [vmem:[#allocation527_spill] sm:$0xff] %v8356_v49  ;;  %v8381_v49 = vld [vmem:[%s12758_s5 + $0x1160] sm:$0xff] }
 0x207   :  { %13288 = vst [vmem:[#allocation528_spill] sm:$0xff] %v8361_v33  ;;  %v8386_v33 = vld [vmem:[%s12758_s5 + $0x1168] sm:$0xff] }
 0x208   :  { %13289 = vst [vmem:[#allocation529_spill] sm:$0xff] %v8366_v55  ;;  %v8391_v55 = vld [vmem:[%s12758_s5 + $0x1170] sm:$0xff] }
 0x209   :  { %13290 = vst [vmem:[#allocation530_spill] sm:$0xff] %v8371_v0  ;;  %v8396_v0 = vld [vmem:[%s12758_s5 + $0x1178] sm:$0xff] }
 0x20a   :  { %13291 = vst [vmem:[#allocation531_spill] sm:$0xff] %v8376_v32  ;;  %v8401_v32 = vld [vmem:[%s12758_s5 + $0x1180] sm:$0xff] }
 0x20b   :  { %13292 = vst [vmem:[#allocation532_spill] sm:$0xff] %v8381_v49  ;;  %v8406_v49 = vld [vmem:[%s12758_s5 + $0x1188] sm:$0xff] }
 0x20c   :  { %13293 = vst [vmem:[#allocation533_spill] sm:$0xff] %v8386_v33  ;;  %v8411_v33 = vld [vmem:[%s12758_s5 + $0x1190] sm:$0xff] }
 0x20d   :  { %13294 = vst [vmem:[#allocation534_spill] sm:$0xff] %v8391_v55  ;;  %v8416_v55 = vld [vmem:[%s12758_s5 + $0x1198] sm:$0xff] }
 0x20e   :  { %13295 = vst [vmem:[#allocation535_spill] sm:$0xff] %v8396_v0  ;;  %v8421_v0 = vld [vmem:[%s12758_s5 + $0x11a0] sm:$0xff] }
 0x20f   :  { %13296 = vst [vmem:[#allocation536_spill] sm:$0xff] %v8401_v32  ;;  %v8426_v32 = vld [vmem:[%s12758_s5 + $0x11a8] sm:$0xff] }
 0x210   :  { %13297 = vst [vmem:[#allocation537_spill] sm:$0xff] %v8406_v49  ;;  %v8431_v49 = vld [vmem:[%s12758_s5 + $0x11b0] sm:$0xff] }
 0x211   :  { %13298 = vst [vmem:[#allocation538_spill] sm:$0xff] %v8411_v33  ;;  %v8436_v33 = vld [vmem:[%s12758_s5 + $0x11b8] sm:$0xff] }
 0x212   :  { %13299 = vst [vmem:[#allocation539_spill] sm:$0xff] %v8416_v55  ;;  %v8441_v55 = vld [vmem:[%s12758_s5 + $0x11c0] sm:$0xff] }
 0x213   :  { %13300 = vst [vmem:[#allocation540_spill] sm:$0xff] %v8421_v0  ;;  %v8446_v0 = vld [vmem:[%s12758_s5 + $0x11c8] sm:$0xff] }
 0x214   :  { %13301 = vst [vmem:[#allocation541_spill] sm:$0xff] %v8426_v32  ;;  %v8451_v32 = vld [vmem:[%s12758_s5 + $0x11d0] sm:$0xff] }
 0x215   :  { %13302 = vst [vmem:[#allocation542_spill] sm:$0xff] %v8431_v49  ;;  %v8456_v49 = vld [vmem:[%s12758_s5 + $0x11d8] sm:$0xff] }
 0x216   :  { %13303 = vst [vmem:[#allocation543_spill] sm:$0xff] %v8436_v33  ;;  %v8461_v33 = vld [vmem:[%s12758_s5 + $0x11e0] sm:$0xff] }
 0x217   :  { %13304 = vst [vmem:[#allocation544_spill] sm:$0xff] %v8441_v55  ;;  %v8466_v55 = vld [vmem:[%s12758_s5 + $0x11e8] sm:$0xff] }
 0x218   :  { %13305 = vst [vmem:[#allocation545_spill] sm:$0xff] %v8446_v0  ;;  %v8471_v0 = vld [vmem:[%s12758_s5 + $0x11f0] sm:$0xff] }
 0x219   :  { %13306 = vst [vmem:[#allocation546_spill] sm:$0xff] %v8451_v32  ;;  %v8476_v32 = vld [vmem:[%s12758_s5 + $0x11f8] sm:$0xff] }
 0x21a   :  { %13307 = vst [vmem:[#allocation547_spill] sm:$0xff] %v8456_v49  ;;  %v8481_v49 = vld [vmem:[%s12758_s5 + $0x1200] sm:$0xff] }
 0x21b   :  { %13308 = vst [vmem:[#allocation548_spill] sm:$0xff] %v8461_v33  ;;  %v8486_v33 = vld [vmem:[%s12758_s5 + $0x1208] sm:$0xff] }
 0x21c   :  { %13309 = vst [vmem:[#allocation549_spill] sm:$0xff] %v8466_v55  ;;  %v8491_v55 = vld [vmem:[%s12758_s5 + $0x1210] sm:$0xff] }
 0x21d   :  { %13310 = vst [vmem:[#allocation550_spill] sm:$0xff] %v8471_v0  ;;  %v8496_v0 = vld [vmem:[%s12758_s5 + $0x1218] sm:$0xff] }
 0x21e   :  { %13311 = vst [vmem:[#allocation551_spill] sm:$0xff] %v8476_v32  ;;  %v8501_v32 = vld [vmem:[%s12758_s5 + $0x1220] sm:$0xff] }
 0x21f   :  { %13312 = vst [vmem:[#allocation552_spill] sm:$0xff] %v8481_v49  ;;  %v8506_v49 = vld [vmem:[%s12758_s5 + $0x1228] sm:$0xff] }
 0x220   :  { %13313 = vst [vmem:[#allocation553_spill] sm:$0xff] %v8486_v33  ;;  %v8511_v33 = vld [vmem:[%s12758_s5 + $0x1230] sm:$0xff] }
 0x221   :  { %13314 = vst [vmem:[#allocation554_spill] sm:$0xff] %v8491_v55  ;;  %v8516_v55 = vld [vmem:[%s12758_s5 + $0x1238] sm:$0xff] }
 0x222   :  { %13315 = vst [vmem:[#allocation555_spill] sm:$0xff] %v8496_v0  ;;  %v8521_v0 = vld [vmem:[%s12758_s5 + $0x1240] sm:$0xff] }
 0x223   :  { %13316 = vst [vmem:[#allocation556_spill] sm:$0xff] %v8501_v32  ;;  %v8526_v32 = vld [vmem:[%s12758_s5 + $0x1248] sm:$0xff] }
 0x224   :  { %13317 = vst [vmem:[#allocation557_spill] sm:$0xff] %v8506_v49  ;;  %v8531_v49 = vld [vmem:[%s12758_s5 + $0x1250] sm:$0xff] }
 0x225   :  { %13318 = vst [vmem:[#allocation558_spill] sm:$0xff] %v8511_v33  ;;  %v8536_v33 = vld [vmem:[%s12758_s5 + $0x1258] sm:$0xff] }
 0x226   :  { %13319 = vst [vmem:[#allocation559_spill] sm:$0xff] %v8516_v55  ;;  %v8541_v55 = vld [vmem:[%s12758_s5 + $0x1260] sm:$0xff] }
 0x227   :  { %13320 = vst [vmem:[#allocation560_spill] sm:$0xff] %v8521_v0  ;;  %v8546_v0 = vld [vmem:[%s12758_s5 + $0x1268] sm:$0xff] }
 0x228   :  { %13321 = vst [vmem:[#allocation561_spill] sm:$0xff] %v8526_v32  ;;  %v8551_v32 = vld [vmem:[%s12758_s5 + $0x1270] sm:$0xff] }
 0x229   :  { %13322 = vst [vmem:[#allocation562_spill] sm:$0xff] %v8531_v49  ;;  %v8556_v49 = vld [vmem:[%s12758_s5 + $0x1278] sm:$0xff] }
 0x22a   :  { %13323 = vst [vmem:[#allocation563_spill] sm:$0xff] %v8536_v33  ;;  %v8561_v33 = vld [vmem:[%s12758_s5 + $0x1280] sm:$0xff] }
 0x22b   :  { %13324 = vst [vmem:[#allocation564_spill] sm:$0xff] %v8541_v55  ;;  %v8566_v55 = vld [vmem:[%s12758_s5 + $0x1288] sm:$0xff] }
 0x22c   :  { %13325 = vst [vmem:[#allocation565_spill] sm:$0xff] %v8546_v0  ;;  %v8571_v0 = vld [vmem:[%s12758_s5 + $0x1290] sm:$0xff] }
 0x22d   :  { %13326 = vst [vmem:[#allocation566_spill] sm:$0xff] %v8551_v32  ;;  %v8576_v32 = vld [vmem:[%s12758_s5 + $0x1298] sm:$0xff] }
 0x22e   :  { %13327 = vst [vmem:[#allocation567_spill] sm:$0xff] %v8556_v49  ;;  %v8581_v49 = vld [vmem:[%s12758_s5 + $0x12a0] sm:$0xff] }
 0x22f   :  { %13328 = vst [vmem:[#allocation568_spill] sm:$0xff] %v8561_v33  ;;  %v8586_v33 = vld [vmem:[%s12758_s5 + $0x12a8] sm:$0xff] }
 0x230   :  { %13329 = vst [vmem:[#allocation569_spill] sm:$0xff] %v8566_v55  ;;  %v8591_v55 = vld [vmem:[%s12758_s5 + $0x12b0] sm:$0xff] }
 0x231   :  { %13330 = vst [vmem:[#allocation570_spill] sm:$0xff] %v8571_v0  ;;  %v8596_v0 = vld [vmem:[%s12758_s5 + $0x12b8] sm:$0xff] }
 0x232   :  { %13331 = vst [vmem:[#allocation571_spill] sm:$0xff] %v8576_v32  ;;  %v8601_v32 = vld [vmem:[%s12758_s5 + $0x12c0] sm:$0xff] }
 0x233   :  { %13332 = vst [vmem:[#allocation572_spill] sm:$0xff] %v8581_v49  ;;  %v8606_v49 = vld [vmem:[%s12758_s5 + $0x12c8] sm:$0xff] }
 0x234   :  { %13333 = vst [vmem:[#allocation573_spill] sm:$0xff] %v8586_v33  ;;  %v8611_v33 = vld [vmem:[%s12758_s5 + $0x12d0] sm:$0xff] }
 0x235   :  { %13334 = vst [vmem:[#allocation574_spill] sm:$0xff] %v8591_v55  ;;  %v8616_v55 = vld [vmem:[%s12758_s5 + $0x12d8] sm:$0xff] }
 0x236   :  { %13335 = vst [vmem:[#allocation575_spill] sm:$0xff] %v8596_v0  ;;  %v8621_v0 = vld [vmem:[%s12758_s5 + $0x12e0] sm:$0xff] }
 0x237   :  { %13336 = vst [vmem:[#allocation576_spill] sm:$0xff] %v8601_v32  ;;  %v8626_v32 = vld [vmem:[%s12758_s5 + $0x12e8] sm:$0xff] }
 0x238   :  { %13337 = vst [vmem:[#allocation577_spill] sm:$0xff] %v8606_v49  ;;  %v8631_v49 = vld [vmem:[%s12758_s5 + $0x12f0] sm:$0xff] }
 0x239   :  { %13338 = vst [vmem:[#allocation578_spill] sm:$0xff] %v8611_v33  ;;  %v8636_v33 = vld [vmem:[%s12758_s5 + $0x12f8] sm:$0xff] }
 0x23a   :  { %13339 = vst [vmem:[#allocation579_spill] sm:$0xff] %v8616_v55  ;;  %v8641_v55 = vld [vmem:[%s12758_s5 + $0x1300] sm:$0xff] }
 0x23b   :  { %13340 = vst [vmem:[#allocation580_spill] sm:$0xff] %v8621_v0  ;;  %v8646_v0 = vld [vmem:[%s12758_s5 + $0x1308] sm:$0xff] }
 0x23c   :  { %13341 = vst [vmem:[#allocation581_spill] sm:$0xff] %v8626_v32  ;;  %v8651_v32 = vld [vmem:[%s12758_s5 + $0x1310] sm:$0xff] }
 0x23d   :  { %13342 = vst [vmem:[#allocation582_spill] sm:$0xff] %v8631_v49  ;;  %v8656_v49 = vld [vmem:[%s12758_s5 + $0x1318] sm:$0xff] }
 0x23e   :  { %13343 = vst [vmem:[#allocation583_spill] sm:$0xff] %v8636_v33  ;;  %v8661_v33 = vld [vmem:[%s12758_s5 + $0x1320] sm:$0xff] }
 0x23f   :  { %13344 = vst [vmem:[#allocation584_spill] sm:$0xff] %v8641_v55  ;;  %v8666_v55 = vld [vmem:[%s12758_s5 + $0x1328] sm:$0xff] }
 0x240   :  { %13345 = vst [vmem:[#allocation585_spill] sm:$0xff] %v8646_v0  ;;  %v8671_v0 = vld [vmem:[%s12758_s5 + $0x1330] sm:$0xff] }
 0x241   :  { %13346 = vst [vmem:[#allocation586_spill] sm:$0xff] %v8651_v32  ;;  %v8676_v32 = vld [vmem:[%s12758_s5 + $0x1338] sm:$0xff] }
 0x242   :  { %13347 = vst [vmem:[#allocation587_spill] sm:$0xff] %v8656_v49  ;;  %v8681_v49 = vld [vmem:[%s12758_s5 + $0x1340] sm:$0xff] }
 0x243   :  { %13348 = vst [vmem:[#allocation588_spill] sm:$0xff] %v8661_v33  ;;  %v8686_v33 = vld [vmem:[%s12758_s5 + $0x1348] sm:$0xff] }
 0x244   :  { %13349 = vst [vmem:[#allocation589_spill] sm:$0xff] %v8666_v55  ;;  %v8691_v55 = vld [vmem:[%s12758_s5 + $0x1350] sm:$0xff] }
 0x245   :  { %13350 = vst [vmem:[#allocation590_spill] sm:$0xff] %v8671_v0  ;;  %v8696_v0 = vld [vmem:[%s12758_s5 + $0x1358] sm:$0xff] }
 0x246   :  { %13351 = vst [vmem:[#allocation591_spill] sm:$0xff] %v8676_v32  ;;  %v8701_v32 = vld [vmem:[%s12758_s5 + $0x1360] sm:$0xff] }
 0x247   :  { %13352 = vst [vmem:[#allocation592_spill] sm:$0xff] %v8681_v49  ;;  %v8706_v49 = vld [vmem:[%s12758_s5 + $0x1368] sm:$0xff] }
 0x248   :  { %13353 = vst [vmem:[#allocation593_spill] sm:$0xff] %v8686_v33  ;;  %v8711_v33 = vld [vmem:[%s12758_s5 + $0x1370] sm:$0xff] }
 0x249   :  { %13354 = vst [vmem:[#allocation594_spill] sm:$0xff] %v8691_v55  ;;  %v8716_v55 = vld [vmem:[%s12758_s5 + $0x1378] sm:$0xff] }
 0x24a   :  { %13355 = vst [vmem:[#allocation595_spill] sm:$0xff] %v8696_v0  ;;  %v8721_v0 = vld [vmem:[%s12758_s5 + $0x1380] sm:$0xff] }
 0x24b   :  { %13356 = vst [vmem:[#allocation596_spill] sm:$0xff] %v8701_v32  ;;  %v8726_v32 = vld [vmem:[%s12758_s5 + $0x1388] sm:$0xff] }
 0x24c   :  { %13357 = vst [vmem:[#allocation597_spill] sm:$0xff] %v8706_v49  ;;  %v8731_v49 = vld [vmem:[%s12758_s5 + $0x1390] sm:$0xff] }
 0x24d   :  { %13358 = vst [vmem:[#allocation598_spill] sm:$0xff] %v8711_v33  ;;  %v8736_v33 = vld [vmem:[%s12758_s5 + $0x1398] sm:$0xff] }
 0x24e   :  { %13359 = vst [vmem:[#allocation599_spill] sm:$0xff] %v8716_v55  ;;  %v8741_v55 = vld [vmem:[%s12758_s5 + $0x13a0] sm:$0xff] }
 0x24f   :  { %13360 = vst [vmem:[#allocation600_spill] sm:$0xff] %v8721_v0  ;;  %v8746_v0 = vld [vmem:[%s12758_s5 + $0x13a8] sm:$0xff] }
 0x250   :  { %13361 = vst [vmem:[#allocation601_spill] sm:$0xff] %v8726_v32  ;;  %v8751_v32 = vld [vmem:[%s12758_s5 + $0x13b0] sm:$0xff] }
 0x251   :  { %13362 = vst [vmem:[#allocation602_spill] sm:$0xff] %v8731_v49  ;;  %v8756_v49 = vld [vmem:[%s12758_s5 + $0x13b8] sm:$0xff] }
 0x252   :  { %13363 = vst [vmem:[#allocation603_spill] sm:$0xff] %v8736_v33  ;;  %v8761_v33 = vld [vmem:[%s12758_s5 + $0x13c0] sm:$0xff] }
 0x253   :  { %13364 = vst [vmem:[#allocation604_spill] sm:$0xff] %v8741_v55  ;;  %v8766_v55 = vld [vmem:[%s12758_s5 + $0x13c8] sm:$0xff] }
 0x254   :  { %13365 = vst [vmem:[#allocation605_spill] sm:$0xff] %v8746_v0  ;;  %v8771_v0 = vld [vmem:[%s12758_s5 + $0x13d0] sm:$0xff] }
 0x255   :  { %13366 = vst [vmem:[#allocation606_spill] sm:$0xff] %v8751_v32  ;;  %v8776_v32 = vld [vmem:[%s12758_s5 + $0x13d8] sm:$0xff] }
 0x256   :  { %13367 = vst [vmem:[#allocation607_spill] sm:$0xff] %v8756_v49  ;;  %v8781_v49 = vld [vmem:[%s12758_s5 + $0x13e0] sm:$0xff] }
 0x257   :  { %13368 = vst [vmem:[#allocation608_spill] sm:$0xff] %v8761_v33  ;;  %v8786_v33 = vld [vmem:[%s12758_s5 + $0x13e8] sm:$0xff] }
 0x258   :  { %13369 = vst [vmem:[#allocation609_spill] sm:$0xff] %v8766_v55  ;;  %v8791_v55 = vld [vmem:[%s12758_s5 + $0x13f0] sm:$0xff] }
 0x259   :  { %13370 = vst [vmem:[#allocation610_spill] sm:$0xff] %v8771_v0  ;;  %v8796_v0 = vld [vmem:[%s12758_s5 + $0x13f8] sm:$0xff] }
 0x25a   :  { %13371 = vst [vmem:[#allocation611_spill] sm:$0xff] %v8776_v32  ;;  %v8801_v32 = vld [vmem:[%s12758_s5 + $0x1400] sm:$0xff] }
 0x25b   :  { %13372 = vst [vmem:[#allocation612_spill] sm:$0xff] %v8781_v49  ;;  %v8806_v49 = vld [vmem:[%s12758_s5 + $0x1408] sm:$0xff] }
 0x25c   :  { %13373 = vst [vmem:[#allocation613_spill] sm:$0xff] %v8786_v33  ;;  %v8811_v33 = vld [vmem:[%s12758_s5 + $0x1410] sm:$0xff] }
 0x25d   :  { %13374 = vst [vmem:[#allocation614_spill] sm:$0xff] %v8791_v55  ;;  %v8816_v55 = vld [vmem:[%s12758_s5 + $0x1418] sm:$0xff] }
 0x25e   :  { %13375 = vst [vmem:[#allocation615_spill] sm:$0xff] %v8796_v0  ;;  %v8821_v0 = vld [vmem:[%s12758_s5 + $0x1420] sm:$0xff] }
 0x25f   :  { %13376 = vst [vmem:[#allocation616_spill] sm:$0xff] %v8801_v32  ;;  %v8826_v32 = vld [vmem:[%s12758_s5 + $0x1428] sm:$0xff] }
 0x260   :  { %13377 = vst [vmem:[#allocation617_spill] sm:$0xff] %v8806_v49  ;;  %v8831_v49 = vld [vmem:[%s12758_s5 + $0x1430] sm:$0xff] }
 0x261   :  { %13378 = vst [vmem:[#allocation618_spill] sm:$0xff] %v8811_v33  ;;  %v8836_v33 = vld [vmem:[%s12758_s5 + $0x1438] sm:$0xff] }
 0x262   :  { %13379 = vst [vmem:[#allocation619_spill] sm:$0xff] %v8816_v55  ;;  %v8841_v55 = vld [vmem:[%s12758_s5 + $0x1440] sm:$0xff] }
 0x263   :  { %13380 = vst [vmem:[#allocation620_spill] sm:$0xff] %v8821_v0  ;;  %v8846_v0 = vld [vmem:[%s12758_s5 + $0x1448] sm:$0xff] }
 0x264   :  { %13381 = vst [vmem:[#allocation621_spill] sm:$0xff] %v8826_v32  ;;  %v8851_v32 = vld [vmem:[%s12758_s5 + $0x1450] sm:$0xff] }
 0x265   :  { %13382 = vst [vmem:[#allocation622_spill] sm:$0xff] %v8831_v49  ;;  %v8856_v49 = vld [vmem:[%s12758_s5 + $0x1458] sm:$0xff] }
 0x266   :  { %13383 = vst [vmem:[#allocation623_spill] sm:$0xff] %v8836_v33  ;;  %v8861_v33 = vld [vmem:[%s12758_s5 + $0x1460] sm:$0xff] }
 0x267   :  { %13384 = vst [vmem:[#allocation624_spill] sm:$0xff] %v8841_v55  ;;  %v8866_v55 = vld [vmem:[%s12758_s5 + $0x1468] sm:$0xff] }
 0x268   :  { %13385 = vst [vmem:[#allocation625_spill] sm:$0xff] %v8846_v0  ;;  %v8871_v0 = vld [vmem:[%s12758_s5 + $0x1470] sm:$0xff] }
 0x269   :  { %13386 = vst [vmem:[#allocation626_spill] sm:$0xff] %v8851_v32  ;;  %v8876_v32 = vld [vmem:[%s12758_s5 + $0x1478] sm:$0xff] }
 0x26a   :  { %13387 = vst [vmem:[#allocation627_spill] sm:$0xff] %v8856_v49  ;;  %v8881_v49 = vld [vmem:[%s12758_s5 + $0x1480] sm:$0xff] }
 0x26b   :  { %13388 = vst [vmem:[#allocation628_spill] sm:$0xff] %v8861_v33  ;;  %v8886_v33 = vld [vmem:[%s12758_s5 + $0x1488] sm:$0xff] }
 0x26c   :  { %13389 = vst [vmem:[#allocation629_spill] sm:$0xff] %v8866_v55  ;;  %v8891_v55 = vld [vmem:[%s12758_s5 + $0x1490] sm:$0xff] }
 0x26d   :  { %13390 = vst [vmem:[#allocation630_spill] sm:$0xff] %v8871_v0  ;;  %v8896_v0 = vld [vmem:[%s12758_s5 + $0x1498] sm:$0xff] }
 0x26e   :  { %13391 = vst [vmem:[#allocation631_spill] sm:$0xff] %v8876_v32  ;;  %v8901_v32 = vld [vmem:[%s12758_s5 + $0x14a0] sm:$0xff] }
 0x26f   :  { %13392 = vst [vmem:[#allocation632_spill] sm:$0xff] %v8881_v49  ;;  %v8906_v49 = vld [vmem:[%s12758_s5 + $0x14a8] sm:$0xff] }
 0x270   :  { %13393 = vst [vmem:[#allocation633_spill] sm:$0xff] %v8886_v33  ;;  %v8911_v33 = vld [vmem:[%s12758_s5 + $0x14b0] sm:$0xff] }
 0x271   :  { %13394 = vst [vmem:[#allocation634_spill] sm:$0xff] %v8891_v55  ;;  %v8916_v55 = vld [vmem:[%s12758_s5 + $0x14b8] sm:$0xff] }
 0x272   :  { %13395 = vst [vmem:[#allocation635_spill] sm:$0xff] %v8896_v0  ;;  %v8921_v0 = vld [vmem:[%s12758_s5 + $0x14c0] sm:$0xff] }
 0x273   :  { %13396 = vst [vmem:[#allocation636_spill] sm:$0xff] %v8901_v32  ;;  %v8926_v32 = vld [vmem:[%s12758_s5 + $0x14c8] sm:$0xff] }
 0x274   :  { %13397 = vst [vmem:[#allocation637_spill] sm:$0xff] %v8906_v49  ;;  %v8931_v49 = vld [vmem:[%s12758_s5 + $0x14d0] sm:$0xff] }
 0x275   :  { %13398 = vst [vmem:[#allocation638_spill] sm:$0xff] %v8911_v33  ;;  %v8936_v33 = vld [vmem:[%s12758_s5 + $0x14d8] sm:$0xff] }
 0x276   :  { %13399 = vst [vmem:[#allocation639_spill] sm:$0xff] %v8916_v55  ;;  %v8941_v55 = vld [vmem:[%s12758_s5 + $0x14e0] sm:$0xff] }
 0x277   :  { %13400 = vst [vmem:[#allocation640_spill] sm:$0xff] %v8921_v0  ;;  %v8946_v0 = vld [vmem:[%s12758_s5 + $0x14e8] sm:$0xff] }
 0x278   :  { %13401 = vst [vmem:[#allocation641_spill] sm:$0xff] %v8926_v32  ;;  %v8951_v32 = vld [vmem:[%s12758_s5 + $0x14f0] sm:$0xff] }
 0x279   :  { %13402 = vst [vmem:[#allocation642_spill] sm:$0xff] %v8931_v49  ;;  %v8956_v49 = vld [vmem:[%s12758_s5 + $0x14f8] sm:$0xff] }
 0x27a   :  { %13403 = vst [vmem:[#allocation643_spill] sm:$0xff] %v8936_v33  ;;  %v8961_v33 = vld [vmem:[%s12758_s5 + $0x1500] sm:$0xff] }
 0x27b   :  { %13404 = vst [vmem:[#allocation644_spill] sm:$0xff] %v8941_v55  ;;  %v8966_v55 = vld [vmem:[%s12758_s5 + $0x1508] sm:$0xff] }
 0x27c   :  { %13405 = vst [vmem:[#allocation645_spill] sm:$0xff] %v8946_v0  ;;  %v8971_v0 = vld [vmem:[%s12758_s5 + $0x1510] sm:$0xff] }
 0x27d   :  { %13406 = vst [vmem:[#allocation646_spill] sm:$0xff] %v8951_v32  ;;  %v8976_v32 = vld [vmem:[%s12758_s5 + $0x1518] sm:$0xff] }
 0x27e   :  { %13407 = vst [vmem:[#allocation647_spill] sm:$0xff] %v8956_v49  ;;  %v8981_v49 = vld [vmem:[%s12758_s5 + $0x1520] sm:$0xff] }
 0x27f   :  { %13408 = vst [vmem:[#allocation648_spill] sm:$0xff] %v8961_v33  ;;  %v8986_v33 = vld [vmem:[%s12758_s5 + $0x1528] sm:$0xff] }
 0x280   :  { %13409 = vst [vmem:[#allocation649_spill] sm:$0xff] %v8966_v55  ;;  %v8991_v55 = vld [vmem:[%s12758_s5 + $0x1530] sm:$0xff] }
 0x281   :  { %13410 = vst [vmem:[#allocation650_spill] sm:$0xff] %v8971_v0  ;;  %v8996_v0 = vld [vmem:[%s12758_s5 + $0x1538] sm:$0xff] }
 0x282   :  { %13411 = vst [vmem:[#allocation651_spill] sm:$0xff] %v8976_v32  ;;  %v9001_v32 = vld [vmem:[%s12758_s5 + $0x1540] sm:$0xff] }
 0x283   :  { %13412 = vst [vmem:[#allocation652_spill] sm:$0xff] %v8981_v49  ;;  %v9006_v49 = vld [vmem:[%s12758_s5 + $0x1548] sm:$0xff] }
 0x284   :  { %13413 = vst [vmem:[#allocation653_spill] sm:$0xff] %v8986_v33  ;;  %v9011_v33 = vld [vmem:[%s12758_s5 + $0x1550] sm:$0xff] }
 0x285   :  { %13414 = vst [vmem:[#allocation654_spill] sm:$0xff] %v8991_v55  ;;  %v9016_v55 = vld [vmem:[%s12758_s5 + $0x1558] sm:$0xff] }
 0x286   :  { %13415 = vst [vmem:[#allocation655_spill] sm:$0xff] %v8996_v0  ;;  %v9021_v0 = vld [vmem:[%s12758_s5 + $0x1560] sm:$0xff] }
 0x287   :  { %13416 = vst [vmem:[#allocation656_spill] sm:$0xff] %v9001_v32  ;;  %v9026_v32 = vld [vmem:[%s12758_s5 + $0x1568] sm:$0xff] }
 0x288   :  { %13417 = vst [vmem:[#allocation657_spill] sm:$0xff] %v9006_v49  ;;  %v9031_v49 = vld [vmem:[%s12758_s5 + $0x1570] sm:$0xff] }
 0x289   :  { %13418 = vst [vmem:[#allocation658_spill] sm:$0xff] %v9011_v33  ;;  %v9036_v33 = vld [vmem:[%s12758_s5 + $0x1578] sm:$0xff] }
 0x28a   :  { %13419 = vst [vmem:[#allocation659_spill] sm:$0xff] %v9016_v55  ;;  %v9041_v55 = vld [vmem:[%s12758_s5 + $0x1580] sm:$0xff] }
 0x28b   :  { %13420 = vst [vmem:[#allocation660_spill] sm:$0xff] %v9021_v0  ;;  %v9046_v0 = vld [vmem:[%s12758_s5 + $0x1588] sm:$0xff] }
 0x28c   :  { %13421 = vst [vmem:[#allocation661_spill] sm:$0xff] %v9026_v32  ;;  %v9051_v32 = vld [vmem:[%s12758_s5 + $0x1590] sm:$0xff] }
 0x28d   :  { %13422 = vst [vmem:[#allocation662_spill] sm:$0xff] %v9031_v49  ;;  %v9056_v49 = vld [vmem:[%s12758_s5 + $0x1598] sm:$0xff] }
 0x28e   :  { %13423 = vst [vmem:[#allocation663_spill] sm:$0xff] %v9036_v33  ;;  %v9061_v33 = vld [vmem:[%s12758_s5 + $0x15a0] sm:$0xff] }
 0x28f   :  { %13424 = vst [vmem:[#allocation664_spill] sm:$0xff] %v9041_v55  ;;  %v9066_v55 = vld [vmem:[%s12758_s5 + $0x15a8] sm:$0xff] }
 0x290   :  { %13425 = vst [vmem:[#allocation665_spill] sm:$0xff] %v9046_v0  ;;  %v9071_v0 = vld [vmem:[%s12758_s5 + $0x15b0] sm:$0xff] }
 0x291   :  { %13426 = vst [vmem:[#allocation666_spill] sm:$0xff] %v9051_v32  ;;  %v9076_v32 = vld [vmem:[%s12758_s5 + $0x15b8] sm:$0xff] }
 0x292   :  { %13427 = vst [vmem:[#allocation667_spill] sm:$0xff] %v9056_v49  ;;  %v9081_v49 = vld [vmem:[%s12758_s5 + $0x15c0] sm:$0xff] }
 0x293   :  { %13428 = vst [vmem:[#allocation668_spill] sm:$0xff] %v9061_v33  ;;  %v9086_v33 = vld [vmem:[%s12758_s5 + $0x15c8] sm:$0xff] }
 0x294   :  { %13429 = vst [vmem:[#allocation669_spill] sm:$0xff] %v9066_v55  ;;  %v9091_v55 = vld [vmem:[%s12758_s5 + $0x15d0] sm:$0xff] }
 0x295   :  { %13430 = vst [vmem:[#allocation670_spill] sm:$0xff] %v9071_v0  ;;  %v9096_v0 = vld [vmem:[%s12758_s5 + $0x15d8] sm:$0xff] }
 0x296   :  { %13431 = vst [vmem:[#allocation671_spill] sm:$0xff] %v9076_v32  ;;  %v9101_v32 = vld [vmem:[%s12758_s5 + $0x15e0] sm:$0xff] }
 0x297   :  { %13432 = vst [vmem:[#allocation672_spill] sm:$0xff] %v9081_v49  ;;  %v9106_v49 = vld [vmem:[%s12758_s5 + $0x15e8] sm:$0xff] }
 0x298   :  { %13433 = vst [vmem:[#allocation673_spill] sm:$0xff] %v9086_v33  ;;  %v9111_v33 = vld [vmem:[%s12758_s5 + $0x15f0] sm:$0xff] }
 0x299   :  { %13434 = vst [vmem:[#allocation674_spill] sm:$0xff] %v9091_v55  ;;  %v9116_v55 = vld [vmem:[%s12758_s5 + $0x15f8] sm:$0xff] }
 0x29a   :  { %13435 = vst [vmem:[#allocation675_spill] sm:$0xff] %v9096_v0  ;;  %v9121_v0 = vld [vmem:[%s12758_s5 + $0x1600] sm:$0xff] }
 0x29b   :  { %13436 = vst [vmem:[#allocation676_spill] sm:$0xff] %v9101_v32  ;;  %v9126_v32 = vld [vmem:[%s12758_s5 + $0x1608] sm:$0xff] }
 0x29c   :  { %13437 = vst [vmem:[#allocation677_spill] sm:$0xff] %v9106_v49  ;;  %v9131_v49 = vld [vmem:[%s12758_s5 + $0x1610] sm:$0xff] }
 0x29d   :  { %13438 = vst [vmem:[#allocation678_spill] sm:$0xff] %v9111_v33  ;;  %v9136_v33 = vld [vmem:[%s12758_s5 + $0x1618] sm:$0xff] }
 0x29e   :  { %13439 = vst [vmem:[#allocation679_spill] sm:$0xff] %v9116_v55  ;;  %v9141_v55 = vld [vmem:[%s12758_s5 + $0x1620] sm:$0xff] }
 0x29f   :  { %13440 = vst [vmem:[#allocation680_spill] sm:$0xff] %v9121_v0  ;;  %v9146_v0 = vld [vmem:[%s12758_s5 + $0x1628] sm:$0xff] }
 0x2a0   :  { %13441 = vst [vmem:[#allocation681_spill] sm:$0xff] %v9126_v32  ;;  %v9151_v32 = vld [vmem:[%s12758_s5 + $0x1630] sm:$0xff] }
 0x2a1   :  { %13442 = vst [vmem:[#allocation682_spill] sm:$0xff] %v9131_v49  ;;  %v9156_v49 = vld [vmem:[%s12758_s5 + $0x1638] sm:$0xff] }
 0x2a2   :  { %13443 = vst [vmem:[#allocation683_spill] sm:$0xff] %v9136_v33  ;;  %v9161_v33 = vld [vmem:[%s12758_s5 + $0x1640] sm:$0xff] }
 0x2a3   :  { %13444 = vst [vmem:[#allocation684_spill] sm:$0xff] %v9141_v55  ;;  %v9166_v55 = vld [vmem:[%s12758_s5 + $0x1648] sm:$0xff] }
 0x2a4   :  { %13445 = vst [vmem:[#allocation685_spill] sm:$0xff] %v9146_v0  ;;  %v9171_v0 = vld [vmem:[%s12758_s5 + $0x1650] sm:$0xff] }
 0x2a5   :  { %13446 = vst [vmem:[#allocation686_spill] sm:$0xff] %v9151_v32  ;;  %v9176_v32 = vld [vmem:[%s12758_s5 + $0x1658] sm:$0xff] }
 0x2a6   :  { %13447 = vst [vmem:[#allocation687_spill] sm:$0xff] %v9156_v49  ;;  %v9181_v49 = vld [vmem:[%s12758_s5 + $0x1660] sm:$0xff] }
 0x2a7   :  { %13448 = vst [vmem:[#allocation688_spill] sm:$0xff] %v9161_v33  ;;  %v9186_v33 = vld [vmem:[%s12758_s5 + $0x1668] sm:$0xff] }
 0x2a8   :  { %13449 = vst [vmem:[#allocation689_spill] sm:$0xff] %v9166_v55  ;;  %v9191_v55 = vld [vmem:[%s12758_s5 + $0x1670] sm:$0xff] }
 0x2a9   :  { %13450 = vst [vmem:[#allocation690_spill] sm:$0xff] %v9171_v0  ;;  %v9196_v0 = vld [vmem:[%s12758_s5 + $0x1678] sm:$0xff] }
 0x2aa   :  { %13451 = vst [vmem:[#allocation691_spill] sm:$0xff] %v9176_v32  ;;  %v9201_v32 = vld [vmem:[%s12758_s5 + $0x1680] sm:$0xff] }
 0x2ab   :  { %13452 = vst [vmem:[#allocation692_spill] sm:$0xff] %v9181_v49  ;;  %v9206_v49 = vld [vmem:[%s12758_s5 + $0x1688] sm:$0xff] }
 0x2ac   :  { %13453 = vst [vmem:[#allocation693_spill] sm:$0xff] %v9186_v33  ;;  %v9211_v33 = vld [vmem:[%s12758_s5 + $0x1690] sm:$0xff] }
 0x2ad   :  { %13454 = vst [vmem:[#allocation694_spill] sm:$0xff] %v9191_v55  ;;  %v9216_v55 = vld [vmem:[%s12758_s5 + $0x1698] sm:$0xff] }
 0x2ae   :  { %13455 = vst [vmem:[#allocation695_spill] sm:$0xff] %v9196_v0  ;;  %v9221_v0 = vld [vmem:[%s12758_s5 + $0x16a0] sm:$0xff] }
 0x2af   :  { %13456 = vst [vmem:[#allocation696_spill] sm:$0xff] %v9201_v32  ;;  %v9226_v32 = vld [vmem:[%s12758_s5 + $0x16a8] sm:$0xff] }
 0x2b0   :  { %13457 = vst [vmem:[#allocation697_spill] sm:$0xff] %v9206_v49  ;;  %v9231_v49 = vld [vmem:[%s12758_s5 + $0x16b0] sm:$0xff] }
 0x2b1   :  { %13458 = vst [vmem:[#allocation698_spill] sm:$0xff] %v9211_v33  ;;  %v9236_v33 = vld [vmem:[%s12758_s5 + $0x16b8] sm:$0xff] }
 0x2b2   :  { %13459 = vst [vmem:[#allocation699_spill] sm:$0xff] %v9216_v55  ;;  %v9241_v55 = vld [vmem:[%s12758_s5 + $0x16c0] sm:$0xff] }
 0x2b3   :  { %13460 = vst [vmem:[#allocation700_spill] sm:$0xff] %v9221_v0  ;;  %v9246_v0 = vld [vmem:[%s12758_s5 + $0x16c8] sm:$0xff] }
 0x2b4   :  { %13461 = vst [vmem:[#allocation701_spill] sm:$0xff] %v9226_v32  ;;  %v9251_v32 = vld [vmem:[%s12758_s5 + $0x16d0] sm:$0xff] }
 0x2b5   :  { %13462 = vst [vmem:[#allocation702_spill] sm:$0xff] %v9231_v49  ;;  %v9256_v49 = vld [vmem:[%s12758_s5 + $0x16d8] sm:$0xff] }
 0x2b6   :  { %13463 = vst [vmem:[#allocation703_spill] sm:$0xff] %v9236_v33  ;;  %v9261_v33 = vld [vmem:[%s12758_s5 + $0x16e0] sm:$0xff] }
 0x2b7   :  { %13464 = vst [vmem:[#allocation704_spill] sm:$0xff] %v9241_v55  ;;  %v9266_v55 = vld [vmem:[%s12758_s5 + $0x16e8] sm:$0xff] }
 0x2b8   :  { %13465 = vst [vmem:[#allocation705_spill] sm:$0xff] %v9246_v0  ;;  %v9271_v0 = vld [vmem:[%s12758_s5 + $0x16f0] sm:$0xff] }
 0x2b9   :  { %13466 = vst [vmem:[#allocation706_spill] sm:$0xff] %v9251_v32  ;;  %v9276_v32 = vld [vmem:[%s12758_s5 + $0x16f8] sm:$0xff] }
 0x2ba   :  { %13467 = vst [vmem:[#allocation707_spill] sm:$0xff] %v9256_v49  ;;  %v9281_v49 = vld [vmem:[%s12758_s5 + $0x1700] sm:$0xff] }
 0x2bb   :  { %13468 = vst [vmem:[#allocation708_spill] sm:$0xff] %v9261_v33  ;;  %v9286_v33 = vld [vmem:[%s12758_s5 + $0x1708] sm:$0xff] }
 0x2bc   :  { %13469 = vst [vmem:[#allocation709_spill] sm:$0xff] %v9266_v55  ;;  %v9291_v55 = vld [vmem:[%s12758_s5 + $0x1710] sm:$0xff] }
 0x2bd   :  { %13470 = vst [vmem:[#allocation710_spill] sm:$0xff] %v9271_v0  ;;  %v9296_v0 = vld [vmem:[%s12758_s5 + $0x1718] sm:$0xff] }
 0x2be   :  { %13471 = vst [vmem:[#allocation711_spill] sm:$0xff] %v9276_v32  ;;  %v9301_v32 = vld [vmem:[%s12758_s5 + $0x1720] sm:$0xff] }
 0x2bf   :  { %13472 = vst [vmem:[#allocation712_spill] sm:$0xff] %v9281_v49  ;;  %v9306_v49 = vld [vmem:[%s12758_s5 + $0x1728] sm:$0xff] }
 0x2c0   :  { %13473 = vst [vmem:[#allocation713_spill] sm:$0xff] %v9286_v33  ;;  %v9311_v33 = vld [vmem:[%s12758_s5 + $0x1730] sm:$0xff] }
 0x2c1   :  { %13474 = vst [vmem:[#allocation714_spill] sm:$0xff] %v9291_v55  ;;  %v9316_v55 = vld [vmem:[%s12758_s5 + $0x1738] sm:$0xff] }
 0x2c2   :  { %13475 = vst [vmem:[#allocation715_spill] sm:$0xff] %v9296_v0  ;;  %v9321_v0 = vld [vmem:[%s12758_s5 + $0x1740] sm:$0xff] }
 0x2c3   :  { %13476 = vst [vmem:[#allocation716_spill] sm:$0xff] %v9301_v32  ;;  %v9326_v32 = vld [vmem:[%s12758_s5 + $0x1748] sm:$0xff] }
 0x2c4   :  { %13477 = vst [vmem:[#allocation717_spill] sm:$0xff] %v9306_v49  ;;  %v9331_v49 = vld [vmem:[%s12758_s5 + $0x1750] sm:$0xff] }
 0x2c5   :  { %13478 = vst [vmem:[#allocation718_spill] sm:$0xff] %v9311_v33  ;;  %v9336_v33 = vld [vmem:[%s12758_s5 + $0x1758] sm:$0xff] }
 0x2c6   :  { %13479 = vst [vmem:[#allocation719_spill] sm:$0xff] %v9316_v55  ;;  %v9341_v55 = vld [vmem:[%s12758_s5 + $0x1760] sm:$0xff] }
 0x2c7   :  { %13480 = vst [vmem:[#allocation720_spill] sm:$0xff] %v9321_v0  ;;  %v9346_v0 = vld [vmem:[%s12758_s5 + $0x1768] sm:$0xff] }
 0x2c8   :  { %13481 = vst [vmem:[#allocation721_spill] sm:$0xff] %v9326_v32  ;;  %v9351_v32 = vld [vmem:[%s12758_s5 + $0x1770] sm:$0xff] }
 0x2c9   :  { %13482 = vst [vmem:[#allocation722_spill] sm:$0xff] %v9331_v49  ;;  %v9356_v49 = vld [vmem:[%s12758_s5 + $0x1778] sm:$0xff] }
 0x2ca   :  { %13483 = vst [vmem:[#allocation723_spill] sm:$0xff] %v9336_v33  ;;  %v9361_v33 = vld [vmem:[%s12758_s5 + $0x1780] sm:$0xff] }
 0x2cb   :  { %13484 = vst [vmem:[#allocation724_spill] sm:$0xff] %v9341_v55  ;;  %v9366_v55 = vld [vmem:[%s12758_s5 + $0x1788] sm:$0xff] }
 0x2cc   :  { %13485 = vst [vmem:[#allocation725_spill] sm:$0xff] %v9346_v0  ;;  %v9371_v0 = vld [vmem:[%s12758_s5 + $0x1790] sm:$0xff] }
 0x2cd   :  { %13486 = vst [vmem:[#allocation726_spill] sm:$0xff] %v9351_v32  ;;  %v9376_v32 = vld [vmem:[%s12758_s5 + $0x1798] sm:$0xff] }
 0x2ce   :  { %13487 = vst [vmem:[#allocation727_spill] sm:$0xff] %v9356_v49  ;;  %v9381_v49 = vld [vmem:[%s12758_s5 + $0x17a0] sm:$0xff] }
 0x2cf   :  { %13488 = vst [vmem:[#allocation728_spill] sm:$0xff] %v9361_v33  ;;  %v9386_v33 = vld [vmem:[%s12758_s5 + $0x17a8] sm:$0xff] }
 0x2d0   :  { %13489 = vst [vmem:[#allocation729_spill] sm:$0xff] %v9366_v55  ;;  %v9391_v55 = vld [vmem:[%s12758_s5 + $0x17b0] sm:$0xff] }
 0x2d1   :  { %13490 = vst [vmem:[#allocation730_spill] sm:$0xff] %v9371_v0  ;;  %v9396_v0 = vld [vmem:[%s12758_s5 + $0x17b8] sm:$0xff] }
 0x2d2   :  { %13491 = vst [vmem:[#allocation731_spill] sm:$0xff] %v9376_v32  ;;  %v9401_v32 = vld [vmem:[%s12758_s5 + $0x17c0] sm:$0xff] }
 0x2d3   :  { %13492 = vst [vmem:[#allocation732_spill] sm:$0xff] %v9381_v49  ;;  %v9406_v49 = vld [vmem:[%s12758_s5 + $0x17c8] sm:$0xff] }
 0x2d4   :  { %13493 = vst [vmem:[#allocation733_spill] sm:$0xff] %v9386_v33  ;;  %v9411_v33 = vld [vmem:[%s12758_s5 + $0x17d0] sm:$0xff] }
 0x2d5   :  { %13494 = vst [vmem:[#allocation734_spill] sm:$0xff] %v9391_v55  ;;  %v9416_v55 = vld [vmem:[%s12758_s5 + $0x17d8] sm:$0xff] }
 0x2d6   :  { %13495 = vst [vmem:[#allocation735_spill] sm:$0xff] %v9396_v0  ;;  %v9421_v0 = vld [vmem:[%s12758_s5 + $0x17e0] sm:$0xff] }
 0x2d7   :  { %13496 = vst [vmem:[#allocation736_spill] sm:$0xff] %v9401_v32  ;;  %v9426_v32 = vld [vmem:[%s12758_s5 + $0x17e8] sm:$0xff] }
 0x2d8   :  { %13497 = vst [vmem:[#allocation737_spill] sm:$0xff] %v9406_v49  ;;  %v9431_v49 = vld [vmem:[%s12758_s5 + $0x17f0] sm:$0xff] }
 0x2d9   :  { %13498 = vst [vmem:[#allocation738_spill] sm:$0xff] %v9411_v33  ;;  %v9436_v33 = vld [vmem:[%s12758_s5 + $0x17f8] sm:$0xff] }
 0x2da   :  { %13499 = vst [vmem:[#allocation739_spill] sm:$0xff] %v9416_v55  ;;  %v9441_v55 = vld [vmem:[%s12758_s5 + $0x1800] sm:$0xff] }
 0x2db   :  { %13500 = vst [vmem:[#allocation740_spill] sm:$0xff] %v9421_v0  ;;  %v9446_v0 = vld [vmem:[%s12758_s5 + $0x1808] sm:$0xff] }
 0x2dc   :  { %13501 = vst [vmem:[#allocation741_spill] sm:$0xff] %v9426_v32  ;;  %v9451_v32 = vld [vmem:[%s12758_s5 + $0x1810] sm:$0xff] }
 0x2dd   :  { %13502 = vst [vmem:[#allocation742_spill] sm:$0xff] %v9431_v49  ;;  %v9456_v49 = vld [vmem:[%s12758_s5 + $0x1818] sm:$0xff] }
 0x2de   :  { %13503 = vst [vmem:[#allocation743_spill] sm:$0xff] %v9436_v33  ;;  %v9461_v33 = vld [vmem:[%s12758_s5 + $0x1820] sm:$0xff] }
 0x2df   :  { %13504 = vst [vmem:[#allocation744_spill] sm:$0xff] %v9441_v55  ;;  %v9466_v55 = vld [vmem:[%s12758_s5 + $0x1828] sm:$0xff] }
 0x2e0   :  { %13505 = vst [vmem:[#allocation745_spill] sm:$0xff] %v9446_v0  ;;  %v9471_v0 = vld [vmem:[%s12758_s5 + $0x1830] sm:$0xff] }
 0x2e1   :  { %13506 = vst [vmem:[#allocation746_spill] sm:$0xff] %v9451_v32  ;;  %v9476_v32 = vld [vmem:[%s12758_s5 + $0x1838] sm:$0xff] }
 0x2e2   :  { %13507 = vst [vmem:[#allocation747_spill] sm:$0xff] %v9456_v49  ;;  %v9481_v49 = vld [vmem:[%s12758_s5 + $0x1840] sm:$0xff] }
 0x2e3   :  { %13508 = vst [vmem:[#allocation748_spill] sm:$0xff] %v9461_v33  ;;  %v9486_v33 = vld [vmem:[%s12758_s5 + $0x1848] sm:$0xff] }
 0x2e4   :  { %13509 = vst [vmem:[#allocation749_spill] sm:$0xff] %v9466_v55  ;;  %v9491_v55 = vld [vmem:[%s12758_s5 + $0x1850] sm:$0xff] }
 0x2e5   :  { %13510 = vst [vmem:[#allocation750_spill] sm:$0xff] %v9471_v0  ;;  %v9496_v0 = vld [vmem:[%s12758_s5 + $0x1858] sm:$0xff] }
 0x2e6   :  { %13511 = vst [vmem:[#allocation751_spill] sm:$0xff] %v9476_v32  ;;  %v9501_v32 = vld [vmem:[%s12758_s5 + $0x1860] sm:$0xff] }
 0x2e7   :  { %13512 = vst [vmem:[#allocation752_spill] sm:$0xff] %v9481_v49  ;;  %v9506_v49 = vld [vmem:[%s12758_s5 + $0x1868] sm:$0xff] }
 0x2e8   :  { %13513 = vst [vmem:[#allocation753_spill] sm:$0xff] %v9486_v33  ;;  %v9511_v33 = vld [vmem:[%s12758_s5 + $0x1870] sm:$0xff] }
 0x2e9   :  { %13514 = vst [vmem:[#allocation754_spill] sm:$0xff] %v9491_v55  ;;  %v9516_v55 = vld [vmem:[%s12758_s5 + $0x1878] sm:$0xff] }
 0x2ea   :  { %13515 = vst [vmem:[#allocation755_spill] sm:$0xff] %v9496_v0  ;;  %v9521_v0 = vld [vmem:[%s12758_s5 + $0x1880] sm:$0xff] }
 0x2eb   :  { %13516 = vst [vmem:[#allocation756_spill] sm:$0xff] %v9501_v32  ;;  %v9526_v32 = vld [vmem:[%s12758_s5 + $0x1888] sm:$0xff] }
 0x2ec   :  { %13517 = vst [vmem:[#allocation757_spill] sm:$0xff] %v9506_v49  ;;  %v9531_v49 = vld [vmem:[%s12758_s5 + $0x1890] sm:$0xff] }
 0x2ed   :  { %13518 = vst [vmem:[#allocation758_spill] sm:$0xff] %v9511_v33  ;;  %v9536_v33 = vld [vmem:[%s12758_s5 + $0x1898] sm:$0xff] }
 0x2ee   :  { %13519 = vst [vmem:[#allocation759_spill] sm:$0xff] %v9516_v55  ;;  %v9541_v55 = vld [vmem:[%s12758_s5 + $0x18a0] sm:$0xff] }
 0x2ef   :  { %13520 = vst [vmem:[#allocation760_spill] sm:$0xff] %v9521_v0  ;;  %v9546_v0 = vld [vmem:[%s12758_s5 + $0x18a8] sm:$0xff] }
 0x2f0   :  { %13521 = vst [vmem:[#allocation761_spill] sm:$0xff] %v9526_v32  ;;  %v9551_v32 = vld [vmem:[%s12758_s5 + $0x18b0] sm:$0xff] }
 0x2f1   :  { %13522 = vst [vmem:[#allocation762_spill] sm:$0xff] %v9531_v49  ;;  %v9556_v49 = vld [vmem:[%s12758_s5 + $0x18b8] sm:$0xff] }
 0x2f2   :  { %13523 = vst [vmem:[#allocation763_spill] sm:$0xff] %v9536_v33  ;;  %v9561_v33 = vld [vmem:[%s12758_s5 + $0x18c0] sm:$0xff] }
 0x2f3   :  { %13524 = vst [vmem:[#allocation764_spill] sm:$0xff] %v9541_v55  ;;  %v9566_v55 = vld [vmem:[%s12758_s5 + $0x18c8] sm:$0xff] }
 0x2f4   :  { %13525 = vst [vmem:[#allocation765_spill] sm:$0xff] %v9546_v0  ;;  %v9571_v0 = vld [vmem:[%s12758_s5 + $0x18d0] sm:$0xff] }
 0x2f5   :  { %13526 = vst [vmem:[#allocation766_spill] sm:$0xff] %v9551_v32  ;;  %v9576_v32 = vld [vmem:[%s12758_s5 + $0x18d8] sm:$0xff] }
 0x2f6   :  { %13527 = vst [vmem:[#allocation767_spill] sm:$0xff] %v9556_v49  ;;  %v9581_v49 = vld [vmem:[%s12758_s5 + $0x18e0] sm:$0xff] }
 0x2f7   :  { %13528 = vst [vmem:[#allocation768_spill] sm:$0xff] %v9561_v33  ;;  %v9586_v33 = vld [vmem:[%s12758_s5 + $0x18e8] sm:$0xff] }
 0x2f8   :  { %13529 = vst [vmem:[#allocation769_spill] sm:$0xff] %v9566_v55  ;;  %v9591_v55 = vld [vmem:[%s12758_s5 + $0x18f0] sm:$0xff] }
 0x2f9   :  { %13530 = vst [vmem:[#allocation770_spill] sm:$0xff] %v9571_v0  ;;  %v9596_v0 = vld [vmem:[%s12758_s5 + $0x18f8] sm:$0xff] }
 0x2fa   :  { %13531 = vst [vmem:[#allocation771_spill] sm:$0xff] %v9576_v32  ;;  %v9601_v32 = vld [vmem:[%s12758_s5 + $0x1900] sm:$0xff] }
 0x2fb   :  { %13532 = vst [vmem:[#allocation772_spill] sm:$0xff] %v9581_v49  ;;  %v9606_v49 = vld [vmem:[%s12758_s5 + $0x1908] sm:$0xff] }
 0x2fc   :  { %13533 = vst [vmem:[#allocation773_spill] sm:$0xff] %v9586_v33  ;;  %v9611_v33 = vld [vmem:[%s12758_s5 + $0x1910] sm:$0xff] }
 0x2fd   :  { %13534 = vst [vmem:[#allocation774_spill] sm:$0xff] %v9591_v55  ;;  %v9616_v55 = vld [vmem:[%s12758_s5 + $0x1918] sm:$0xff] }
 0x2fe   :  { %13535 = vst [vmem:[#allocation775_spill] sm:$0xff] %v9596_v0  ;;  %v9621_v0 = vld [vmem:[%s12758_s5 + $0x1920] sm:$0xff] }
 0x2ff   :  { %13536 = vst [vmem:[#allocation776_spill] sm:$0xff] %v9601_v32  ;;  %v9626_v32 = vld [vmem:[%s12758_s5 + $0x1928] sm:$0xff] }
 0x300   :  { %13537 = vst [vmem:[#allocation777_spill] sm:$0xff] %v9606_v49  ;;  %v9631_v49 = vld [vmem:[%s12758_s5 + $0x1930] sm:$0xff] }
 0x301   :  { %13538 = vst [vmem:[#allocation778_spill] sm:$0xff] %v9611_v33  ;;  %v9636_v33 = vld [vmem:[%s12758_s5 + $0x1938] sm:$0xff] }
 0x302   :  { %13539 = vst [vmem:[#allocation779_spill] sm:$0xff] %v9616_v55  ;;  %v9641_v55 = vld [vmem:[%s12758_s5 + $0x1940] sm:$0xff] }
 0x303   :  { %13540 = vst [vmem:[#allocation780_spill] sm:$0xff] %v9621_v0  ;;  %v9646_v0 = vld [vmem:[%s12758_s5 + $0x1948] sm:$0xff] }
 0x304   :  { %13541 = vst [vmem:[#allocation781_spill] sm:$0xff] %v9626_v32  ;;  %v9651_v32 = vld [vmem:[%s12758_s5 + $0x1950] sm:$0xff] }
 0x305   :  { %13542 = vst [vmem:[#allocation782_spill] sm:$0xff] %v9631_v49  ;;  %v9656_v49 = vld [vmem:[%s12758_s5 + $0x1958] sm:$0xff] }
 0x306   :  { %13543 = vst [vmem:[#allocation783_spill] sm:$0xff] %v9636_v33  ;;  %v9661_v33 = vld [vmem:[%s12758_s5 + $0x1960] sm:$0xff] }
 0x307   :  { %13544 = vst [vmem:[#allocation784_spill] sm:$0xff] %v9641_v55  ;;  %v9666_v55 = vld [vmem:[%s12758_s5 + $0x1968] sm:$0xff] }
 0x308   :  { %13545 = vst [vmem:[#allocation785_spill] sm:$0xff] %v9646_v0  ;;  %v9671_v0 = vld [vmem:[%s12758_s5 + $0x1970] sm:$0xff] }
 0x309   :  { %13546 = vst [vmem:[#allocation786_spill] sm:$0xff] %v9651_v32  ;;  %v9676_v32 = vld [vmem:[%s12758_s5 + $0x1978] sm:$0xff] }
 0x30a   :  { %13547 = vst [vmem:[#allocation787_spill] sm:$0xff] %v9656_v49  ;;  %v9681_v49 = vld [vmem:[%s12758_s5 + $0x1980] sm:$0xff] }
 0x30b   :  { %13548 = vst [vmem:[#allocation788_spill] sm:$0xff] %v9661_v33  ;;  %v9686_v33 = vld [vmem:[%s12758_s5 + $0x1988] sm:$0xff] }
 0x30c   :  { %13549 = vst [vmem:[#allocation789_spill] sm:$0xff] %v9666_v55  ;;  %v9691_v55 = vld [vmem:[%s12758_s5 + $0x1990] sm:$0xff] }
 0x30d   :  { %13550 = vst [vmem:[#allocation790_spill] sm:$0xff] %v9671_v0  ;;  %v9696_v0 = vld [vmem:[%s12758_s5 + $0x1998] sm:$0xff] }
 0x30e   :  { %13551 = vst [vmem:[#allocation791_spill] sm:$0xff] %v9676_v32  ;;  %v9701_v32 = vld [vmem:[%s12758_s5 + $0x19a0] sm:$0xff] }
 0x30f   :  { %13552 = vst [vmem:[#allocation792_spill] sm:$0xff] %v9681_v49  ;;  %v9706_v49 = vld [vmem:[%s12758_s5 + $0x19a8] sm:$0xff] }
 0x310   :  { %13553 = vst [vmem:[#allocation793_spill] sm:$0xff] %v9686_v33  ;;  %v9711_v33 = vld [vmem:[%s12758_s5 + $0x19b0] sm:$0xff] }
 0x311   :  { %13554 = vst [vmem:[#allocation794_spill] sm:$0xff] %v9691_v55  ;;  %v9716_v55 = vld [vmem:[%s12758_s5 + $0x19b8] sm:$0xff] }
 0x312   :  { %13555 = vst [vmem:[#allocation795_spill] sm:$0xff] %v9696_v0  ;;  %v9721_v0 = vld [vmem:[%s12758_s5 + $0x19c0] sm:$0xff] }
 0x313   :  { %13556 = vst [vmem:[#allocation796_spill] sm:$0xff] %v9701_v32  ;;  %v9726_v32 = vld [vmem:[%s12758_s5 + $0x19c8] sm:$0xff] }
 0x314   :  { %13557 = vst [vmem:[#allocation797_spill] sm:$0xff] %v9706_v49  ;;  %v9731_v49 = vld [vmem:[%s12758_s5 + $0x19d0] sm:$0xff] }
 0x315   :  { %13558 = vst [vmem:[#allocation798_spill] sm:$0xff] %v9711_v33  ;;  %v9736_v33 = vld [vmem:[%s12758_s5 + $0x19d8] sm:$0xff] }
 0x316   :  { %13559 = vst [vmem:[#allocation799_spill] sm:$0xff] %v9716_v55  ;;  %v9741_v55 = vld [vmem:[%s12758_s5 + $0x19e0] sm:$0xff] }
 0x317   :  { %13560 = vst [vmem:[#allocation800_spill] sm:$0xff] %v9721_v0  ;;  %v9746_v0 = vld [vmem:[%s12758_s5 + $0x19e8] sm:$0xff] }
 0x318   :  { %13561 = vst [vmem:[#allocation801_spill] sm:$0xff] %v9726_v32  ;;  %v9751_v32 = vld [vmem:[%s12758_s5 + $0x19f0] sm:$0xff] }
 0x319   :  { %13562 = vst [vmem:[#allocation802_spill] sm:$0xff] %v9731_v49  ;;  %v9756_v49 = vld [vmem:[%s12758_s5 + $0x19f8] sm:$0xff] }
 0x31a   :  { %13563 = vst [vmem:[#allocation803_spill] sm:$0xff] %v9736_v33  ;;  %v9761_v33 = vld [vmem:[%s12758_s5 + $0x1a00] sm:$0xff] }
 0x31b   :  { %13564 = vst [vmem:[#allocation804_spill] sm:$0xff] %v9741_v55  ;;  %v9766_v55 = vld [vmem:[%s12758_s5 + $0x1a08] sm:$0xff] }
 0x31c   :  { %13565 = vst [vmem:[#allocation805_spill] sm:$0xff] %v9746_v0  ;;  %v9771_v0 = vld [vmem:[%s12758_s5 + $0x1a10] sm:$0xff] }
 0x31d   :  { %13566 = vst [vmem:[#allocation806_spill] sm:$0xff] %v9751_v32  ;;  %v9776_v32 = vld [vmem:[%s12758_s5 + $0x1a18] sm:$0xff] }
 0x31e   :  { %13567 = vst [vmem:[#allocation807_spill] sm:$0xff] %v9756_v49  ;;  %v9781_v49 = vld [vmem:[%s12758_s5 + $0x1a20] sm:$0xff] }
 0x31f   :  { %13568 = vst [vmem:[#allocation808_spill] sm:$0xff] %v9761_v33  ;;  %v9786_v33 = vld [vmem:[%s12758_s5 + $0x1a28] sm:$0xff] }
 0x320   :  { %13569 = vst [vmem:[#allocation809_spill] sm:$0xff] %v9766_v55  ;;  %v9791_v55 = vld [vmem:[%s12758_s5 + $0x1a30] sm:$0xff] }
 0x321   :  { %13570 = vst [vmem:[#allocation810_spill] sm:$0xff] %v9771_v0  ;;  %v9796_v0 = vld [vmem:[%s12758_s5 + $0x1a38] sm:$0xff] }
 0x322   :  { %13571 = vst [vmem:[#allocation811_spill] sm:$0xff] %v9776_v32  ;;  %v9801_v32 = vld [vmem:[%s12758_s5 + $0x1a40] sm:$0xff] }
 0x323   :  { %13572 = vst [vmem:[#allocation812_spill] sm:$0xff] %v9781_v49  ;;  %v9806_v49 = vld [vmem:[%s12758_s5 + $0x1a48] sm:$0xff] }
 0x324   :  { %13573 = vst [vmem:[#allocation813_spill] sm:$0xff] %v9786_v33  ;;  %v9811_v33 = vld [vmem:[%s12758_s5 + $0x1a50] sm:$0xff] }
 0x325   :  { %13574 = vst [vmem:[#allocation814_spill] sm:$0xff] %v9791_v55  ;;  %v9816_v55 = vld [vmem:[%s12758_s5 + $0x1a58] sm:$0xff] }
 0x326   :  { %13575 = vst [vmem:[#allocation815_spill] sm:$0xff] %v9796_v0  ;;  %v9821_v0 = vld [vmem:[%s12758_s5 + $0x1a60] sm:$0xff] }
 0x327   :  { %13576 = vst [vmem:[#allocation816_spill] sm:$0xff] %v9801_v32  ;;  %v9826_v32 = vld [vmem:[%s12758_s5 + $0x1a68] sm:$0xff] }
 0x328   :  { %13577 = vst [vmem:[#allocation817_spill] sm:$0xff] %v9806_v49  ;;  %v9831_v49 = vld [vmem:[%s12758_s5 + $0x1a70] sm:$0xff] }
 0x329   :  { %13578 = vst [vmem:[#allocation818_spill] sm:$0xff] %v9811_v33  ;;  %v9836_v33 = vld [vmem:[%s12758_s5 + $0x1a78] sm:$0xff] }
 0x32a   :  { %13579 = vst [vmem:[#allocation819_spill] sm:$0xff] %v9816_v55  ;;  %v9841_v55 = vld [vmem:[%s12758_s5 + $0x1a80] sm:$0xff] }
 0x32b   :  { %13580 = vst [vmem:[#allocation820_spill] sm:$0xff] %v9821_v0  ;;  %v9846_v0 = vld [vmem:[%s12758_s5 + $0x1a88] sm:$0xff] }
 0x32c   :  { %13581 = vst [vmem:[#allocation821_spill] sm:$0xff] %v9826_v32  ;;  %v9851_v32 = vld [vmem:[%s12758_s5 + $0x1a90] sm:$0xff] }
 0x32d   :  { %13582 = vst [vmem:[#allocation822_spill] sm:$0xff] %v9831_v49  ;;  %v9856_v49 = vld [vmem:[%s12758_s5 + $0x1a98] sm:$0xff] }
 0x32e   :  { %13583 = vst [vmem:[#allocation823_spill] sm:$0xff] %v9836_v33  ;;  %v9861_v33 = vld [vmem:[%s12758_s5 + $0x1aa0] sm:$0xff] }
 0x32f   :  { %13584 = vst [vmem:[#allocation824_spill] sm:$0xff] %v9841_v55  ;;  %v9866_v55 = vld [vmem:[%s12758_s5 + $0x1aa8] sm:$0xff] }
 0x330   :  { %13585 = vst [vmem:[#allocation825_spill] sm:$0xff] %v9846_v0  ;;  %v9871_v0 = vld [vmem:[%s12758_s5 + $0x1ab0] sm:$0xff] }
 0x331   :  { %13586 = vst [vmem:[#allocation826_spill] sm:$0xff] %v9851_v32  ;;  %v9876_v32 = vld [vmem:[%s12758_s5 + $0x1ab8] sm:$0xff] }
 0x332   :  { %13587 = vst [vmem:[#allocation827_spill] sm:$0xff] %v9856_v49  ;;  %v9881_v49 = vld [vmem:[%s12758_s5 + $0x1ac0] sm:$0xff] }
 0x333   :  { %13588 = vst [vmem:[#allocation828_spill] sm:$0xff] %v9861_v33  ;;  %v9886_v33 = vld [vmem:[%s12758_s5 + $0x1ac8] sm:$0xff] }
 0x334   :  { %13589 = vst [vmem:[#allocation829_spill] sm:$0xff] %v9866_v55  ;;  %v9891_v55 = vld [vmem:[%s12758_s5 + $0x1ad0] sm:$0xff] }
 0x335   :  { %13590 = vst [vmem:[#allocation830_spill] sm:$0xff] %v9871_v0  ;;  %v9896_v0 = vld [vmem:[%s12758_s5 + $0x1ad8] sm:$0xff] }
 0x336   :  { %13591 = vst [vmem:[#allocation831_spill] sm:$0xff] %v9876_v32  ;;  %v9901_v32 = vld [vmem:[%s12758_s5 + $0x1ae0] sm:$0xff] }
 0x337   :  { %13592 = vst [vmem:[#allocation832_spill] sm:$0xff] %v9881_v49  ;;  %v9906_v49 = vld [vmem:[%s12758_s5 + $0x1ae8] sm:$0xff] }
 0x338   :  { %13593 = vst [vmem:[#allocation833_spill] sm:$0xff] %v9886_v33  ;;  %v9911_v33 = vld [vmem:[%s12758_s5 + $0x1af0] sm:$0xff] }
 0x339   :  { %13594 = vst [vmem:[#allocation834_spill] sm:$0xff] %v9891_v55  ;;  %v9916_v55 = vld [vmem:[%s12758_s5 + $0x1af8] sm:$0xff] }
 0x33a   :  { %13595 = vst [vmem:[#allocation835_spill] sm:$0xff] %v9896_v0  ;;  %v9921_v0 = vld [vmem:[%s12758_s5 + $0x1b00] sm:$0xff] }
 0x33b   :  { %13596 = vst [vmem:[#allocation836_spill] sm:$0xff] %v9901_v32  ;;  %v9926_v32 = vld [vmem:[%s12758_s5 + $0x1b08] sm:$0xff] }
 0x33c   :  { %13597 = vst [vmem:[#allocation837_spill] sm:$0xff] %v9906_v49  ;;  %v9931_v49 = vld [vmem:[%s12758_s5 + $0x1b10] sm:$0xff] }
 0x33d   :  { %13598 = vst [vmem:[#allocation838_spill] sm:$0xff] %v9911_v33  ;;  %v9936_v33 = vld [vmem:[%s12758_s5 + $0x1b18] sm:$0xff] }
 0x33e   :  { %13599 = vst [vmem:[#allocation839_spill] sm:$0xff] %v9916_v55  ;;  %v9941_v55 = vld [vmem:[%s12758_s5 + $0x1b20] sm:$0xff] }
 0x33f   :  { %13600 = vst [vmem:[#allocation840_spill] sm:$0xff] %v9921_v0  ;;  %v9946_v0 = vld [vmem:[%s12758_s5 + $0x1b28] sm:$0xff] }
 0x340   :  { %13601 = vst [vmem:[#allocation841_spill] sm:$0xff] %v9926_v32  ;;  %v9951_v32 = vld [vmem:[%s12758_s5 + $0x1b30] sm:$0xff] }
 0x341   :  { %13602 = vst [vmem:[#allocation842_spill] sm:$0xff] %v9931_v49  ;;  %v9956_v49 = vld [vmem:[%s12758_s5 + $0x1b38] sm:$0xff] }
 0x342   :  { %13603 = vst [vmem:[#allocation843_spill] sm:$0xff] %v9936_v33  ;;  %v9961_v33 = vld [vmem:[%s12758_s5 + $0x1b40] sm:$0xff] }
 0x343   :  { %13604 = vst [vmem:[#allocation844_spill] sm:$0xff] %v9941_v55  ;;  %v9966_v55 = vld [vmem:[%s12758_s5 + $0x1b48] sm:$0xff] }
 0x344   :  { %13605 = vst [vmem:[#allocation845_spill] sm:$0xff] %v9946_v0  ;;  %v9971_v0 = vld [vmem:[%s12758_s5 + $0x1b50] sm:$0xff] }
 0x345   :  { %13606 = vst [vmem:[#allocation846_spill] sm:$0xff] %v9951_v32  ;;  %v9976_v32 = vld [vmem:[%s12758_s5 + $0x1b58] sm:$0xff] }
 0x346   :  { %13607 = vst [vmem:[#allocation847_spill] sm:$0xff] %v9956_v49  ;;  %v9981_v49 = vld [vmem:[%s12758_s5 + $0x1b60] sm:$0xff] }
 0x347   :  { %13608 = vst [vmem:[#allocation848_spill] sm:$0xff] %v9961_v33  ;;  %v9986_v33 = vld [vmem:[%s12758_s5 + $0x1b68] sm:$0xff] }
 0x348   :  { %13609 = vst [vmem:[#allocation849_spill] sm:$0xff] %v9966_v55  ;;  %v9991_v55 = vld [vmem:[%s12758_s5 + $0x1b70] sm:$0xff] }
 0x349   :  { %13610 = vst [vmem:[#allocation850_spill] sm:$0xff] %v9971_v0  ;;  %v9996_v0 = vld [vmem:[%s12758_s5 + $0x1b78] sm:$0xff] }
 0x34a   :  { %13611 = vst [vmem:[#allocation851_spill] sm:$0xff] %v9976_v32  ;;  %v10001_v32 = vld [vmem:[%s12758_s5 + $0x1b80] sm:$0xff] }
 0x34b   :  { %13612 = vst [vmem:[#allocation852_spill] sm:$0xff] %v9981_v49  ;;  %v10006_v49 = vld [vmem:[%s12758_s5 + $0x1b88] sm:$0xff] }
 0x34c   :  { %13613 = vst [vmem:[#allocation853_spill] sm:$0xff] %v9986_v33  ;;  %v10011_v33 = vld [vmem:[%s12758_s5 + $0x1b90] sm:$0xff] }
 0x34d   :  { %13614 = vst [vmem:[#allocation854_spill] sm:$0xff] %v9991_v55  ;;  %v10016_v55 = vld [vmem:[%s12758_s5 + $0x1b98] sm:$0xff] }
 0x34e   :  { %13615 = vst [vmem:[#allocation855_spill] sm:$0xff] %v9996_v0  ;;  %v10021_v0 = vld [vmem:[%s12758_s5 + $0x1ba0] sm:$0xff] }
 0x34f   :  { %13616 = vst [vmem:[#allocation856_spill] sm:$0xff] %v10001_v32  ;;  %v10026_v32 = vld [vmem:[%s12758_s5 + $0x1ba8] sm:$0xff] }
 0x350   :  { %13617 = vst [vmem:[#allocation857_spill] sm:$0xff] %v10006_v49  ;;  %v10031_v49 = vld [vmem:[%s12758_s5 + $0x1bb0] sm:$0xff] }
 0x351   :  { %13618 = vst [vmem:[#allocation858_spill] sm:$0xff] %v10011_v33  ;;  %v10036_v33 = vld [vmem:[%s12758_s5 + $0x1bb8] sm:$0xff] }
 0x352   :  { %13619 = vst [vmem:[#allocation859_spill] sm:$0xff] %v10016_v55  ;;  %v10041_v55 = vld [vmem:[%s12758_s5 + $0x1bc0] sm:$0xff] }
 0x353   :  { %13620 = vst [vmem:[#allocation860_spill] sm:$0xff] %v10021_v0  ;;  %v10046_v0 = vld [vmem:[%s12758_s5 + $0x1bc8] sm:$0xff] }
 0x354   :  { %13621 = vst [vmem:[#allocation861_spill] sm:$0xff] %v10026_v32  ;;  %v10051_v32 = vld [vmem:[%s12758_s5 + $0x1bd0] sm:$0xff] }
 0x355   :  { %13622 = vst [vmem:[#allocation862_spill] sm:$0xff] %v10031_v49  ;;  %v10056_v49 = vld [vmem:[%s12758_s5 + $0x1bd8] sm:$0xff] }
 0x356   :  { %13623 = vst [vmem:[#allocation863_spill] sm:$0xff] %v10036_v33  ;;  %v10061_v33 = vld [vmem:[%s12758_s5 + $0x1be0] sm:$0xff] }
 0x357   :  { %13624 = vst [vmem:[#allocation864_spill] sm:$0xff] %v10041_v55  ;;  %v10066_v55 = vld [vmem:[%s12758_s5 + $0x1be8] sm:$0xff] }
 0x358   :  { %13625 = vst [vmem:[#allocation865_spill] sm:$0xff] %v10046_v0  ;;  %v10071_v0 = vld [vmem:[%s12758_s5 + $0x1bf0] sm:$0xff] }
 0x359   :  { %13626 = vst [vmem:[#allocation866_spill] sm:$0xff] %v10051_v32  ;;  %v10076_v32 = vld [vmem:[%s12758_s5 + $0x1bf8] sm:$0xff] }
 0x35a   :  { %13627 = vst [vmem:[#allocation867_spill] sm:$0xff] %v10056_v49  ;;  %v10081_v49 = vld [vmem:[%s12758_s5 + $0x1c00] sm:$0xff] }
 0x35b   :  { %13628 = vst [vmem:[#allocation868_spill] sm:$0xff] %v10061_v33  ;;  %v10086_v33 = vld [vmem:[%s12758_s5 + $0x1c08] sm:$0xff] }
 0x35c   :  { %13629 = vst [vmem:[#allocation869_spill] sm:$0xff] %v10066_v55  ;;  %v10091_v55 = vld [vmem:[%s12758_s5 + $0x1c10] sm:$0xff] }
 0x35d   :  { %13630 = vst [vmem:[#allocation870_spill] sm:$0xff] %v10071_v0  ;;  %v10096_v0 = vld [vmem:[%s12758_s5 + $0x1c18] sm:$0xff] }
 0x35e   :  { %13631 = vst [vmem:[#allocation871_spill] sm:$0xff] %v10076_v32  ;;  %v10101_v32 = vld [vmem:[%s12758_s5 + $0x1c20] sm:$0xff] }
 0x35f   :  { %13632 = vst [vmem:[#allocation872_spill] sm:$0xff] %v10081_v49  ;;  %v10106_v49 = vld [vmem:[%s12758_s5 + $0x1c28] sm:$0xff] }
 0x360   :  { %13633 = vst [vmem:[#allocation873_spill] sm:$0xff] %v10086_v33  ;;  %v10111_v33 = vld [vmem:[%s12758_s5 + $0x1c30] sm:$0xff] }
 0x361   :  { %13634 = vst [vmem:[#allocation874_spill] sm:$0xff] %v10091_v55  ;;  %v10116_v55 = vld [vmem:[%s12758_s5 + $0x1c38] sm:$0xff] }
 0x362   :  { %13635 = vst [vmem:[#allocation875_spill] sm:$0xff] %v10096_v0  ;;  %v10121_v0 = vld [vmem:[%s12758_s5 + $0x1c40] sm:$0xff] }
 0x363   :  { %13636 = vst [vmem:[#allocation876_spill] sm:$0xff] %v10101_v32  ;;  %v10126_v32 = vld [vmem:[%s12758_s5 + $0x1c48] sm:$0xff] }
 0x364   :  { %13637 = vst [vmem:[#allocation877_spill] sm:$0xff] %v10106_v49  ;;  %v10131_v49 = vld [vmem:[%s12758_s5 + $0x1c50] sm:$0xff] }
 0x365   :  { %13638 = vst [vmem:[#allocation878_spill] sm:$0xff] %v10111_v33  ;;  %v10136_v33 = vld [vmem:[%s12758_s5 + $0x1c58] sm:$0xff] }
 0x366   :  { %13639 = vst [vmem:[#allocation879_spill] sm:$0xff] %v10116_v55  ;;  %v10141_v55 = vld [vmem:[%s12758_s5 + $0x1c60] sm:$0xff] }
 0x367   :  { %13640 = vst [vmem:[#allocation880_spill] sm:$0xff] %v10121_v0  ;;  %v10146_v0 = vld [vmem:[%s12758_s5 + $0x1c68] sm:$0xff] }
 0x368   :  { %13641 = vst [vmem:[#allocation881_spill] sm:$0xff] %v10126_v32  ;;  %v10151_v32 = vld [vmem:[%s12758_s5 + $0x1c70] sm:$0xff] }
 0x369   :  { %13642 = vst [vmem:[#allocation882_spill] sm:$0xff] %v10131_v49  ;;  %v10156_v49 = vld [vmem:[%s12758_s5 + $0x1c78] sm:$0xff] }
 0x36a   :  { %13643 = vst [vmem:[#allocation883_spill] sm:$0xff] %v10136_v33  ;;  %v10161_v33 = vld [vmem:[%s12758_s5 + $0x1c80] sm:$0xff] }
 0x36b   :  { %13644 = vst [vmem:[#allocation884_spill] sm:$0xff] %v10141_v55  ;;  %v10166_v55 = vld [vmem:[%s12758_s5 + $0x1c88] sm:$0xff] }
 0x36c   :  { %13645 = vst [vmem:[#allocation885_spill] sm:$0xff] %v10146_v0  ;;  %v10171_v0 = vld [vmem:[%s12758_s5 + $0x1c90] sm:$0xff] }
 0x36d   :  { %13646 = vst [vmem:[#allocation886_spill] sm:$0xff] %v10151_v32  ;;  %v10176_v32 = vld [vmem:[%s12758_s5 + $0x1c98] sm:$0xff] }
 0x36e   :  { %13647 = vst [vmem:[#allocation887_spill] sm:$0xff] %v10156_v49  ;;  %v10181_v49 = vld [vmem:[%s12758_s5 + $0x1ca0] sm:$0xff] }
 0x36f   :  { %13648 = vst [vmem:[#allocation888_spill] sm:$0xff] %v10161_v33  ;;  %v10186_v33 = vld [vmem:[%s12758_s5 + $0x1ca8] sm:$0xff] }
 0x370   :  { %13649 = vst [vmem:[#allocation889_spill] sm:$0xff] %v10166_v55  ;;  %v10191_v55 = vld [vmem:[%s12758_s5 + $0x1cb0] sm:$0xff] }
 0x371   :  { %13650 = vst [vmem:[#allocation890_spill] sm:$0xff] %v10171_v0  ;;  %v10196_v0 = vld [vmem:[%s12758_s5 + $0x1cb8] sm:$0xff] }
 0x372   :  { %13651 = vst [vmem:[#allocation891_spill] sm:$0xff] %v10176_v32  ;;  %v10201_v32 = vld [vmem:[%s12758_s5 + $0x1cc0] sm:$0xff] }
 0x373   :  { %13652 = vst [vmem:[#allocation892_spill] sm:$0xff] %v10181_v49  ;;  %v10206_v49 = vld [vmem:[%s12758_s5 + $0x1cc8] sm:$0xff] }
 0x374   :  { %13653 = vst [vmem:[#allocation893_spill] sm:$0xff] %v10186_v33  ;;  %v10211_v33 = vld [vmem:[%s12758_s5 + $0x1cd0] sm:$0xff] }
 0x375   :  { %13654 = vst [vmem:[#allocation894_spill] sm:$0xff] %v10191_v55  ;;  %v10216_v55 = vld [vmem:[%s12758_s5 + $0x1cd8] sm:$0xff] }
 0x376   :  { %13655 = vst [vmem:[#allocation895_spill] sm:$0xff] %v10196_v0  ;;  %v10221_v0 = vld [vmem:[%s12758_s5 + $0x1ce0] sm:$0xff] }
 0x377   :  { %13656 = vst [vmem:[#allocation896_spill] sm:$0xff] %v10201_v32  ;;  %v10226_v32 = vld [vmem:[%s12758_s5 + $0x1ce8] sm:$0xff] }
 0x378   :  { %13657 = vst [vmem:[#allocation897_spill] sm:$0xff] %v10206_v49  ;;  %v10231_v49 = vld [vmem:[%s12758_s5 + $0x1cf0] sm:$0xff] }
 0x379   :  { %13658 = vst [vmem:[#allocation898_spill] sm:$0xff] %v10211_v33  ;;  %v10236_v33 = vld [vmem:[%s12758_s5 + $0x1cf8] sm:$0xff] }
 0x37a   :  { %13659 = vst [vmem:[#allocation899_spill] sm:$0xff] %v10216_v55  ;;  %v10241_v55 = vld [vmem:[%s12758_s5 + $0x1d00] sm:$0xff] }
 0x37b   :  { %13660 = vst [vmem:[#allocation900_spill] sm:$0xff] %v10221_v0  ;;  %v10246_v0 = vld [vmem:[%s12758_s5 + $0x1d08] sm:$0xff] }
 0x37c   :  { %13661 = vst [vmem:[#allocation901_spill] sm:$0xff] %v10226_v32  ;;  %v10251_v32 = vld [vmem:[%s12758_s5 + $0x1d10] sm:$0xff] }
 0x37d   :  { %13662 = vst [vmem:[#allocation902_spill] sm:$0xff] %v10231_v49  ;;  %v10256_v49 = vld [vmem:[%s12758_s5 + $0x1d18] sm:$0xff] }
 0x37e   :  { %13663 = vst [vmem:[#allocation903_spill] sm:$0xff] %v10236_v33  ;;  %v10261_v33 = vld [vmem:[%s12758_s5 + $0x1d20] sm:$0xff] }
 0x37f   :  { %13664 = vst [vmem:[#allocation904_spill] sm:$0xff] %v10241_v55  ;;  %v10266_v55 = vld [vmem:[%s12758_s5 + $0x1d28] sm:$0xff] }
 0x380   :  { %13665 = vst [vmem:[#allocation905_spill] sm:$0xff] %v10246_v0  ;;  %v10271_v0 = vld [vmem:[%s12758_s5 + $0x1d30] sm:$0xff] }
 0x381   :  { %13666 = vst [vmem:[#allocation906_spill] sm:$0xff] %v10251_v32  ;;  %v10276_v32 = vld [vmem:[%s12758_s5 + $0x1d38] sm:$0xff] }
 0x382   :  { %13667 = vst [vmem:[#allocation907_spill] sm:$0xff] %v10256_v49  ;;  %v10281_v49 = vld [vmem:[%s12758_s5 + $0x1d40] sm:$0xff] }
 0x383   :  { %13668 = vst [vmem:[#allocation908_spill] sm:$0xff] %v10261_v33  ;;  %v10286_v33 = vld [vmem:[%s12758_s5 + $0x1d48] sm:$0xff] }
 0x384   :  { %13669 = vst [vmem:[#allocation909_spill] sm:$0xff] %v10266_v55  ;;  %v10291_v55 = vld [vmem:[%s12758_s5 + $0x1d50] sm:$0xff] }
 0x385   :  { %13670 = vst [vmem:[#allocation910_spill] sm:$0xff] %v10271_v0  ;;  %v10296_v0 = vld [vmem:[%s12758_s5 + $0x1d58] sm:$0xff] }
 0x386   :  { %13671 = vst [vmem:[#allocation911_spill] sm:$0xff] %v10276_v32  ;;  %v10301_v32 = vld [vmem:[%s12758_s5 + $0x1d60] sm:$0xff] }
 0x387   :  { %13672 = vst [vmem:[#allocation912_spill] sm:$0xff] %v10281_v49  ;;  %v10306_v49 = vld [vmem:[%s12758_s5 + $0x1d68] sm:$0xff] }
 0x388   :  { %13673 = vst [vmem:[#allocation913_spill] sm:$0xff] %v10286_v33  ;;  %v10311_v33 = vld [vmem:[%s12758_s5 + $0x1d70] sm:$0xff] }
 0x389   :  { %13674 = vst [vmem:[#allocation914_spill] sm:$0xff] %v10291_v55  ;;  %v10316_v55 = vld [vmem:[%s12758_s5 + $0x1d78] sm:$0xff] }
 0x38a   :  { %13675 = vst [vmem:[#allocation915_spill] sm:$0xff] %v10296_v0  ;;  %v10321_v0 = vld [vmem:[%s12758_s5 + $0x1d80] sm:$0xff] }
 0x38b   :  { %13676 = vst [vmem:[#allocation916_spill] sm:$0xff] %v10301_v32  ;;  %v10326_v32 = vld [vmem:[%s12758_s5 + $0x1d88] sm:$0xff] }
 0x38c   :  { %13677 = vst [vmem:[#allocation917_spill] sm:$0xff] %v10306_v49  ;;  %v10331_v49 = vld [vmem:[%s12758_s5 + $0x1d90] sm:$0xff] }
 0x38d   :  { %13678 = vst [vmem:[#allocation918_spill] sm:$0xff] %v10311_v33  ;;  %v10336_v33 = vld [vmem:[%s12758_s5 + $0x1d98] sm:$0xff] }
 0x38e   :  { %13679 = vst [vmem:[#allocation919_spill] sm:$0xff] %v10316_v55  ;;  %v10341_v55 = vld [vmem:[%s12758_s5 + $0x1da0] sm:$0xff] }
 0x38f   :  { %13680 = vst [vmem:[#allocation920_spill] sm:$0xff] %v10321_v0  ;;  %v10346_v0 = vld [vmem:[%s12758_s5 + $0x1da8] sm:$0xff] }
 0x390   :  { %13681 = vst [vmem:[#allocation921_spill] sm:$0xff] %v10326_v32  ;;  %v10351_v32 = vld [vmem:[%s12758_s5 + $0x1db0] sm:$0xff] }
 0x391   :  { %13682 = vst [vmem:[#allocation922_spill] sm:$0xff] %v10331_v49  ;;  %v10356_v49 = vld [vmem:[%s12758_s5 + $0x1db8] sm:$0xff] }
 0x392   :  { %13683 = vst [vmem:[#allocation923_spill] sm:$0xff] %v10336_v33  ;;  %v10361_v33 = vld [vmem:[%s12758_s5 + $0x1dc0] sm:$0xff] }
 0x393   :  { %13684 = vst [vmem:[#allocation924_spill] sm:$0xff] %v10341_v55  ;;  %v10366_v55 = vld [vmem:[%s12758_s5 + $0x1dc8] sm:$0xff] }
 0x394   :  { %13685 = vst [vmem:[#allocation925_spill] sm:$0xff] %v10346_v0  ;;  %v10371_v0 = vld [vmem:[%s12758_s5 + $0x1dd0] sm:$0xff] }
 0x395   :  { %13686 = vst [vmem:[#allocation926_spill] sm:$0xff] %v10351_v32  ;;  %v10376_v32 = vld [vmem:[%s12758_s5 + $0x1dd8] sm:$0xff] }
 0x396   :  { %13687 = vst [vmem:[#allocation927_spill] sm:$0xff] %v10356_v49  ;;  %v10381_v49 = vld [vmem:[%s12758_s5 + $0x1de0] sm:$0xff] }
 0x397   :  { %13688 = vst [vmem:[#allocation928_spill] sm:$0xff] %v10361_v33  ;;  %v10386_v33 = vld [vmem:[%s12758_s5 + $0x1de8] sm:$0xff] }
 0x398   :  { %13689 = vst [vmem:[#allocation929_spill] sm:$0xff] %v10366_v55  ;;  %v10391_v55 = vld [vmem:[%s12758_s5 + $0x1df0] sm:$0xff] }
 0x399   :  { %13690 = vst [vmem:[#allocation930_spill] sm:$0xff] %v10371_v0  ;;  %v10396_v0 = vld [vmem:[%s12758_s5 + $0x1df8] sm:$0xff] }
 0x39a   :  { %13691 = vst [vmem:[#allocation931_spill] sm:$0xff] %v10376_v32  ;;  %v10401_v32 = vld [vmem:[%s12758_s5 + $0x1e00] sm:$0xff] }
 0x39b   :  { %13692 = vst [vmem:[#allocation932_spill] sm:$0xff] %v10381_v49  ;;  %v10406_v49 = vld [vmem:[%s12758_s5 + $0x1e08] sm:$0xff] }
 0x39c   :  { %13693 = vst [vmem:[#allocation933_spill] sm:$0xff] %v10386_v33  ;;  %v10411_v33 = vld [vmem:[%s12758_s5 + $0x1e10] sm:$0xff] }
 0x39d   :  { %13694 = vst [vmem:[#allocation934_spill] sm:$0xff] %v10391_v55  ;;  %v10416_v55 = vld [vmem:[%s12758_s5 + $0x1e18] sm:$0xff] }
 0x39e   :  { %13695 = vst [vmem:[#allocation935_spill] sm:$0xff] %v10396_v0  ;;  %v10421_v0 = vld [vmem:[%s12758_s5 + $0x1e20] sm:$0xff] }
 0x39f   :  { %13696 = vst [vmem:[#allocation936_spill] sm:$0xff] %v10401_v32  ;;  %v10426_v32 = vld [vmem:[%s12758_s5 + $0x1e28] sm:$0xff] }
 0x3a0   :  { %13697 = vst [vmem:[#allocation937_spill] sm:$0xff] %v10406_v49  ;;  %v10431_v49 = vld [vmem:[%s12758_s5 + $0x1e30] sm:$0xff] }
 0x3a1   :  { %13698 = vst [vmem:[#allocation938_spill] sm:$0xff] %v10411_v33  ;;  %v10436_v33 = vld [vmem:[%s12758_s5 + $0x1e38] sm:$0xff] }
 0x3a2   :  { %13699 = vst [vmem:[#allocation939_spill] sm:$0xff] %v10416_v55  ;;  %v10441_v55 = vld [vmem:[%s12758_s5 + $0x1e40] sm:$0xff] }
 0x3a3   :  { %13700 = vst [vmem:[#allocation940_spill] sm:$0xff] %v10421_v0  ;;  %v10446_v0 = vld [vmem:[%s12758_s5 + $0x1e48] sm:$0xff] }
 0x3a4   :  { %13701 = vst [vmem:[#allocation941_spill] sm:$0xff] %v10426_v32  ;;  %v10451_v32 = vld [vmem:[%s12758_s5 + $0x1e50] sm:$0xff] }
 0x3a5   :  { %13702 = vst [vmem:[#allocation942_spill] sm:$0xff] %v10431_v49  ;;  %v10456_v49 = vld [vmem:[%s12758_s5 + $0x1e58] sm:$0xff] }
 0x3a6   :  { %13703 = vst [vmem:[#allocation943_spill] sm:$0xff] %v10436_v33  ;;  %v10461_v33 = vld [vmem:[%s12758_s5 + $0x1e60] sm:$0xff] }
 0x3a7   :  { %13704 = vst [vmem:[#allocation944_spill] sm:$0xff] %v10441_v55  ;;  %v10466_v55 = vld [vmem:[%s12758_s5 + $0x1e68] sm:$0xff] }
 0x3a8   :  { %13705 = vst [vmem:[#allocation945_spill] sm:$0xff] %v10446_v0  ;;  %v10471_v0 = vld [vmem:[%s12758_s5 + $0x1e70] sm:$0xff] }
 0x3a9   :  { %13706 = vst [vmem:[#allocation946_spill] sm:$0xff] %v10451_v32  ;;  %v10476_v32 = vld [vmem:[%s12758_s5 + $0x1e78] sm:$0xff] }
 0x3aa   :  { %13707 = vst [vmem:[#allocation947_spill] sm:$0xff] %v10456_v49  ;;  %v10481_v49 = vld [vmem:[%s12758_s5 + $0x1e80] sm:$0xff] }
 0x3ab   :  { %13708 = vst [vmem:[#allocation948_spill] sm:$0xff] %v10461_v33  ;;  %v10486_v33 = vld [vmem:[%s12758_s5 + $0x1e88] sm:$0xff] }
 0x3ac   :  { %13709 = vst [vmem:[#allocation949_spill] sm:$0xff] %v10466_v55  ;;  %v10491_v55 = vld [vmem:[%s12758_s5 + $0x1e90] sm:$0xff] }
 0x3ad   :  { %13710 = vst [vmem:[#allocation950_spill] sm:$0xff] %v10471_v0  ;;  %v10496_v0 = vld [vmem:[%s12758_s5 + $0x1e98] sm:$0xff] }
 0x3ae   :  { %13711 = vst [vmem:[#allocation951_spill] sm:$0xff] %v10476_v32  ;;  %v10501_v32 = vld [vmem:[%s12758_s5 + $0x1ea0] sm:$0xff] }
 0x3af   :  { %13712 = vst [vmem:[#allocation952_spill] sm:$0xff] %v10481_v49  ;;  %v10506_v49 = vld [vmem:[%s12758_s5 + $0x1ea8] sm:$0xff] }
 0x3b0   :  { %13713 = vst [vmem:[#allocation953_spill] sm:$0xff] %v10486_v33  ;;  %v10511_v33 = vld [vmem:[%s12758_s5 + $0x1eb0] sm:$0xff] }
 0x3b1   :  { %13714 = vst [vmem:[#allocation954_spill] sm:$0xff] %v10491_v55  ;;  %v10516_v55 = vld [vmem:[%s12758_s5 + $0x1eb8] sm:$0xff] }
 0x3b2   :  { %13715 = vst [vmem:[#allocation955_spill] sm:$0xff] %v10496_v0  ;;  %v10521_v0 = vld [vmem:[%s12758_s5 + $0x1ec0] sm:$0xff] }
 0x3b3   :  { %13716 = vst [vmem:[#allocation956_spill] sm:$0xff] %v10501_v32  ;;  %v10526_v32 = vld [vmem:[%s12758_s5 + $0x1ec8] sm:$0xff] }
 0x3b4   :  { %13717 = vst [vmem:[#allocation957_spill] sm:$0xff] %v10506_v49  ;;  %v10531_v49 = vld [vmem:[%s12758_s5 + $0x1ed0] sm:$0xff] }
 0x3b5   :  { %13718 = vst [vmem:[#allocation958_spill] sm:$0xff] %v10511_v33  ;;  %v10536_v33 = vld [vmem:[%s12758_s5 + $0x1ed8] sm:$0xff] }
 0x3b6   :  { %13719 = vst [vmem:[#allocation959_spill] sm:$0xff] %v10516_v55  ;;  %v10541_v55 = vld [vmem:[%s12758_s5 + $0x1ee0] sm:$0xff] }
 0x3b7   :  { %13720 = vst [vmem:[#allocation960_spill] sm:$0xff] %v10521_v0  ;;  %v10546_v0 = vld [vmem:[%s12758_s5 + $0x1ee8] sm:$0xff] }
 0x3b8   :  { %13721 = vst [vmem:[#allocation961_spill] sm:$0xff] %v10526_v32  ;;  %v10551_v32 = vld [vmem:[%s12758_s5 + $0x1ef0] sm:$0xff] }
 0x3b9   :  { %13722 = vst [vmem:[#allocation962_spill] sm:$0xff] %v10531_v49  ;;  %v10556_v49 = vld [vmem:[%s12758_s5 + $0x1ef8] sm:$0xff] }
 0x3ba   :  { %13723 = vst [vmem:[#allocation963_spill] sm:$0xff] %v10536_v33  ;;  %v10561_v33 = vld [vmem:[%s12758_s5 + $0x1f00] sm:$0xff] }
 0x3bb   :  { %13724 = vst [vmem:[#allocation964_spill] sm:$0xff] %v10541_v55  ;;  %v10566_v55 = vld [vmem:[%s12758_s5 + $0x1f08] sm:$0xff] }
 0x3bc   :  { %13725 = vst [vmem:[#allocation965_spill] sm:$0xff] %v10546_v0  ;;  %v10571_v0 = vld [vmem:[%s12758_s5 + $0x1f10] sm:$0xff] }
 0x3bd   :  { %13726 = vst [vmem:[#allocation966_spill] sm:$0xff] %v10551_v32  ;;  %v10576_v32 = vld [vmem:[%s12758_s5 + $0x1f18] sm:$0xff] }
 0x3be   :  { %13727 = vst [vmem:[#allocation967_spill] sm:$0xff] %v10556_v49  ;;  %v10581_v49 = vld [vmem:[%s12758_s5 + $0x1f20] sm:$0xff] }
 0x3bf   :  { %13728 = vst [vmem:[#allocation968_spill] sm:$0xff] %v10561_v33  ;;  %v10586_v33 = vld [vmem:[%s12758_s5 + $0x1f28] sm:$0xff] }
 0x3c0   :  { %13729 = vst [vmem:[#allocation969_spill] sm:$0xff] %v10566_v55  ;;  %v10591_v55 = vld [vmem:[%s12758_s5 + $0x1f30] sm:$0xff] }
 0x3c1   :  { %13730 = vst [vmem:[#allocation970_spill] sm:$0xff] %v10571_v0  ;;  %v10596_v0 = vld [vmem:[%s12758_s5 + $0x1f38] sm:$0xff] }
 0x3c2   :  { %13731 = vst [vmem:[#allocation971_spill] sm:$0xff] %v10576_v32  ;;  %v10601_v32 = vld [vmem:[%s12758_s5 + $0x1f40] sm:$0xff] }
 0x3c3   :  { %13732 = vst [vmem:[#allocation972_spill] sm:$0xff] %v10581_v49  ;;  %v10606_v49 = vld [vmem:[%s12758_s5 + $0x1f48] sm:$0xff] }
 0x3c4   :  { %13733 = vst [vmem:[#allocation973_spill] sm:$0xff] %v10586_v33  ;;  %v10611_v33 = vld [vmem:[%s12758_s5 + $0x1f50] sm:$0xff] }
 0x3c5   :  { %13734 = vst [vmem:[#allocation974_spill] sm:$0xff] %v10591_v55  ;;  %v10616_v55 = vld [vmem:[%s12758_s5 + $0x1f58] sm:$0xff] }
 0x3c6   :  { %13735 = vst [vmem:[#allocation975_spill] sm:$0xff] %v10596_v0  ;;  %v10621_v0 = vld [vmem:[%s12758_s5 + $0x1f60] sm:$0xff] }
 0x3c7   :  { %13736 = vst [vmem:[#allocation976_spill] sm:$0xff] %v10601_v32  ;;  %v10626_v32 = vld [vmem:[%s12758_s5 + $0x1f68] sm:$0xff] }
 0x3c8   :  { %13737 = vst [vmem:[#allocation977_spill] sm:$0xff] %v10606_v49  ;;  %v10631_v49 = vld [vmem:[%s12758_s5 + $0x1f70] sm:$0xff] }
 0x3c9   :  { %13738 = vst [vmem:[#allocation978_spill] sm:$0xff] %v10611_v33  ;;  %v10636_v33 = vld [vmem:[%s12758_s5 + $0x1f78] sm:$0xff] }
 0x3ca   :  { %13739 = vst [vmem:[#allocation979_spill] sm:$0xff] %v10616_v55  ;;  %v10641_v55 = vld [vmem:[%s12758_s5 + $0x1f80] sm:$0xff] }
 0x3cb   :  { %13740 = vst [vmem:[#allocation980_spill] sm:$0xff] %v10621_v0  ;;  %v10646_v0 = vld [vmem:[%s12758_s5 + $0x1f88] sm:$0xff] }
 0x3cc   :  { %13741 = vst [vmem:[#allocation981_spill] sm:$0xff] %v10626_v32  ;;  %v10651_v32 = vld [vmem:[%s12758_s5 + $0x1f90] sm:$0xff] }
 0x3cd   :  { %13742 = vst [vmem:[#allocation982_spill] sm:$0xff] %v10631_v49  ;;  %v10656_v49 = vld [vmem:[%s12758_s5 + $0x1f98] sm:$0xff] }
 0x3ce   :  { %13743 = vst [vmem:[#allocation983_spill] sm:$0xff] %v10636_v33  ;;  %v10661_v33 = vld [vmem:[%s12758_s5 + $0x1fa0] sm:$0xff] }
 0x3cf   :  { %13744 = vst [vmem:[#allocation984_spill] sm:$0xff] %v10641_v55  ;;  %v10666_v55 = vld [vmem:[%s12758_s5 + $0x1fa8] sm:$0xff] }
 0x3d0   :  { %13745 = vst [vmem:[#allocation985_spill] sm:$0xff] %v10646_v0  ;;  %v10671_v0 = vld [vmem:[%s12758_s5 + $0x1fb0] sm:$0xff] }
 0x3d1   :  { %13746 = vst [vmem:[#allocation986_spill] sm:$0xff] %v10651_v32  ;;  %v10676_v32 = vld [vmem:[%s12758_s5 + $0x1fb8] sm:$0xff] }
 0x3d2   :  { %13747 = vst [vmem:[#allocation987_spill] sm:$0xff] %v10656_v49  ;;  %v10681_v49 = vld [vmem:[%s12758_s5 + $0x1fc0] sm:$0xff] }
 0x3d3   :  { %13748 = vst [vmem:[#allocation988_spill] sm:$0xff] %v10661_v33  ;;  %v10686_v33 = vld [vmem:[%s12758_s5 + $0x1fc8] sm:$0xff] }
 0x3d4   :  { %13749 = vst [vmem:[#allocation989_spill] sm:$0xff] %v10666_v55  ;;  %v10691_v55 = vld [vmem:[%s12758_s5 + $0x1fd0] sm:$0xff] }
 0x3d5   :  { %13750 = vst [vmem:[#allocation990_spill] sm:$0xff] %v10671_v0  ;;  %v10696_v0 = vld [vmem:[%s12758_s5 + $0x1fd8] sm:$0xff] }
 0x3d6   :  { %13751 = vst [vmem:[#allocation991_spill] sm:$0xff] %v10676_v32  ;;  %v10701_v32 = vld [vmem:[%s12758_s5 + $0x1fe0] sm:$0xff] }
 0x3d7   :  { %13752 = vst [vmem:[#allocation992_spill] sm:$0xff] %v10681_v49  ;;  %v10706_v49 = vld [vmem:[%s12758_s5 + $0x1fe8] sm:$0xff] }
 0x3d8   :  { %13753 = vst [vmem:[#allocation993_spill] sm:$0xff] %v10686_v33  ;;  %v10711_v33 = vld [vmem:[%s12758_s5 + $0x1ff0] sm:$0xff] }
 0x3d9   :  { %13754 = vst [vmem:[#allocation994_spill] sm:$0xff] %v10691_v55  ;;  %v10716_v55 = vld [vmem:[%s12758_s5 + $0x1ff8] sm:$0xff] }
 0x3da   :  { %13755 = vst [vmem:[#allocation995_spill] sm:$0xff] %v10696_v0 }
 0x3db   :  { %13756 = vst [vmem:[#allocation996_spill] sm:$0xff] %v10701_v32 }
 0x3dc   :  { %13757 = vst [vmem:[#allocation997_spill] sm:$0xff] %v10706_v49 }
 0x3dd   :  { %13758 = vst [vmem:[#allocation998_spill] sm:$0xff] %v10711_v33 }
 0x3de   :  { %13759 = vst [vmem:[#allocation999_spill] sm:$0xff] %v10716_v55 }
 0x3df   :  { %2094 = vsyncadd [#allocation5], 131072  ;;  %v2174_v0 = vld [vmem:[%s12753_s0 + $0x258] sm:$0xff]  ;;  %v2169_v32 = vld [vmem:[%s12753_s0 + $0x230] sm:$0xff]  ;;  %s5545_s16 = smov 117   ;;  %s5546_s17 = smov 118  }
 0x3e0   :  { %2271 = vmatpush.msra.mxu0 %v2174_v0  ;;  %v2254_v49 = vld [vmem:[%s12753_s0 + $0x4d8] sm:$0xff]  ;;  %v2249_v33 = vld [vmem:[%s12753_s0 + $0x4b0] sm:$0xff]  ;;  %v2164_v55 = vld [vmem:[%s12753_s0 + $0x208] sm:$0xff]  ;;  %vm2607_vm0 = vcmask 957440   ;;  %vm2527_vm1 = vcmask 1039360   ;;  %vm2582_vm2 = vcmask 965632  }
 0x3e1   :  { %2294 = vmatpush.msra.mxu1 %v2254_v49  ;;  %v2244_v34 = vld [vmem:[%s12753_s0 + $0x488] sm:$0xff]  ;;  %v2175_v0 = vld [vmem:[%s12753_s0 + $0x260] sm:$0xff]  ;;  %v2170_v49 = vld [vmem:[%s12753_s0 + $0x238] sm:$0xff] }
 0x3e2   :  { %2272 = vmatpush.msra.mxu0 %v2169_v32  ;;  %v2159_v1 = vld [vmem:[%s12753_s0 + $0x1e0] sm:$0xff]  ;;  %2317 = vmatpush.msra.mxu2 %v2175_v0  ;;  %v2154_v0 = vld [vmem:[%s12753_s0 + $0x1b8] sm:$0xff]  ;;  %v2197_v21 = vld [vmem:[%s12753_s0 + $0x310] sm:$0xff] }
 0x3e3   :  { %2295 = vmatpush.msra.mxu1 %v2249_v33  ;;  %v2255_v32 = vld [vmem:[%s12753_s0 + $0x4e0] sm:$0xff]  ;;  %v2165_v33 = vld [vmem:[%s12753_s0 + $0x210] sm:$0xff]  ;;  %v2250_v23 = vld [vmem:[%s12753_s0 + $0x4b8] sm:$0xff] }
 0x3e4   :  { %2273 = vmatpush.msra.mxu0 %v2164_v55  ;;  %v2239_v2 = vld [vmem:[%s12753_s0 + $0x460] sm:$0xff]  ;;  %2340 = vmatpush.msra.mxu3 %v2255_v32  ;;  %v2234_v55 = vld [vmem:[%s12753_s0 + $0x438] sm:$0xff]  ;;  %v2160_v32 = vld [vmem:[%s12753_s0 + $0x1e8] sm:$0xff] }
 0x3e5   :  { %2296 = vmatpush.msra.mxu1 %v2244_v34  ;;  %2318 = vmatpush.msra.mxu2 %v2170_v49  ;;  %v2245_v34 = vld [vmem:[%s12753_s0 + $0x490] sm:$0xff]  ;;  %v2155_v36 = vld [vmem:[%s12753_s0 + $0x1c0] sm:$0xff]  ;;  %v2168_v38 = vld [vmem:[%s12753_s0 + $0x228] sm:$0xff] }
 0x3e6   :  { %2274 = vmatpush.msra.mxu0 %v2159_v1  ;;  %2341 = vmatpush.msra.mxu3 %v2250_v23  ;;  %v2149_v49 = vld [vmem:[%s12753_s0 + $0x190] sm:$0xff]  ;;  %v2240_v1 = vld [vmem:[%s12753_s0 + $0x468] sm:$0xff]  ;;  %v2191_v3 = vld [vmem:[%s12753_s0 + $0x2e0] sm:$0xff] }
 0x3e7   :  { %2297 = vmatpush.msra.mxu1 %v2239_v2  ;;  %2319 = vmatpush.msra.mxu2 %v2165_v33  ;;  %v2229_v23 = vld [vmem:[%s12753_s0 + $0x410] sm:$0xff]  ;;  %v2144_v2 = vld [vmem:[%s12753_s0 + $0x168] sm:$0xff]  ;;  %v2235_v33 = vld [vmem:[%s12753_s0 + $0x440] sm:$0xff] }
 0x3e8   :  { %2275 = vmatpush.msra.mxu0 %v2154_v0  ;;  %2342 = vmatpush.msra.mxu3 %v2245_v34  ;;  %v2224_v0 = vld [vmem:[%s12753_s0 + $0x3e8] sm:$0xff]  ;;  %v2150_v34 = vld [vmem:[%s12753_s0 + $0x198] sm:$0xff]  ;;  %v2207_v4 = vld [vmem:[%s12753_s0 + $0x360] sm:$0xff] }
 0x3e9   :  { %2298 = vmatpush.msra.mxu1 %v2234_v55  ;;  %2320 = vmatpush.msra.mxu2 %v2160_v32  ;;  %v2139_v55 = vld [vmem:[%s12753_s0 + $0x140] sm:$0xff]  ;;  %v2230_v32 = vld [vmem:[%s12753_s0 + $0x418] sm:$0xff] }
 0x3ea   :  { %2276 = vmatpush.msra.mxu0 %v2149_v49  ;;  %2343 = vmatpush.msra.mxu3 %v2240_v1  ;;  %v2219_v49 = vld [vmem:[%s12753_s0 + $0x3c0] sm:$0xff]  ;;  %v2145_v1 = vld [vmem:[%s12753_s0 + $0x170] sm:$0xff] }
 0x3eb   :  { %2299 = vmatpush.msra.mxu1 %v2229_v23  ;;  %2321 = vmatpush.msra.mxu2 %v2155_v36  ;;  %v2134_v23 = vld [vmem:[%s12753_s0 + $0x118] sm:$0xff]  ;;  %v2225_v36 = vld [vmem:[%s12753_s0 + $0x3f0] sm:$0xff] }
 0x3ec   :  { %2277 = vmatpush.msra.mxu0 %v2144_v2  ;;  %2344 = vmatpush.msra.mxu3 %v2235_v33  ;;  %v2214_v2 = vld [vmem:[%s12753_s0 + $0x398] sm:$0xff]  ;;  %v2140_v33 = vld [vmem:[%s12753_s0 + $0x148] sm:$0xff] }
 0x3ed   :  { %2300 = vmatpush.msra.mxu1 %v2224_v0  ;;  %2322 = vmatpush.msra.mxu2 %v2150_v34  ;;  %v2129_v0 = vld [vmem:[%s12753_s0 + $0xf0] sm:$0xff]  ;;  %v2220_v34 = vld [vmem:[%s12753_s0 + $0x3c8] sm:$0xff] }
 0x3ee   :  { %2278 = vmatpush.msra.mxu0 %v2139_v55  ;;  %2345 = vmatpush.msra.mxu3 %v2230_v32  ;;  %v2209_v55 = vld [vmem:[%s12753_s0 + $0x370] sm:$0xff]  ;;  %v2135_v32 = vld [vmem:[%s12753_s0 + $0x120] sm:$0xff] }
 0x3ef   :  { %2301 = vmatpush.msra.mxu1 %v2219_v49  ;;  %2323 = vmatpush.msra.mxu2 %v2145_v1  ;;  %v2124_v49 = vld [vmem:[%s12753_s0 + $0xc8] sm:$0xff]  ;;  %v2215_v1 = vld [vmem:[%s12753_s0 + $0x3a0] sm:$0xff] }
 0x3f0   :  { %2279 = vmatpush.msra.mxu0 %v2134_v23  ;;  %2346 = vmatpush.msra.mxu3 %v2225_v36  ;;  %v2204_v23 = vld [vmem:[%s12753_s0 + $0x348] sm:$0xff]  ;;  %v2130_v36 = vld [vmem:[%s12753_s0 + $0xf8] sm:$0xff] }
 0x3f1   :  { %2302 = vmatpush.msra.mxu1 %v2214_v2  ;;  %2324 = vmatpush.msra.mxu2 %v2140_v33  ;;  %v2119_v2 = vld [vmem:[%s12753_s0 + $0xa0] sm:$0xff]  ;;  %v2210_v33 = vld [vmem:[%s12753_s0 + $0x378] sm:$0xff] }
 0x3f2   :  { %2280 = vmatpush.msra.mxu0 %v2129_v0  ;;  %2347 = vmatpush.msra.mxu3 %v2220_v34  ;;  %v2199_v0 = vld [vmem:[%s12753_s0 + $0x320] sm:$0xff]  ;;  %v2125_v34 = vld [vmem:[%s12753_s0 + $0xd0] sm:$0xff] }
 0x3f3   :  { %2303 = vmatpush.msra.mxu1 %v2209_v55  ;;  %2325 = vmatpush.msra.mxu2 %v2135_v32  ;;  %v2114_v55 = vld [vmem:[%s12753_s0 + $0x78] sm:$0xff]  ;;  %v2205_v32 = vld [vmem:[%s12753_s0 + $0x350] sm:$0xff] }
 0x3f4   :  { %2281 = vmatpush.msra.mxu0 %v2124_v49  ;;  %2348 = vmatpush.msra.mxu3 %v2215_v1  ;;  %v2194_v49 = vld [vmem:[%s12753_s0 + $0x2f8] sm:$0xff]  ;;  %v2120_v1 = vld [vmem:[%s12753_s0 + $0xa8] sm:$0xff] }
 0x3f5   :  { %2304 = vmatpush.msra.mxu1 %v2204_v23  ;;  %2326 = vmatpush.msra.mxu2 %v2130_v36  ;;  %v2109_v23 = vld [vmem:[%s12753_s0 + $0x50] sm:$0xff]  ;;  %v2200_v36 = vld [vmem:[%s12753_s0 + $0x328] sm:$0xff] }
 0x3f6   :  { %2282 = vmatpush.msra.mxu0 %v2119_v2  ;;  %2349 = vmatpush.msra.mxu3 %v2210_v33  ;;  %v2189_v2 = vld [vmem:[%s12753_s0 + $0x2d0] sm:$0xff]  ;;  %v2115_v33 = vld [vmem:[%s12753_s0 + $0x80] sm:$0xff] }
 0x3f7   :  { %2305 = vmatpush.msra.mxu1 %v2199_v0  ;;  %2327 = vmatpush.msra.mxu2 %v2125_v34  ;;  %v2104_v0 = vld [vmem:[%s12753_s0 + $0x28] sm:$0xff]  ;;  %v2195_v34 = vld [vmem:[%s12753_s0 + $0x300] sm:$0xff] }
 0x3f8   :  { %2283 = vmatpush.msra.mxu0 %v2114_v55  ;;  %2350 = vmatpush.msra.mxu3 %v2205_v32  ;;  %v2184_v55 = vld [vmem:[%s12753_s0 + $0x2a8] sm:$0xff]  ;;  %v2110_v32 = vld [vmem:[%s12753_s0 + $0x58] sm:$0xff] }
 0x3f9   :  { %2306 = vmatpush.msra.mxu1 %v2194_v49  ;;  %2328 = vmatpush.msra.mxu2 %v2120_v1  ;;  %v2099_v49 = vld [vmem:[%s12753_s0] sm:$0xff]  ;;  %v2190_v1 = vld [vmem:[%s12753_s0 + $0x2d8] sm:$0xff] }
 0x3fa   :  { %2284 = vmatpush.msra.mxu0 %v2109_v23  ;;  %2351 = vmatpush.msra.mxu3 %v2200_v36  ;;  %v2176_v23 = vld [vmem:[%s12753_s0 + $0x268] sm:$0xff]  ;;  %v2179_v36 = vld [vmem:[%s12753_s0 + $0x280] sm:$0xff] }
 0x3fb   :  { %2307 = vmatpush.msra.mxu1 %v2189_v2  ;;  %2329 = vmatpush.msra.mxu2 %v2115_v33  ;;  %v2256_v2 = vld [vmem:[%s12753_s0 + $0x4e8] sm:$0xff]  ;;  %v2105_v33 = vld [vmem:[%s12753_s0 + $0x30] sm:$0xff] }
 0x3fc   :  { %2285 = vmatpush.msra.mxu0 %v2104_v0  ;;  %2352 = vmatpush.msra.mxu3 %v2195_v34  ;;  %v2171_v0 = vld [vmem:[%s12753_s0 + $0x240] sm:$0xff]  ;;  %v2185_v34 = vld [vmem:[%s12753_s0 + $0x2b0] sm:$0xff] }
 0x3fd   :  { %2308 = vmatpush.msra.mxu1 %v2184_v55  ;;  %2330 = vmatpush.msra.mxu2 %v2110_v32  ;;  %v2251_v55 = vld [vmem:[%s12753_s0 + $0x4c0] sm:$0xff]  ;;  %v2100_v32 = vld [vmem:[%s12753_s0 + $0x8] sm:$0xff] }
 0x3fe   :  { %2286 = vmatpush.msra.mxu0 %v2099_v49  ;;  %2353 = vmatpush.msra.mxu3 %v2190_v1  ;;  %v2166_v49 = vld [vmem:[%s12753_s0 + $0x218] sm:$0xff]  ;;  %v2177_v1 = vld [vmem:[%s12753_s0 + $0x270] sm:$0xff] }
 0x3ff   :  { %2309 = vmatpush.msra.mxu1 %v2179_v36  ;;  %2331 = vmatpush.msra.mxu2 %v2105_v33  ;;  %v2180_v36 = vld [vmem:[%s12753_s0 + $0x288] sm:$0xff] }
 0x400   :  { %2363 = vmatpush.msrb.mxu0 %v2176_v23  ;;  %v2246_v23 = vld [vmem:[%s12753_s0 + $0x498] sm:$0xff]  ;;  %2354 = vmatpush.msra.mxu3 %v2185_v34  ;;  %v2172_v33 = vld [vmem:[%s12753_s0 + $0x248] sm:$0xff]  ;;  %v2257_v34 = vld [vmem:[%s12753_s0 + $0x4f0] sm:$0xff] }
 0x401   :  { %2386 = vmatpush.msrb.mxu1 %v2256_v2  ;;  %v2161_v2 = vld [vmem:[%s12753_s0 + $0x1f0] sm:$0xff]  ;;  %2332 = vmatpush.msra.mxu2 %v2100_v32  ;;  %v2167_v32 = vld [vmem:[%s12753_s0 + $0x220] sm:$0xff] }
 0x402   :  { %2364 = vmatpush.msrb.mxu0 %v2171_v0  ;;  %v2241_v0 = vld [vmem:[%s12753_s0 + $0x470] sm:$0xff]  ;;  %2355 = vmatpush.msra.mxu3 %v2180_v36  ;;  %v2162_v36 = vld [vmem:[%s12753_s0 + $0x1f8] sm:$0xff] }
 0x403   :  { %2387 = vmatpush.msrb.mxu1 %v2251_v55  ;;  %2409 = vmatpush.msrb.mxu2 %v2177_v1  ;;  %v2156_v55 = vld [vmem:[%s12753_s0 + $0x1c8] sm:$0xff] }
 0x404   :  { %2365 = vmatpush.msrb.mxu0 %v2166_v49  ;;  %v2236_v49 = vld [vmem:[%s12753_s0 + $0x448] sm:$0xff]  ;;  %2432 = vmatpush.msrb.mxu3 %v2257_v34  ;;  %v2157_v34 = vld [vmem:[%s12753_s0 + $0x1d0] sm:$0xff] }
 0x405   :  { %2388 = vmatpush.msrb.mxu1 %v2246_v23  ;;  %2410 = vmatpush.msrb.mxu2 %v2172_v33  ;;  %v2252_v1 = vld [vmem:[%s12753_s0 + $0x4c8] sm:$0xff]  ;;  %v2151_v23 = vld [vmem:[%s12753_s0 + $0x1a0] sm:$0xff] }
 0x406   :  { %2366 = vmatpush.msrb.mxu0 %v2161_v2  ;;  %v2231_v2 = vld [vmem:[%s12753_s0 + $0x420] sm:$0xff]  ;;  %2433 = vmatpush.msrb.mxu3 %v2252_v1  ;;  %v2152_v1 = vld [vmem:[%s12753_s0 + $0x1a8] sm:$0xff] }
 0x407   :  { %2389 = vmatpush.msrb.mxu1 %v2241_v0  ;;  %2411 = vmatpush.msrb.mxu2 %v2167_v32  ;;  %v2247_v33 = vld [vmem:[%s12753_s0 + $0x4a0] sm:$0xff]  ;;  %v2146_v0 = vld [vmem:[%s12753_s0 + $0x178] sm:$0xff] }
 0x408   :  { %2367 = vmatpush.msrb.mxu0 %v2156_v55  ;;  %v2226_v55 = vld [vmem:[%s12753_s0 + $0x3f8] sm:$0xff]  ;;  %2434 = vmatpush.msrb.mxu3 %v2247_v33  ;;  %v2147_v33 = vld [vmem:[%s12753_s0 + $0x180] sm:$0xff] }
 0x409   :  { %2390 = vmatpush.msrb.mxu1 %v2236_v49  ;;  %2412 = vmatpush.msrb.mxu2 %v2162_v36  ;;  %v2242_v32 = vld [vmem:[%s12753_s0 + $0x478] sm:$0xff]  ;;  %v2141_v49 = vld [vmem:[%s12753_s0 + $0x150] sm:$0xff] }
 0x40a   :  { %2368 = vmatpush.msrb.mxu0 %v2151_v23  ;;  %v2221_v23 = vld [vmem:[%s12753_s0 + $0x3d0] sm:$0xff]  ;;  %2435 = vmatpush.msrb.mxu3 %v2242_v32  ;;  %v2142_v32 = vld [vmem:[%s12753_s0 + $0x158] sm:$0xff] }
 0x40b   :  { %2391 = vmatpush.msrb.mxu1 %v2231_v2  ;;  %2413 = vmatpush.msrb.mxu2 %v2157_v34  ;;  %v2237_v36 = vld [vmem:[%s12753_s0 + $0x450] sm:$0xff]  ;;  %v2136_v2 = vld [vmem:[%s12753_s0 + $0x128] sm:$0xff] }
 0x40c   :  { %2369 = vmatpush.msrb.mxu0 %v2146_v0  ;;  %v2216_v0 = vld [vmem:[%s12753_s0 + $0x3a8] sm:$0xff]  ;;  %2436 = vmatpush.msrb.mxu3 %v2237_v36  ;;  %v2227_v36 = vld [vmem:[%s12753_s0 + $0x400] sm:$0xff] }
 0x40d   :  { %2392 = vmatpush.msrb.mxu1 %v2226_v55  ;;  %2414 = vmatpush.msrb.mxu2 %v2152_v1  ;;  %v2232_v34 = vld [vmem:[%s12753_s0 + $0x428] sm:$0xff]  ;;  %v2131_v55 = vld [vmem:[%s12753_s0 + $0x100] sm:$0xff] }
 0x40e   :  { %2370 = vmatpush.msrb.mxu0 %v2141_v49  ;;  %v2211_v49 = vld [vmem:[%s12753_s0 + $0x380] sm:$0xff]  ;;  %2437 = vmatpush.msrb.mxu3 %v2232_v34  ;;  %v2201_v34 = vld [vmem:[%s12753_s0 + $0x330] sm:$0xff] }
 0x40f   :  { %2393 = vmatpush.msrb.mxu1 %v2221_v23  ;;  %2415 = vmatpush.msrb.mxu2 %v2147_v33  ;;  %v11015_v1 = vld [vmem:[%s12754_s1] sm:$0xff]  ;;  %v2126_v23 = vld [vmem:[%s12753_s0 + $0xd8] sm:$0xff]  ;;  %v2121_v33 = vld [vmem:[%s12753_s0 + $0xb0] sm:$0xff] }
 0x410   :  { %2371 = vmatpush.msrb.mxu0 %v2136_v2  ;;  %v2206_v2 = vld [vmem:[%s12753_s0 + $0x358] sm:$0xff]  ;;  %2438 = vmatpush.msrb.mxu3 %v2227_v36  ;;  %v2111_v36 = vld [vmem:[%s12753_s0 + $0x60] sm:$0xff] }
 0x411   :  { %2394 = vmatpush.msrb.mxu1 %v2216_v0  ;;  %2416 = vmatpush.msrb.mxu2 %v2142_v32  ;;  %v11033_v0 = vld [vmem:[%s12754_s1 + $0x8] sm:$0xff] }
 0x412   :  { %2372 = vmatpush.msrb.mxu0 %v2131_v55  ;;  %v2137_v55 = vld [vmem:[%s12753_s0 + $0x130] sm:$0xff]  ;;  %2333 = vmatmul.f32.vlgmr.msra.gmra.mxu2 %v11015_v1  ;;  %v2116_v32 = vld [vmem:[%s12753_s0 + $0x88] sm:$0xff] }
 0x413   :  { %2395 = vmatpush.msrb.mxu1 %v2211_v49  ;;  %2287 = vmatmul.f32.vlgmr.msra.gmra.mxu0 %v11015_v1  ;;  %v2222_v49 = vld [vmem:[%s12753_s0 + $0x3d8] sm:$0xff] }
 0x414   :  { %2373 = vmatpush.msrb.mxu0 %v2126_v23  ;;  %2310 = vmatmul.f32.vlgmr.msra.gmra.mxu1 %v11033_v0  ;;  %v2196_v23 = vld [vmem:[%s12753_s0 + $0x308] sm:$0xff] }
 0x415   :  { %2396 = vmatpush.msrb.mxu1 %v2206_v2  ;;  %2417 = vmatpush.msrb.mxu2 %v2137_v55  ;;  %v2132_v2 = vld [vmem:[%s12753_s0 + $0x108] sm:$0xff]  ;;  %v2127_v55 = vld [vmem:[%s12753_s0 + $0xe0] sm:$0xff] }
 0x416   :  { %2374 = vmatpush.msrb.mxu0 %v2121_v33  ;;  %2439 = vmatpush.msrb.mxu3 %v2222_v49  ;;  %v2217_v33 = vld [vmem:[%s12753_s0 + $0x3b0] sm:$0xff] }
 0x417   :  { %2397 = vmatpush.msrb.mxu1 %v2201_v34  ;;  %2356 = vmatmul.f32.vlgmr.msra.gmra.mxu3 %v11033_v0  ;;  %v2106_v34 = vld [vmem:[%s12753_s0 + $0x38] sm:$0xff]  ;;  %v11077_v49 = vld [vmem:[%s12754_s1 + $0x10] sm:$0xff] }
 0x418   :  { %2375 = vmatpush.msrb.mxu0 %v2116_v32  ;;  %2418 = vmatpush.msrb.mxu2 %v2132_v2  ;;  %v2212_v32 = vld [vmem:[%s12753_s0 + $0x388] sm:$0xff]  ;;  %v2122_v2 = vld [vmem:[%s12753_s0 + $0xb8] sm:$0xff] }
 0x419   :  { %2398 = vmatpush.msrb.mxu1 %v2196_v23  ;;  %2440 = vmatpush.msrb.mxu3 %v2217_v33  ;;  %v2101_v23 = vld [vmem:[%s12753_s0 + $0x10] sm:$0xff]  ;;  %v11098_v33 = vld [vmem:[%s12754_s1 + $0x18] sm:$0xff] }
 0x41a   :  { %2376 = vmatpush.msrb.mxu0 %v2111_v36  ;;  %v2186_v36 = vld [vmem:[%s12753_s0 + $0x2b8] sm:$0xff]  ;;  %2419 = vmatpush.msrb.mxu2 %v2127_v55  ;;  %v2260_v55 = vld [vmem:[%s12755_s2 + $0x8] sm:$0xff] }
 0x41b   :  { %2399 = vmatpush.msrb.mxu1 %v2191_v3  ;;  %2441 = vmatpush.msrb.mxu3 %v2212_v32  ;;  %v2178_v3 = vld [vmem:[%s12753_s0 + $0x278] sm:$0xff]  ;;  %v5543_v32 = vmov 0  }
 0x41c   :  { %2377 = vmatpush.msrb.mxu0 %v2106_v34  ;;  %2420 = vmatpush.msrb.mxu2 %v2122_v2  ;;  %v2181_v34 = vld [vmem:[%s12753_s0 + $0x290] sm:$0xff]  ;;  %v2258_v2 = vld [vmem:[%s12753_s0 + $0x4f8] sm:$0xff] }
 0x41d   :  { %2290 = vmatmul.f32.gmra.mxu0 %v11077_v49  ;;  %2400 = vmatpush.msrb.mxu1 %v2186_v36  ;;  %v2202_v36 = vld [vmem:[%s12753_s0 + $0x338] sm:$0xff] }
 0x41e   :  { %2378 = vmatpush.msrb.mxu0 %v2101_v23  ;;  %2442 = vmatpush.msrb.mxu3 %v2207_v4  ;;  %v2117_v23 = vld [vmem:[%s12753_s0 + $0x90] sm:$0xff] }
 0x41f   :  { %5437 = vset.pattern.permute.xlu0 %v5543_v32  ;;  %2313 = vmatmul.f32.gmra.mxu1 %v11098_v33  ;;  %v2173_v4 = vld [vmem:[%s12753_s0 + $0x250] sm:$0xff] }
 0x420   :  { %2455 = vmatpush.msra.mxu0 %v2178_v3  ;;  %2336 = vmatmul.f32.gmra.mxu2 %v11077_v49  ;;  %v2112_v3 = vld [vmem:[%s12753_s0 + $0x68] sm:$0xff] }
 0x421   :  { %2401 = vmatpush.msrb.mxu1 %v2181_v34  ;;  %2268 = vperm.xlu0 %5437, %v2260_v55   ;;  %v2253_v34 = vld [vmem:[%s12753_s0 + $0x4d0] sm:$0xff]  ;;  %v2107_v55 = vld [vmem:[%s12753_s0 + $0x40] sm:$0xff] }
 0x422   :  { %2421 = vmatpush.msrb.mxu2 %v2117_v23  ;;  %2443 = vmatpush.msrb.mxu3 %v2202_v36  ;;  %v2192_v23 = vld [vmem:[%s12753_s0 + $0x2e8] sm:$0xff]  ;;  %v2163_v36 = vld [vmem:[%s12753_s0 + $0x200] sm:$0xff] }
 0x423   :  { %2456 = vmatpush.msra.mxu0 %v2173_v4  ;;  %2478 = vmatpush.msra.mxu1 %v2258_v2  ;;  %v2248_v4 = vld [vmem:[%s12753_s0 + $0x4a8] sm:$0xff]  ;;  %v2102_v2 = vld [vmem:[%s12753_s0 + $0x18] sm:$0xff] }
 0x424   :  { %2359 = vmatmul.f32.gmra.mxu3 %v11098_v33  ;;  %2422 = vmatpush.msrb.mxu2 %v2112_v3  ;;  %v2187_v3 = vld [vmem:[%s12753_s0 + $0x2c0] sm:$0xff] }
 0x425   :  { %2444 = vmatpush.msrb.mxu3 %v2197_v21  ;;  %2457 = vmatpush.msra.mxu0 %v2168_v38  ;;  %v2158_v21 = vld [vmem:[%s12753_s0 + $0x1d8] sm:$0xff]  ;;  %v2243_v38 = vld [vmem:[%s12753_s0 + $0x480] sm:$0xff] }
 0x426   :  { %2479 = vmatpush.msra.mxu1 %v2253_v34  ;;  %2423 = vmatpush.msrb.mxu2 %v2107_v55  ;;  %v2259_v34 = vld [vmem:[%s12755_s2] sm:$0xff]  ;;  %v2182_v55 = vld [vmem:[%s12753_s0 + $0x298] sm:$0xff] }
 0x427   :  { %2445 = vmatpush.msrb.mxu3 %v2192_v23  ;;  %2458 = vmatpush.msra.mxu0 %v2163_v36  ;;  %v2153_v23 = vld [vmem:[%s12753_s0 + $0x1b0] sm:$0xff]  ;;  %v2238_v36 = vld [vmem:[%s12753_s0 + $0x458] sm:$0xff] }
 0x428   :  { %2480 = vmatpush.msra.mxu1 %v2248_v4  ;;  %2379 = vmatmul.f32.vlgmr.msrb.gmra.mxu0 %v11015_v1  ;;  %v2148_v4 = vld [vmem:[%s12753_s0 + $0x188] sm:$0xff] }
 0x429   :  { %2424 = vmatpush.msrb.mxu2 %v2102_v2  ;;  %2446 = vmatpush.msrb.mxu3 %v2187_v3  ;;  %v2233_v2 = vld [vmem:[%s12753_s0 + $0x430] sm:$0xff]  ;;  %v2143_v3 = vld [vmem:[%s12753_s0 + $0x160] sm:$0xff] }
 0x42a   :  { %2459 = vmatpush.msra.mxu0 %v2158_v21  ;;  %2481 = vmatpush.msra.mxu1 %v2243_v38  ;;  %v2228_v21 = vld [vmem:[%s12753_s0 + $0x408] sm:$0xff]  ;;  %v2138_v38 = vld [vmem:[%s12753_s0 + $0x138] sm:$0xff] }
 0x42b   :  { %2402 = vmatmul.f32.vlgmr.msrb.gmra.mxu1 %v11033_v0  ;;  %2425 = vmatmul.f32.vlgmr.msrb.gmra.mxu2 %v11015_v1 }
 0x42c   :  { %2263 = vperm.xlu0 %5437, %v2259_v34   ;;  %2447 = vmatpush.msrb.mxu3 %v2182_v55  ;;  %v2223_v34 = vld [vmem:[%s12753_s0 + $0x3e0] sm:$0xff]  ;;  %v2133_v55 = vld [vmem:[%s12753_s0 + $0x110] sm:$0xff] }
 0x42d   :  { %2460 = vmatpush.msra.mxu0 %v2153_v23  ;;  %2482 = vmatpush.msra.mxu1 %v2238_v36  ;;  %v2218_v23 = vld [vmem:[%s12753_s0 + $0x3b8] sm:$0xff]  ;;  %v2213_v36 = vld [vmem:[%s12753_s0 + $0x390] sm:$0xff] }
 0x42e   :  { %2448 = vmatmul.f32.vlgmr.msrb.gmra.mxu3 %v11033_v0  ;;  %5513 = vset.pattern.permute.xlu2 %v5543_v32 }
 0x42f   :  { %2461 = vmatpush.msra.mxu0 %v2148_v4  ;;  %2483 = vmatpush.msra.mxu1 %v2233_v2  ;;  %v2123_v4 = vld [vmem:[%s12753_s0 + $0xc0] sm:$0xff]  ;;  %v2208_v2 = vld [vmem:[%s12753_s0 + $0x368] sm:$0xff] }
 0x430   :  { %2382 = vmatmul.f32.gmra.mxu0 %v11077_v49  ;;  %5514 = vset.pattern.permute.xlu1 %v5543_v32  ;;  %v2128_v32 = vld [vmem:[%s12753_s0 + $0xe8] sm:$0xff] }
 0x431   :  { %2462 = vmatpush.msra.mxu0 %v2143_v3  ;;  %2484 = vmatpush.msra.mxu1 %v2228_v21  ;;  %v2118_v3 = vld [vmem:[%s12753_s0 + $0x98] sm:$0xff]  ;;  %v2203_v21 = vld [vmem:[%s12753_s0 + $0x340] sm:$0xff] }
 0x433   :  { %2463 = vmatpush.msra.mxu0 %v2138_v38  ;;  %2485 = vmatpush.msra.mxu1 %v2223_v34  ;;  %v2113_v38 = vld [vmem:[%s12753_s0 + $0x70] sm:$0xff]  ;;  %v2198_v34 = vld [vmem:[%s12753_s0 + $0x318] sm:$0xff] }
 0x434   :  { %2405 = vmatmul.f32.gmra.mxu1 %v11098_v33  ;;  %2428 = vmatmul.f32.gmra.mxu2 %v11077_v49 }
 0x435   :  { %2464 = vmatpush.msra.mxu0 %v2133_v55  ;;  %2486 = vmatpush.msra.mxu1 %v2218_v23  ;;  %v2108_v55 = vld [vmem:[%s12753_s0 + $0x48] sm:$0xff]  ;;  %v2193_v23 = vld [vmem:[%s12753_s0 + $0x2f0] sm:$0xff] }
 0x436   :  { %2451 = vmatmul.f32.gmra.mxu3 %v11098_v33 }
 0x437   :  { %2465 = vmatpush.msra.mxu0 %v2128_v32  ;;  %2487 = vmatpush.msra.mxu1 %v2213_v36  ;;  %v2103_v32 = vld [vmem:[%s12753_s0 + $0x20] sm:$0xff]  ;;  %v2188_v36 = vld [vmem:[%s12753_s0 + $0x2c8] sm:$0xff] }
 0x439   :  { %2466 = vmatpush.msra.mxu0 %v2123_v4  ;;  %2488 = vmatpush.msra.mxu1 %v2208_v2  ;;  %v2183_v4 = vld [vmem:[%s12753_s0 + $0x2a0] sm:$0xff]  ;;  %s5544_s0 = smov 127  }
 0x43b   :  { %2467 = vmatpush.msra.mxu0 %v2118_v3  ;;  %2489 = vmatpush.msra.mxu1 %v2203_v21 }
 0x43d   :  { %2468 = vmatpush.msra.mxu0 %v2113_v38  ;;  %2490 = vmatpush.msra.mxu1 %v2198_v34 }
 0x43f   :  { %2469 = vmatpush.msra.mxu0 %v2108_v55  ;;  %2491 = vmatpush.msra.mxu1 %v2193_v23 }
 0x441   :  { %2470 = vmatpush.msra.mxu0 %v2103_v32  ;;  %2492 = vmatpush.msra.mxu1 %v2188_v36 }
 0x442   :  { %2471 = vmatmul.f32.vlgmr.msra.gmra.mxu0 %v11015_v1 }
 0x443   :  { %2493 = vmatpush.msra.mxu1 %v2183_v4  ;;  %4048 = vmatpush.msrb.mxu0 %v5751_v30 }
 0x444   :  { %2494 = vmatmul.f32.vlgmr.msra.gmra.mxu1 %v11033_v0 }
 0x44a   :  { %2474 = vmatmul.f32.gmra.mxu0 %v11077_v49 }
 0x44c   :  { %2497 = vmatmul.f32.gmra.mxu1 %v11098_v33 }
 0x490   :  { %v2288_v2 = vpop.f32.mrf.mxu0 }
 0x491   :  { %v2311_v3 = vpop.f32.mrf.mxu1 }
 0x493   :  { %v2269_v21 = vpop.permute.xlu0 %2268 }
 0x495   :  { %v2334_v1 = vpop.f32.mrf.mxu2 }
 0x49a   :  { %v2291_v38 = vpop.f32.mrf.mxu0  ;;  %v2357_v6 = vpop.f32.mrf.mxu3 }
 0x49b   :  { %v2292_v34 = vadd.f32 %v2291_v38, %v2269_v21 }
 0x49c   :  { %v2314_v55 = vpop.f32.mrf.mxu1 }
 0x49d   :  { %v11244_v35 = vadd.f32 %v2314_v55, %v2292_v34 }
 0x49e   :  { %v2264_v23 = vpop.permute.xlu0 %2263 }
 0x49f   :  { %v2289_v32 = vadd.f32 %v2288_v2, %v2264_v23 }
 0x4a1   :  { %v11246_v36 = vadd.f32 %v2311_v3, %v2289_v32 }
 0x4a3   :  { %v2337_v49 = vpop.f32.mrf.mxu2 }
 0x4a5   :  { %v2380_v4 = vpop.f32.mrf.mxu0 }
 0x4a6   :  { %v2381_v57 = vadd.f32 %v2380_v4, %v2264_v23 }
 0x4a7   :  { %v2360_v8 = vpop.f32.mrf.mxu3 }
 0x4a8   :  { %v2403_v0 = vpop.f32.mrf.mxu1 }
 0x4a9   :  { %v11248_v33 = vadd.f32 %v2403_v0, %v2381_v57 }
 0x4ab   :  { %v12763_v38 = vmax.f32 %v11248_v33, 0.0 }
 0x4ad   :  { %v2383_v40 = vpop.f32.mrf.mxu0 }
 0x4ae   :  { %v2384_v37 = vadd.f32 %v2383_v40, %v2269_v21  ;;  %v2426_v34 = vpop.f32.mrf.mxu2 }
 0x4af   :  { %v2427_v55 = vadd.f32 %v2426_v34, %v2264_v23  ;;  %v2335_v34 = vadd.f32 %v2334_v1, %v2264_v23 }
 0x4b1   :  { %v2406_v45 = vpop.f32.mrf.mxu1  ;;  %v2449_v57 = vpop.f32.mrf.mxu3 }
 0x4b2   :  { %v11251_v42 = vadd.f32 %v2406_v45, %v2384_v37  ;;  %v11259_v32 = vadd.f32 %v2449_v57, %v2427_v55  ;;  %v2338_v55 = vadd.f32 %v2337_v49, %v2269_v21 }
 0x4b4   :  { %v12764_v2 = vmax.f32 %v11251_v42, 0.0  ;;  %v12769_v39 = vmax.f32 %v11259_v32, 0.0 }
 0x4b6   :  { %v5438_v3 = vpack.i.bf16 %v12763_v38, %v12764_v2 }
 0x4b7   :  { %v2429_v0 = vpop.f32.mrf.mxu2 }
 0x4b8   :  { %5439 = vrot.lane.b32.xlu2 %v5438_v3, %s5544_s0  ;;  %v2430_v10 = vadd.f32 %v2429_v0, %v2269_v21 }
 0x4b9   :  { %v2452_v44 = vpop.f32.mrf.mxu3 }
 0x4ba   :  { %v11264_v5 = vadd.f32 %v2452_v44, %v2430_v10 }
 0x4bc   :  { %v13760_v25 = vmax.f32 %v11264_v5, 0.0 }
 0x4bf   :  { %v2472_v40 = vpop.f32.mrf.mxu0 }
 0x4c0   :  { %v2473_v4 = vadd.f32 %v2472_v40, %v2264_v23 }
 0x4c1   :  { %v2495_v37 = vpop.f32.mrf.mxu1 }
 0x4c2   :  { %v2496_v45 = vadd.f32 %v2495_v37, %v2473_v4  ;;  %v12770_v4 = vmax.f32 %v11264_v5, 0.0  ;;  %v11269_v37 = vadd.f32 %v2357_v6, %v2335_v34 }
 0x4c4   :  { %v2505_v59 = vmax.f32 %v2496_v45, 0.0  ;;  %v11271_v45 = vadd.f32 %v2360_v8, %v2338_v55  ;;  %v12767_v44 = vmax.f32 %v11269_v37, 0.0  ;;  %v12765_v8 = vmax.f32 %v11246_v36, 0.0 }
 0x4c6   :  { %v5448_v38 = vpack.i.bf16 %v2505_v59, %v12769_v39  ;;  %v12766_v59 = vmax.f32 %v11244_v35, 0.0 }
 0x4c7   :  { %v2475_v2 = vpop.f32.mrf.mxu0 }
 0x4c8   :  { %v2476_v12 = vadd.f32 %v2475_v2, %v2269_v21  ;;  %5449 = vrot.lane.b32.xlu0 %v5448_v38, %s5545_s16  ;;  %5444 = vrot.lane.b32.xlu1 %v5448_v38, %s5544_s0  ;;  %v2705_v21 = vld [vmem:[%s12757_s4 + $0x8] sm:$0xff]  ;;  %v5493_v23 = vpack.i.bf16 %v12765_v8, %v12766_v59 }
 0x4c9   :  { %v2498_v57 = vpop.f32.mrf.mxu1 }
 0x4ca   :  { %v2499_v40 = vadd.f32 %v2498_v57, %v2476_v12  ;;  %v12768_v12 = vmax.f32 %v11271_v45, 0.0 }
 0x4cc   :  { %v2510_v0 = vmax.f32 %v2499_v40, 0.0  ;;  %v5488_v6 = vpack.i.bf16 %v12767_v44, %v12768_v12 }
 0x4ce   :  { %v5453_v10 = vpack.i.bf16 %v2510_v0, %v12770_v4 }
 0x4d0   :  { %5464 = vrot.lane.b32.xlu0 %v5448_v38, %s5546_s17  ;;  %5454 = vrot.lane.b32.xlu1 %v5453_v10, %s5544_s0 }
 0x4d1   :  { %5474 = vrot.lane.b32.xlu2 %v5453_v10, %s5545_s16 }
 0x4d8   :  { %5489 = vrot.lane.b32.xlu0 %v5488_v6, %s5545_s16  ;;  %5459 = vrot.lane.b32.xlu1 %v5438_v3, %s5545_s16 }
 0x4d9   :  { %5479 = vrot.lane.b32.xlu2 %v5453_v10, %s5546_s17 }
 0x4e0   :  { %5504 = vrot.lane.b32.xlu0 %v5488_v6, %s5546_s17  ;;  %5469 = vrot.lane.b32.xlu1 %v5438_v3, %s5546_s17 }
 0x4e1   :  { %5484 = vrot.lane.b32.xlu2 %v5488_v6, %s5544_s0 }
 0x4e8   :  { %2715 = vperm.xlu0 %5437, %v2705_v21   ;;  %5494 = vrot.lane.b32.xlu1 %v5493_v23, %s5544_s0 }
 0x4e9   :  { %5499 = vrot.lane.b32.xlu2 %v5493_v23, %s5545_s16 }
 0x4f0   :  { %5509 = vrot.lane.b32.xlu1 %v5493_v23, %s5546_s17 }
 0x512   :  { %v11297_v1 = vpop.permute.xlu2 %5439 }
 0x52b   :  { %v5475_v49 = vpop.permute.xlu2 %5474 }
 0x52c   :  { %v5477_v38 = vunpack.i.h.bf16 %v5475_v49  ;;  %v5476_v2 = vunpack.i.l.bf16 %v5475_v49 }
 0x52e   :  { %v2659_v3 = vsel %vm2607_vm0, %v5476_v2, %v5477_v38  ;;  %v5441_v38 = vunpack.i.l.bf16 %v11297_v1 }
 0x52f   :  { %2757 = vmatpush.msra.mxu3 %v2659_v3 }
 0x533   :  { %v5480_v59 = vpop.permute.xlu2 %5479 }
 0x534   :  { %v5482_v39 = vunpack.i.h.bf16 %v5480_v59 }
 0x53a   :  { %v5450_v34 = vpop.permute.xlu0 %5449  ;;  %v5445_v57 = vpop.permute.xlu1 %5444 }
 0x53b   :  { %v5452_v55 = vunpack.i.h.bf16 %v5450_v34  ;;  %v5451_v40 = vunpack.i.l.bf16 %v5450_v34  ;;  %v5447_v6 = vunpack.i.h.bf16 %v5445_v57  ;;  %v5446_v21 = vunpack.i.l.bf16 %v5445_v57  ;;  %v5485_v4 = vpop.permute.xlu2 %5484 }
 0x53c   :  { %v5442_v34 = vunpack.i.h.bf16 %v11297_v1  ;;  %v5487_v5 = vunpack.i.h.bf16 %v5485_v4 }
 0x53d   :  { %v2658_v0 = vsel %vm2607_vm0, %v5451_v40, %v5452_v55  ;;  %v2568_v3 = vsel %vm2527_vm1, %v5446_v21, %v5447_v6 }
 0x53e   :  { %2758 = vmatpush.msra.mxu3 %v2658_v0 }
 0x542   :  { %v5455_v10 = vpop.permute.xlu1 %5454  ;;  %v5465_v49 = vpop.permute.xlu0 %5464 }
 0x543   :  { %v5457_v23 = vunpack.i.h.bf16 %v5455_v10  ;;  %v5456_v8 = vunpack.i.l.bf16 %v5455_v10  ;;  %v2556_v10 = vsel %vm2527_vm1, %v5442_v34, %v5446_v21  ;;  %v5467_v1 = vunpack.i.h.bf16 %v5465_v49 }
 0x544   :  { %v5466_v6 = vunpack.i.l.bf16 %v5465_v49  ;;  %v5486_v21 = vunpack.i.l.bf16 %v5485_v4 }
 0x545   :  { %v2569_v44 = vsel %vm2527_vm1, %v5456_v8, %v5457_v23  ;;  %v2557_v55 = vsel %vm2527_vm1, %v5441_v38, %v5456_v8  ;;  %v5481_v23 = vunpack.i.l.bf16 %v5480_v59 }
 0x546   :  { %2728 = vmatpush.msra.mxu2 %v2569_v44  ;;  %v2638_v49 = vsel %vm2582_vm2, %v5466_v6, %v5467_v1 }
 0x547   :  { %v2639_v59 = vsel %vm2582_vm2, %v5481_v23, %v5482_v39 }
 0x548   :  { %2729 = vmatpush.msra.mxu2 %v2568_v3 }
 0x54a   :  { %v5460_v0 = vpop.permute.xlu1 %5459  ;;  %2730 = vmatpush.msra.mxu2 %v2557_v55  ;;  %v5490_v3 = vpop.permute.xlu0 %5489  ;;  %v13761_v55 = vmax.f32 %v11259_v32, 0.0 }
 0x54b   :  { %v5462_v57 = vunpack.i.h.bf16 %v5460_v0  ;;  %v5461_v12 = vunpack.i.l.bf16 %v5460_v0  ;;  %v5491_v32 = vunpack.i.l.bf16 %v5490_v3  ;;  %v5492_v39 = vunpack.i.h.bf16 %v5490_v3 }
 0x54c   :  { %2731 = vmatpush.msra.mxu2 %v2556_v10 }
 0x54d   :  { %v2649_v44 = vsel %vm2607_vm0, %v5461_v12, %v5476_v2  ;;  %v2648_v8 = vsel %vm2607_vm0, %v5462_v57, %v5451_v40  ;;  %v13762_v2 = vmax.f32 %v11251_v42, 0.0  ;;  %v13763_v40 = vmax.f32 %v11248_v33, 0.0 }
 0x54e   :  { %2732 = vmatpush.msra.mxu2 %v13760_v25  ;;  %2759 = vmatpush.msra.mxu3 %v2649_v44  ;;  %v2541_v44 = vsel %vm2527_vm1, %v5486_v21, %v5441_v38  ;;  %v2540_v42 = vsel %vm2527_vm1, %v5487_v5, %v5442_v34  ;;  %v2619_v1 = vsel %vm2607_vm0, %v5491_v32, %v5461_v12 }
 0x550   :  { %2733 = vmatpush.msra.mxu2 %v13761_v55  ;;  %2760 = vmatpush.msra.mxu3 %v2648_v8  ;;  %v5500_v55 = vpop.permute.xlu2 %5499 }
 0x552   :  { %v5470_v0 = vpop.permute.xlu1 %5469  ;;  %2734 = vmatpush.msra.mxu2 %v13762_v2  ;;  %2761 = vmatpush.msra.mxu3 %v2639_v59  ;;  %v5505_v33 = vpop.permute.xlu0 %5504 }
 0x553   :  { %v5472_v25 = vunpack.i.h.bf16 %v5470_v0  ;;  %v5471_v10 = vunpack.i.l.bf16 %v5470_v0  ;;  %v5501_v0 = vunpack.i.l.bf16 %v5500_v55  ;;  %v5506_v3 = vunpack.i.l.bf16 %v5505_v33 }
 0x554   :  { %2735 = vmatpush.msra.mxu2 %v13763_v40  ;;  %2762 = vmatpush.msra.mxu3 %v2638_v49  ;;  %v5502_v49 = vunpack.i.h.bf16 %v5500_v55  ;;  %v5507_v40 = vunpack.i.h.bf16 %v5505_v33  ;;  %v2666_v33 = vld [vmem:[%s12756_s3 + $0x10] sm:$0xff] }
 0x555   :  { %v2629_v8 = vsel %vm2582_vm2, %v5471_v10, %v5481_v23  ;;  %v2628_v4 = vsel %vm2582_vm2, %v5472_v25, %v5466_v6  ;;  %v2618_v23 = vsel %vm2607_vm0, %v5492_v39, %v5462_v57  ;;  %v2609_v6 = vsel %vm2607_vm0, %v5501_v0, %v5491_v32  ;;  %v2704_v57 = vld [vmem:[%s12757_s4] sm:$0xff]  ;;  %v2669_v0 = vld [vmem:[%s12756_s3 + $0x28] sm:$0xff] }
 0x556   :  { %2736 = vmatpush.msra.mxu2 %v2541_v44  ;;  %2763 = vmatpush.msra.mxu3 %v2629_v8  ;;  %v2608_v44 = vsel %vm2607_vm0, %v5502_v49, %v5492_v39  ;;  %v2594_v8 = vsel %vm2582_vm2, %v5506_v3, %v5471_v10  ;;  %v2593_v55 = vsel %vm2582_vm2, %v5507_v40, %v5472_v25  ;;  %v13766_v39 = vmax.f32 %v11244_v35, 0.0  ;;  %v2707_v35 = vld [vmem:[%s12757_s4 + $0x18] sm:$0xff] }
 0x557   :  { %2710 = vperm.xlu2 %5513, %v2704_v57  }
 0x558   :  { %2737 = vmatpush.msra.mxu2 %v2540_v42  ;;  %2764 = vmatpush.msra.mxu3 %v2628_v4 }
 0x55a   :  { %2765 = vmatpush.msra.mxu3 %v2619_v1  ;;  %v5495_v59 = vpop.permute.xlu1 %5494  ;;  %v2665_v1 = vld [vmem:[%s12756_s3 + $0x8] sm:$0xff]  ;;  %v2716_v57 = vpop.permute.xlu0 %2715 }
 0x55b   :  { %v5497_v2 = vunpack.i.h.bf16 %v5495_v59  ;;  %v5496_v38 = vunpack.i.l.bf16 %v5495_v59  ;;  %v2667_v59 = vld [vmem:[%s12756_s3 + $0x18] sm:$0xff] }
 0x55c   :  { %2766 = vmatpush.msra.mxu3 %v2618_v23  ;;  %v2706_v23 = vld [vmem:[%s12757_s4 + $0x10] sm:$0xff] }
 0x55d   :  { %v2529_v34 = vsel %vm2527_vm1, %v5496_v38, %v5486_v21  ;;  %v2528_v12 = vsel %vm2527_vm1, %v5497_v2, %v5487_v5  ;;  %v13764_v21 = vmax.f32 %v11271_v45, 0.0  ;;  %v13765_v5 = vmax.f32 %v11269_v37, 0.0  ;;  %v2664_v45 = vld [vmem:[%s12756_s3] sm:$0xff]  ;;  %v2670_v2 = vld [vmem:[%s12756_s3 + $0x30] sm:$0xff]  ;;  %v2671_v38 = vld [vmem:[%s12756_s3 + $0x38] sm:$0xff]  ;;  %2720 = vperm.xlu1 %5514, %v2706_v23  }
 0x55e   :  { %2738 = vmatpush.msra.mxu2 %v2529_v34  ;;  %2767 = vmatpush.msra.mxu3 %v2609_v6  ;;  %v13767_v37 = vmax.f32 %v11246_v36, 0.0  ;;  %v2668_v36 = vld [vmem:[%s12756_s3 + $0x20] sm:$0xff]  ;;  %v2790_v6 = vlaneseq }
 0x55f   :  { %2725 = vperm.xlu2 %5513, %v2707_v35  }
 0x560   :  { %2739 = vmatpush.msra.mxu2 %v2528_v12  ;;  %2768 = vmatpush.msra.mxu3 %v2608_v44  ;;  %vm11374_vm3 = vcmp.lt.s32.totalorder %v2790_v6, 128 }
 0x562   :  { %2769 = vmatpush.msra.mxu3 %v2594_v8  ;;  %v5510_v42 = vpop.permute.xlu1 %5509  ;;  %2740 = vmatpush.msra.mxu2 %v13764_v21 }
 0x563   :  { %v5512_v32 = vunpack.i.h.bf16 %v5510_v42  ;;  %v5511_v4 = vunpack.i.l.bf16 %v5510_v42 }
 0x564   :  { %2741 = vmatpush.msra.mxu2 %v13765_v5  ;;  %2770 = vmatpush.msra.mxu3 %v2593_v55 }
 0x565   :  { %v2584_v10 = vsel %vm2582_vm2, %v5511_v4, %v5506_v3  ;;  %v2583_v25 = vsel %vm2582_vm2, %v5512_v32, %v5507_v40 }
 0x566   :  { %2742 = vmatpush.msra.mxu2 %v13766_v39  ;;  %2771 = vmatpush.msra.mxu3 %v2584_v10 }
 0x568   :  { %2743 = vmatpush.msra.mxu2 %v13767_v37  ;;  %2772 = vmatpush.msra.mxu3 %v2583_v25 }
 0x569   :  { %2744 = vmatmul.f32.vlgmr.msra.gmra.mxu2 %v2664_v45  ;;  %2773 = vmatmul.f32.vlgmr.msra.gmra.mxu3 %v2665_v1 }
 0x56a   :  { %4088 = vmatpush.msrb.mxu2 %v6071_v19 }
 0x571   :  { %2747 = vmatmul.f32.gmra.mxu2 %v2666_v33  ;;  %2776 = vmatmul.f32.gmra.mxu3 %v2667_v59 }
 0x579   :  { %2750 = vmatmul.f32.gmra.mxu2 %v2668_v36  ;;  %2779 = vmatmul.f32.gmra.mxu3 %v2669_v0 }
 0x581   :  { %2753 = vmatmul.f32.gmra.mxu2 %v2670_v2  ;;  %2782 = vmatmul.f32.gmra.mxu3 %v2671_v38 }
 0x5b1   :  { %v2711_v49 = vpop.permute.xlu2 %2710 }
 0x5b9   :  { %v2726_v45 = vpop.permute.xlu2 %2725 }
 0x5ec   :  { %v2745_v3 = vpop.f32.mrf.mxu2  ;;  %v2774_v34 = vpop.f32.mrf.mxu3 }
 0x5ed   :  { %v2746_v40 = vadd.f32 %v2745_v3, %v2711_v49 }
 0x5ef   :  { %v2775_v12 = vadd.f32 %v2774_v34, %v2746_v40  ;;  %v2721_v34 = vpop.permute.xlu1 %2720 }
 0x5f1   :  { %v2786_v8 = vmax.f32 %v2775_v12, 0.0 }
 0x5f3   :  { %2794 = vst.msk [vmem:[#allocation3] sm:$0x1] %vm11374_vm3, %v2786_v8 }
 0x5f4   :  { %2796 = vst [vmem:[#allocation1] sm:$0xff] %v2786_v8  ;;  %v2748_v42 = vpop.f32.mrf.mxu2  ;;  %v2777_v21 = vpop.f32.mrf.mxu3 }
 0x5f5   :  { %v2749_v32 = vadd.f32 %v2748_v42, %v2716_v57 }
 0x5f7   :  { %v2778_v4 = vadd.f32 %v2777_v21, %v2749_v32 }
 0x5f9   :  { %v2787_v55 = vmax.f32 %v2778_v4, 0.0 }
 0x5fb   :  { %v2798_v5 = vld [vmem:[#allocation1 + $0x1] ss:$9 sm:$0xff]  ;;  %2831 = vst.msk [vmem:[#allocation3 + $0x8] sm:$0x1] %vm11374_vm3, %v2787_v55 }
 0x5fc   :  { %2800 = vst.msk [vmem:[#allocation3 + $0x1] sm:$0x1] %vm11374_vm3, %v2798_v5  ;;  %v2751_v10 = vpop.f32.mrf.mxu2  ;;  %v2780_v39 = vpop.f32.mrf.mxu3 }
 0x5fd   :  { %2801 = vst [vmem:[#allocation1] sm:$0xff] %v2786_v8  ;;  %v2752_v6 = vadd.f32 %v2751_v10, %v2721_v34 }
 0x5ff   :  { %v2781_v12 = vadd.f32 %v2780_v39, %v2752_v6 }
 0x604   :  { %v2803_v1 = vld [vmem:[#allocation1 + $0x2] ss:$9 sm:$0xff]  ;;  %v2754_v25 = vpop.f32.mrf.mxu2  ;;  %v2783_v37 = vpop.f32.mrf.mxu3 }
 0x605   :  { %2805 = vst.msk [vmem:[#allocation3 + $0x2] sm:$0x1] %vm11374_vm3, %v2803_v1  ;;  %v2755_v35 = vadd.f32 %v2754_v25, %v2726_v45 }
 0x606   :  { %2806 = vst [vmem:[#allocation1] sm:$0xff] %v2786_v8 }
 0x607   :  { %v2784_v33 = vadd.f32 %v2783_v37, %v2755_v35 }
 0x609   :  { %v11386_v59 = vmax.f32 %v2784_v33, 0.0 }
 0x60b   :  { %2905 = vst.msk [vmem:[#allocation3 + $0x18] sm:$0x1] %vm11374_vm3, %v11386_v59 }
 0x60d   :  { %v2808_v36 = vld [vmem:[#allocation1 + $0x3] ss:$9 sm:$0xff] }
 0x60e   :  { %2810 = vst.msk [vmem:[#allocation3 + $0x3] sm:$0x1] %vm11374_vm3, %v2808_v36 }
 0x60f   :  { %2811 = vst [vmem:[#allocation1] sm:$0xff] %v2786_v8 }
 0x616   :  { %v2813_v0 = vld [vmem:[#allocation1 + $0x4] ss:$9 sm:$0xff] }
 0x617   :  { %2815 = vst.msk [vmem:[#allocation3 + $0x4] sm:$0x1] %vm11374_vm3, %v2813_v0 }
 0x618   :  { %2816 = vst [vmem:[#allocation1] sm:$0xff] %v2786_v8 }
 0x61f   :  { %v2818_v2 = vld [vmem:[#allocation1 + $0x5] ss:$9 sm:$0xff] }
 0x620   :  { %2820 = vst.msk [vmem:[#allocation3 + $0x5] sm:$0x1] %vm11374_vm3, %v2818_v2 }
 0x621   :  { %2821 = vst [vmem:[#allocation1] sm:$0xff] %v2786_v8 }
 0x628   :  { %v2823_v38 = vld [vmem:[#allocation1 + $0x6] ss:$9 sm:$0xff] }
 0x629   :  { %2825 = vst.msk [vmem:[#allocation3 + $0x6] sm:$0x1] %vm11374_vm3, %v2823_v38 }
 0x62a   :  { %2826 = vst [vmem:[#allocation1] sm:$0xff] %v2786_v8  ;;  %v2788_v8 = vmax.f32 %v2781_v12, 0.0 }
 0x62c   :  { %2868 = vst.msk [vmem:[#allocation3 + $0x10] sm:$0x1] %vm11374_vm3, %v2788_v8 }
 0x631   :  { %v2828_v23 = vld [vmem:[#allocation1 + $0x7] ss:$9 sm:$0xff] }
 0x632   :  { %2830 = vst.msk [vmem:[#allocation3 + $0x7] sm:$0x1] %vm11374_vm3, %v2828_v23 }
 0x633   :  { %2833 = vst [vmem:[#allocation1] sm:$0xff] %v2787_v55 }
 0x63a   :  { %v2835_v49 = vld [vmem:[#allocation1 + $0x1] ss:$9 sm:$0xff] }
 0x63b   :  { %2837 = vst.msk [vmem:[#allocation3 + $0x9] sm:$0x1] %vm11374_vm3, %v2835_v49 }
 0x63c   :  { %2838 = vst [vmem:[#allocation1] sm:$0xff] %v2787_v55 }
 0x643   :  { %v2840_v3 = vld [vmem:[#allocation1 + $0x2] ss:$9 sm:$0xff] }
 0x644   :  { %2842 = vst.msk [vmem:[#allocation3 + $0xa] sm:$0x1] %vm11374_vm3, %v2840_v3 }
 0x645   :  { %2843 = vst [vmem:[#allocation1] sm:$0xff] %v2787_v55 }
 0x64c   :  { %v2845_v40 = vld [vmem:[#allocation1 + $0x3] ss:$9 sm:$0xff] }
 0x64d   :  { %2847 = vst.msk [vmem:[#allocation3 + $0xb] sm:$0x1] %vm11374_vm3, %v2845_v40 }
 0x64e   :  { %2848 = vst [vmem:[#allocation1] sm:$0xff] %v2787_v55 }
 0x655   :  { %v2850_v57 = vld [vmem:[#allocation1 + $0x4] ss:$9 sm:$0xff] }
 0x656   :  { %2852 = vst.msk [vmem:[#allocation3 + $0xc] sm:$0x1] %vm11374_vm3, %v2850_v57 }
 0x657   :  { %2853 = vst [vmem:[#allocation1] sm:$0xff] %v2787_v55 }
 0x65e   :  { %v2855_v42 = vld [vmem:[#allocation1 + $0x5] ss:$9 sm:$0xff] }
 0x65f   :  { %2857 = vst.msk [vmem:[#allocation3 + $0xd] sm:$0x1] %vm11374_vm3, %v2855_v42 }
 0x660   :  { %2858 = vst [vmem:[#allocation1] sm:$0xff] %v2787_v55 }
 0x667   :  { %v2860_v21 = vld [vmem:[#allocation1 + $0x6] ss:$9 sm:$0xff] }
 0x668   :  { %2862 = vst.msk [vmem:[#allocation3 + $0xe] sm:$0x1] %vm11374_vm3, %v2860_v21 }
 0x669   :  { %2863 = vst [vmem:[#allocation1] sm:$0xff] %v2787_v55 }
 0x670   :  { %v2865_v32 = vld [vmem:[#allocation1 + $0x7] ss:$9 sm:$0xff] }
 0x671   :  { %2867 = vst.msk [vmem:[#allocation3 + $0xf] sm:$0x1] %vm11374_vm3, %v2865_v32 }
 0x672   :  { %2870 = vst [vmem:[#allocation1] sm:$0xff] %v2788_v8 }
 0x679   :  { %v2872_v4 = vld [vmem:[#allocation1 + $0x1] ss:$9 sm:$0xff] }
 0x67a   :  { %2874 = vst.msk [vmem:[#allocation3 + $0x11] sm:$0x1] %vm11374_vm3, %v2872_v4 }
 0x67b   :  { %2875 = vst [vmem:[#allocation1] sm:$0xff] %v2788_v8 }
 0x682   :  { %v2877_v5 = vld [vmem:[#allocation1 + $0x2] ss:$9 sm:$0xff] }
 0x683   :  { %2879 = vst.msk [vmem:[#allocation3 + $0x12] sm:$0x1] %vm11374_vm3, %v2877_v5 }
 0x684   :  { %2880 = vst [vmem:[#allocation1] sm:$0xff] %v2788_v8 }
 0x68b   :  { %v2882_v10 = vld [vmem:[#allocation1 + $0x3] ss:$9 sm:$0xff] }
 0x68c   :  { %2884 = vst.msk [vmem:[#allocation3 + $0x13] sm:$0x1] %vm11374_vm3, %v2882_v10 }
 0x68d   :  { %2885 = vst [vmem:[#allocation1] sm:$0xff] %v2788_v8 }
 0x694   :  { %v2887_v55 = vld [vmem:[#allocation1 + $0x4] ss:$9 sm:$0xff] }
 0x695   :  { %2889 = vst.msk [vmem:[#allocation3 + $0x14] sm:$0x1] %vm11374_vm3, %v2887_v55 }
 0x696   :  { %2890 = vst [vmem:[#allocation1] sm:$0xff] %v2788_v8 }
 0x69d   :  { %v2892_v39 = vld [vmem:[#allocation1 + $0x5] ss:$9 sm:$0xff] }
 0x69e   :  { %2894 = vst.msk [vmem:[#allocation3 + $0x15] sm:$0x1] %vm11374_vm3, %v2892_v39 }
 0x69f   :  { %2895 = vst [vmem:[#allocation1] sm:$0xff] %v2788_v8 }
 0x6a6   :  { %v2897_v45 = vld [vmem:[#allocation1 + $0x6] ss:$9 sm:$0xff] }
 0x6a7   :  { %2899 = vst.msk [vmem:[#allocation3 + $0x16] sm:$0x1] %vm11374_vm3, %v2897_v45 }
 0x6a8   :  { %2900 = vst [vmem:[#allocation1] sm:$0xff] %v2788_v8 }
 0x6af   :  { %v2902_v1 = vld [vmem:[#allocation1 + $0x7] ss:$9 sm:$0xff] }
 0x6b0   :  { %2904 = vst.msk [vmem:[#allocation3 + $0x17] sm:$0x1] %vm11374_vm3, %v2902_v1 }
 0x6b1   :  { %2907 = vst [vmem:[#allocation1] sm:$0xff] %v11386_v59 }
 0x6b8   :  { %v2909_v25 = vld [vmem:[#allocation1 + $0x1] ss:$9 sm:$0xff] }
 0x6b9   :  { %2911 = vst.msk [vmem:[#allocation3 + $0x19] sm:$0x1] %vm11374_vm3, %v2909_v25 }
 0x6ba   :  { %2912 = vst [vmem:[#allocation1] sm:$0xff] %v11386_v59 }
 0x6c1   :  { %v2914_v37 = vld [vmem:[#allocation1 + $0x2] ss:$9 sm:$0xff] }
 0x6c2   :  { %2916 = vst.msk [vmem:[#allocation3 + $0x1a] sm:$0x1] %vm11374_vm3, %v2914_v37 }
 0x6c3   :  { %2917 = vst [vmem:[#allocation1] sm:$0xff] %v11386_v59 }
 0x6ca   :  { %v2919_v35 = vld [vmem:[#allocation1 + $0x3] ss:$9 sm:$0xff] }
 0x6cb   :  { %2921 = vst.msk [vmem:[#allocation3 + $0x1b] sm:$0x1] %vm11374_vm3, %v2919_v35 }
 0x6cc   :  { %2922 = vst [vmem:[#allocation1] sm:$0xff] %v11386_v59 }
 0x6d3   :  { %v2924_v33 = vld [vmem:[#allocation1 + $0x4] ss:$9 sm:$0xff] }
 0x6d4   :  { %2926 = vst.msk [vmem:[#allocation3 + $0x1c] sm:$0x1] %vm11374_vm3, %v2924_v33 }
 0x6d5   :  { %2927 = vst [vmem:[#allocation1] sm:$0xff] %v11386_v59 }
 0x6dc   :  { %v2929_v36 = vld [vmem:[#allocation1 + $0x5] ss:$9 sm:$0xff] }
 0x6dd   :  { %2931 = vst.msk [vmem:[#allocation3 + $0x1d] sm:$0x1] %vm11374_vm3, %v2929_v36 }
 0x6de   :  { %2932 = vst [vmem:[#allocation1] sm:$0xff] %v11386_v59 }
 0x6e5   :  { %v2934_v0 = vld [vmem:[#allocation1 + $0x6] ss:$9 sm:$0xff] }
 0x6e6   :  { %2936 = vst.msk [vmem:[#allocation3 + $0x1e] sm:$0x1] %vm11374_vm3, %v2934_v0 }
 0x6e7   :  { %2937 = vst [vmem:[#allocation1] sm:$0xff] %v11386_v59 }
 0x6ee   :  { %v2939_v2 = vld [vmem:[#allocation1 + $0x7] ss:$9 sm:$0xff] }
 0x6ef   :  { %2941 = vst.msk [vmem:[#allocation3 + $0x1f] sm:$0x1] %vm11374_vm3, %v2939_v2 }
 0x6f0   :  { %5539 = dma.done.wait [#allocation5], 131072 }
 0x6f1   :  { %5540 = vsyncadd [#allocation5], 4294836224  ;;  %4068 = vmatpush.msrb.mxu1 %v5911_v62  ;;  %4108 = vmatpush.msrb.mxu3 %v6231_v31  ;;  %v13779_v19 = vld [vmem:[#allocation19_spill] sm:$0xff]  ;;  %v13788_v31 = vld [vmem:[#allocation61_spill] sm:$0xff]  ;;  %s5547_s24 = smov [#allocation6]   ;;  %s5412_s5 = sshll.u32 %s12762_s9, 4  ;;  %s5413_s5 = int_to_ptr.hbm [resolvable:$true] %s5412_s5 }
 0x6f2   :  { %4049 = vmatpush.msrb.mxu0 %v5741_v28  ;;  %4089 = vmatpush.msrb.mxu2 %v6061_v43  ;;  %v13785_v28 = vld [vmem:[#allocation40_spill] sm:$0xff]  ;;  %v13787_v30 = vld [vmem:[#allocation15_spill] sm:$0xff]  ;;  %v13805_v44 = vld [vmem:[#allocation130_spill] sm:$0xff]  ;;  %s5410_s25 = sshll.u32 %s5547_s24, 4  ;;  %vm5403_vm4 = vcmask 40960   ;;  %s5411_s25 = int_to_ptr.vmem [resolvable:$true] %s5410_s25 }
 0x6f3   :  { %4069 = vmatpush.msrb.mxu1 %v5901_v60  ;;  %4109 = vmatpush.msrb.mxu3 %v6221_v13  ;;  %v13772_v13 = vld [vmem:[#allocation69_spill] sm:$0xff]  ;;  %v13790_v43 = vld [vmem:[#allocation84_spill] sm:$0xff]  ;;  %v13807_v38 = vld [vmem:[#allocation194_spill] sm:$0xff] }
 0x6f4   :  { %4050 = vmatpush.msrb.mxu0 %v5731_v26  ;;  %4090 = vmatpush.msrb.mxu2 %v6051_v51  ;;  %v13783_v26 = vld [vmem:[#allocation17_spill] sm:$0xff]  ;;  %v13795_v51 = vld [vmem:[#allocation11_spill] sm:$0xff]  ;;  %v13801_v60 = vld [vmem:[#allocation132_spill] sm:$0xff] }
 0x6f5   :  { %4070 = vmatpush.msrb.mxu1 %v5891_v58  ;;  %4110 = vmatpush.msrb.mxu3 %v6211_v29  ;;  %v13786_v29 = vld [vmem:[#allocation86_spill] sm:$0xff]  ;;  %v13800_v58 = vld [vmem:[#allocation80_spill] sm:$0xff] }
 0x6f6   :  { %4051 = vmatpush.msrb.mxu0 %v5721_v24  ;;  %4091 = vmatpush.msrb.mxu2 %v6041_v15  ;;  %v13773_v15 = vld [vmem:[#allocation46_spill] sm:$0xff]  ;;  %v13782_v24 = vld [vmem:[#allocation88_spill] sm:$0xff] }
 0x6f7   :  { %4071 = vmatpush.msrb.mxu1 %v5881_v56  ;;  %4111 = vmatpush.msrb.mxu3 %v6201_v63  ;;  %v13799_v56 = vld [vmem:[#allocation34_spill] sm:$0xff]  ;;  %v13803_v62 = vld [vmem:[#allocation196_spill] sm:$0xff] }
 0x6f8   :  { %4052 = vmatpush.msrb.mxu0 %v5711_v22  ;;  %4092 = vmatpush.msrb.mxu2 %v6031_v9  ;;  %v13770_v9 = vld [vmem:[#allocation94_spill] sm:$0xff]  ;;  %v13806_v59 = vld [vmem:[#allocation164_spill] sm:$0xff] }
 0x6f9   :  { %4072 = vmatpush.msrb.mxu1 %v5871_v54  ;;  %4112 = vmatpush.msrb.mxu3 %v6191_v53  ;;  %v13781_v22 = vld [vmem:[#allocation42_spill] sm:$0xff]  ;;  %v13808_v23 = vld [vmem:[#allocation228_spill] sm:$0xff] }
 0x6fa   :  { %4053 = vmatpush.msrb.mxu0 %v5701_v20  ;;  %4093 = vmatpush.msrb.mxu2 %v6021_v47  ;;  %v13780_v20 = vld [vmem:[#allocation65_spill] sm:$0xff]  ;;  %v13792_v47 = vld [vmem:[#allocation59_spill] sm:$0xff]  ;;  %v13797_v53 = vld [vmem:[#allocation134_spill] sm:$0xff] }
 0x6fb   :  { %4073 = vmatpush.msrb.mxu1 %v5861_v52  ;;  %4113 = vmatpush.msrb.mxu3 %v6181_v27  ;;  %v13784_v27 = vld [vmem:[#allocation63_spill] sm:$0xff]  ;;  %v13796_v52 = vld [vmem:[#allocation57_spill] sm:$0xff]  ;;  %v13798_v54 = vld [vmem:[#allocation198_spill] sm:$0xff] }
 0x6fc   :  { %4054 = vmatpush.msrb.mxu0 %v5691_v18  ;;  %4094 = vmatpush.msrb.mxu2 %v6011_v11  ;;  %v13771_v11 = vld [vmem:[#allocation23_spill] sm:$0xff]  ;;  %v13804_v63 = vld [vmem:[#allocation230_spill] sm:$0xff]  ;;  %v13809_v49 = vld [vmem:[#allocation128_spill] sm:$0xff] }
 0x6fd   :  { %4074 = vmatpush.msrb.mxu1 %v5851_v50  ;;  %4114 = vmatpush.msrb.mxu3 %v6171_v61  ;;  %v13776_v18 = vld [vmem:[#allocation67_spill] sm:$0xff]  ;;  %v13794_v50 = vld [vmem:[#allocation82_spill] sm:$0xff]  ;;  %v13811_v34 = vld [vmem:[#allocation192_spill] sm:$0xff] }
 0x6fe   :  { %4055 = vmatpush.msrb.mxu0 %v5681_v16  ;;  %4095 = vmatpush.msrb.mxu2 %v6001_v7  ;;  %v13774_v16 = vld [vmem:[#allocation92_spill] sm:$0xff]  ;;  %v13775_v7 = vld [vmem:[#allocation21_spill] sm:$0xff]  ;;  %v13802_v61 = vld [vmem:[#allocation166_spill] sm:$0xff] }
 0x6ff   :  { %4075 = vmatpush.msrb.mxu1 %v5841_v48  ;;  %4115 = vmatpush.msrb.mxu3 %v6161_v17  ;;  %v13777_v17 = vld [vmem:[#allocation44_spill] sm:$0xff]  ;;  %v13810_v3 = vld [vmem:[#allocation162_spill] sm:$0xff] }
 0x700   :  { %4056 = vmatpush.msrb.mxu0 %v5671_v14  ;;  %4096 = vmatpush.msrb.mxu2 %v5991_v41  ;;  %v13778_v14 = vld [vmem:[#allocation90_spill] sm:$0xff]  ;;  %v13793_v48 = vld [vmem:[#allocation36_spill] sm:$0xff] }
 0x701   :  { %4076 = vmatpush.msrb.mxu1 %v5831_v46  ;;  %4116 = vmatpush.msrb.mxu3 %v13770_v9  ;;  %v13789_v41 = vld [vmem:[#allocation38_spill] sm:$0xff]  ;;  %v13791_v46 = vld [vmem:[#allocation13_spill] sm:$0xff]  ;;  %v13814_v12 = vld [vmem:[#allocation160_spill] sm:$0xff] }
 0x702   :  { %4057 = vmatpush.msrb.mxu0 %v13771_v11  ;;  %4097 = vmatpush.msrb.mxu2 %v13772_v13  ;;  %v13812_v6 = vld [vmem:[#allocation226_spill] sm:$0xff]  ;;  %v13816_v57 = vld [vmem:[#allocation224_spill] sm:$0xff] }
 0x703   :  { %4077 = vmatpush.msrb.mxu1 %v13773_v15  ;;  %4117 = vmatpush.msrb.mxu3 %v13774_v16  ;;  %v13813_v40 = vld [vmem:[#allocation126_spill] sm:$0xff]  ;;  %v13817_v42 = vld [vmem:[#allocation124_spill] sm:$0xff] }
 0x704   :  { %4058 = vmatpush.msrb.mxu0 %v13775_v7  ;;  %4098 = vmatpush.msrb.mxu2 %v13776_v18  ;;  %v13815_v8 = vld [vmem:[#allocation190_spill] sm:$0xff]  ;;  %v13819_v32 = vld [vmem:[#allocation188_spill] sm:$0xff] }
 0x705   :  { %4078 = vmatpush.msrb.mxu1 %v13777_v17  ;;  %4118 = vmatpush.msrb.mxu3 %v13778_v14  ;;  %v13818_v21 = vld [vmem:[#allocation158_spill] sm:$0xff]  ;;  %v13822_v10 = vld [vmem:[#allocation156_spill] sm:$0xff] }
 0x706   :  { %4059 = vmatpush.msrb.mxu0 %v13779_v19  ;;  %4099 = vmatpush.msrb.mxu2 %v13780_v20  ;;  %v13820_v4 = vld [vmem:[#allocation222_spill] sm:$0xff]  ;;  %v13824_v39 = vld [vmem:[#allocation220_spill] sm:$0xff] }
 0x707   :  { %4079 = vmatpush.msrb.mxu1 %v13781_v22  ;;  %4119 = vmatpush.msrb.mxu3 %v13782_v24  ;;  %v13821_v5 = vld [vmem:[#allocation122_spill] sm:$0xff]  ;;  %v13825_v45 = vld [vmem:[#allocation120_spill] sm:$0xff] }
 0x708   :  { %4060 = vmatpush.msrb.mxu0 %v13783_v26  ;;  %4100 = vmatpush.msrb.mxu2 %v13784_v27  ;;  %v13823_v55 = vld [vmem:[#allocation186_spill] sm:$0xff]  ;;  %v13827_v25 = vld [vmem:[#allocation184_spill] sm:$0xff] }
 0x709   :  { %4080 = vmatpush.msrb.mxu1 %v13785_v28  ;;  %4120 = vmatpush.msrb.mxu3 %v13786_v29  ;;  %v13826_v1 = vld [vmem:[#allocation154_spill] sm:$0xff]  ;;  %v13830_v33 = vld [vmem:[#allocation152_spill] sm:$0xff] }
 0x70a   :  { %4061 = vmatpush.msrb.mxu0 %v13787_v30  ;;  %4101 = vmatpush.msrb.mxu2 %v13788_v31  ;;  %v13828_v37 = vld [vmem:[#allocation218_spill] sm:$0xff]  ;;  %v13832_v0 = vld [vmem:[#allocation216_spill] sm:$0xff] }
 0x70b   :  { %4081 = vmatpush.msrb.mxu1 %v13789_v41  ;;  %4121 = vmatpush.msrb.mxu3 %v13790_v43  ;;  %v13829_v35 = vld [vmem:[#allocation118_spill] sm:$0xff]  ;;  %v13833_v2 = vld [vmem:[#allocation116_spill] sm:$0xff] }
 0x70c   :  { %4062 = vmatpush.msrb.mxu0 %v13791_v46  ;;  %4102 = vmatpush.msrb.mxu2 %v13792_v47  ;;  %v13831_v36 = vld [vmem:[#allocation182_spill] sm:$0xff]  ;;  %v13835_v11 = vld [vmem:[#allocation180_spill] sm:$0xff] }
 0x70d   :  { %4082 = vmatpush.msrb.mxu1 %v13793_v48  ;;  %4122 = vmatpush.msrb.mxu3 %v13794_v50  ;;  %v13834_v9 = vld [vmem:[#allocation150_spill] sm:$0xff]  ;;  %v13838_v16 = vld [vmem:[#allocation148_spill] sm:$0xff] }
 0x70e   :  { %4063 = vmatpush.msrb.mxu0 %v13795_v51  ;;  %4103 = vmatpush.msrb.mxu2 %v13796_v52  ;;  %v13836_v13 = vld [vmem:[#allocation214_spill] sm:$0xff]  ;;  %v13840_v18 = vld [vmem:[#allocation212_spill] sm:$0xff] }
 0x70f   :  { %4083 = vmatpush.msrb.mxu1 %v13799_v56  ;;  %4123 = vmatpush.msrb.mxu3 %v13800_v58  ;;  %v13837_v15 = vld [vmem:[#allocation114_spill] sm:$0xff]  ;;  %v13841_v17 = vld [vmem:[#allocation112_spill] sm:$0xff] }
 0x710   :  { %4128 = vmatpush.msra.mxu0 %v13797_v53  ;;  %4168 = vmatpush.msra.mxu2 %v13798_v54  ;;  %v13839_v7 = vld [vmem:[#allocation178_spill] sm:$0xff]  ;;  %v13843_v19 = vld [vmem:[#allocation176_spill] sm:$0xff] }
 0x711   :  { %4148 = vmatpush.msra.mxu1 %v13802_v61  ;;  %4188 = vmatpush.msra.mxu3 %v13804_v63  ;;  %v13842_v14 = vld [vmem:[#allocation146_spill] sm:$0xff]  ;;  %v13846_v24 = vld [vmem:[#allocation144_spill] sm:$0xff] }
 0x712   :  { %4129 = vmatpush.msra.mxu0 %v13801_v60  ;;  %4169 = vmatpush.msra.mxu2 %v13803_v62  ;;  %v13844_v20 = vld [vmem:[#allocation210_spill] sm:$0xff]  ;;  %v13848_v27 = vld [vmem:[#allocation208_spill] sm:$0xff] }
 0x713   :  { %4149 = vmatpush.msra.mxu1 %v13806_v59  ;;  %4189 = vmatpush.msra.mxu3 %v13808_v23  ;;  %v13845_v22 = vld [vmem:[#allocation110_spill] sm:$0xff]  ;;  %v13849_v29 = vld [vmem:[#allocation108_spill] sm:$0xff] }
 0x714   :  { %4130 = vmatpush.msra.mxu0 %v13805_v44  ;;  %4170 = vmatpush.msra.mxu2 %v13807_v38  ;;  %v13847_v26 = vld [vmem:[#allocation174_spill] sm:$0xff]  ;;  %v13851_v31 = vld [vmem:[#allocation172_spill] sm:$0xff] }
 0x715   :  { %4150 = vmatpush.msra.mxu1 %v13810_v3  ;;  %4190 = vmatpush.msra.mxu3 %v13812_v6  ;;  %v11566_v28 = vld [vmem:[#allocation3] sm:$0xff]  ;;  %v13854_v46 = vld [vmem:[#allocation140_spill] sm:$0xff] }
 0x716   :  { %4131 = vmatpush.msra.mxu0 %v13809_v49  ;;  %4171 = vmatpush.msra.mxu2 %v13811_v34  ;;  %v13850_v30 = vld [vmem:[#allocation142_spill] sm:$0xff]  ;;  %v3979_v47 = vperm.slane %v11566_v28, 0  ;;  %v3981_v48 = vperm.slane %v11566_v28, 2  ;;  %v13856_v51 = vld [vmem:[#allocation204_spill] sm:$0xff]  ;;  %v3980_v58 = vperm.slane %v11566_v28, 1  ;;  %v3982_v60 = vperm.slane %v11566_v28, 3 }
 0x717   :  { %4151 = vmatpush.msra.mxu1 %v13814_v12  ;;  %4191 = vmatpush.msra.mxu3 %v13816_v57  ;;  %v13852_v41 = vld [vmem:[#allocation206_spill] sm:$0xff]  ;;  %v13857_v52 = vld [vmem:[#allocation104_spill] sm:$0xff]  ;;  %v3985_v6 = vperm.slane %v11566_v28, 6 }
 0x718   :  { %4132 = vmatpush.msra.mxu0 %v13813_v40  ;;  %4172 = vmatpush.msra.mxu2 %v13815_v8  ;;  %v13853_v43 = vld [vmem:[#allocation106_spill] sm:$0xff]  ;;  %v13859_v54 = vld [vmem:[#allocation168_spill] sm:$0xff] }
 0x719   :  { %4152 = vmatpush.msra.mxu1 %v13818_v21  ;;  %4192 = vmatpush.msra.mxu3 %v13820_v4  ;;  %v13855_v50 = vld [vmem:[#allocation170_spill] sm:$0xff]  ;;  %v13863_v63 = vld [vmem:[#allocation136_spill] sm:$0xff]  ;;  %v3986_v4 = vperm.slane %v11566_v28, 7 }
 0x71a   :  { %4133 = vmatpush.msra.mxu0 %v13817_v42  ;;  %4173 = vmatpush.msra.mxu2 %v13819_v32  ;;  %v13858_v53 = vld [vmem:[#allocation138_spill] sm:$0xff]  ;;  %v13864_v44 = vld [vmem:[#allocation200_spill] sm:$0xff]  ;;  %v3983_v42 = vperm.slane %v11566_v28, 4 }
 0x71b   :  { %4153 = vmatpush.msra.mxu1 %v13822_v10  ;;  %4193 = vmatpush.msra.mxu3 %v13824_v39  ;;  %v13860_v56 = vld [vmem:[#allocation202_spill] sm:$0xff]  ;;  %v13865_v59 = vld [vmem:[#allocation260_spill] sm:$0xff]  ;;  %v3984_v39 = vperm.slane %v11566_v28, 5  ;;  %v14406_v28 = vld [vmem:[#allocation281_spill] sm:$0xff] }
 0x71c   :  { %4134 = vmatpush.msra.mxu0 %v13821_v5  ;;  %4174 = vmatpush.msra.mxu2 %v13823_v55  ;;  %v13861_v61 = vld [vmem:[#allocation262_spill] sm:$0xff]  ;;  %v13867_v23 = vld [vmem:[#allocation324_spill] sm:$0xff] }
 0x71d   :  { %4154 = vmatpush.msra.mxu1 %v13826_v1  ;;  %4194 = vmatpush.msra.mxu3 %v13828_v37  ;;  %v13862_v62 = vld [vmem:[#allocation326_spill] sm:$0xff]  ;;  %v13870_v34 = vld [vmem:[#allocation292_spill] sm:$0xff] }
 0x71e   :  { %4135 = vmatpush.msra.mxu0 %v13825_v45  ;;  %4175 = vmatpush.msra.mxu2 %v13827_v25  ;;  %v13866_v38 = vld [vmem:[#allocation294_spill] sm:$0xff]  ;;  %v13872_v12 = vld [vmem:[#allocation356_spill] sm:$0xff] }
 0x71f   :  { %4155 = vmatpush.msra.mxu1 %v13830_v33  ;;  %4195 = vmatpush.msra.mxu3 %v13832_v0  ;;  %v13868_v49 = vld [vmem:[#allocation358_spill] sm:$0xff]  ;;  %v13873_v8 = vld [vmem:[#allocation256_spill] sm:$0xff] }
 0x720   :  { %4136 = vmatpush.msra.mxu0 %v13829_v35  ;;  %4176 = vmatpush.msra.mxu2 %v13831_v36  ;;  %v13869_v3 = vld [vmem:[#allocation258_spill] sm:$0xff]  ;;  %v13875_v21 = vld [vmem:[#allocation320_spill] sm:$0xff] }
 0x721   :  { %4156 = vmatpush.msra.mxu1 %v13834_v9  ;;  %4196 = vmatpush.msra.mxu3 %v13836_v13  ;;  %v13871_v40 = vld [vmem:[#allocation322_spill] sm:$0xff]  ;;  %v13878_v10 = vld [vmem:[#allocation288_spill] sm:$0xff] }
 0x722   :  { %4137 = vmatpush.msra.mxu0 %v13833_v2  ;;  %4177 = vmatpush.msra.mxu2 %v13835_v11  ;;  %v13874_v57 = vld [vmem:[#allocation290_spill] sm:$0xff]  ;;  %v13880_v45 = vld [vmem:[#allocation352_spill] sm:$0xff] }
 0x723   :  { %4157 = vmatpush.msra.mxu1 %v13838_v16  ;;  %4197 = vmatpush.msra.mxu3 %v13840_v18  ;;  %v13876_v32 = vld [vmem:[#allocation354_spill] sm:$0xff]  ;;  %v13881_v1 = vld [vmem:[#allocation252_spill] sm:$0xff] }
 0x724   :  { %4138 = vmatpush.msra.mxu0 %v13837_v15  ;;  %4178 = vmatpush.msra.mxu2 %v13839_v7  ;;  %v13877_v5 = vld [vmem:[#allocation254_spill] sm:$0xff]  ;;  %v13883_v37 = vld [vmem:[#allocation316_spill] sm:$0xff] }
 0x725   :  { %4158 = vmatpush.msra.mxu1 %v13842_v14  ;;  %4198 = vmatpush.msra.mxu3 %v13844_v20  ;;  %v13879_v55 = vld [vmem:[#allocation318_spill] sm:$0xff]  ;;  %v13886_v36 = vld [vmem:[#allocation284_spill] sm:$0xff] }
 0x726   :  { %4139 = vmatpush.msra.mxu0 %v13841_v17  ;;  %4179 = vmatpush.msra.mxu2 %v13843_v19  ;;  %v13882_v25 = vld [vmem:[#allocation286_spill] sm:$0xff]  ;;  %v13888_v2 = vld [vmem:[#allocation348_spill] sm:$0xff] }
 0x727   :  { %4159 = vmatpush.msra.mxu1 %v13846_v24  ;;  %4199 = vmatpush.msra.mxu3 %v13848_v27  ;;  %v13884_v35 = vld [vmem:[#allocation350_spill] sm:$0xff]  ;;  %v13889_v9 = vld [vmem:[#allocation248_spill] sm:$0xff] }
 0x728   :  { %4140 = vmatpush.msra.mxu0 %v13845_v22  ;;  %4180 = vmatpush.msra.mxu2 %v13847_v26  ;;  %v13885_v33 = vld [vmem:[#allocation250_spill] sm:$0xff]  ;;  %v13891_v13 = vld [vmem:[#allocation312_spill] sm:$0xff] }
 0x729   :  { %4160 = vmatpush.msra.mxu1 %v13850_v30  ;;  %4200 = vmatpush.msra.mxu3 %v13852_v41  ;;  %v13887_v0 = vld [vmem:[#allocation314_spill] sm:$0xff]  ;;  %v13894_v7 = vld [vmem:[#allocation280_spill] sm:$0xff] }
 0x72a   :  { %4141 = vmatpush.msra.mxu0 %v13849_v29  ;;  %4181 = vmatpush.msra.mxu2 %v13851_v31  ;;  %v13890_v11 = vld [vmem:[#allocation282_spill] sm:$0xff]  ;;  %v13896_v17 = vld [vmem:[#allocation344_spill] sm:$0xff] }
 0x72b   :  { %4161 = vmatpush.msra.mxu1 %v13854_v46  ;;  %4201 = vmatpush.msra.mxu3 %v13856_v51  ;;  %v13892_v15 = vld [vmem:[#allocation346_spill] sm:$0xff]  ;;  %v13897_v14 = vld [vmem:[#allocation244_spill] sm:$0xff] }
 0x72c   :  { %4142 = vmatpush.msra.mxu0 %v13853_v43  ;;  %4182 = vmatpush.msra.mxu2 %v13855_v50  ;;  %v13893_v16 = vld [vmem:[#allocation246_spill] sm:$0xff]  ;;  %v13899_v20 = vld [vmem:[#allocation308_spill] sm:$0xff] }
 0x72d   :  { %4162 = vmatpush.msra.mxu1 %v13858_v53  ;;  %4202 = vmatpush.msra.mxu3 %v13860_v56  ;;  %v13895_v18 = vld [vmem:[#allocation310_spill] sm:$0xff]  ;;  %v13902_v26 = vld [vmem:[#allocation276_spill] sm:$0xff] }
 0x72e   :  { %4143 = vmatpush.msra.mxu0 %v13857_v52  ;;  %4183 = vmatpush.msra.mxu2 %v13859_v54  ;;  %v13898_v19 = vld [vmem:[#allocation278_spill] sm:$0xff]  ;;  %v13904_v29 = vld [vmem:[#allocation340_spill] sm:$0xff] }
 0x72f   :  { %4064 = vmatmul.f32.vlgmr.msrb.gmra.mxu0 %v3979_v47  ;;  %4104 = vmatmul.f32.vlgmr.msrb.gmra.mxu2 %v3981_v48  ;;  %v13900_v22 = vld [vmem:[#allocation342_spill] sm:$0xff]  ;;  %v13905_v30 = vld [vmem:[#allocation240_spill] sm:$0xff] }
 0x730   :  { %4208 = vmatpush.msrb.mxu0 %v13861_v61  ;;  %4248 = vmatpush.msrb.mxu2 %v13862_v62  ;;  %v13901_v24 = vld [vmem:[#allocation242_spill] sm:$0xff]  ;;  %v13907_v41 = vld [vmem:[#allocation304_spill] sm:$0xff] }
 0x731   :  { %4163 = vmatpush.msra.mxu1 %v13863_v63  ;;  %4203 = vmatpush.msra.mxu3 %v13864_v44  ;;  %v13903_v27 = vld [vmem:[#allocation306_spill] sm:$0xff]  ;;  %v13910_v50 = vld [vmem:[#allocation272_spill] sm:$0xff] }
 0x732   :  { %4084 = vmatmul.f32.vlgmr.msrb.gmra.mxu1 %v3980_v58  ;;  %4124 = vmatmul.f32.vlgmr.msrb.gmra.mxu3 %v3982_v60  ;;  %v13906_v31 = vld [vmem:[#allocation274_spill] sm:$0xff]  ;;  %v13912_v52 = vld [vmem:[#allocation336_spill] sm:$0xff] }
 0x733   :  { %4209 = vmatpush.msrb.mxu0 %v13865_v59  ;;  %4228 = vmatpush.msrb.mxu1 %v13866_v38  ;;  %v13908_v43 = vld [vmem:[#allocation338_spill] sm:$0xff]  ;;  %v11656_v53 = vld [vmem:[#allocation3 + $0x8] sm:$0xff] }
 0x734   :  { %4249 = vmatpush.msrb.mxu2 %v13867_v23  ;;  %4268 = vmatpush.msrb.mxu3 %v13868_v49  ;;  %v13909_v46 = vld [vmem:[#allocation238_spill] sm:$0xff]  ;;  %v13913_v54 = vld [vmem:[#allocation236_spill] sm:$0xff]  ;;  %v3987_v59 = vperm.slane %v11656_v53, 0  ;;  %v3989_v38 = vperm.slane %v11656_v53, 2 }
 0x735   :  { %4210 = vmatpush.msrb.mxu0 %v13869_v3  ;;  %4229 = vmatpush.msrb.mxu1 %v13870_v34  ;;  %v13911_v51 = vld [vmem:[#allocation302_spill] sm:$0xff]  ;;  %v13915_v61 = vld [vmem:[#allocation300_spill] sm:$0xff] }
 0x736   :  { %4250 = vmatpush.msrb.mxu2 %v13871_v40  ;;  %4269 = vmatpush.msrb.mxu3 %v13872_v12  ;;  %v13914_v56 = vld [vmem:[#allocation270_spill] sm:$0xff]  ;;  %v13918_v44 = vld [vmem:[#allocation268_spill] sm:$0xff] }
 0x737   :  { %4211 = vmatpush.msrb.mxu0 %v13873_v8  ;;  %4230 = vmatpush.msrb.mxu1 %v13874_v57  ;;  %v13916_v62 = vld [vmem:[#allocation334_spill] sm:$0xff]  ;;  %v13920_v49 = vld [vmem:[#allocation332_spill] sm:$0xff]  ;;  %v3988_v8 = vperm.slane %v11656_v53, 1  ;;  %v3990_v57 = vperm.slane %v11656_v53, 3 }
 0x738   :  { %4251 = vmatpush.msrb.mxu2 %v13875_v21  ;;  %4270 = vmatpush.msrb.mxu3 %v13876_v32  ;;  %v13917_v63 = vld [vmem:[#allocation234_spill] sm:$0xff]  ;;  %v13921_v3 = vld [vmem:[#allocation232_spill] sm:$0xff] }
 0x739   :  { %4184 = vmatmul.f32.vlgmr.msra.gmra.mxu2 %v3985_v6  ;;  %4212 = vmatpush.msrb.mxu0 %v13877_v5  ;;  %v13919_v23 = vld [vmem:[#allocation298_spill] sm:$0xff]  ;;  %v13923_v40 = vld [vmem:[#allocation296_spill] sm:$0xff] }
 0x73a   :  { %4231 = vmatpush.msrb.mxu1 %v13878_v10  ;;  %4252 = vmatpush.msrb.mxu2 %v13879_v55  ;;  %v13922_v34 = vld [vmem:[#allocation266_spill] sm:$0xff]  ;;  %v13927_v5 = vld [vmem:[#allocation264_spill] sm:$0xff] }
 0x73b   :  { %4271 = vmatpush.msrb.mxu3 %v13880_v45  ;;  %4144 = vmatmul.f32.vlgmr.msra.gmra.mxu0 %v3983_v42  ;;  %v13924_v12 = vld [vmem:[#allocation330_spill] sm:$0xff]  ;;  %v13928_v10 = vld [vmem:[#allocation328_spill] sm:$0xff] }
 0x73c   :  { %4204 = vmatmul.f32.vlgmr.msra.gmra.mxu3 %v3986_v4  ;;  %4213 = vmatpush.msrb.mxu0 %v13881_v1  ;;  %v13925_v21 = vld [vmem:[#allocation390_spill] sm:$0xff]  ;;  %v13929_v55 = vld [vmem:[#allocation388_spill] sm:$0xff] }
 0x73d   :  { %4232 = vmatpush.msrb.mxu1 %v13882_v25  ;;  %4253 = vmatpush.msrb.mxu2 %v13883_v37  ;;  %v13926_v32 = vld [vmem:[#allocation454_spill] sm:$0xff]  ;;  %v13931_v1 = vld [vmem:[#allocation452_spill] sm:$0xff] }
 0x73e   :  { %4272 = vmatpush.msrb.mxu3 %v13884_v35  ;;  %4164 = vmatmul.f32.vlgmr.msra.gmra.mxu1 %v3984_v39  ;;  %v13930_v45 = vld [vmem:[#allocation422_spill] sm:$0xff]  ;;  %v13934_v35 = vld [vmem:[#allocation420_spill] sm:$0xff] }
 0x73f   :  { %4214 = vmatpush.msrb.mxu0 %v13885_v33  ;;  %4233 = vmatpush.msrb.mxu1 %v13886_v36  ;;  %v13932_v25 = vld [vmem:[#allocation486_spill] sm:$0xff]  ;;  %v13936_v36 = vld [vmem:[#allocation484_spill] sm:$0xff] }
 0x740   :  { %4254 = vmatpush.msrb.mxu2 %v13887_v0  ;;  %4273 = vmatpush.msrb.mxu3 %v13888_v2  ;;  %v13933_v37 = vld [vmem:[#allocation386_spill] sm:$0xff]  ;;  %v13937_v0 = vld [vmem:[#allocation384_spill] sm:$0xff] }
 0x741   :  { %4215 = vmatpush.msrb.mxu0 %v13889_v9  ;;  %4234 = vmatpush.msrb.mxu1 %v13890_v11  ;;  %v13935_v33 = vld [vmem:[#allocation450_spill] sm:$0xff]  ;;  %v13939_v9 = vld [vmem:[#allocation448_spill] sm:$0xff] }
 0x742   :  { %4255 = vmatpush.msrb.mxu2 %v13891_v13  ;;  %4274 = vmatpush.msrb.mxu3 %v13892_v15  ;;  %v13938_v2 = vld [vmem:[#allocation418_spill] sm:$0xff]  ;;  %v13942_v15 = vld [vmem:[#allocation416_spill] sm:$0xff] }
 0x743   :  { %4216 = vmatpush.msrb.mxu0 %v13893_v16  ;;  %4235 = vmatpush.msrb.mxu1 %v13894_v7  ;;  %v13940_v11 = vld [vmem:[#allocation482_spill] sm:$0xff]  ;;  %v13944_v7 = vld [vmem:[#allocation480_spill] sm:$0xff] }
 0x744   :  { %4256 = vmatpush.msrb.mxu2 %v13895_v18  ;;  %4275 = vmatpush.msrb.mxu3 %v13896_v17  ;;  %v13941_v13 = vld [vmem:[#allocation382_spill] sm:$0xff]  ;;  %v13945_v18 = vld [vmem:[#allocation380_spill] sm:$0xff] }
 0x745   :  { %4217 = vmatpush.msrb.mxu0 %v13897_v14  ;;  %4236 = vmatpush.msrb.mxu1 %v13898_v19  ;;  %v13943_v16 = vld [vmem:[#allocation446_spill] sm:$0xff]  ;;  %v13947_v14 = vld [vmem:[#allocation444_spill] sm:$0xff] }
 0x746   :  { %4257 = vmatpush.msrb.mxu2 %v13899_v20  ;;  %4276 = vmatpush.msrb.mxu3 %v13900_v22  ;;  %v13946_v17 = vld [vmem:[#allocation414_spill] sm:$0xff]  ;;  %v13950_v22 = vld [vmem:[#allocation412_spill] sm:$0xff] }
 0x747   :  { %4218 = vmatpush.msrb.mxu0 %v13901_v24  ;;  %4237 = vmatpush.msrb.mxu1 %v13902_v26  ;;  %v13948_v19 = vld [vmem:[#allocation478_spill] sm:$0xff]  ;;  %v13952_v26 = vld [vmem:[#allocation476_spill] sm:$0xff] }
 0x748   :  { %4258 = vmatpush.msrb.mxu2 %v13903_v27  ;;  %4277 = vmatpush.msrb.mxu3 %v13904_v29  ;;  %v13949_v20 = vld [vmem:[#allocation378_spill] sm:$0xff]  ;;  %v13953_v27 = vld [vmem:[#allocation376_spill] sm:$0xff] }
 0x749   :  { %4219 = vmatpush.msrb.mxu0 %v13905_v30  ;;  %4238 = vmatpush.msrb.mxu1 %v13906_v31  ;;  %v13951_v24 = vld [vmem:[#allocation442_spill] sm:$0xff]  ;;  %v13955_v30 = vld [vmem:[#allocation440_spill] sm:$0xff] }
 0x74a   :  { %4259 = vmatpush.msrb.mxu2 %v13907_v41  ;;  %4278 = vmatpush.msrb.mxu3 %v13908_v43  ;;  %v13954_v29 = vld [vmem:[#allocation410_spill] sm:$0xff]  ;;  %v13958_v43 = vld [vmem:[#allocation408_spill] sm:$0xff] }
 0x74b   :  { %4220 = vmatpush.msrb.mxu0 %v13909_v46  ;;  %4239 = vmatpush.msrb.mxu1 %v13910_v50  ;;  %v13956_v31 = vld [vmem:[#allocation474_spill] sm:$0xff]  ;;  %v13960_v50 = vld [vmem:[#allocation472_spill] sm:$0xff] }
 0x74c   :  { %4260 = vmatpush.msrb.mxu2 %v13911_v51  ;;  %4279 = vmatpush.msrb.mxu3 %v13912_v52  ;;  %v13957_v41 = vld [vmem:[#allocation374_spill] sm:$0xff]  ;;  %v13961_v51 = vld [vmem:[#allocation372_spill] sm:$0xff] }
 0x74d   :  { %4221 = vmatpush.msrb.mxu0 %v13913_v54  ;;  %4240 = vmatpush.msrb.mxu1 %v13914_v56  ;;  %v13959_v46 = vld [vmem:[#allocation438_spill] sm:$0xff]  ;;  %v13963_v54 = vld [vmem:[#allocation436_spill] sm:$0xff] }
 0x74e   :  { %4261 = vmatpush.msrb.mxu2 %v13915_v61  ;;  %4280 = vmatpush.msrb.mxu3 %v13916_v62  ;;  %v13962_v52 = vld [vmem:[#allocation406_spill] sm:$0xff]  ;;  %v13966_v62 = vld [vmem:[#allocation404_spill] sm:$0xff] }
 0x74f   :  { %4222 = vmatpush.msrb.mxu0 %v13917_v63  ;;  %4241 = vmatpush.msrb.mxu1 %v13918_v44  ;;  %v13964_v56 = vld [vmem:[#allocation470_spill] sm:$0xff]  ;;  %v13968_v44 = vld [vmem:[#allocation468_spill] sm:$0xff] }
 0x750   :  { %4262 = vmatpush.msrb.mxu2 %v13919_v23  ;;  %4281 = vmatpush.msrb.mxu3 %v13920_v49  ;;  %v13965_v61 = vld [vmem:[#allocation370_spill] sm:$0xff]  ;;  %v13969_v23 = vld [vmem:[#allocation368_spill] sm:$0xff] }
 0x751   :  { %4223 = vmatpush.msrb.mxu0 %v13921_v3  ;;  %4242 = vmatpush.msrb.mxu1 %v13922_v34  ;;  %v13967_v63 = vld [vmem:[#allocation434_spill] sm:$0xff]  ;;  %v13971_v3 = vld [vmem:[#allocation432_spill] sm:$0xff] }
 0x752   :  { %4263 = vmatpush.msrb.mxu2 %v13923_v40  ;;  %4282 = vmatpush.msrb.mxu3 %v13924_v12  ;;  %v13970_v49 = vld [vmem:[#allocation402_spill] sm:$0xff]  ;;  %v13974_v12 = vld [vmem:[#allocation400_spill] sm:$0xff] }
 0x753   :  { %4224 = vmatmul.f32.vlgmr.msrb.gmra.mxu0 %v3987_v59  ;;  %4264 = vmatmul.f32.vlgmr.msrb.gmra.mxu2 %v3989_v38  ;;  %v13972_v34 = vld [vmem:[#allocation466_spill] sm:$0xff] }
 0x754   :  { %4288 = vmatpush.msra.mxu0 %v13925_v21  ;;  %4328 = vmatpush.msra.mxu2 %v13926_v32  ;;  %v13973_v40 = vld [vmem:[#allocation366_spill] sm:$0xff]  ;;  %v13976_v32 = vld [vmem:[#allocation464_spill] sm:$0xff] }
 0x755   :  { %4243 = vmatpush.msrb.mxu1 %v13927_v5  ;;  %4283 = vmatpush.msrb.mxu3 %v13928_v10  ;;  %v13975_v21 = vld [vmem:[#allocation430_spill] sm:$0xff]  ;;  %v13977_v5 = vld [vmem:[#allocation364_spill] sm:$0xff] }
 0x756   :  { %4244 = vmatmul.f32.vlgmr.msrb.gmra.mxu1 %v3988_v8  ;;  %4284 = vmatmul.f32.vlgmr.msrb.gmra.mxu3 %v3990_v57  ;;  %v13978_v10 = vld [vmem:[#allocation398_spill] sm:$0xff] }
 0x757   :  { %4289 = vmatpush.msra.mxu0 %v13929_v55  ;;  %4308 = vmatpush.msra.mxu1 %v13930_v45  ;;  %v13979_v55 = vld [vmem:[#allocation428_spill] sm:$0xff]  ;;  %v13980_v45 = vld [vmem:[#allocation462_spill] sm:$0xff] }
 0x758   :  { %4329 = vmatpush.msra.mxu2 %v13931_v1  ;;  %4348 = vmatpush.msra.mxu3 %v13932_v25  ;;  %v13981_v1 = vld [vmem:[#allocation362_spill] sm:$0xff]  ;;  %v13982_v25 = vld [vmem:[#allocation396_spill] sm:$0xff] }
 0x759   :  { %4290 = vmatpush.msra.mxu0 %v13933_v37  ;;  %4309 = vmatpush.msra.mxu1 %v13934_v35  ;;  %v3991_v37 = vperm.slane %v11656_v53, 4  ;;  %v3993_v35 = vperm.slane %v11656_v53, 6 }
 0x75a   :  { %4330 = vmatpush.msra.mxu2 %v13935_v33  ;;  %4349 = vmatpush.msra.mxu3 %v13936_v36  ;;  %v13983_v33 = vld [vmem:[#allocation426_spill] sm:$0xff]  ;;  %v13984_v36 = vld [vmem:[#allocation460_spill] sm:$0xff] }
 0x75b   :  { %4291 = vmatpush.msra.mxu0 %v13937_v0  ;;  %4310 = vmatpush.msra.mxu1 %v13938_v2  ;;  %v13985_v0 = vld [vmem:[#allocation360_spill] sm:$0xff]  ;;  %v13986_v2 = vld [vmem:[#allocation394_spill] sm:$0xff] }
 0x75c   :  { %4331 = vmatpush.msra.mxu2 %v13939_v9  ;;  %4350 = vmatpush.msra.mxu3 %v13940_v11  ;;  %v13987_v9 = vld [vmem:[#allocation424_spill] sm:$0xff]  ;;  %v13988_v11 = vld [vmem:[#allocation458_spill] sm:$0xff] }
 0x75d   :  { %4292 = vmatpush.msra.mxu0 %v13941_v13  ;;  %4311 = vmatpush.msra.mxu1 %v13942_v15  ;;  %v3992_v13 = vperm.slane %v11656_v53, 5  ;;  %v3994_v15 = vperm.slane %v11656_v53, 7  ;;  %v14514_v53 = vld [vmem:[#allocation547_spill] sm:$0xff] }
 0x75e   :  { %4332 = vmatpush.msra.mxu2 %v13943_v16  ;;  %4351 = vmatpush.msra.mxu3 %v13944_v7  ;;  %v13989_v16 = vld [vmem:[#allocation518_spill] sm:$0xff] }
 0x75f   :  { %4293 = vmatpush.msra.mxu0 %v13945_v18  ;;  %4312 = vmatpush.msra.mxu1 %v13946_v17  ;;  %v13990_v7 = vld [vmem:[#allocation582_spill] sm:$0xff]  ;;  %v13991_v18 = vld [vmem:[#allocation392_spill] sm:$0xff] }
 0x760   :  { %4333 = vmatpush.msra.mxu2 %v13947_v14  ;;  %4352 = vmatpush.msra.mxu3 %v13948_v19  ;;  %v13992_v17 = vld [vmem:[#allocation456_spill] sm:$0xff]  ;;  %v13994_v19 = vld [vmem:[#allocation550_spill] sm:$0xff] }
 0x761   :  { %4294 = vmatpush.msra.mxu0 %v13949_v20  ;;  %4313 = vmatpush.msra.mxu1 %v13950_v22  ;;  %v13993_v14 = vld [vmem:[#allocation516_spill] sm:$0xff]  ;;  %v13996_v22 = vld [vmem:[#allocation614_spill] sm:$0xff] }
 0x762   :  { %4334 = vmatpush.msra.mxu2 %v13951_v24  ;;  %4353 = vmatpush.msra.mxu3 %v13952_v26  ;;  %v13995_v20 = vld [vmem:[#allocation580_spill] sm:$0xff]  ;;  %v13997_v24 = vld [vmem:[#allocation514_spill] sm:$0xff] }
 0x763   :  { %4295 = vmatpush.msra.mxu0 %v13953_v27  ;;  %4314 = vmatpush.msra.mxu1 %v13954_v29  ;;  %v13998_v26 = vld [vmem:[#allocation548_spill] sm:$0xff]  ;;  %v13999_v27 = vld [vmem:[#allocation578_spill] sm:$0xff] }
 0x764   :  { %4335 = vmatpush.msra.mxu2 %v13955_v30  ;;  %4354 = vmatpush.msra.mxu3 %v13956_v31  ;;  %v14000_v29 = vld [vmem:[#allocation612_spill] sm:$0xff]  ;;  %v14002_v31 = vld [vmem:[#allocation546_spill] sm:$0xff] }
 0x765   :  { %4296 = vmatpush.msra.mxu0 %v13957_v41  ;;  %4315 = vmatpush.msra.mxu1 %v13958_v43  ;;  %v14001_v30 = vld [vmem:[#allocation512_spill] sm:$0xff]  ;;  %v14004_v43 = vld [vmem:[#allocation610_spill] sm:$0xff] }
 0x766   :  { %4336 = vmatpush.msra.mxu2 %v13959_v46  ;;  %4355 = vmatpush.msra.mxu3 %v13960_v50  ;;  %v14003_v41 = vld [vmem:[#allocation576_spill] sm:$0xff]  ;;  %v14005_v46 = vld [vmem:[#allocation510_spill] sm:$0xff] }
 0x767   :  { %4297 = vmatpush.msra.mxu0 %v13961_v51  ;;  %4316 = vmatpush.msra.mxu1 %v13962_v52  ;;  %v14006_v50 = vld [vmem:[#allocation544_spill] sm:$0xff]  ;;  %v14007_v51 = vld [vmem:[#allocation574_spill] sm:$0xff] }
 0x768   :  { %4337 = vmatpush.msra.mxu2 %v13963_v54  ;;  %4356 = vmatpush.msra.mxu3 %v13964_v56  ;;  %v14008_v52 = vld [vmem:[#allocation608_spill] sm:$0xff]  ;;  %v14010_v56 = vld [vmem:[#allocation542_spill] sm:$0xff] }
 0x769   :  { %4298 = vmatpush.msra.mxu0 %v13965_v61  ;;  %4317 = vmatpush.msra.mxu1 %v13966_v62  ;;  %v14009_v54 = vld [vmem:[#allocation508_spill] sm:$0xff]  ;;  %v14012_v62 = vld [vmem:[#allocation606_spill] sm:$0xff] }
 0x76a   :  { %4338 = vmatpush.msra.mxu2 %v13967_v63  ;;  %4357 = vmatpush.msra.mxu3 %v13968_v44  ;;  %v14011_v61 = vld [vmem:[#allocation572_spill] sm:$0xff]  ;;  %v14013_v63 = vld [vmem:[#allocation506_spill] sm:$0xff] }
 0x76b   :  { %4299 = vmatpush.msra.mxu0 %v13969_v23  ;;  %4318 = vmatpush.msra.mxu1 %v13970_v49  ;;  %v14014_v44 = vld [vmem:[#allocation540_spill] sm:$0xff]  ;;  %v14015_v23 = vld [vmem:[#allocation570_spill] sm:$0xff] }
 0x76c   :  { %4339 = vmatpush.msra.mxu2 %v13971_v3  ;;  %4358 = vmatpush.msra.mxu3 %v13972_v34  ;;  %v14016_v49 = vld [vmem:[#allocation604_spill] sm:$0xff]  ;;  %v14018_v34 = vld [vmem:[#allocation538_spill] sm:$0xff] }
 0x76d   :  { %4300 = vmatpush.msra.mxu0 %v13973_v40  ;;  %4319 = vmatpush.msra.mxu1 %v13974_v12  ;;  %v14017_v3 = vld [vmem:[#allocation504_spill] sm:$0xff]  ;;  %v14020_v12 = vld [vmem:[#allocation602_spill] sm:$0xff] }
 0x76e   :  { %4340 = vmatpush.msra.mxu2 %v13975_v21  ;;  %4359 = vmatpush.msra.mxu3 %v13976_v32  ;;  %v14019_v40 = vld [vmem:[#allocation568_spill] sm:$0xff]  ;;  %v14021_v21 = vld [vmem:[#allocation502_spill] sm:$0xff] }
 0x76f   :  { %4301 = vmatpush.msra.mxu0 %v13977_v5  ;;  %4320 = vmatpush.msra.mxu1 %v13978_v10  ;;  %v14022_v32 = vld [vmem:[#allocation536_spill] sm:$0xff]  ;;  %v14023_v5 = vld [vmem:[#allocation566_spill] sm:$0xff] }
 0x770   :  { %4341 = vmatpush.msra.mxu2 %v13979_v55  ;;  %4360 = vmatpush.msra.mxu3 %v13980_v45  ;;  %v14024_v10 = vld [vmem:[#allocation600_spill] sm:$0xff]  ;;  %v14026_v45 = vld [vmem:[#allocation534_spill] sm:$0xff] }
 0x771   :  { %4302 = vmatpush.msra.mxu0 %v13981_v1  ;;  %4321 = vmatpush.msra.mxu1 %v13982_v25  ;;  %v14025_v55 = vld [vmem:[#allocation500_spill] sm:$0xff]  ;;  %v14028_v25 = vld [vmem:[#allocation598_spill] sm:$0xff] }
 0x772   :  { %4342 = vmatpush.msra.mxu2 %v13983_v33  ;;  %4361 = vmatpush.msra.mxu3 %v13984_v36  ;;  %v14027_v1 = vld [vmem:[#allocation564_spill] sm:$0xff]  ;;  %v14029_v33 = vld [vmem:[#allocation498_spill] sm:$0xff] }
 0x773   :  { %4303 = vmatpush.msra.mxu0 %v13985_v0  ;;  %4322 = vmatpush.msra.mxu1 %v13986_v2  ;;  %v14030_v36 = vld [vmem:[#allocation532_spill] sm:$0xff]  ;;  %v14031_v0 = vld [vmem:[#allocation562_spill] sm:$0xff] }
 0x774   :  { %4343 = vmatpush.msra.mxu2 %v13987_v9  ;;  %4362 = vmatpush.msra.mxu3 %v13988_v11  ;;  %v14032_v2 = vld [vmem:[#allocation596_spill] sm:$0xff]  ;;  %v14034_v11 = vld [vmem:[#allocation530_spill] sm:$0xff] }
 0x775   :  { %4304 = vmatmul.f32.vlgmr.msra.gmra.mxu0 %v3991_v37  ;;  %4344 = vmatmul.f32.vlgmr.msra.gmra.mxu2 %v3993_v35  ;;  %v14033_v9 = vld [vmem:[#allocation496_spill] sm:$0xff] }
 0x776   :  { %4368 = vmatpush.msrb.mxu0 %v13989_v16  ;;  %4408 = vmatpush.msrb.mxu2 %v13990_v7  ;;  %v14035_v16 = vld [vmem:[#allocation560_spill] sm:$0xff]  ;;  %v14036_v7 = vld [vmem:[#allocation594_spill] sm:$0xff] }
 0x777   :  { %4323 = vmatpush.msra.mxu1 %v13991_v18  ;;  %4363 = vmatpush.msra.mxu3 %v13992_v17  ;;  %v14037_v18 = vld [vmem:[#allocation494_spill] sm:$0xff]  ;;  %v14038_v17 = vld [vmem:[#allocation528_spill] sm:$0xff] }
 0x778   :  { %4324 = vmatmul.f32.vlgmr.msra.gmra.mxu1 %v3992_v13  ;;  %4364 = vmatmul.f32.vlgmr.msra.gmra.mxu3 %v3994_v15 }
 0x779   :  { %4369 = vmatpush.msrb.mxu0 %v13993_v14  ;;  %4388 = vmatpush.msrb.mxu1 %v13994_v19  ;;  %v14039_v14 = vld [vmem:[#allocation558_spill] sm:$0xff]  ;;  %v14040_v19 = vld [vmem:[#allocation592_spill] sm:$0xff] }
 0x77a   :  { %4409 = vmatpush.msrb.mxu2 %v13995_v20  ;;  %4428 = vmatpush.msrb.mxu3 %v13996_v22  ;;  %v11810_v20 = vld [vmem:[#allocation3 + $0x10] sm:$0xff] }
 0x77b   :  { %4370 = vmatpush.msrb.mxu0 %v13997_v24  ;;  %4389 = vmatpush.msrb.mxu1 %v13998_v26  ;;  %v14041_v22 = vld [vmem:[#allocation492_spill] sm:$0xff]  ;;  %v14042_v24 = vld [vmem:[#allocation526_spill] sm:$0xff] }
 0x77c   :  { %4410 = vmatpush.msrb.mxu2 %v13999_v27  ;;  %4429 = vmatpush.msrb.mxu3 %v14000_v29  ;;  %v14043_v26 = vld [vmem:[#allocation556_spill] sm:$0xff]  ;;  %v14044_v27 = vld [vmem:[#allocation590_spill] sm:$0xff] }
 0x77d   :  { %4371 = vmatpush.msrb.mxu0 %v14001_v30  ;;  %4390 = vmatpush.msrb.mxu1 %v14002_v31  ;;  %v14045_v29 = vld [vmem:[#allocation490_spill] sm:$0xff]  ;;  %v14046_v30 = vld [vmem:[#allocation524_spill] sm:$0xff]  ;;  %v3995_v31 = vperm.slane %v11810_v20, 0 }
 0x77e   :  { %4411 = vmatpush.msrb.mxu2 %v14003_v41  ;;  %4430 = vmatpush.msrb.mxu3 %v14004_v43  ;;  %v3997_v41 = vperm.slane %v11810_v20, 2  ;;  %v14047_v43 = vld [vmem:[#allocation554_spill] sm:$0xff] }
 0x77f   :  { %4372 = vmatpush.msrb.mxu0 %v14005_v46  ;;  %4391 = vmatpush.msrb.mxu1 %v14006_v50  ;;  %v14048_v46 = vld [vmem:[#allocation588_spill] sm:$0xff] }
 0x780   :  { %4412 = vmatpush.msrb.mxu2 %v14007_v51  ;;  %4431 = vmatpush.msrb.mxu3 %v14008_v52  ;;  %v14049_v50 = vld [vmem:[#allocation488_spill] sm:$0xff]  ;;  %v14050_v51 = vld [vmem:[#allocation522_spill] sm:$0xff] }
 0x781   :  { %4373 = vmatpush.msrb.mxu0 %v14009_v54  ;;  %4392 = vmatpush.msrb.mxu1 %v14010_v56  ;;  %v14051_v52 = vld [vmem:[#allocation552_spill] sm:$0xff]  ;;  %v14052_v54 = vld [vmem:[#allocation586_spill] sm:$0xff]  ;;  %v3996_v56 = vperm.slane %v11810_v20, 1 }
 0x782   :  { %4413 = vmatpush.msrb.mxu2 %v14011_v61  ;;  %4432 = vmatpush.msrb.mxu3 %v14012_v62  ;;  %v3998_v61 = vperm.slane %v11810_v20, 3  ;;  %v14053_v62 = vld [vmem:[#allocation646_spill] sm:$0xff] }
 0x783   :  { %4374 = vmatpush.msrb.mxu0 %v14013_v63  ;;  %4393 = vmatpush.msrb.mxu1 %v14014_v44  ;;  %v14054_v63 = vld [vmem:[#allocation710_spill] sm:$0xff]  ;;  %v14055_v44 = vld [vmem:[#allocation520_spill] sm:$0xff] }
 0x784   :  { %4414 = vmatpush.msrb.mxu2 %v14015_v23  ;;  %4433 = vmatpush.msrb.mxu3 %v14016_v49  ;;  %v14056_v23 = vld [vmem:[#allocation584_spill] sm:$0xff] }
 0x785   :  { %4375 = vmatpush.msrb.mxu0 %v14017_v3  ;;  %4394 = vmatpush.msrb.mxu1 %v14018_v34  ;;  %v14057_v49 = vld [vmem:[#allocation644_spill] sm:$0xff]  ;;  %v14058_v3 = vld [vmem:[#allocation678_spill] sm:$0xff] }
 0x786   :  { %4415 = vmatpush.msrb.mxu2 %v14019_v40  ;;  %4434 = vmatpush.msrb.mxu3 %v14020_v12  ;;  %v14059_v34 = vld [vmem:[#allocation708_spill] sm:$0xff]  ;;  %v14060_v40 = vld [vmem:[#allocation742_spill] sm:$0xff] }
 0x787   :  { %4376 = vmatpush.msrb.mxu0 %v14021_v21  ;;  %4395 = vmatpush.msrb.mxu1 %v14022_v32  ;;  %v14061_v12 = vld [vmem:[#allocation642_spill] sm:$0xff]  ;;  %v14062_v21 = vld [vmem:[#allocation676_spill] sm:$0xff] }
 0x788   :  { %4416 = vmatpush.msrb.mxu2 %v14023_v5  ;;  %4435 = vmatpush.msrb.mxu3 %v14024_v10  ;;  %v14063_v32 = vld [vmem:[#allocation706_spill] sm:$0xff]  ;;  %v14064_v5 = vld [vmem:[#allocation740_spill] sm:$0xff] }
 0x789   :  { %4377 = vmatpush.msrb.mxu0 %v14025_v55  ;;  %4396 = vmatpush.msrb.mxu1 %v14026_v45  ;;  %v14065_v10 = vld [vmem:[#allocation640_spill] sm:$0xff]  ;;  %v14066_v55 = vld [vmem:[#allocation674_spill] sm:$0xff] }
 0x78a   :  { %4417 = vmatpush.msrb.mxu2 %v14027_v1  ;;  %4436 = vmatpush.msrb.mxu3 %v14028_v25  ;;  %v14067_v45 = vld [vmem:[#allocation704_spill] sm:$0xff]  ;;  %v14068_v1 = vld [vmem:[#allocation738_spill] sm:$0xff] }
 0x78b   :  { %4378 = vmatpush.msrb.mxu0 %v14029_v33  ;;  %4397 = vmatpush.msrb.mxu1 %v14030_v36  ;;  %v14069_v25 = vld [vmem:[#allocation638_spill] sm:$0xff]  ;;  %v14070_v33 = vld [vmem:[#allocation672_spill] sm:$0xff] }
 0x78c   :  { %4418 = vmatpush.msrb.mxu2 %v14031_v0  ;;  %4437 = vmatpush.msrb.mxu3 %v14032_v2  ;;  %v14071_v36 = vld [vmem:[#allocation702_spill] sm:$0xff]  ;;  %v14072_v0 = vld [vmem:[#allocation736_spill] sm:$0xff] }
 0x78d   :  { %4379 = vmatpush.msrb.mxu0 %v14033_v9  ;;  %4398 = vmatpush.msrb.mxu1 %v14034_v11  ;;  %v14073_v2 = vld [vmem:[#allocation636_spill] sm:$0xff]  ;;  %v14074_v9 = vld [vmem:[#allocation670_spill] sm:$0xff] }
 0x78e   :  { %4419 = vmatpush.msrb.mxu2 %v14035_v16  ;;  %4438 = vmatpush.msrb.mxu3 %v14036_v7  ;;  %v14075_v11 = vld [vmem:[#allocation700_spill] sm:$0xff]  ;;  %v14076_v16 = vld [vmem:[#allocation734_spill] sm:$0xff] }
 0x78f   :  { %4380 = vmatpush.msrb.mxu0 %v14037_v18  ;;  %4399 = vmatpush.msrb.mxu1 %v14038_v17  ;;  %v14077_v7 = vld [vmem:[#allocation634_spill] sm:$0xff]  ;;  %v14078_v18 = vld [vmem:[#allocation668_spill] sm:$0xff] }
 0x790   :  { %4420 = vmatpush.msrb.mxu2 %v14039_v14  ;;  %4439 = vmatpush.msrb.mxu3 %v14040_v19  ;;  %v14079_v17 = vld [vmem:[#allocation698_spill] sm:$0xff]  ;;  %v14080_v14 = vld [vmem:[#allocation732_spill] sm:$0xff] }
 0x791   :  { %4381 = vmatpush.msrb.mxu0 %v14041_v22  ;;  %4400 = vmatpush.msrb.mxu1 %v14042_v24  ;;  %v14081_v19 = vld [vmem:[#allocation632_spill] sm:$0xff]  ;;  %v14082_v22 = vld [vmem:[#allocation666_spill] sm:$0xff] }
 0x792   :  { %4421 = vmatpush.msrb.mxu2 %v14043_v26  ;;  %4440 = vmatpush.msrb.mxu3 %v14044_v27  ;;  %v14083_v24 = vld [vmem:[#allocation696_spill] sm:$0xff]  ;;  %v14084_v26 = vld [vmem:[#allocation730_spill] sm:$0xff] }
 0x793   :  { %4382 = vmatpush.msrb.mxu0 %v14045_v29  ;;  %4401 = vmatpush.msrb.mxu1 %v14046_v30  ;;  %v14085_v27 = vld [vmem:[#allocation630_spill] sm:$0xff]  ;;  %v14086_v29 = vld [vmem:[#allocation664_spill] sm:$0xff] }
 0x794   :  { %4422 = vmatpush.msrb.mxu2 %v14047_v43  ;;  %4441 = vmatpush.msrb.mxu3 %v14048_v46  ;;  %v14087_v30 = vld [vmem:[#allocation694_spill] sm:$0xff]  ;;  %v14088_v43 = vld [vmem:[#allocation728_spill] sm:$0xff] }
 0x795   :  { %4383 = vmatpush.msrb.mxu0 %v14049_v50  ;;  %4402 = vmatpush.msrb.mxu1 %v14050_v51  ;;  %v14089_v46 = vld [vmem:[#allocation628_spill] sm:$0xff]  ;;  %v14090_v50 = vld [vmem:[#allocation662_spill] sm:$0xff] }
 0x796   :  { %4423 = vmatpush.msrb.mxu2 %v14051_v52  ;;  %4442 = vmatpush.msrb.mxu3 %v14052_v54  ;;  %v14091_v51 = vld [vmem:[#allocation692_spill] sm:$0xff]  ;;  %v14092_v52 = vld [vmem:[#allocation726_spill] sm:$0xff] }
 0x797   :  { %4384 = vmatmul.f32.vlgmr.msrb.gmra.mxu0 %v3995_v31  ;;  %4424 = vmatmul.f32.vlgmr.msrb.gmra.mxu2 %v3997_v41  ;;  %v14093_v54 = vld [vmem:[#allocation626_spill] sm:$0xff] }
 0x798   :  { %4448 = vmatpush.msra.mxu0 %v14053_v62  ;;  %4488 = vmatpush.msra.mxu2 %v14054_v63  ;;  %v14094_v62 = vld [vmem:[#allocation660_spill] sm:$0xff]  ;;  %v14095_v63 = vld [vmem:[#allocation690_spill] sm:$0xff] }
 0x799   :  { %4403 = vmatpush.msrb.mxu1 %v14055_v44  ;;  %4443 = vmatpush.msrb.mxu3 %v14056_v23  ;;  %v14096_v44 = vld [vmem:[#allocation724_spill] sm:$0xff] }
 0x79a   :  { %4404 = vmatmul.f32.vlgmr.msrb.gmra.mxu1 %v3996_v56  ;;  %4444 = vmatmul.f32.vlgmr.msrb.gmra.mxu3 %v3998_v61  ;;  %v14097_v23 = vld [vmem:[#allocation624_spill] sm:$0xff] }
 0x79b   :  { %4449 = vmatpush.msra.mxu0 %v14057_v49  ;;  %4468 = vmatpush.msra.mxu1 %v14058_v3  ;;  %v14098_v49 = vld [vmem:[#allocation658_spill] sm:$0xff]  ;;  %v14099_v3 = vld [vmem:[#allocation688_spill] sm:$0xff] }
 0x79c   :  { %4489 = vmatpush.msra.mxu2 %v14059_v34  ;;  %4508 = vmatpush.msra.mxu3 %v14060_v40  ;;  %v14100_v34 = vld [vmem:[#allocation722_spill] sm:$0xff] }
 0x79d   :  { %4450 = vmatpush.msra.mxu0 %v14061_v12  ;;  %4469 = vmatpush.msra.mxu1 %v14062_v21  ;;  %v14101_v40 = vld [vmem:[#allocation622_spill] sm:$0xff]  ;;  %v14102_v12 = vld [vmem:[#allocation656_spill] sm:$0xff] }
 0x79e   :  { %4490 = vmatpush.msra.mxu2 %v14063_v32  ;;  %4509 = vmatpush.msra.mxu3 %v14064_v5  ;;  %v14103_v21 = vld [vmem:[#allocation686_spill] sm:$0xff]  ;;  %v14104_v32 = vld [vmem:[#allocation720_spill] sm:$0xff] }
 0x79f   :  { %4451 = vmatpush.msra.mxu0 %v14065_v10  ;;  %4470 = vmatpush.msra.mxu1 %v14066_v55  ;;  %v14105_v5 = vld [vmem:[#allocation620_spill] sm:$0xff]  ;;  %v14106_v10 = vld [vmem:[#allocation654_spill] sm:$0xff] }
 0x7a0   :  { %4491 = vmatpush.msra.mxu2 %v14067_v45  ;;  %4510 = vmatpush.msra.mxu3 %v14068_v1  ;;  %v14107_v55 = vld [vmem:[#allocation684_spill] sm:$0xff]  ;;  %v14108_v45 = vld [vmem:[#allocation718_spill] sm:$0xff] }
 0x7a1   :  { %4452 = vmatpush.msra.mxu0 %v14069_v25  ;;  %4471 = vmatpush.msra.mxu1 %v14070_v33  ;;  %v14109_v1 = vld [vmem:[#allocation618_spill] sm:$0xff]  ;;  %v14110_v25 = vld [vmem:[#allocation652_spill] sm:$0xff]  ;;  %v3999_v33 = vperm.slane %v11810_v20, 4 }
 0x7a2   :  { %4492 = vmatpush.msra.mxu2 %v14071_v36  ;;  %4511 = vmatpush.msra.mxu3 %v14072_v0  ;;  %v4001_v36 = vperm.slane %v11810_v20, 6  ;;  %v14111_v0 = vld [vmem:[#allocation682_spill] sm:$0xff] }
 0x7a3   :  { %4453 = vmatpush.msra.mxu0 %v14073_v2  ;;  %4472 = vmatpush.msra.mxu1 %v14074_v9  ;;  %v14112_v2 = vld [vmem:[#allocation716_spill] sm:$0xff] }
 0x7a4   :  { %4493 = vmatpush.msra.mxu2 %v14075_v11  ;;  %4512 = vmatpush.msra.mxu3 %v14076_v16  ;;  %v14113_v9 = vld [vmem:[#allocation616_spill] sm:$0xff]  ;;  %v14114_v11 = vld [vmem:[#allocation650_spill] sm:$0xff] }
 0x7a5   :  { %4454 = vmatpush.msra.mxu0 %v14077_v7  ;;  %4473 = vmatpush.msra.mxu1 %v14078_v18  ;;  %v14115_v16 = vld [vmem:[#allocation680_spill] sm:$0xff]  ;;  %v14116_v7 = vld [vmem:[#allocation714_spill] sm:$0xff]  ;;  %v4000_v18 = vperm.slane %v11810_v20, 5 }
 0x7a6   :  { %4494 = vmatpush.msra.mxu2 %v14079_v17  ;;  %4513 = vmatpush.msra.mxu3 %v14080_v14  ;;  %v4002_v17 = vperm.slane %v11810_v20, 7  ;;  %v14117_v14 = vld [vmem:[#allocation774_spill] sm:$0xff]  ;;  %v14641_v20 = vld [vmem:[#allocation769_spill] sm:$0xff] }
 0x7a7   :  { %4455 = vmatpush.msra.mxu0 %v14081_v19  ;;  %4474 = vmatpush.msra.mxu1 %v14082_v22  ;;  %v14118_v19 = vld [vmem:[#allocation838_spill] sm:$0xff]  ;;  %v14119_v22 = vld [vmem:[#allocation648_spill] sm:$0xff] }
 0x7a8   :  { %4495 = vmatpush.msra.mxu2 %v14083_v24  ;;  %4514 = vmatpush.msra.mxu3 %v14084_v26  ;;  %v14120_v24 = vld [vmem:[#allocation712_spill] sm:$0xff] }
 0x7a9   :  { %4456 = vmatpush.msra.mxu0 %v14085_v27  ;;  %4475 = vmatpush.msra.mxu1 %v14086_v29  ;;  %v14121_v26 = vld [vmem:[#allocation772_spill] sm:$0xff]  ;;  %v14122_v27 = vld [vmem:[#allocation806_spill] sm:$0xff] }
 0x7aa   :  { %4496 = vmatpush.msra.mxu2 %v14087_v30  ;;  %4515 = vmatpush.msra.mxu3 %v14088_v43  ;;  %v14123_v29 = vld [vmem:[#allocation836_spill] sm:$0xff]  ;;  %v14124_v30 = vld [vmem:[#allocation870_spill] sm:$0xff] }
 0x7ab   :  { %4457 = vmatpush.msra.mxu0 %v14089_v46  ;;  %4476 = vmatpush.msra.mxu1 %v14090_v50  ;;  %v14125_v43 = vld [vmem:[#allocation770_spill] sm:$0xff]  ;;  %v14126_v46 = vld [vmem:[#allocation804_spill] sm:$0xff] }
 0x7ac   :  { %4497 = vmatpush.msra.mxu2 %v14091_v51  ;;  %4516 = vmatpush.msra.mxu3 %v14092_v52  ;;  %v14127_v50 = vld [vmem:[#allocation834_spill] sm:$0xff]  ;;  %v14128_v51 = vld [vmem:[#allocation868_spill] sm:$0xff] }
 0x7ad   :  { %4458 = vmatpush.msra.mxu0 %v14093_v54  ;;  %4477 = vmatpush.msra.mxu1 %v14094_v62  ;;  %v14129_v52 = vld [vmem:[#allocation768_spill] sm:$0xff]  ;;  %v14130_v54 = vld [vmem:[#allocation802_spill] sm:$0xff] }
 0x7ae   :  { %4498 = vmatpush.msra.mxu2 %v14095_v63  ;;  %4517 = vmatpush.msra.mxu3 %v14096_v44  ;;  %v14131_v62 = vld [vmem:[#allocation832_spill] sm:$0xff]  ;;  %v14132_v63 = vld [vmem:[#allocation866_spill] sm:$0xff] }
 0x7af   :  { %4459 = vmatpush.msra.mxu0 %v14097_v23  ;;  %4478 = vmatpush.msra.mxu1 %v14098_v49  ;;  %v14133_v44 = vld [vmem:[#allocation766_spill] sm:$0xff]  ;;  %v14134_v23 = vld [vmem:[#allocation800_spill] sm:$0xff] }
 0x7b0   :  { %4499 = vmatpush.msra.mxu2 %v14099_v3  ;;  %4518 = vmatpush.msra.mxu3 %v14100_v34  ;;  %v14135_v49 = vld [vmem:[#allocation830_spill] sm:$0xff]  ;;  %v14136_v3 = vld [vmem:[#allocation864_spill] sm:$0xff] }
 0x7b1   :  { %4460 = vmatpush.msra.mxu0 %v14101_v40  ;;  %4479 = vmatpush.msra.mxu1 %v14102_v12  ;;  %v14137_v34 = vld [vmem:[#allocation764_spill] sm:$0xff]  ;;  %v14138_v40 = vld [vmem:[#allocation798_spill] sm:$0xff] }
 0x7b2   :  { %4500 = vmatpush.msra.mxu2 %v14103_v21  ;;  %4519 = vmatpush.msra.mxu3 %v14104_v32  ;;  %v14139_v12 = vld [vmem:[#allocation828_spill] sm:$0xff]  ;;  %v14140_v21 = vld [vmem:[#allocation862_spill] sm:$0xff] }
 0x7b3   :  { %4461 = vmatpush.msra.mxu0 %v14105_v5  ;;  %4480 = vmatpush.msra.mxu1 %v14106_v10  ;;  %v14141_v32 = vld [vmem:[#allocation762_spill] sm:$0xff]  ;;  %v14142_v5 = vld [vmem:[#allocation796_spill] sm:$0xff] }
 0x7b4   :  { %4501 = vmatpush.msra.mxu2 %v14107_v55  ;;  %4520 = vmatpush.msra.mxu3 %v14108_v45  ;;  %v14143_v10 = vld [vmem:[#allocation826_spill] sm:$0xff]  ;;  %v14144_v55 = vld [vmem:[#allocation860_spill] sm:$0xff] }
 0x7b5   :  { %4462 = vmatpush.msra.mxu0 %v14109_v1  ;;  %4481 = vmatpush.msra.mxu1 %v14110_v25  ;;  %v14145_v45 = vld [vmem:[#allocation760_spill] sm:$0xff]  ;;  %v14146_v1 = vld [vmem:[#allocation794_spill] sm:$0xff] }
 0x7b6   :  { %4502 = vmatpush.msra.mxu2 %v14111_v0  ;;  %4521 = vmatpush.msra.mxu3 %v14112_v2  ;;  %v14147_v25 = vld [vmem:[#allocation824_spill] sm:$0xff]  ;;  %v14148_v0 = vld [vmem:[#allocation858_spill] sm:$0xff] }
 0x7b7   :  { %4463 = vmatpush.msra.mxu0 %v14113_v9  ;;  %4482 = vmatpush.msra.mxu1 %v14114_v11  ;;  %v14149_v2 = vld [vmem:[#allocation758_spill] sm:$0xff]  ;;  %v14150_v9 = vld [vmem:[#allocation792_spill] sm:$0xff] }
 0x7b8   :  { %4503 = vmatpush.msra.mxu2 %v14115_v16  ;;  %4522 = vmatpush.msra.mxu3 %v14116_v7  ;;  %v14151_v11 = vld [vmem:[#allocation822_spill] sm:$0xff]  ;;  %v14152_v16 = vld [vmem:[#allocation856_spill] sm:$0xff] }
 0x7b9   :  { %4464 = vmatmul.f32.vlgmr.msra.gmra.mxu0 %v3999_v33  ;;  %4504 = vmatmul.f32.vlgmr.msra.gmra.mxu2 %v4001_v36  ;;  %v14153_v7 = vld [vmem:[#allocation756_spill] sm:$0xff] }
 0x7ba   :  { %4528 = vmatpush.msrb.mxu0 %v14117_v14  ;;  %4568 = vmatpush.msrb.mxu2 %v14118_v19  ;;  %v14154_v14 = vld [vmem:[#allocation790_spill] sm:$0xff]  ;;  %v14155_v19 = vld [vmem:[#allocation820_spill] sm:$0xff] }
 0x7bb   :  { %4483 = vmatpush.msra.mxu1 %v14119_v22  ;;  %4523 = vmatpush.msra.mxu3 %v14120_v24  ;;  %v14156_v22 = vld [vmem:[#allocation854_spill] sm:$0xff] }
 0x7bc   :  { %4484 = vmatmul.f32.vlgmr.msra.gmra.mxu1 %v4000_v18  ;;  %4524 = vmatmul.f32.vlgmr.msra.gmra.mxu3 %v4002_v17  ;;  %v14157_v24 = vld [vmem:[#allocation754_spill] sm:$0xff] }
 0x7bd   :  { %4529 = vmatpush.msrb.mxu0 %v14121_v26  ;;  %4548 = vmatpush.msrb.mxu1 %v14122_v27  ;;  %v14158_v26 = vld [vmem:[#allocation788_spill] sm:$0xff]  ;;  %v14159_v27 = vld [vmem:[#allocation818_spill] sm:$0xff] }
 0x7be   :  { %4569 = vmatpush.msrb.mxu2 %v14123_v29  ;;  %4588 = vmatpush.msrb.mxu3 %v14124_v30  ;;  %v14160_v29 = vld [vmem:[#allocation852_spill] sm:$0xff] }
 0x7bf   :  { %4530 = vmatpush.msrb.mxu0 %v14125_v43  ;;  %4549 = vmatpush.msrb.mxu1 %v14126_v46  ;;  %v14161_v30 = vld [vmem:[#allocation752_spill] sm:$0xff]  ;;  %v14162_v43 = vld [vmem:[#allocation786_spill] sm:$0xff] }
 0x7c0   :  { %4570 = vmatpush.msrb.mxu2 %v14127_v50  ;;  %4589 = vmatpush.msrb.mxu3 %v14128_v51  ;;  %v14163_v46 = vld [vmem:[#allocation816_spill] sm:$0xff]  ;;  %v14164_v50 = vld [vmem:[#allocation850_spill] sm:$0xff] }
 0x7c1   :  { %4531 = vmatpush.msrb.mxu0 %v14129_v52  ;;  %4550 = vmatpush.msrb.mxu1 %v14130_v54  ;;  %v14165_v51 = vld [vmem:[#allocation750_spill] sm:$0xff]  ;;  %v14166_v52 = vld [vmem:[#allocation784_spill] sm:$0xff] }
 0x7c2   :  { %4571 = vmatpush.msrb.mxu2 %v14131_v62  ;;  %4590 = vmatpush.msrb.mxu3 %v14132_v63  ;;  %v14167_v54 = vld [vmem:[#allocation814_spill] sm:$0xff]  ;;  %v14168_v62 = vld [vmem:[#allocation848_spill] sm:$0xff] }
 0x7c3   :  { %4532 = vmatpush.msrb.mxu0 %v14133_v44  ;;  %4551 = vmatpush.msrb.mxu1 %v14134_v23  ;;  %v11964_v63 = vld [vmem:[#allocation3 + $0x18] sm:$0xff]  ;;  %v14169_v44 = vld [vmem:[#allocation748_spill] sm:$0xff] }
 0x7c4   :  { %4572 = vmatpush.msrb.mxu2 %v14135_v49  ;;  %4591 = vmatpush.msrb.mxu3 %v14136_v3  ;;  %v14170_v23 = vld [vmem:[#allocation782_spill] sm:$0xff]  ;;  %v14171_v49 = vld [vmem:[#allocation812_spill] sm:$0xff] }
 0x7c5   :  { %4533 = vmatpush.msrb.mxu0 %v14137_v34  ;;  %4552 = vmatpush.msrb.mxu1 %v14138_v40  ;;  %v14172_v3 = vld [vmem:[#allocation846_spill] sm:$0xff]  ;;  %v14174_v40 = vld [vmem:[#allocation780_spill] sm:$0xff] }
 0x7c6   :  { %4573 = vmatpush.msrb.mxu2 %v14139_v12  ;;  %4592 = vmatpush.msrb.mxu3 %v14140_v21  ;;  %v14173_v34 = vld [vmem:[#allocation746_spill] sm:$0xff]  ;;  %v4003_v12 = vperm.slane %v11964_v63, 0  ;;  %v4005_v21 = vperm.slane %v11964_v63, 2 }
 0x7c7   :  { %4534 = vmatpush.msrb.mxu0 %v14141_v32  ;;  %4553 = vmatpush.msrb.mxu1 %v14142_v5  ;;  %v14175_v32 = vld [vmem:[#allocation810_spill] sm:$0xff]  ;;  %v14176_v5 = vld [vmem:[#allocation844_spill] sm:$0xff] }
 0x7c8   :  { %4574 = vmatpush.msrb.mxu2 %v14143_v10  ;;  %4593 = vmatpush.msrb.mxu3 %v14144_v55  ;;  %v14177_v10 = vld [vmem:[#allocation744_spill] sm:$0xff]  ;;  %v14178_v55 = vld [vmem:[#allocation778_spill] sm:$0xff] }
 0x7c9   :  { %4535 = vmatpush.msrb.mxu0 %v14145_v45  ;;  %4554 = vmatpush.msrb.mxu1 %v14146_v1  ;;  %v14179_v45 = vld [vmem:[#allocation808_spill] sm:$0xff]  ;;  %v14180_v1 = vld [vmem:[#allocation842_spill] sm:$0xff] }
 0x7ca   :  { %4575 = vmatpush.msrb.mxu2 %v14147_v25  ;;  %4594 = vmatpush.msrb.mxu3 %v14148_v0  ;;  %v4004_v25 = vperm.slane %v11964_v63, 1  ;;  %v4006_v0 = vperm.slane %v11964_v63, 3 }
 0x7cb   :  { %4536 = vmatpush.msrb.mxu0 %v14149_v2  ;;  %4555 = vmatpush.msrb.mxu1 %v14150_v9  ;;  %v14181_v2 = vld [vmem:[#allocation902_spill] sm:$0xff] }
 0x7cc   :  { %4576 = vmatpush.msrb.mxu2 %v14151_v11  ;;  %4595 = vmatpush.msrb.mxu3 %v14152_v16  ;;  %v14182_v9 = vld [vmem:[#allocation966_spill] sm:$0xff]  ;;  %v14183_v11 = vld [vmem:[#allocation776_spill] sm:$0xff] }
 0x7cd   :  { %4537 = vmatpush.msrb.mxu0 %v14153_v7  ;;  %4556 = vmatpush.msrb.mxu1 %v14154_v14  ;;  %v14184_v16 = vld [vmem:[#allocation840_spill] sm:$0xff]  ;;  %v14186_v14 = vld [vmem:[#allocation934_spill] sm:$0xff] }
 0x7ce   :  { %4577 = vmatpush.msrb.mxu2 %v14155_v19  ;;  %4596 = vmatpush.msrb.mxu3 %v14156_v22  ;;  %v14185_v7 = vld [vmem:[#allocation900_spill] sm:$0xff]  ;;  %v14188_v22 = vld [vmem:[#allocation998_spill] sm:$0xff] }
 0x7cf   :  { %4538 = vmatpush.msrb.mxu0 %v14157_v24  ;;  %4557 = vmatpush.msrb.mxu1 %v14158_v26  ;;  %v14187_v19 = vld [vmem:[#allocation964_spill] sm:$0xff]  ;;  %v14189_v24 = vld [vmem:[#allocation898_spill] sm:$0xff] }
 0x7d0   :  { %4578 = vmatpush.msrb.mxu2 %v14159_v27  ;;  %4597 = vmatpush.msrb.mxu3 %v14160_v29  ;;  %v14190_v26 = vld [vmem:[#allocation932_spill] sm:$0xff]  ;;  %v14191_v27 = vld [vmem:[#allocation962_spill] sm:$0xff] }
 0x7d1   :  { %4539 = vmatpush.msrb.mxu0 %v14161_v30  ;;  %4558 = vmatpush.msrb.mxu1 %v14162_v43  ;;  %v14192_v29 = vld [vmem:[#allocation996_spill] sm:$0xff]  ;;  %v14194_v43 = vld [vmem:[#allocation930_spill] sm:$0xff] }
 0x7d2   :  { %4579 = vmatpush.msrb.mxu2 %v14163_v46  ;;  %4598 = vmatpush.msrb.mxu3 %v14164_v50  ;;  %v14193_v30 = vld [vmem:[#allocation896_spill] sm:$0xff]  ;;  %v14196_v50 = vld [vmem:[#allocation994_spill] sm:$0xff] }
 0x7d3   :  { %4540 = vmatpush.msrb.mxu0 %v14165_v51  ;;  %4559 = vmatpush.msrb.mxu1 %v14166_v52  ;;  %v14195_v46 = vld [vmem:[#allocation960_spill] sm:$0xff]  ;;  %v14197_v51 = vld [vmem:[#allocation894_spill] sm:$0xff] }
 0x7d4   :  { %4580 = vmatpush.msrb.mxu2 %v14167_v54  ;;  %4599 = vmatpush.msrb.mxu3 %v14168_v62  ;;  %v14198_v52 = vld [vmem:[#allocation928_spill] sm:$0xff]  ;;  %v14199_v54 = vld [vmem:[#allocation958_spill] sm:$0xff] }
 0x7d5   :  { %4541 = vmatpush.msrb.mxu0 %v14169_v44  ;;  %4560 = vmatpush.msrb.mxu1 %v14170_v23  ;;  %v14200_v62 = vld [vmem:[#allocation992_spill] sm:$0xff]  ;;  %v14202_v23 = vld [vmem:[#allocation926_spill] sm:$0xff] }
 0x7d6   :  { %4581 = vmatpush.msrb.mxu2 %v14171_v49  ;;  %4600 = vmatpush.msrb.mxu3 %v14172_v3  ;;  %v14201_v44 = vld [vmem:[#allocation892_spill] sm:$0xff]  ;;  %v14204_v3 = vld [vmem:[#allocation990_spill] sm:$0xff] }
 0x7d7   :  { %4542 = vmatpush.msrb.mxu0 %v14173_v34  ;;  %4561 = vmatpush.msrb.mxu1 %v14174_v40  ;;  %v14203_v49 = vld [vmem:[#allocation956_spill] sm:$0xff]  ;;  %v14205_v34 = vld [vmem:[#allocation890_spill] sm:$0xff] }
 0x7d8   :  { %4582 = vmatpush.msrb.mxu2 %v14175_v32  ;;  %4601 = vmatpush.msrb.mxu3 %v14176_v5  ;;  %v14206_v40 = vld [vmem:[#allocation924_spill] sm:$0xff]  ;;  %v14207_v32 = vld [vmem:[#allocation954_spill] sm:$0xff] }
 0x7d9   :  { %4543 = vmatpush.msrb.mxu0 %v14177_v10  ;;  %4562 = vmatpush.msrb.mxu1 %v14178_v55  ;;  %v14208_v5 = vld [vmem:[#allocation988_spill] sm:$0xff]  ;;  %v14210_v55 = vld [vmem:[#allocation922_spill] sm:$0xff] }
 0x7da   :  { %4583 = vmatpush.msrb.mxu2 %v14179_v45  ;;  %4602 = vmatpush.msrb.mxu3 %v14180_v1  ;;  %v14209_v10 = vld [vmem:[#allocation888_spill] sm:$0xff]  ;;  %v14212_v1 = vld [vmem:[#allocation986_spill] sm:$0xff] }
 0x7db   :  { %4544 = vmatmul.f32.vlgmr.msrb.gmra.mxu0 %v4003_v12  ;;  %4584 = vmatmul.f32.vlgmr.msrb.gmra.mxu2 %v4005_v21  ;;  %v14211_v45 = vld [vmem:[#allocation952_spill] sm:$0xff] }
 0x7dc   :  { %4608 = vmatpush.msra.mxu0 %v14181_v2  ;;  %4648 = vmatpush.msra.mxu2 %v14182_v9  ;;  %v14213_v2 = vld [vmem:[#allocation886_spill] sm:$0xff]  ;;  %v14214_v9 = vld [vmem:[#allocation920_spill] sm:$0xff] }
 0x7dd   :  { %4563 = vmatpush.msrb.mxu1 %v14183_v11  ;;  %4603 = vmatpush.msrb.mxu3 %v14184_v16  ;;  %v14215_v11 = vld [vmem:[#allocation950_spill] sm:$0xff]  ;;  %v14216_v16 = vld [vmem:[#allocation984_spill] sm:$0xff] }
 0x7de   :  { %4564 = vmatmul.f32.vlgmr.msrb.gmra.mxu1 %v4004_v25  ;;  %4604 = vmatmul.f32.vlgmr.msrb.gmra.mxu3 %v4006_v0 }
 0x7df   :  { %4609 = vmatpush.msra.mxu0 %v14185_v7  ;;  %4628 = vmatpush.msra.mxu1 %v14186_v14  ;;  %v14217_v7 = vld [vmem:[#allocation884_spill] sm:$0xff]  ;;  %v14218_v14 = vld [vmem:[#allocation918_spill] sm:$0xff] }
 0x7e0   :  { %4649 = vmatpush.msra.mxu2 %v14187_v19  ;;  %4668 = vmatpush.msra.mxu3 %v14188_v22  ;;  %v14219_v19 = vld [vmem:[#allocation948_spill] sm:$0xff]  ;;  %v14220_v22 = vld [vmem:[#allocation982_spill] sm:$0xff] }
 0x7e1   :  { %4610 = vmatpush.msra.mxu0 %v14189_v24  ;;  %4629 = vmatpush.msra.mxu1 %v14190_v26  ;;  %v14221_v24 = vld [vmem:[#allocation882_spill] sm:$0xff]  ;;  %v14222_v26 = vld [vmem:[#allocation916_spill] sm:$0xff] }
 0x7e2   :  { %4650 = vmatpush.msra.mxu2 %v14191_v27  ;;  %4669 = vmatpush.msra.mxu3 %v14192_v29  ;;  %v14223_v27 = vld [vmem:[#allocation946_spill] sm:$0xff]  ;;  %v14224_v29 = vld [vmem:[#allocation980_spill] sm:$0xff] }
 0x7e3   :  { %4611 = vmatpush.msra.mxu0 %v14193_v30  ;;  %4630 = vmatpush.msra.mxu1 %v14194_v43  ;;  %v14225_v30 = vld [vmem:[#allocation880_spill] sm:$0xff]  ;;  %v14226_v43 = vld [vmem:[#allocation914_spill] sm:$0xff] }
 0x7e4   :  { %4651 = vmatpush.msra.mxu2 %v14195_v46  ;;  %4670 = vmatpush.msra.mxu3 %v14196_v50  ;;  %v14227_v46 = vld [vmem:[#allocation944_spill] sm:$0xff]  ;;  %v14228_v50 = vld [vmem:[#allocation978_spill] sm:$0xff] }
 0x7e5   :  { %4612 = vmatpush.msra.mxu0 %v14197_v51  ;;  %4631 = vmatpush.msra.mxu1 %v14198_v52  ;;  %v14229_v51 = vld [vmem:[#allocation878_spill] sm:$0xff]  ;;  %v14230_v52 = vld [vmem:[#allocation912_spill] sm:$0xff] }
 0x7e6   :  { %4652 = vmatpush.msra.mxu2 %v14199_v54  ;;  %4671 = vmatpush.msra.mxu3 %v14200_v62  ;;  %v14231_v54 = vld [vmem:[#allocation942_spill] sm:$0xff]  ;;  %v14232_v62 = vld [vmem:[#allocation976_spill] sm:$0xff] }
 0x7e7   :  { %4613 = vmatpush.msra.mxu0 %v14201_v44  ;;  %4632 = vmatpush.msra.mxu1 %v14202_v23  ;;  %v14233_v44 = vld [vmem:[#allocation876_spill] sm:$0xff]  ;;  %v14234_v23 = vld [vmem:[#allocation910_spill] sm:$0xff] }
 0x7e8   :  { %4653 = vmatpush.msra.mxu2 %v14203_v49  ;;  %4672 = vmatpush.msra.mxu3 %v14204_v3  ;;  %v14235_v49 = vld [vmem:[#allocation940_spill] sm:$0xff]  ;;  %v14236_v3 = vld [vmem:[#allocation974_spill] sm:$0xff] }
 0x7e9   :  { %4614 = vmatpush.msra.mxu0 %v14205_v34  ;;  %4633 = vmatpush.msra.mxu1 %v14206_v40  ;;  %v14237_v34 = vld [vmem:[#allocation874_spill] sm:$0xff]  ;;  %v14238_v40 = vld [vmem:[#allocation908_spill] sm:$0xff] }
 0x7ea   :  { %4654 = vmatpush.msra.mxu2 %v14207_v32  ;;  %4673 = vmatpush.msra.mxu3 %v14208_v5  ;;  %v4007_v32 = vperm.slane %v11964_v63, 4  ;;  %v4009_v5 = vperm.slane %v11964_v63, 6 }
 0x7eb   :  { %4615 = vmatpush.msra.mxu0 %v14209_v10  ;;  %4634 = vmatpush.msra.mxu1 %v14210_v55  ;;  %v14239_v10 = vld [vmem:[#allocation938_spill] sm:$0xff]  ;;  %v14240_v55 = vld [vmem:[#allocation972_spill] sm:$0xff] }
 0x7ec   :  { %4655 = vmatpush.msra.mxu2 %v14211_v45  ;;  %4674 = vmatpush.msra.mxu3 %v14212_v1  ;;  %v14241_v45 = vld [vmem:[#allocation872_spill] sm:$0xff]  ;;  %v14242_v1 = vld [vmem:[#allocation906_spill] sm:$0xff] }
 0x7ed   :  { %4616 = vmatpush.msra.mxu0 %v14213_v2  ;;  %4635 = vmatpush.msra.mxu1 %v14214_v9  ;;  %v14243_v2 = vld [vmem:[#allocation936_spill] sm:$0xff]  ;;  %v14244_v9 = vld [vmem:[#allocation970_spill] sm:$0xff] }
 0x7ee   :  { %4656 = vmatpush.msra.mxu2 %v14215_v11  ;;  %4675 = vmatpush.msra.mxu3 %v14216_v16  ;;  %v4008_v11 = vperm.slane %v11964_v63, 5  ;;  %v4010_v16 = vperm.slane %v11964_v63, 7  ;;  %v5340_v63 = vld [vmem:[%s12760_s7 + $0x50] sm:$0xff] }
 0x7ef   :  { %4617 = vmatpush.msra.mxu0 %v14217_v7  ;;  %4636 = vmatpush.msra.mxu1 %v14218_v14  ;;  %v14245_v7 = vld [vmem:[#allocation33_spill] sm:$0xff]  ;;  %v14246_v14 = vld [vmem:[#allocation79_spill] sm:$0xff] }
 0x7f0   :  { %4657 = vmatpush.msra.mxu2 %v14219_v19  ;;  %4676 = vmatpush.msra.mxu3 %v14220_v22  ;;  %v14247_v19 = vld [vmem:[#allocation904_spill] sm:$0xff] }
 0x7f1   :  { %4618 = vmatpush.msra.mxu0 %v14221_v24  ;;  %4637 = vmatpush.msra.mxu1 %v14222_v26  ;;  %v14248_v22 = vld [vmem:[#allocation968_spill] sm:$0xff] }
 0x7f2   :  { %4658 = vmatpush.msra.mxu2 %v14223_v27  ;;  %4677 = vmatpush.msra.mxu3 %v14224_v29  ;;  %v14249_v24 = vld [vmem:[#allocation32_spill] sm:$0xff]  ;;  %v14251_v27 = vld [vmem:[#allocation78_spill] sm:$0xff]  ;;  %v14252_v29 = vld [vmem:[#allocation103_spill] sm:$0xff] }
 0x7f3   :  { %4619 = vmatpush.msra.mxu0 %v14225_v30  ;;  %4638 = vmatpush.msra.mxu1 %v14226_v43  ;;  %v14250_v26 = vld [vmem:[#allocation56_spill] sm:$0xff]  ;;  %v14253_v30 = vld [vmem:[#allocation31_spill] sm:$0xff] }
 0x7f4   :  { %4659 = vmatpush.msra.mxu2 %v14227_v46  ;;  %4678 = vmatpush.msra.mxu3 %v14228_v50  ;;  %v14254_v43 = vld [vmem:[#allocation55_spill] sm:$0xff]  ;;  %v14255_v46 = vld [vmem:[#allocation77_spill] sm:$0xff]  ;;  %v14256_v50 = vld [vmem:[#allocation102_spill] sm:$0xff] }
 0x7f5   :  { %4620 = vmatpush.msra.mxu0 %v14229_v51  ;;  %4639 = vmatpush.msra.mxu1 %v14230_v52  ;;  %v14257_v51 = vld [vmem:[#allocation30_spill] sm:$0xff] }
 0x7f6   :  { %4660 = vmatpush.msra.mxu2 %v14231_v54  ;;  %4679 = vmatpush.msra.mxu3 %v14232_v62  ;;  %v14258_v52 = vld [vmem:[#allocation54_spill] sm:$0xff]  ;;  %v14259_v54 = vld [vmem:[#allocation76_spill] sm:$0xff]  ;;  %v14260_v62 = vld [vmem:[#allocation101_spill] sm:$0xff] }
 0x7f7   :  { %4621 = vmatpush.msra.mxu0 %v14233_v44  ;;  %4640 = vmatpush.msra.mxu1 %v14234_v23  ;;  %v14261_v44 = vld [vmem:[#allocation29_spill] sm:$0xff] }
 0x7f8   :  { %4661 = vmatpush.msra.mxu2 %v14235_v49  ;;  %4680 = vmatpush.msra.mxu3 %v14236_v3  ;;  %v14262_v23 = vld [vmem:[#allocation53_spill] sm:$0xff]  ;;  %v14263_v49 = vld [vmem:[#allocation75_spill] sm:$0xff]  ;;  %v14264_v3 = vld [vmem:[#allocation100_spill] sm:$0xff] }
 0x7f9   :  { %4622 = vmatpush.msra.mxu0 %v14237_v34  ;;  %4641 = vmatpush.msra.mxu1 %v14238_v40  ;;  %v14265_v34 = vld [vmem:[#allocation28_spill] sm:$0xff] }
 0x7fa   :  { %4662 = vmatpush.msra.mxu2 %v14239_v10  ;;  %4681 = vmatpush.msra.mxu3 %v14240_v55  ;;  %v14266_v40 = vld [vmem:[#allocation52_spill] sm:$0xff]  ;;  %v14267_v10 = vld [vmem:[#allocation74_spill] sm:$0xff]  ;;  %v14268_v55 = vld [vmem:[#allocation99_spill] sm:$0xff] }
 0x7fb   :  { %4623 = vmatpush.msra.mxu0 %v14241_v45  ;;  %4642 = vmatpush.msra.mxu1 %v14242_v1  ;;  %v14269_v45 = vld [vmem:[#allocation27_spill] sm:$0xff] }
 0x7fc   :  { %4663 = vmatpush.msra.mxu2 %v14243_v2  ;;  %4682 = vmatpush.msra.mxu3 %v14244_v9  ;;  %v14270_v1 = vld [vmem:[#allocation51_spill] sm:$0xff]  ;;  %v14271_v2 = vld [vmem:[#allocation73_spill] sm:$0xff]  ;;  %v14272_v9 = vld [vmem:[#allocation98_spill] sm:$0xff] }
 0x7fd   :  { %4624 = vmatmul.f32.vlgmr.msra.gmra.mxu0 %v4007_v32  ;;  %4664 = vmatmul.f32.vlgmr.msra.gmra.mxu2 %v4009_v5 }
 0x7fe   :  { %4688 = vmatpush.msrb.mxu0 %v14245_v7  ;;  %4728 = vmatpush.msrb.mxu2 %v14246_v14  ;;  %v14273_v7 = vld [vmem:[#allocation26_spill] sm:$0xff] }
 0x7ff   :  { %4643 = vmatpush.msra.mxu1 %v14247_v19  ;;  %4683 = vmatpush.msra.mxu3 %v14248_v22  ;;  %v14274_v14 = vld [vmem:[#allocation50_spill] sm:$0xff]  ;;  %v14275_v19 = vld [vmem:[#allocation72_spill] sm:$0xff]  ;;  %v14276_v22 = vld [vmem:[#allocation97_spill] sm:$0xff] }
 0x800   :  { %4644 = vmatmul.f32.vlgmr.msra.gmra.mxu1 %v4008_v11  ;;  %4684 = vmatmul.f32.vlgmr.msra.gmra.mxu3 %v4010_v16 }
 0x801   :  { %4689 = vmatpush.msrb.mxu0 %v14249_v24  ;;  %4708 = vmatpush.msrb.mxu1 %v14250_v26  ;;  %v14277_v24 = vld [vmem:[#allocation25_spill] sm:$0xff] }
 0x802   :  { %4729 = vmatpush.msrb.mxu2 %v14251_v27  ;;  %4748 = vmatpush.msrb.mxu3 %v14252_v29  ;;  %v14278_v26 = vld [vmem:[#allocation49_spill] sm:$0xff]  ;;  %v14279_v27 = vld [vmem:[#allocation71_spill] sm:$0xff]  ;;  %v14280_v29 = vld [vmem:[#allocation96_spill] sm:$0xff] }
 0x803   :  { %4690 = vmatpush.msrb.mxu0 %v14253_v30  ;;  %4709 = vmatpush.msrb.mxu1 %v14254_v43  ;;  %v14281_v30 = vld [vmem:[#allocation24_spill] sm:$0xff] }
 0x804   :  { %4730 = vmatpush.msrb.mxu2 %v14255_v46  ;;  %4749 = vmatpush.msrb.mxu3 %v14256_v50  ;;  %v14282_v43 = vld [vmem:[#allocation48_spill] sm:$0xff]  ;;  %v14283_v46 = vld [vmem:[#allocation70_spill] sm:$0xff]  ;;  %v14284_v50 = vld [vmem:[#allocation95_spill] sm:$0xff] }
 0x805   :  { %4691 = vmatpush.msrb.mxu0 %v14257_v51  ;;  %4710 = vmatpush.msrb.mxu1 %v14258_v52  ;;  %v14285_v51 = vld [vmem:[#allocation22_spill] sm:$0xff]  ;;  %v14286_v52 = vld [vmem:[#allocation47_spill] sm:$0xff] }
 0x806   :  { %4731 = vmatpush.msrb.mxu2 %v14259_v54  ;;  %4750 = vmatpush.msrb.mxu3 %v14260_v62  ;;  %v14287_v54 = vld [vmem:[#allocation68_spill] sm:$0xff]  ;;  %v14288_v62 = vld [vmem:[#allocation93_spill] sm:$0xff] }
 0x807   :  { %4692 = vmatpush.msrb.mxu0 %v14261_v44  ;;  %4711 = vmatpush.msrb.mxu1 %v14262_v23  ;;  %v14289_v44 = vld [vmem:[#allocation20_spill] sm:$0xff]  ;;  %v14290_v23 = vld [vmem:[#allocation45_spill] sm:$0xff] }
 0x808   :  { %4732 = vmatpush.msrb.mxu2 %v14263_v49  ;;  %4751 = vmatpush.msrb.mxu3 %v14264_v3  ;;  %v14291_v49 = vld [vmem:[#allocation66_spill] sm:$0xff]  ;;  %v14292_v3 = vld [vmem:[#allocation91_spill] sm:$0xff] }
 0x809   :  { %4693 = vmatpush.msrb.mxu0 %v14265_v34  ;;  %4712 = vmatpush.msrb.mxu1 %v14266_v40  ;;  %v14293_v34 = vld [vmem:[#allocation18_spill] sm:$0xff]  ;;  %v14294_v40 = vld [vmem:[#allocation43_spill] sm:$0xff] }
 0x80a   :  { %4733 = vmatpush.msrb.mxu2 %v14267_v10  ;;  %4752 = vmatpush.msrb.mxu3 %v14268_v55  ;;  %v14295_v10 = vld [vmem:[#allocation64_spill] sm:$0xff]  ;;  %v14296_v55 = vld [vmem:[#allocation89_spill] sm:$0xff] }
 0x80b   :  { %4694 = vmatpush.msrb.mxu0 %v14269_v45  ;;  %4713 = vmatpush.msrb.mxu1 %v14270_v1  ;;  %v14297_v45 = vld [vmem:[#allocation16_spill] sm:$0xff]  ;;  %v14298_v1 = vld [vmem:[#allocation41_spill] sm:$0xff] }
 0x80c   :  { %4734 = vmatpush.msrb.mxu2 %v14271_v2  ;;  %4753 = vmatpush.msrb.mxu3 %v14272_v9  ;;  %v14299_v2 = vld [vmem:[#allocation62_spill] sm:$0xff]  ;;  %v14300_v9 = vld [vmem:[#allocation87_spill] sm:$0xff] }
 0x80d   :  { %4695 = vmatpush.msrb.mxu0 %v14273_v7  ;;  %4714 = vmatpush.msrb.mxu1 %v14274_v14  ;;  %v14301_v7 = vld [vmem:[#allocation14_spill] sm:$0xff]  ;;  %v14302_v14 = vld [vmem:[#allocation39_spill] sm:$0xff] }
 0x80e   :  { %4735 = vmatpush.msrb.mxu2 %v14275_v19  ;;  %4754 = vmatpush.msrb.mxu3 %v14276_v22  ;;  %v14303_v19 = vld [vmem:[#allocation60_spill] sm:$0xff]  ;;  %v14304_v22 = vld [vmem:[#allocation85_spill] sm:$0xff] }
 0x80f   :  { %4696 = vmatpush.msrb.mxu0 %v14277_v24  ;;  %4715 = vmatpush.msrb.mxu1 %v14278_v26  ;;  %v14305_v24 = vld [vmem:[#allocation12_spill] sm:$0xff]  ;;  %v14306_v26 = vld [vmem:[#allocation37_spill] sm:$0xff] }
 0x810   :  { %4736 = vmatpush.msrb.mxu2 %v14279_v27  ;;  %4755 = vmatpush.msrb.mxu3 %v14280_v29  ;;  %v14307_v27 = vld [vmem:[#allocation58_spill] sm:$0xff]  ;;  %v14308_v29 = vld [vmem:[#allocation83_spill] sm:$0xff] }
 0x811   :  { %4697 = vmatpush.msrb.mxu0 %v14281_v30  ;;  %4716 = vmatpush.msrb.mxu1 %v14282_v43  ;;  %v14309_v30 = vld [vmem:[#allocation135_spill] sm:$0xff] }
 0x812   :  { %4737 = vmatpush.msrb.mxu2 %v14283_v46  ;;  %4756 = vmatpush.msrb.mxu3 %v14284_v50  ;;  %v14310_v43 = vld [vmem:[#allocation199_spill] sm:$0xff]  ;;  %v14312_v50 = vld [vmem:[#allocation81_spill] sm:$0xff] }
 0x813   :  { %4698 = vmatpush.msrb.mxu0 %v14285_v51  ;;  %4717 = vmatpush.msrb.mxu1 %v14286_v52  ;;  %v14311_v46 = vld [vmem:[#allocation35_spill] sm:$0xff]  ;;  %v14313_v51 = vld [vmem:[#allocation133_spill] sm:$0xff] }
 0x814   :  { %4738 = vmatpush.msrb.mxu2 %v14287_v54  ;;  %4757 = vmatpush.msrb.mxu3 %v14288_v62  ;;  %v14314_v52 = vld [vmem:[#allocation167_spill] sm:$0xff]  ;;  %v14315_v54 = vld [vmem:[#allocation197_spill] sm:$0xff] }
 0x815   :  { %4699 = vmatpush.msrb.mxu0 %v14289_v44  ;;  %4718 = vmatpush.msrb.mxu1 %v14290_v23  ;;  %v14316_v62 = vld [vmem:[#allocation231_spill] sm:$0xff]  ;;  %v14318_v23 = vld [vmem:[#allocation165_spill] sm:$0xff] }
 0x816   :  { %4739 = vmatpush.msrb.mxu2 %v14291_v49  ;;  %4758 = vmatpush.msrb.mxu3 %v14292_v3  ;;  %v14317_v44 = vld [vmem:[#allocation131_spill] sm:$0xff]  ;;  %v14320_v3 = vld [vmem:[#allocation229_spill] sm:$0xff] }
 0x817   :  { %4700 = vmatpush.msrb.mxu0 %v14293_v34  ;;  %4719 = vmatpush.msrb.mxu1 %v14294_v40  ;;  %v14319_v49 = vld [vmem:[#allocation195_spill] sm:$0xff]  ;;  %v14321_v34 = vld [vmem:[#allocation129_spill] sm:$0xff] }
 0x818   :  { %4740 = vmatpush.msrb.mxu2 %v14295_v10  ;;  %4759 = vmatpush.msrb.mxu3 %v14296_v55  ;;  %v14322_v40 = vld [vmem:[#allocation163_spill] sm:$0xff]  ;;  %v14323_v10 = vld [vmem:[#allocation193_spill] sm:$0xff] }
 0x819   :  { %4701 = vmatpush.msrb.mxu0 %v14297_v45  ;;  %4720 = vmatpush.msrb.mxu1 %v14298_v1  ;;  %v14324_v55 = vld [vmem:[#allocation227_spill] sm:$0xff]  ;;  %v14326_v1 = vld [vmem:[#allocation161_spill] sm:$0xff] }
 0x81a   :  { %4741 = vmatpush.msrb.mxu2 %v14299_v2  ;;  %4760 = vmatpush.msrb.mxu3 %v14300_v9  ;;  %v14325_v45 = vld [vmem:[#allocation127_spill] sm:$0xff]  ;;  %v14328_v9 = vld [vmem:[#allocation225_spill] sm:$0xff] }
 0x81b   :  { %4702 = vmatpush.msrb.mxu0 %v14301_v7  ;;  %4721 = vmatpush.msrb.mxu1 %v14302_v14  ;;  %v14327_v2 = vld [vmem:[#allocation191_spill] sm:$0xff]  ;;  %v14329_v7 = vld [vmem:[#allocation125_spill] sm:$0xff] }
 0x81c   :  { %4742 = vmatpush.msrb.mxu2 %v14303_v19  ;;  %4761 = vmatpush.msrb.mxu3 %v14304_v22  ;;  %v14330_v14 = vld [vmem:[#allocation159_spill] sm:$0xff]  ;;  %v14331_v19 = vld [vmem:[#allocation189_spill] sm:$0xff] }
 0x81d   :  { %4703 = vmatpush.msrb.mxu0 %v14305_v24  ;;  %4722 = vmatpush.msrb.mxu1 %v14306_v26  ;;  %v14332_v22 = vld [vmem:[#allocation223_spill] sm:$0xff]  ;;  %v14334_v26 = vld [vmem:[#allocation157_spill] sm:$0xff] }
 0x81e   :  { %4743 = vmatpush.msrb.mxu2 %v14307_v27  ;;  %4762 = vmatpush.msrb.mxu3 %v14308_v29  ;;  %v14333_v24 = vld [vmem:[#allocation123_spill] sm:$0xff]  ;;  %v14336_v29 = vld [vmem:[#allocation221_spill] sm:$0xff] }
 0x81f   :  { %4768 = vmatpush.msra.mxu0 %v14309_v30  ;;  %4723 = vmatpush.msrb.mxu1 %v14311_v46  ;;  %v14335_v27 = vld [vmem:[#allocation187_spill] sm:$0xff]  ;;  %v14337_v30 = vld [vmem:[#allocation121_spill] sm:$0xff] }
 0x820   :  { %4808 = vmatpush.msra.mxu2 %v14310_v43  ;;  %4763 = vmatpush.msrb.mxu3 %v14312_v50  ;;  %v14338_v43 = vld [vmem:[#allocation155_spill] sm:$0xff]  ;;  %v14339_v46 = vld [vmem:[#allocation185_spill] sm:$0xff] }
 0x821   :  { %4769 = vmatpush.msra.mxu0 %v14313_v51  ;;  %4788 = vmatpush.msra.mxu1 %v14314_v52  ;;  %v14340_v50 = vld [vmem:[#allocation219_spill] sm:$0xff]  ;;  %v14342_v52 = vld [vmem:[#allocation153_spill] sm:$0xff] }
 0x822   :  { %4809 = vmatpush.msra.mxu2 %v14315_v54  ;;  %4828 = vmatpush.msra.mxu3 %v14316_v62  ;;  %v14341_v51 = vld [vmem:[#allocation119_spill] sm:$0xff]  ;;  %v14344_v62 = vld [vmem:[#allocation217_spill] sm:$0xff] }
 0x823   :  { %4770 = vmatpush.msra.mxu0 %v14317_v44  ;;  %4789 = vmatpush.msra.mxu1 %v14318_v23  ;;  %v14343_v54 = vld [vmem:[#allocation183_spill] sm:$0xff]  ;;  %v14345_v44 = vld [vmem:[#allocation117_spill] sm:$0xff] }
 0x824   :  { %4810 = vmatpush.msra.mxu2 %v14319_v49  ;;  %4829 = vmatpush.msra.mxu3 %v14320_v3  ;;  %v14346_v23 = vld [vmem:[#allocation151_spill] sm:$0xff]  ;;  %v14347_v49 = vld [vmem:[#allocation181_spill] sm:$0xff] }
 0x825   :  { %4771 = vmatpush.msra.mxu0 %v14321_v34  ;;  %4790 = vmatpush.msra.mxu1 %v14322_v40  ;;  %v14348_v3 = vld [vmem:[#allocation215_spill] sm:$0xff]  ;;  %v14350_v40 = vld [vmem:[#allocation149_spill] sm:$0xff] }
 0x826   :  { %4811 = vmatpush.msra.mxu2 %v14323_v10  ;;  %4830 = vmatpush.msra.mxu3 %v14324_v55  ;;  %v14349_v34 = vld [vmem:[#allocation115_spill] sm:$0xff]  ;;  %v14352_v55 = vld [vmem:[#allocation213_spill] sm:$0xff] }
 0x827   :  { %4772 = vmatpush.msra.mxu0 %v14325_v45  ;;  %4791 = vmatpush.msra.mxu1 %v14326_v1  ;;  %v14351_v10 = vld [vmem:[#allocation179_spill] sm:$0xff]  ;;  %v14353_v45 = vld [vmem:[#allocation113_spill] sm:$0xff] }
 0x828   :  { %4812 = vmatpush.msra.mxu2 %v14327_v2  ;;  %4831 = vmatpush.msra.mxu3 %v14328_v9  ;;  %v14354_v1 = vld [vmem:[#allocation147_spill] sm:$0xff]  ;;  %v14355_v2 = vld [vmem:[#allocation177_spill] sm:$0xff] }
 0x829   :  { %4773 = vmatpush.msra.mxu0 %v14329_v7  ;;  %4792 = vmatpush.msra.mxu1 %v14330_v14  ;;  %v14356_v9 = vld [vmem:[#allocation211_spill] sm:$0xff]  ;;  %v14358_v14 = vld [vmem:[#allocation145_spill] sm:$0xff] }
 0x82a   :  { %4813 = vmatpush.msra.mxu2 %v14331_v19  ;;  %4832 = vmatpush.msra.mxu3 %v14332_v22  ;;  %v14357_v7 = vld [vmem:[#allocation111_spill] sm:$0xff]  ;;  %v14360_v22 = vld [vmem:[#allocation209_spill] sm:$0xff] }
 0x82b   :  { %4774 = vmatpush.msra.mxu0 %v14333_v24  ;;  %4793 = vmatpush.msra.mxu1 %v14334_v26  ;;  %v14359_v19 = vld [vmem:[#allocation175_spill] sm:$0xff]  ;;  %v14361_v24 = vld [vmem:[#allocation109_spill] sm:$0xff] }
 0x82c   :  { %4814 = vmatpush.msra.mxu2 %v14335_v27  ;;  %4833 = vmatpush.msra.mxu3 %v14336_v29  ;;  %v14362_v26 = vld [vmem:[#allocation143_spill] sm:$0xff]  ;;  %v14363_v27 = vld [vmem:[#allocation173_spill] sm:$0xff] }
 0x82d   :  { %4775 = vmatpush.msra.mxu0 %v14337_v30  ;;  %4794 = vmatpush.msra.mxu1 %v14338_v43  ;;  %v14364_v29 = vld [vmem:[#allocation207_spill] sm:$0xff]  ;;  %v14366_v43 = vld [vmem:[#allocation141_spill] sm:$0xff] }
 0x82e   :  { %4815 = vmatpush.msra.mxu2 %v14339_v46  ;;  %4834 = vmatpush.msra.mxu3 %v14340_v50  ;;  %v14365_v30 = vld [vmem:[#allocation107_spill] sm:$0xff]  ;;  %v14368_v50 = vld [vmem:[#allocation205_spill] sm:$0xff] }
 0x82f   :  { %4776 = vmatpush.msra.mxu0 %v14341_v51  ;;  %4795 = vmatpush.msra.mxu1 %v14342_v52  ;;  %v14367_v46 = vld [vmem:[#allocation171_spill] sm:$0xff]  ;;  %v14369_v51 = vld [vmem:[#allocation105_spill] sm:$0xff] }
 0x830   :  { %4816 = vmatpush.msra.mxu2 %v14343_v54  ;;  %4835 = vmatpush.msra.mxu3 %v14344_v62  ;;  %v14370_v52 = vld [vmem:[#allocation139_spill] sm:$0xff]  ;;  %v14371_v54 = vld [vmem:[#allocation169_spill] sm:$0xff] }
 0x831   :  { %4777 = vmatpush.msra.mxu0 %v14345_v44  ;;  %4796 = vmatpush.msra.mxu1 %v14346_v23  ;;  %v14372_v62 = vld [vmem:[#allocation203_spill] sm:$0xff] }
 0x832   :  { %4817 = vmatpush.msra.mxu2 %v14347_v49  ;;  %4836 = vmatpush.msra.mxu3 %v14348_v3  ;;  %v14373_v44 = vld [vmem:[#allocation263_spill] sm:$0xff]  ;;  %v14375_v49 = vld [vmem:[#allocation137_spill] sm:$0xff] }
 0x833   :  { %4778 = vmatpush.msra.mxu0 %v14349_v34  ;;  %4797 = vmatpush.msra.mxu1 %v14350_v40  ;;  %v14374_v23 = vld [vmem:[#allocation327_spill] sm:$0xff]  ;;  %v14376_v3 = vld [vmem:[#allocation201_spill] sm:$0xff] }
 0x834   :  { %4818 = vmatpush.msra.mxu2 %v14351_v10  ;;  %4837 = vmatpush.msra.mxu3 %v14352_v55  ;;  %v14377_v34 = vld [vmem:[#allocation261_spill] sm:$0xff]  ;;  %v14381_v10 = vld [vmem:[#allocation259_spill] sm:$0xff] }
 0x835   :  { %4779 = vmatpush.msra.mxu0 %v14353_v45  ;;  %4798 = vmatpush.msra.mxu1 %v14354_v1  ;;  %v14379_v40 = vld [vmem:[#allocation325_spill] sm:$0xff]  ;;  %v14383_v45 = vld [vmem:[#allocation323_spill] sm:$0xff] }
 0x836   :  { %4819 = vmatpush.msra.mxu2 %v14355_v2  ;;  %4838 = vmatpush.msra.mxu3 %v14356_v9  ;;  %v14382_v55 = vld [vmem:[#allocation293_spill] sm:$0xff]  ;;  %v14386_v2 = vld [vmem:[#allocation291_spill] sm:$0xff] }
 0x837   :  { %4780 = vmatpush.msra.mxu0 %v14357_v7  ;;  %4799 = vmatpush.msra.mxu1 %v14358_v14  ;;  %v14384_v1 = vld [vmem:[#allocation357_spill] sm:$0xff]  ;;  %v14388_v9 = vld [vmem:[#allocation355_spill] sm:$0xff] }
 0x838   :  { %4820 = vmatpush.msra.mxu2 %v14359_v19  ;;  %4839 = vmatpush.msra.mxu3 %v14360_v22  ;;  %v14389_v7 = vld [vmem:[#allocation255_spill] sm:$0xff]  ;;  %v14390_v14 = vld [vmem:[#allocation289_spill] sm:$0xff] }
 0x839   :  { %4781 = vmatpush.msra.mxu0 %v14361_v24  ;;  %4800 = vmatpush.msra.mxu1 %v14362_v26  ;;  %v14391_v19 = vld [vmem:[#allocation319_spill] sm:$0xff]  ;;  %v14392_v22 = vld [vmem:[#allocation353_spill] sm:$0xff] }
 0x83a   :  { %4821 = vmatpush.msra.mxu2 %v14363_v27  ;;  %4840 = vmatpush.msra.mxu3 %v14364_v29  ;;  %v14393_v24 = vld [vmem:[#allocation253_spill] sm:$0xff]  ;;  %v14394_v26 = vld [vmem:[#allocation287_spill] sm:$0xff] }
 0x83b   :  { %4782 = vmatpush.msra.mxu0 %v14365_v30  ;;  %4801 = vmatpush.msra.mxu1 %v14366_v43  ;;  %v14395_v27 = vld [vmem:[#allocation317_spill] sm:$0xff]  ;;  %v14397_v29 = vld [vmem:[#allocation251_spill] sm:$0xff] }
 0x83c   :  { %4822 = vmatpush.msra.mxu2 %v14367_v46  ;;  %4841 = vmatpush.msra.mxu3 %v14368_v50  ;;  %v14398_v30 = vld [vmem:[#allocation285_spill] sm:$0xff]  ;;  %v14399_v43 = vld [vmem:[#allocation315_spill] sm:$0xff] }
 0x83d   :  { %4783 = vmatpush.msra.mxu0 %v14369_v51  ;;  %4802 = vmatpush.msra.mxu1 %v14370_v52  ;;  %v14402_v46 = vld [vmem:[#allocation283_spill] sm:$0xff]  ;;  %v14403_v50 = vld [vmem:[#allocation313_spill] sm:$0xff] }
 0x83e   :  { %4823 = vmatpush.msra.mxu2 %v14371_v54  ;;  %4842 = vmatpush.msra.mxu3 %v14372_v62  ;;  %v14404_v51 = vld [vmem:[#allocation347_spill] sm:$0xff]  ;;  %v14408_v54 = vld [vmem:[#allocation345_spill] sm:$0xff] }
 0x83f   :  { %4704 = vmatmul.f32.vlgmr.msrb.gmra.mxu0 %v3979_v47  ;;  %4744 = vmatmul.f32.vlgmr.msrb.gmra.mxu2 %v3981_v48  ;;  %v14378_v47 = vld [vmem:[#allocation295_spill] sm:$0xff]  ;;  %v14409_v62 = vld [vmem:[#allocation245_spill] sm:$0xff] }
 0x840   :  { %4848 = vmatpush.msrb.mxu0 %v14373_v44  ;;  %4888 = vmatpush.msrb.mxu2 %v14374_v23  ;;  %v14380_v48 = vld [vmem:[#allocation359_spill] sm:$0xff]  ;;  %v14411_v23 = vld [vmem:[#allocation309_spill] sm:$0xff] }
 0x841   :  { %4803 = vmatpush.msra.mxu1 %v14375_v49  ;;  %4843 = vmatpush.msra.mxu3 %v14376_v3  ;;  %v14405_v52 = vld [vmem:[#allocation247_spill] sm:$0xff] }
 0x842   :  { %4724 = vmatmul.f32.vlgmr.msrb.gmra.mxu1 %v3980_v58  ;;  %4764 = vmatmul.f32.vlgmr.msrb.gmra.mxu3 %v3982_v60  ;;  %v14385_v58 = vld [vmem:[#allocation257_spill] sm:$0xff]  ;;  %v14410_v44 = vld [vmem:[#allocation279_spill] sm:$0xff] }
 0x843   :  { %4849 = vmatpush.msrb.mxu0 %v14377_v34  ;;  %4868 = vmatpush.msrb.mxu1 %v14378_v47  ;;  %v14387_v60 = vld [vmem:[#allocation321_spill] sm:$0xff]  ;;  %v14412_v49 = vld [vmem:[#allocation343_spill] sm:$0xff] }
 0x844   :  { %4889 = vmatpush.msrb.mxu2 %v14379_v40  ;;  %4908 = vmatpush.msrb.mxu3 %v14380_v48  ;;  %v14413_v3 = vld [vmem:[#allocation243_spill] sm:$0xff]  ;;  %v14414_v34 = vld [vmem:[#allocation277_spill] sm:$0xff] }
 0x845   :  { %4850 = vmatpush.msrb.mxu0 %v14381_v10  ;;  %4869 = vmatpush.msrb.mxu1 %v14382_v55  ;;  %v14415_v47 = vld [vmem:[#allocation307_spill] sm:$0xff]  ;;  %v14416_v40 = vld [vmem:[#allocation341_spill] sm:$0xff] }
 0x846   :  { %4890 = vmatpush.msrb.mxu2 %v14383_v45  ;;  %4909 = vmatpush.msrb.mxu3 %v14384_v1  ;;  %v14417_v48 = vld [vmem:[#allocation241_spill] sm:$0xff]  ;;  %v14418_v10 = vld [vmem:[#allocation275_spill] sm:$0xff] }
 0x847   :  { %4851 = vmatpush.msrb.mxu0 %v14385_v58  ;;  %4870 = vmatpush.msrb.mxu1 %v14386_v2  ;;  %v14419_v55 = vld [vmem:[#allocation305_spill] sm:$0xff]  ;;  %v14420_v45 = vld [vmem:[#allocation339_spill] sm:$0xff] }
 0x848   :  { %4891 = vmatpush.msrb.mxu2 %v14387_v60  ;;  %4910 = vmatpush.msrb.mxu3 %v14388_v9  ;;  %v14421_v1 = vld [vmem:[#allocation239_spill] sm:$0xff]  ;;  %v14422_v58 = vld [vmem:[#allocation273_spill] sm:$0xff] }
 0x849   :  { %4824 = vmatmul.f32.vlgmr.msra.gmra.mxu2 %v3985_v6  ;;  %4852 = vmatpush.msrb.mxu0 %v14389_v7  ;;  %v14396_v6 = vld [vmem:[#allocation351_spill] sm:$0xff]  ;;  %v14424_v60 = vld [vmem:[#allocation337_spill] sm:$0xff] }
 0x84a   :  { %4871 = vmatpush.msrb.mxu1 %v14390_v14  ;;  %4892 = vmatpush.msrb.mxu2 %v14391_v19  ;;  %v14423_v2 = vld [vmem:[#allocation303_spill] sm:$0xff]  ;;  %v14425_v9 = vld [vmem:[#allocation237_spill] sm:$0xff] }
 0x84b   :  { %4911 = vmatpush.msrb.mxu3 %v14392_v22  ;;  %4784 = vmatmul.f32.vlgmr.msra.gmra.mxu0 %v3983_v42  ;;  %v14400_v42 = vld [vmem:[#allocation349_spill] sm:$0xff]  ;;  %v14426_v7 = vld [vmem:[#allocation271_spill] sm:$0xff] }
 0x84c   :  { %4844 = vmatmul.f32.vlgmr.msra.gmra.mxu3 %v3986_v4  ;;  %4853 = vmatpush.msrb.mxu0 %v14393_v24  ;;  %v14401_v4 = vld [vmem:[#allocation249_spill] sm:$0xff]  ;;  %v14428_v19 = vld [vmem:[#allocation335_spill] sm:$0xff] }
 0x84d   :  { %4872 = vmatpush.msrb.mxu1 %v14394_v26  ;;  %4893 = vmatpush.msrb.mxu2 %v14395_v27  ;;  %v14427_v14 = vld [vmem:[#allocation301_spill] sm:$0xff]  ;;  %v14429_v22 = vld [vmem:[#allocation235_spill] sm:$0xff] }
 0x84e   :  { %4912 = vmatpush.msrb.mxu3 %v14396_v6  ;;  %4804 = vmatmul.f32.vlgmr.msra.gmra.mxu1 %v3984_v39  ;;  %v14407_v39 = vld [vmem:[#allocation311_spill] sm:$0xff]  ;;  %v14430_v24 = vld [vmem:[#allocation269_spill] sm:$0xff] }
 0x84f   :  { %4854 = vmatpush.msrb.mxu0 %v14397_v29  ;;  %4873 = vmatpush.msrb.mxu1 %v14398_v30  ;;  %v14431_v26 = vld [vmem:[#allocation299_spill] sm:$0xff]  ;;  %v14432_v27 = vld [vmem:[#allocation333_spill] sm:$0xff] }
 0x850   :  { %4894 = vmatpush.msrb.mxu2 %v14399_v43  ;;  %4913 = vmatpush.msrb.mxu3 %v14400_v42  ;;  %v14433_v6 = vld [vmem:[#allocation233_spill] sm:$0xff]  ;;  %v14434_v29 = vld [vmem:[#allocation267_spill] sm:$0xff] }
 0x851   :  { %4855 = vmatpush.msrb.mxu0 %v14401_v4  ;;  %4874 = vmatpush.msrb.mxu1 %v14402_v46  ;;  %v14435_v30 = vld [vmem:[#allocation297_spill] sm:$0xff]  ;;  %v14436_v43 = vld [vmem:[#allocation331_spill] sm:$0xff] }
 0x852   :  { %4895 = vmatpush.msrb.mxu2 %v14403_v50  ;;  %4914 = vmatpush.msrb.mxu3 %v14404_v51  ;;  %v14437_v42 = vld [vmem:[#allocation391_spill] sm:$0xff]  ;;  %v14439_v46 = vld [vmem:[#allocation265_spill] sm:$0xff] }
 0x853   :  { %4856 = vmatpush.msrb.mxu0 %v14405_v52  ;;  %4875 = vmatpush.msrb.mxu1 %v14406_v28  ;;  %v14438_v4 = vld [vmem:[#allocation455_spill] sm:$0xff]  ;;  %v14440_v50 = vld [vmem:[#allocation329_spill] sm:$0xff] }
 0x854   :  { %4896 = vmatpush.msrb.mxu2 %v14407_v39  ;;  %4915 = vmatpush.msrb.mxu3 %v14408_v54  ;;  %v14441_v51 = vld [vmem:[#allocation389_spill] sm:$0xff]  ;;  %v14445_v28 = vld [vmem:[#allocation387_spill] sm:$0xff] }
 0x855   :  { %4857 = vmatpush.msrb.mxu0 %v14409_v62  ;;  %4876 = vmatpush.msrb.mxu1 %v14410_v44  ;;  %v14443_v52 = vld [vmem:[#allocation453_spill] sm:$0xff]  ;;  %v14447_v54 = vld [vmem:[#allocation451_spill] sm:$0xff] }
 0x856   :  { %4897 = vmatpush.msrb.mxu2 %v14411_v23  ;;  %4916 = vmatpush.msrb.mxu3 %v14412_v49  ;;  %v14446_v39 = vld [vmem:[#allocation421_spill] sm:$0xff]  ;;  %v14450_v44 = vld [vmem:[#allocation419_spill] sm:$0xff] }
 0x857   :  { %4858 = vmatpush.msrb.mxu0 %v14413_v3  ;;  %4877 = vmatpush.msrb.mxu1 %v14414_v34  ;;  %v14448_v62 = vld [vmem:[#allocation485_spill] sm:$0xff]  ;;  %v14452_v23 = vld [vmem:[#allocation483_spill] sm:$0xff] }
 0x858   :  { %4898 = vmatpush.msrb.mxu2 %v14415_v47  ;;  %4917 = vmatpush.msrb.mxu3 %v14416_v40  ;;  %v14453_v49 = vld [vmem:[#allocation383_spill] sm:$0xff]  ;;  %v14454_v3 = vld [vmem:[#allocation417_spill] sm:$0xff] }
 0x859   :  { %4859 = vmatpush.msrb.mxu0 %v14417_v48  ;;  %4878 = vmatpush.msrb.mxu1 %v14418_v10  ;;  %v14455_v34 = vld [vmem:[#allocation447_spill] sm:$0xff]  ;;  %v14456_v47 = vld [vmem:[#allocation481_spill] sm:$0xff] }
 0x85a   :  { %4899 = vmatpush.msrb.mxu2 %v14419_v55  ;;  %4918 = vmatpush.msrb.mxu3 %v14420_v45  ;;  %v14457_v40 = vld [vmem:[#allocation381_spill] sm:$0xff]  ;;  %v14458_v48 = vld [vmem:[#allocation415_spill] sm:$0xff] }
 0x85b   :  { %4860 = vmatpush.msrb.mxu0 %v14421_v1  ;;  %4879 = vmatpush.msrb.mxu1 %v14422_v58  ;;  %v14459_v10 = vld [vmem:[#allocation445_spill] sm:$0xff]  ;;  %v14460_v55 = vld [vmem:[#allocation479_spill] sm:$0xff] }
 0x85c   :  { %4900 = vmatpush.msrb.mxu2 %v14423_v2  ;;  %4919 = vmatpush.msrb.mxu3 %v14424_v60  ;;  %v14461_v45 = vld [vmem:[#allocation379_spill] sm:$0xff]  ;;  %v14462_v1 = vld [vmem:[#allocation413_spill] sm:$0xff] }
 0x85d   :  { %4861 = vmatpush.msrb.mxu0 %v14425_v9  ;;  %4880 = vmatpush.msrb.mxu1 %v14426_v7  ;;  %v14463_v58 = vld [vmem:[#allocation443_spill] sm:$0xff]  ;;  %v14464_v2 = vld [vmem:[#allocation477_spill] sm:$0xff] }
 0x85e   :  { %4901 = vmatpush.msrb.mxu2 %v14427_v14  ;;  %4920 = vmatpush.msrb.mxu3 %v14428_v19  ;;  %v14465_v60 = vld [vmem:[#allocation377_spill] sm:$0xff]  ;;  %v14466_v9 = vld [vmem:[#allocation411_spill] sm:$0xff] }
 0x85f   :  { %4862 = vmatpush.msrb.mxu0 %v14429_v22  ;;  %4881 = vmatpush.msrb.mxu1 %v14430_v24  ;;  %v14467_v7 = vld [vmem:[#allocation441_spill] sm:$0xff]  ;;  %v14468_v14 = vld [vmem:[#allocation475_spill] sm:$0xff] }
 0x860   :  { %4902 = vmatpush.msrb.mxu2 %v14431_v26  ;;  %4921 = vmatpush.msrb.mxu3 %v14432_v27  ;;  %v14469_v19 = vld [vmem:[#allocation375_spill] sm:$0xff]  ;;  %v14470_v22 = vld [vmem:[#allocation409_spill] sm:$0xff] }
 0x861   :  { %4863 = vmatpush.msrb.mxu0 %v14433_v6  ;;  %4882 = vmatpush.msrb.mxu1 %v14434_v29  ;;  %v14471_v24 = vld [vmem:[#allocation439_spill] sm:$0xff]  ;;  %v14472_v26 = vld [vmem:[#allocation473_spill] sm:$0xff] }
 0x862   :  { %4903 = vmatpush.msrb.mxu2 %v14435_v30  ;;  %4922 = vmatpush.msrb.mxu3 %v14436_v43  ;;  %v14473_v27 = vld [vmem:[#allocation373_spill] sm:$0xff]  ;;  %v14474_v6 = vld [vmem:[#allocation407_spill] sm:$0xff] }
 0x863   :  { %4864 = vmatmul.f32.vlgmr.msrb.gmra.mxu0 %v3987_v59  ;;  %4904 = vmatmul.f32.vlgmr.msrb.gmra.mxu2 %v3989_v38  ;;  %v14442_v59 = vld [vmem:[#allocation423_spill] sm:$0xff]  ;;  %v14475_v29 = vld [vmem:[#allocation437_spill] sm:$0xff] }
 0x864   :  { %4928 = vmatpush.msra.mxu0 %v14437_v42  ;;  %4968 = vmatpush.msra.mxu2 %v14438_v4  ;;  %v14444_v38 = vld [vmem:[#allocation487_spill] sm:$0xff]  ;;  %v14478_v42 = vld [vmem:[#allocation405_spill] sm:$0xff] }
 0x865   :  { %4883 = vmatpush.msrb.mxu1 %v14439_v46  ;;  %4923 = vmatpush.msrb.mxu3 %v14440_v50  ;;  %v14476_v30 = vld [vmem:[#allocation471_spill] sm:$0xff]  ;;  %v14480_v46 = vld [vmem:[#allocation469_spill] sm:$0xff] }
 0x866   :  { %4884 = vmatmul.f32.vlgmr.msrb.gmra.mxu1 %v3988_v8  ;;  %4924 = vmatmul.f32.vlgmr.msrb.gmra.mxu3 %v3990_v57  ;;  %v14449_v8 = vld [vmem:[#allocation385_spill] sm:$0xff]  ;;  %v14477_v43 = vld [vmem:[#allocation371_spill] sm:$0xff] }
 0x867   :  { %4929 = vmatpush.msra.mxu0 %v14441_v51  ;;  %4948 = vmatpush.msra.mxu1 %v14442_v59  ;;  %v14451_v57 = vld [vmem:[#allocation449_spill] sm:$0xff]  ;;  %v14479_v4 = vld [vmem:[#allocation435_spill] sm:$0xff] }
 0x868   :  { %4969 = vmatpush.msra.mxu2 %v14443_v52  ;;  %4988 = vmatpush.msra.mxu3 %v14444_v38  ;;  %v14481_v50 = vld [vmem:[#allocation369_spill] sm:$0xff]  ;;  %v14482_v51 = vld [vmem:[#allocation403_spill] sm:$0xff] }
 0x869   :  { %4930 = vmatpush.msra.mxu0 %v14445_v28  ;;  %4949 = vmatpush.msra.mxu1 %v14446_v39  ;;  %v14483_v59 = vld [vmem:[#allocation433_spill] sm:$0xff]  ;;  %v14484_v52 = vld [vmem:[#allocation467_spill] sm:$0xff] }
 0x86a   :  { %4970 = vmatpush.msra.mxu2 %v14447_v54  ;;  %4989 = vmatpush.msra.mxu3 %v14448_v62  ;;  %v14485_v38 = vld [vmem:[#allocation367_spill] sm:$0xff]  ;;  %v14486_v28 = vld [vmem:[#allocation401_spill] sm:$0xff] }
 0x86b   :  { %4931 = vmatpush.msra.mxu0 %v14449_v8  ;;  %4950 = vmatpush.msra.mxu1 %v14450_v44  ;;  %v14487_v39 = vld [vmem:[#allocation431_spill] sm:$0xff]  ;;  %v14488_v54 = vld [vmem:[#allocation465_spill] sm:$0xff] }
 0x86c   :  { %4971 = vmatpush.msra.mxu2 %v14451_v57  ;;  %4990 = vmatpush.msra.mxu3 %v14452_v23  ;;  %v14489_v62 = vld [vmem:[#allocation365_spill] sm:$0xff]  ;;  %v14490_v8 = vld [vmem:[#allocation399_spill] sm:$0xff] }
 0x86d   :  { %4932 = vmatpush.msra.mxu0 %v14453_v49  ;;  %4951 = vmatpush.msra.mxu1 %v14454_v3  ;;  %v14491_v44 = vld [vmem:[#allocation429_spill] sm:$0xff]  ;;  %v14492_v57 = vld [vmem:[#allocation463_spill] sm:$0xff] }
 0x86e   :  { %4972 = vmatpush.msra.mxu2 %v14455_v34  ;;  %4991 = vmatpush.msra.mxu3 %v14456_v47  ;;  %v14493_v23 = vld [vmem:[#allocation363_spill] sm:$0xff]  ;;  %v14494_v49 = vld [vmem:[#allocation397_spill] sm:$0xff] }
 0x86f   :  { %4933 = vmatpush.msra.mxu0 %v14457_v40  ;;  %4952 = vmatpush.msra.mxu1 %v14458_v48  ;;  %v14495_v3 = vld [vmem:[#allocation427_spill] sm:$0xff]  ;;  %v14496_v34 = vld [vmem:[#allocation461_spill] sm:$0xff] }
 0x870   :  { %4973 = vmatpush.msra.mxu2 %v14459_v10  ;;  %4992 = vmatpush.msra.mxu3 %v14460_v55  ;;  %v14497_v47 = vld [vmem:[#allocation361_spill] sm:$0xff]  ;;  %v14498_v40 = vld [vmem:[#allocation395_spill] sm:$0xff] }
 0x871   :  { %4934 = vmatpush.msra.mxu0 %v14461_v45  ;;  %4953 = vmatpush.msra.mxu1 %v14462_v1  ;;  %v14499_v48 = vld [vmem:[#allocation425_spill] sm:$0xff]  ;;  %v14500_v10 = vld [vmem:[#allocation459_spill] sm:$0xff] }
 0x872   :  { %4974 = vmatpush.msra.mxu2 %v14463_v58  ;;  %4993 = vmatpush.msra.mxu3 %v14464_v2  ;;  %v14501_v55 = vld [vmem:[#allocation519_spill] sm:$0xff]  ;;  %v14503_v1 = vld [vmem:[#allocation393_spill] sm:$0xff] }
 0x873   :  { %4935 = vmatpush.msra.mxu0 %v14465_v60  ;;  %4954 = vmatpush.msra.mxu1 %v14466_v9  ;;  %v14502_v45 = vld [vmem:[#allocation583_spill] sm:$0xff]  ;;  %v14504_v58 = vld [vmem:[#allocation457_spill] sm:$0xff] }
 0x874   :  { %4975 = vmatpush.msra.mxu2 %v14467_v7  ;;  %4994 = vmatpush.msra.mxu3 %v14468_v14  ;;  %v14505_v2 = vld [vmem:[#allocation517_spill] sm:$0xff]  ;;  %v14509_v9 = vld [vmem:[#allocation515_spill] sm:$0xff] }
 0x875   :  { %4936 = vmatpush.msra.mxu0 %v14469_v19  ;;  %4955 = vmatpush.msra.mxu1 %v14470_v22  ;;  %v14507_v60 = vld [vmem:[#allocation581_spill] sm:$0xff]  ;;  %v14511_v14 = vld [vmem:[#allocation579_spill] sm:$0xff] }
 0x876   :  { %4976 = vmatpush.msra.mxu2 %v14471_v24  ;;  %4995 = vmatpush.msra.mxu3 %v14472_v26  ;;  %v14510_v7 = vld [vmem:[#allocation549_spill] sm:$0xff]  ;;  %v14516_v22 = vld [vmem:[#allocation611_spill] sm:$0xff] }
 0x877   :  { %4937 = vmatpush.msra.mxu0 %v14473_v27  ;;  %4956 = vmatpush.msra.mxu1 %v14474_v6  ;;  %v14512_v19 = vld [vmem:[#allocation613_spill] sm:$0xff]  ;;  %v14517_v24 = vld [vmem:[#allocation511_spill] sm:$0xff] }
 0x878   :  { %4977 = vmatpush.msra.mxu2 %v14475_v29  ;;  %4996 = vmatpush.msra.mxu3 %v14476_v30  ;;  %v14518_v26 = vld [vmem:[#allocation545_spill] sm:$0xff]  ;;  %v14519_v27 = vld [vmem:[#allocation575_spill] sm:$0xff] }
 0x879   :  { %4938 = vmatpush.msra.mxu0 %v14477_v43  ;;  %4957 = vmatpush.msra.mxu1 %v14478_v42  ;;  %v14520_v6 = vld [vmem:[#allocation609_spill] sm:$0xff]  ;;  %v14522_v30 = vld [vmem:[#allocation543_spill] sm:$0xff] }
 0x87a   :  { %4978 = vmatpush.msra.mxu2 %v14479_v4  ;;  %4997 = vmatpush.msra.mxu3 %v14480_v46  ;;  %v14521_v29 = vld [vmem:[#allocation509_spill] sm:$0xff]  ;;  %v14524_v42 = vld [vmem:[#allocation607_spill] sm:$0xff] }
 0x87b   :  { %4939 = vmatpush.msra.mxu0 %v14481_v50  ;;  %4958 = vmatpush.msra.mxu1 %v14482_v51  ;;  %v14523_v43 = vld [vmem:[#allocation573_spill] sm:$0xff]  ;;  %v14525_v4 = vld [vmem:[#allocation507_spill] sm:$0xff] }
 0x87c   :  { %4979 = vmatpush.msra.mxu2 %v14483_v59  ;;  %4998 = vmatpush.msra.mxu3 %v14484_v52  ;;  %v14526_v46 = vld [vmem:[#allocation541_spill] sm:$0xff]  ;;  %v14527_v50 = vld [vmem:[#allocation571_spill] sm:$0xff] }
 0x87d   :  { %4940 = vmatpush.msra.mxu0 %v14485_v38  ;;  %4959 = vmatpush.msra.mxu1 %v14486_v28  ;;  %v14528_v51 = vld [vmem:[#allocation605_spill] sm:$0xff]  ;;  %v14530_v52 = vld [vmem:[#allocation539_spill] sm:$0xff] }
 0x87e   :  { %4980 = vmatpush.msra.mxu2 %v14487_v39  ;;  %4999 = vmatpush.msra.mxu3 %v14488_v54  ;;  %v14529_v59 = vld [vmem:[#allocation505_spill] sm:$0xff]  ;;  %v14532_v28 = vld [vmem:[#allocation603_spill] sm:$0xff] }
 0x87f   :  { %4941 = vmatpush.msra.mxu0 %v14489_v62  ;;  %4960 = vmatpush.msra.mxu1 %v14490_v8  ;;  %v14531_v38 = vld [vmem:[#allocation569_spill] sm:$0xff]  ;;  %v14533_v39 = vld [vmem:[#allocation503_spill] sm:$0xff] }
 0x880   :  { %4981 = vmatpush.msra.mxu2 %v14491_v44  ;;  %5000 = vmatpush.msra.mxu3 %v14492_v57  ;;  %v14534_v54 = vld [vmem:[#allocation537_spill] sm:$0xff]  ;;  %v14535_v62 = vld [vmem:[#allocation567_spill] sm:$0xff] }
 0x881   :  { %4942 = vmatpush.msra.mxu0 %v14493_v23  ;;  %4961 = vmatpush.msra.mxu1 %v14494_v49  ;;  %v14536_v8 = vld [vmem:[#allocation601_spill] sm:$0xff]  ;;  %v14538_v57 = vld [vmem:[#allocation535_spill] sm:$0xff] }
 0x882   :  { %4982 = vmatpush.msra.mxu2 %v14495_v3  ;;  %5001 = vmatpush.msra.mxu3 %v14496_v34  ;;  %v14537_v44 = vld [vmem:[#allocation501_spill] sm:$0xff]  ;;  %v14540_v49 = vld [vmem:[#allocation599_spill] sm:$0xff] }
 0x883   :  { %4943 = vmatpush.msra.mxu0 %v14497_v47  ;;  %4962 = vmatpush.msra.mxu1 %v14498_v40  ;;  %v14539_v23 = vld [vmem:[#allocation565_spill] sm:$0xff]  ;;  %v14541_v3 = vld [vmem:[#allocation499_spill] sm:$0xff] }
 0x884   :  { %4983 = vmatpush.msra.mxu2 %v14499_v48  ;;  %5002 = vmatpush.msra.mxu3 %v14500_v10  ;;  %v14542_v34 = vld [vmem:[#allocation533_spill] sm:$0xff]  ;;  %v14543_v47 = vld [vmem:[#allocation563_spill] sm:$0xff] }
 0x885   :  { %4944 = vmatmul.f32.vlgmr.msra.gmra.mxu0 %v3991_v37  ;;  %4984 = vmatmul.f32.vlgmr.msra.gmra.mxu2 %v3993_v35  ;;  %v14506_v37 = vld [vmem:[#allocation551_spill] sm:$0xff]  ;;  %v14544_v40 = vld [vmem:[#allocation597_spill] sm:$0xff] }
 0x886   :  { %5008 = vmatpush.msrb.mxu0 %v14501_v55  ;;  %5048 = vmatpush.msrb.mxu2 %v14502_v45  ;;  %v14508_v35 = vld [vmem:[#allocation615_spill] sm:$0xff]  ;;  %v14545_v48 = vld [vmem:[#allocation497_spill] sm:$0xff] }
 0x887   :  { %4963 = vmatpush.msra.mxu1 %v14503_v1  ;;  %5003 = vmatpush.msra.mxu3 %v14504_v58  ;;  %v14546_v10 = vld [vmem:[#allocation531_spill] sm:$0xff]  ;;  %v14547_v55 = vld [vmem:[#allocation561_spill] sm:$0xff] }
 0x888   :  { %4964 = vmatmul.f32.vlgmr.msra.gmra.mxu1 %v3992_v13  ;;  %5004 = vmatmul.f32.vlgmr.msra.gmra.mxu3 %v3994_v15  ;;  %v14513_v13 = vld [vmem:[#allocation513_spill] sm:$0xff]  ;;  %v14548_v45 = vld [vmem:[#allocation595_spill] sm:$0xff] }
 0x889   :  { %5009 = vmatpush.msrb.mxu0 %v14505_v2  ;;  %5028 = vmatpush.msrb.mxu1 %v14506_v37  ;;  %v14515_v15 = vld [vmem:[#allocation577_spill] sm:$0xff]  ;;  %v14549_v1 = vld [vmem:[#allocation495_spill] sm:$0xff] }
 0x88a   :  { %5049 = vmatpush.msrb.mxu2 %v14507_v60  ;;  %5068 = vmatpush.msrb.mxu3 %v14508_v35  ;;  %v14550_v58 = vld [vmem:[#allocation529_spill] sm:$0xff]  ;;  %v14551_v2 = vld [vmem:[#allocation559_spill] sm:$0xff] }
 0x88b   :  { %5010 = vmatpush.msrb.mxu0 %v14509_v9  ;;  %5029 = vmatpush.msrb.mxu1 %v14510_v7  ;;  %v14552_v37 = vld [vmem:[#allocation593_spill] sm:$0xff]  ;;  %v14554_v35 = vld [vmem:[#allocation527_spill] sm:$0xff] }
 0x88c   :  { %5050 = vmatpush.msrb.mxu2 %v14511_v14  ;;  %5069 = vmatpush.msrb.mxu3 %v14512_v19  ;;  %v14553_v60 = vld [vmem:[#allocation493_spill] sm:$0xff]  ;;  %v14556_v7 = vld [vmem:[#allocation591_spill] sm:$0xff] }
 0x88d   :  { %5011 = vmatpush.msrb.mxu0 %v14513_v13  ;;  %5030 = vmatpush.msrb.mxu1 %v14514_v53  ;;  %v14555_v9 = vld [vmem:[#allocation557_spill] sm:$0xff]  ;;  %v14557_v14 = vld [vmem:[#allocation491_spill] sm:$0xff] }
 0x88e   :  { %5051 = vmatpush.msrb.mxu2 %v14515_v15  ;;  %5070 = vmatpush.msrb.mxu3 %v14516_v22  ;;  %v14558_v19 = vld [vmem:[#allocation525_spill] sm:$0xff]  ;;  %v14559_v13 = vld [vmem:[#allocation555_spill] sm:$0xff] }
 0x88f   :  { %5012 = vmatpush.msrb.mxu0 %v14517_v24  ;;  %5031 = vmatpush.msrb.mxu1 %v14518_v26  ;;  %v14560_v53 = vld [vmem:[#allocation589_spill] sm:$0xff]  ;;  %v14562_v22 = vld [vmem:[#allocation523_spill] sm:$0xff] }
 0x890   :  { %5052 = vmatpush.msrb.mxu2 %v14519_v27  ;;  %5071 = vmatpush.msrb.mxu3 %v14520_v6  ;;  %v14561_v15 = vld [vmem:[#allocation489_spill] sm:$0xff]  ;;  %v14564_v26 = vld [vmem:[#allocation587_spill] sm:$0xff] }
 0x891   :  { %5013 = vmatpush.msrb.mxu0 %v14521_v29  ;;  %5032 = vmatpush.msrb.mxu1 %v14522_v30  ;;  %v14563_v24 = vld [vmem:[#allocation553_spill] sm:$0xff]  ;;  %v14565_v27 = vld [vmem:[#allocation647_spill] sm:$0xff] }
 0x892   :  { %5053 = vmatpush.msrb.mxu2 %v14523_v43  ;;  %5072 = vmatpush.msrb.mxu3 %v14524_v42  ;;  %v14566_v6 = vld [vmem:[#allocation711_spill] sm:$0xff]  ;;  %v14567_v29 = vld [vmem:[#allocation521_spill] sm:$0xff] }
 0x893   :  { %5014 = vmatpush.msrb.mxu0 %v14525_v4  ;;  %5033 = vmatpush.msrb.mxu1 %v14526_v46  ;;  %v14568_v30 = vld [vmem:[#allocation585_spill] sm:$0xff]  ;;  %v14573_v4 = vld [vmem:[#allocation643_spill] sm:$0xff] }
 0x894   :  { %5054 = vmatpush.msrb.mxu2 %v14527_v50  ;;  %5073 = vmatpush.msrb.mxu3 %v14528_v51  ;;  %v14569_v43 = vld [vmem:[#allocation645_spill] sm:$0xff]  ;;  %v14575_v50 = vld [vmem:[#allocation707_spill] sm:$0xff] }
 0x895   :  { %5015 = vmatpush.msrb.mxu0 %v14529_v59  ;;  %5034 = vmatpush.msrb.mxu1 %v14530_v52  ;;  %v14571_v42 = vld [vmem:[#allocation709_spill] sm:$0xff]  ;;  %v14578_v59 = vld [vmem:[#allocation675_spill] sm:$0xff] }
 0x896   :  { %5055 = vmatpush.msrb.mxu2 %v14531_v38  ;;  %5074 = vmatpush.msrb.mxu3 %v14532_v28  ;;  %v14574_v46 = vld [vmem:[#allocation677_spill] sm:$0xff]  ;;  %v14580_v52 = vld [vmem:[#allocation739_spill] sm:$0xff] }
 0x897   :  { %5016 = vmatpush.msrb.mxu0 %v14533_v39  ;;  %5035 = vmatpush.msrb.mxu1 %v14534_v54  ;;  %v14576_v51 = vld [vmem:[#allocation741_spill] sm:$0xff]  ;;  %v14581_v38 = vld [vmem:[#allocation639_spill] sm:$0xff] }
 0x898   :  { %5056 = vmatpush.msrb.mxu2 %v14535_v62  ;;  %5075 = vmatpush.msrb.mxu3 %v14536_v8  ;;  %v14582_v28 = vld [vmem:[#allocation673_spill] sm:$0xff]  ;;  %v14583_v39 = vld [vmem:[#allocation703_spill] sm:$0xff] }
 0x899   :  { %5017 = vmatpush.msrb.mxu0 %v14537_v44  ;;  %5036 = vmatpush.msrb.mxu1 %v14538_v57  ;;  %v14584_v54 = vld [vmem:[#allocation737_spill] sm:$0xff]  ;;  %v14586_v8 = vld [vmem:[#allocation671_spill] sm:$0xff] }
 0x89a   :  { %5057 = vmatpush.msrb.mxu2 %v14539_v23  ;;  %5076 = vmatpush.msrb.mxu3 %v14540_v49  ;;  %v14585_v62 = vld [vmem:[#allocation637_spill] sm:$0xff]  ;;  %v14588_v57 = vld [vmem:[#allocation735_spill] sm:$0xff] }
 0x89b   :  { %5018 = vmatpush.msrb.mxu0 %v14541_v3  ;;  %5037 = vmatpush.msrb.mxu1 %v14542_v34  ;;  %v14587_v44 = vld [vmem:[#allocation701_spill] sm:$0xff]  ;;  %v14589_v23 = vld [vmem:[#allocation635_spill] sm:$0xff] }
 0x89c   :  { %5058 = vmatpush.msrb.mxu2 %v14543_v47  ;;  %5077 = vmatpush.msrb.mxu3 %v14544_v40  ;;  %v14590_v49 = vld [vmem:[#allocation669_spill] sm:$0xff]  ;;  %v14591_v3 = vld [vmem:[#allocation699_spill] sm:$0xff] }
 0x89d   :  { %5019 = vmatpush.msrb.mxu0 %v14545_v48  ;;  %5038 = vmatpush.msrb.mxu1 %v14546_v10  ;;  %v14592_v34 = vld [vmem:[#allocation733_spill] sm:$0xff]  ;;  %v14594_v40 = vld [vmem:[#allocation667_spill] sm:$0xff] }
 0x89e   :  { %5059 = vmatpush.msrb.mxu2 %v14547_v55  ;;  %5078 = vmatpush.msrb.mxu3 %v14548_v45  ;;  %v14593_v47 = vld [vmem:[#allocation633_spill] sm:$0xff]  ;;  %v14596_v10 = vld [vmem:[#allocation731_spill] sm:$0xff] }
 0x89f   :  { %5020 = vmatpush.msrb.mxu0 %v14549_v1  ;;  %5039 = vmatpush.msrb.mxu1 %v14550_v58  ;;  %v14595_v48 = vld [vmem:[#allocation697_spill] sm:$0xff]  ;;  %v14597_v55 = vld [vmem:[#allocation631_spill] sm:$0xff] }
 0x8a0   :  { %5060 = vmatpush.msrb.mxu2 %v14551_v2  ;;  %5079 = vmatpush.msrb.mxu3 %v14552_v37  ;;  %v14598_v45 = vld [vmem:[#allocation665_spill] sm:$0xff]  ;;  %v14599_v1 = vld [vmem:[#allocation695_spill] sm:$0xff] }
 0x8a1   :  { %5021 = vmatpush.msrb.mxu0 %v14553_v60  ;;  %5040 = vmatpush.msrb.mxu1 %v14554_v35  ;;  %v14600_v58 = vld [vmem:[#allocation729_spill] sm:$0xff]  ;;  %v14602_v37 = vld [vmem:[#allocation663_spill] sm:$0xff] }
 0x8a2   :  { %5061 = vmatpush.msrb.mxu2 %v14555_v9  ;;  %5080 = vmatpush.msrb.mxu3 %v14556_v7  ;;  %v14601_v2 = vld [vmem:[#allocation629_spill] sm:$0xff]  ;;  %v14604_v9 = vld [vmem:[#allocation727_spill] sm:$0xff] }
 0x8a3   :  { %5022 = vmatpush.msrb.mxu0 %v14557_v14  ;;  %5041 = vmatpush.msrb.mxu1 %v14558_v19  ;;  %v12467_v60 = vld [vmem:[%s12759_s6] sm:$0x3]  ;;  %v14605_v7 = vld [vmem:[#allocation627_spill] sm:$0xff] }
 0x8a4   :  { %5062 = vmatpush.msrb.mxu2 %v14559_v13  ;;  %5081 = vmatpush.msrb.mxu3 %v14560_v53  ;;  %v14603_v35 = vld [vmem:[#allocation693_spill] sm:$0xff]  ;;  %v14607_v19 = vld [vmem:[#allocation691_spill] sm:$0xff]  ;;  %v4044_v53 = vperm.slane %v12467_v60, 0 }
 0x8a5   :  { %5023 = vmatpush.msrb.mxu0 %v14561_v15  ;;  %5042 = vmatpush.msrb.mxu1 %v14562_v22  ;;  %v14606_v14 = vld [vmem:[#allocation661_spill] sm:$0xff]  ;;  %v14610_v22 = vld [vmem:[#allocation659_spill] sm:$0xff] }
 0x8a6   :  { %5063 = vmatpush.msrb.mxu2 %v14563_v24  ;;  %5082 = vmatpush.msrb.mxu3 %v14564_v26  ;;  %v14608_v13 = vld [vmem:[#allocation725_spill] sm:$0xff]  ;;  %v4065_v24 = vpop.f32.mrf.mxu0 }
 0x8a7   :  { %5024 = vmatmul.f32.vlgmr.msrb.gmra.mxu0 %v3995_v31  ;;  %5064 = vmatmul.f32.vlgmr.msrb.gmra.mxu2 %v3997_v41  ;;  %v14570_v31 = vld [vmem:[#allocation679_spill] sm:$0xff]  ;;  %v14609_v15 = vld [vmem:[#allocation625_spill] sm:$0xff] }
 0x8a8   :  { %5088 = vmatpush.msra.mxu0 %v14565_v27  ;;  %5128 = vmatpush.msra.mxu2 %v14566_v6  ;;  %v14572_v41 = vld [vmem:[#allocation743_spill] sm:$0xff]  ;;  %v14611_v26 = vld [vmem:[#allocation689_spill] sm:$0xff] }
 0x8a9   :  { %5043 = vmatpush.msrb.mxu1 %v14567_v29  ;;  %5083 = vmatpush.msrb.mxu3 %v14568_v30  ;;  %v14612_v27 = vld [vmem:[#allocation723_spill] sm:$0xff]  ;;  %v14614_v29 = vld [vmem:[#allocation657_spill] sm:$0xff] }
 0x8aa   :  { %5044 = vmatmul.f32.vlgmr.msrb.gmra.mxu1 %v3996_v56  ;;  %5084 = vmatmul.f32.vlgmr.msrb.gmra.mxu3 %v3998_v61  ;;  %v14577_v56 = vld [vmem:[#allocation641_spill] sm:$0xff]  ;;  %v14613_v6 = vld [vmem:[#allocation623_spill] sm:$0xff] }
 0x8ab   :  { %5089 = vmatpush.msra.mxu0 %v14569_v43  ;;  %5108 = vmatpush.msra.mxu1 %v14570_v31  ;;  %v14579_v61 = vld [vmem:[#allocation705_spill] sm:$0xff]  ;;  %v14615_v30 = vld [vmem:[#allocation687_spill] sm:$0xff]  ;;  %v4066_v31 = vadd.f32 %v4065_v24, %v4044_v53 }
 0x8ac   :  { %5129 = vmatpush.msra.mxu2 %v14571_v42  ;;  %5148 = vmatpush.msra.mxu3 %v14572_v41  ;;  %v14616_v43 = vld [vmem:[#allocation721_spill] sm:$0xff]  ;;  %v14618_v41 = vld [vmem:[#allocation655_spill] sm:$0xff] }
 0x8ad   :  { %5090 = vmatpush.msra.mxu0 %v14573_v4  ;;  %5109 = vmatpush.msra.mxu1 %v14574_v46  ;;  %v14617_v42 = vld [vmem:[#allocation621_spill] sm:$0xff]  ;;  %v4085_v4 = vpop.f32.mrf.mxu1  ;;  %v14653_v24 = vld [vmem:[#allocation763_spill] sm:$0xff] }
 0x8ae   :  { %5130 = vmatpush.msra.mxu2 %v14575_v50  ;;  %5149 = vmatpush.msra.mxu3 %v14576_v51  ;;  %v14619_v46 = vld [vmem:[#allocation685_spill] sm:$0xff]  ;;  %v14620_v50 = vld [vmem:[#allocation719_spill] sm:$0xff] }
 0x8af   :  { %5091 = vmatpush.msra.mxu0 %v14577_v56  ;;  %5110 = vmatpush.msra.mxu1 %v14578_v59  ;;  %v14621_v51 = vld [vmem:[#allocation619_spill] sm:$0xff]  ;;  %v14622_v56 = vld [vmem:[#allocation653_spill] sm:$0xff] }
 0x8b0   :  { %5131 = vmatpush.msra.mxu2 %v14579_v61  ;;  %5150 = vmatpush.msra.mxu3 %v14580_v52  ;;  %v14623_v59 = vld [vmem:[#allocation683_spill] sm:$0xff]  ;;  %v14624_v61 = vld [vmem:[#allocation717_spill] sm:$0xff]  ;;  %v4086_v52 = vadd.f32 %v4085_v4, %v4066_v31 }
 0x8b1   :  { %5092 = vmatpush.msra.mxu0 %v14581_v38  ;;  %5111 = vmatpush.msra.mxu1 %v14582_v28  ;;  %v14625_v38 = vld [vmem:[#allocation617_spill] sm:$0xff]  ;;  %v14626_v28 = vld [vmem:[#allocation651_spill] sm:$0xff] }
 0x8b2   :  { %5132 = vmatpush.msra.mxu2 %v14583_v39  ;;  %5151 = vmatpush.msra.mxu3 %v14584_v54  ;;  %v4105_v39 = vpop.f32.mrf.mxu2  ;;  %v14627_v54 = vld [vmem:[#allocation681_spill] sm:$0xff]  ;;  %v14661_v4 = vld [vmem:[#allocation759_spill] sm:$0xff] }
 0x8b3   :  { %5093 = vmatpush.msra.mxu0 %v14585_v62  ;;  %5112 = vmatpush.msra.mxu1 %v14586_v8  ;;  %v14628_v62 = vld [vmem:[#allocation715_spill] sm:$0xff]  ;;  %v14651_v53 = vld [vmem:[#allocation829_spill] sm:$0xff] }
 0x8b4   :  { %5133 = vmatpush.msra.mxu2 %v14587_v44  ;;  %5152 = vmatpush.msra.mxu3 %v14588_v57  ;;  %v14629_v8 = vld [vmem:[#allocation775_spill] sm:$0xff]  ;;  %v4106_v57 = vadd.f32 %v4105_v39, %v4086_v52  ;;  %v14659_v31 = vld [vmem:[#allocation825_spill] sm:$0xff] }
 0x8b5   :  { %5094 = vmatpush.msra.mxu0 %v14589_v23  ;;  %5113 = vmatpush.msra.mxu1 %v14590_v49  ;;  %v14630_v44 = vld [vmem:[#allocation839_spill] sm:$0xff]  ;;  %v14631_v23 = vld [vmem:[#allocation649_spill] sm:$0xff] }
 0x8b6   :  { %5134 = vmatpush.msra.mxu2 %v14591_v3  ;;  %5153 = vmatpush.msra.mxu3 %v14592_v34  ;;  %v14632_v49 = vld [vmem:[#allocation713_spill] sm:$0xff]  ;;  %v4125_v3 = vpop.f32.mrf.mxu3  ;;  %v14634_v34 = vld [vmem:[#allocation807_spill] sm:$0xff] }
 0x8b7   :  { %5095 = vmatpush.msra.mxu0 %v14593_v47  ;;  %5114 = vmatpush.msra.mxu1 %v14594_v40  ;;  %v14636_v47 = vld [vmem:[#allocation871_spill] sm:$0xff]  ;;  %v4126_v40 = vadd.f32 %v4125_v3, %v4106_v57 }
 0x8b8   :  { %5135 = vmatpush.msra.mxu2 %v14595_v48  ;;  %5154 = vmatpush.msra.mxu3 %v14596_v10  ;;  %v14637_v48 = vld [vmem:[#allocation771_spill] sm:$0xff]  ;;  %v14638_v10 = vld [vmem:[#allocation805_spill] sm:$0xff] }
 0x8b9   :  { %5096 = vmatpush.msra.mxu0 %v14597_v55  ;;  %5115 = vmatpush.msra.mxu1 %v14598_v45  ;;  %v4145_v55 = vpop.f32.mrf.mxu0  ;;  %v14639_v45 = vld [vmem:[#allocation835_spill] sm:$0xff] }
 0x8ba   :  { %5136 = vmatpush.msra.mxu2 %v14599_v1  ;;  %5155 = vmatpush.msra.mxu3 %v14600_v58  ;;  %v14643_v1 = vld [vmem:[#allocation833_spill] sm:$0xff]  ;;  %v14644_v58 = vld [vmem:[#allocation867_spill] sm:$0xff] }
 0x8bb   :  { %5097 = vmatpush.msra.mxu0 %v14601_v2  ;;  %5116 = vmatpush.msra.mxu1 %v14602_v37  ;;  %v4146_v2 = vadd.f32 %v4145_v55, %v4126_v40  ;;  %v14645_v37 = vld [vmem:[#allocation767_spill] sm:$0xff] }
 0x8bc   :  { %5137 = vmatpush.msra.mxu2 %v14603_v35  ;;  %5156 = vmatpush.msra.mxu3 %v14604_v9  ;;  %v14646_v35 = vld [vmem:[#allocation801_spill] sm:$0xff]  ;;  %v4165_v9 = vpop.f32.mrf.mxu1 }
 0x8bd   :  { %5098 = vmatpush.msra.mxu0 %v14605_v7  ;;  %5117 = vmatpush.msra.mxu1 %v14606_v14  ;;  %v14647_v7 = vld [vmem:[#allocation831_spill] sm:$0xff]  ;;  %v14648_v14 = vld [vmem:[#allocation865_spill] sm:$0xff] }
 0x8be   :  { %5138 = vmatpush.msra.mxu2 %v14607_v19  ;;  %5157 = vmatpush.msra.mxu3 %v14608_v13  ;;  %v14649_v19 = vld [vmem:[#allocation765_spill] sm:$0xff]  ;;  %v14650_v13 = vld [vmem:[#allocation799_spill] sm:$0xff] }
 0x8bf   :  { %5099 = vmatpush.msra.mxu0 %v14609_v15  ;;  %5118 = vmatpush.msra.mxu1 %v14610_v22  ;;  %v14652_v15 = vld [vmem:[#allocation863_spill] sm:$0xff]  ;;  %v4166_v22 = vadd.f32 %v4165_v9, %v4146_v2  ;;  %v14686_v2 = vld [vmem:[#allocation781_spill] sm:$0xff] }
 0x8c0   :  { %5139 = vmatpush.msra.mxu2 %v14611_v26  ;;  %5158 = vmatpush.msra.mxu3 %v14612_v27  ;;  %v14654_v26 = vld [vmem:[#allocation797_spill] sm:$0xff]  ;;  %v4185_v27 = vpop.f32.mrf.mxu2 }
 0x8c1   :  { %5100 = vmatpush.msra.mxu0 %v14613_v6  ;;  %5119 = vmatpush.msra.mxu1 %v14614_v29  ;;  %v14655_v6 = vld [vmem:[#allocation827_spill] sm:$0xff]  ;;  %v14656_v29 = vld [vmem:[#allocation861_spill] sm:$0xff]  ;;  %v4225_v52 = vpop.f32.mrf.mxu0 }
 0x8c2   :  { %5140 = vmatpush.msra.mxu2 %v14615_v30  ;;  %5159 = vmatpush.msra.mxu3 %v14616_v43  ;;  %v14657_v30 = vld [vmem:[#allocation761_spill] sm:$0xff]  ;;  %v14658_v43 = vld [vmem:[#allocation795_spill] sm:$0xff] }
 0x8c3   :  { %5101 = vmatpush.msra.mxu0 %v14617_v42  ;;  %5120 = vmatpush.msra.mxu1 %v14618_v41  ;;  %v14660_v42 = vld [vmem:[#allocation859_spill] sm:$0xff]  ;;  %v4186_v41 = vadd.f32 %v4185_v27, %v4166_v22  ;;  %v14688_v9 = vld [vmem:[#allocation845_spill] sm:$0xff] }
 0x8c4   :  { %5141 = vmatpush.msra.mxu2 %v14619_v46  ;;  %5160 = vmatpush.msra.mxu3 %v14620_v50  ;;  %v14662_v46 = vld [vmem:[#allocation793_spill] sm:$0xff]  ;;  %v4205_v50 = vpop.f32.mrf.mxu3  ;;  %v4245_v3 = vpop.f32.mrf.mxu1  ;;  %v14693_v22 = vld [vmem:[#allocation903_spill] sm:$0xff] }
 0x8c5   :  { %5102 = vmatpush.msra.mxu0 %v14621_v51  ;;  %5121 = vmatpush.msra.mxu1 %v14622_v56  ;;  %v14663_v51 = vld [vmem:[#allocation823_spill] sm:$0xff]  ;;  %v14664_v56 = vld [vmem:[#allocation857_spill] sm:$0xff]  ;;  %v4206_v39 = vadd.f32 %v4205_v50, %v4186_v41 }
 0x8c6   :  { %5142 = vmatpush.msra.mxu2 %v14623_v59  ;;  %5161 = vmatpush.msra.mxu3 %v14624_v61  ;;  %v14665_v59 = vld [vmem:[#allocation757_spill] sm:$0xff]  ;;  %v14666_v61 = vld [vmem:[#allocation791_spill] sm:$0xff] }
 0x8c7   :  { %5103 = vmatpush.msra.mxu0 %v14625_v38  ;;  %5122 = vmatpush.msra.mxu1 %v14626_v28  ;;  %v14667_v38 = vld [vmem:[#allocation821_spill] sm:$0xff]  ;;  %v14668_v28 = vld [vmem:[#allocation855_spill] sm:$0xff]  ;;  %v4226_v57 = vadd.f32 %v4225_v52, %v4206_v39 }
 0x8c8   :  { %5143 = vmatpush.msra.mxu2 %v14627_v54  ;;  %5162 = vmatpush.msra.mxu3 %v14628_v62  ;;  %v14669_v54 = vld [vmem:[#allocation755_spill] sm:$0xff]  ;;  %v14670_v62 = vld [vmem:[#allocation789_spill] sm:$0xff]  ;;  %v4265_v40 = vpop.f32.mrf.mxu2 }
 0x8c9   :  { %5104 = vmatmul.f32.vlgmr.msra.gmra.mxu0 %v3999_v33  ;;  %5144 = vmatmul.f32.vlgmr.msra.gmra.mxu2 %v4001_v36  ;;  %v14633_v33 = vld [vmem:[#allocation773_spill] sm:$0xff]  ;;  %v4246_v55 = vadd.f32 %v4245_v3, %v4226_v57  ;;  %v14701_v41 = vld [vmem:[#allocation899_spill] sm:$0xff] }
 0x8ca   :  { %5168 = vmatpush.msrb.mxu0 %v14629_v8  ;;  %5208 = vmatpush.msrb.mxu2 %v14630_v44  ;;  %v14635_v36 = vld [vmem:[#allocation837_spill] sm:$0xff]  ;;  %v14671_v8 = vld [vmem:[#allocation819_spill] sm:$0xff] }
 0x8cb   :  { %5123 = vmatpush.msra.mxu1 %v14631_v23  ;;  %5163 = vmatpush.msra.mxu3 %v14632_v49  ;;  %v14672_v44 = vld [vmem:[#allocation853_spill] sm:$0xff]  ;;  %v14674_v49 = vld [vmem:[#allocation787_spill] sm:$0xff] }
 0x8cc   :  { %5124 = vmatmul.f32.vlgmr.msra.gmra.mxu1 %v4000_v18  ;;  %5164 = vmatmul.f32.vlgmr.msra.gmra.mxu3 %v4002_v17  ;;  %v14640_v18 = vld [vmem:[#allocation869_spill] sm:$0xff]  ;;  %v14642_v17 = vld [vmem:[#allocation803_spill] sm:$0xff] }
 0x8cd   :  { %5169 = vmatpush.msrb.mxu0 %v14633_v33  ;;  %5188 = vmatpush.msrb.mxu1 %v14634_v34  ;;  %v14673_v23 = vld [vmem:[#allocation753_spill] sm:$0xff]  ;;  %v14676_v34 = vld [vmem:[#allocation851_spill] sm:$0xff] }
 0x8ce   :  { %5209 = vmatpush.msrb.mxu2 %v14635_v36  ;;  %5228 = vmatpush.msrb.mxu3 %v14636_v47  ;;  %v14675_v33 = vld [vmem:[#allocation817_spill] sm:$0xff]  ;;  %v14677_v36 = vld [vmem:[#allocation751_spill] sm:$0xff] }
 0x8cf   :  { %5170 = vmatpush.msrb.mxu0 %v14637_v48  ;;  %5189 = vmatpush.msrb.mxu1 %v14638_v10  ;;  %v14678_v47 = vld [vmem:[#allocation785_spill] sm:$0xff]  ;;  %v14679_v48 = vld [vmem:[#allocation815_spill] sm:$0xff] }
 0x8d0   :  { %5210 = vmatpush.msrb.mxu2 %v14639_v45  ;;  %5229 = vmatpush.msrb.mxu3 %v14640_v18  ;;  %v14680_v10 = vld [vmem:[#allocation849_spill] sm:$0xff]  ;;  %v14682_v18 = vld [vmem:[#allocation783_spill] sm:$0xff] }
 0x8d1   :  { %5171 = vmatpush.msrb.mxu0 %v14641_v20  ;;  %5190 = vmatpush.msrb.mxu1 %v14642_v17  ;;  %v14681_v45 = vld [vmem:[#allocation749_spill] sm:$0xff]  ;;  %v14684_v17 = vld [vmem:[#allocation847_spill] sm:$0xff] }
 0x8d2   :  { %5211 = vmatpush.msrb.mxu2 %v14643_v1  ;;  %5230 = vmatpush.msrb.mxu3 %v14644_v58  ;;  %v14683_v20 = vld [vmem:[#allocation813_spill] sm:$0xff]  ;;  %v4266_v1 = vadd.f32 %v4265_v40, %v4246_v55  ;;  %v14685_v58 = vld [vmem:[#allocation747_spill] sm:$0xff] }
 0x8d3   :  { %5172 = vmatpush.msrb.mxu0 %v14645_v37  ;;  %5191 = vmatpush.msrb.mxu1 %v14646_v35  ;;  %v4285_v37 = vpop.f32.mrf.mxu3  ;;  %v14687_v35 = vld [vmem:[#allocation811_spill] sm:$0xff]  ;;  %v14695_v27 = vld [vmem:[#allocation777_spill] sm:$0xff] }
 0x8d4   :  { %5212 = vmatpush.msrb.mxu2 %v14647_v7  ;;  %5231 = vmatpush.msrb.mxu3 %v14648_v14  ;;  %v14689_v7 = vld [vmem:[#allocation745_spill] sm:$0xff]  ;;  %v14690_v14 = vld [vmem:[#allocation779_spill] sm:$0xff] }
 0x8d5   :  { %5173 = vmatpush.msrb.mxu0 %v14649_v19  ;;  %5192 = vmatpush.msrb.mxu1 %v14650_v13  ;;  %v4305_v19 = vpop.f32.mrf.mxu0  ;;  %v14691_v13 = vld [vmem:[#allocation809_spill] sm:$0xff]  ;;  %v14709_v52 = vld [vmem:[#allocation895_spill] sm:$0xff] }
 0x8d6   :  { %5213 = vmatpush.msrb.mxu2 %v14651_v53  ;;  %5232 = vmatpush.msrb.mxu3 %v14652_v15  ;;  %v14692_v53 = vld [vmem:[#allocation843_spill] sm:$0xff]  ;;  %v4286_v15 = vadd.f32 %v4285_v37, %v4266_v1  ;;  %v14715_v57 = vld [vmem:[#allocation957_spill] sm:$0xff] }
 0x8d7   :  { %5174 = vmatpush.msrb.mxu0 %v14653_v24  ;;  %5193 = vmatpush.msrb.mxu1 %v14654_v26  ;;  %v14694_v24 = vld [vmem:[#allocation967_spill] sm:$0xff]  ;;  %v14721_v40 = vld [vmem:[#allocation889_spill] sm:$0xff] }
 0x8d8   :  { %5214 = vmatpush.msrb.mxu2 %v14655_v6  ;;  %5233 = vmatpush.msrb.mxu3 %v14656_v29  ;;  %v4306_v26 = vadd.f32 %v4305_v19, %v4286_v15  ;;  %v14696_v6 = vld [vmem:[#allocation841_spill] sm:$0xff]  ;;  %v4325_v29 = vpop.f32.mrf.mxu1  ;;  %v14711_v39 = vld [vmem:[#allocation959_spill] sm:$0xff] }
 0x8d9   :  { %5175 = vmatpush.msrb.mxu0 %v14657_v30  ;;  %5194 = vmatpush.msrb.mxu1 %v14658_v43  ;;  %v14698_v30 = vld [vmem:[#allocation935_spill] sm:$0xff]  ;;  %v14699_v43 = vld [vmem:[#allocation965_spill] sm:$0xff] }
 0x8da   :  { %5215 = vmatpush.msrb.mxu2 %v14659_v31  ;;  %5234 = vmatpush.msrb.mxu3 %v14660_v42  ;;  %v14700_v31 = vld [vmem:[#allocation999_spill] sm:$0xff]  ;;  %v4326_v42 = vadd.f32 %v4325_v29, %v4306_v26  ;;  %v14723_v55 = vld [vmem:[#allocation953_spill] sm:$0xff] }
 0x8db   :  { %5176 = vmatpush.msrb.mxu0 %v14661_v4  ;;  %5195 = vmatpush.msrb.mxu1 %v14662_v46  ;;  %v14702_v4 = vld [vmem:[#allocation933_spill] sm:$0xff]  ;;  %v14703_v46 = vld [vmem:[#allocation963_spill] sm:$0xff] }
 0x8dc   :  { %5216 = vmatpush.msrb.mxu2 %v14663_v51  ;;  %5235 = vmatpush.msrb.mxu3 %v14664_v56  ;;  %v14706_v51 = vld [vmem:[#allocation931_spill] sm:$0xff]  ;;  %v4365_v56 = vpop.f32.mrf.mxu3  ;;  %v14729_v37 = vld [vmem:[#allocation885_spill] sm:$0xff] }
 0x8dd   :  { %5177 = vmatpush.msrb.mxu0 %v14665_v59  ;;  %5196 = vmatpush.msrb.mxu1 %v14666_v61  ;;  %v14707_v59 = vld [vmem:[#allocation961_spill] sm:$0xff]  ;;  %v14708_v61 = vld [vmem:[#allocation995_spill] sm:$0xff] }
 0x8de   :  { %5217 = vmatpush.msrb.mxu2 %v14667_v38  ;;  %5236 = vmatpush.msrb.mxu3 %v14668_v28  ;;  %v14710_v38 = vld [vmem:[#allocation929_spill] sm:$0xff]  ;;  %v4385_v28 = vpop.f32.mrf.mxu0  ;;  %v14717_v3 = vld [vmem:[#allocation891_spill] sm:$0xff] }
 0x8df   :  { %5178 = vmatpush.msrb.mxu0 %v14669_v54  ;;  %5197 = vmatpush.msrb.mxu1 %v14670_v62  ;;  %v14712_v54 = vld [vmem:[#allocation993_spill] sm:$0xff]  ;;  %v14727_v1 = vld [vmem:[#allocation951_spill] sm:$0xff] }
 0x8e0   :  { %5218 = vmatpush.msrb.mxu2 %v14671_v8  ;;  %5237 = vmatpush.msrb.mxu3 %v14672_v44  ;;  %v14713_v8 = vld [vmem:[#allocation893_spill] sm:$0xff]  ;;  %v14714_v44 = vld [vmem:[#allocation927_spill] sm:$0xff] }
 0x8e1   :  { %5179 = vmatpush.msrb.mxu0 %v14673_v23  ;;  %5198 = vmatpush.msrb.mxu1 %v14674_v49  ;;  %v14716_v23 = vld [vmem:[#allocation991_spill] sm:$0xff]  ;;  %v14737_v26 = vld [vmem:[#allocation881_spill] sm:$0xff] }
 0x8e2   :  { %5219 = vmatpush.msrb.mxu2 %v14675_v33  ;;  %5238 = vmatpush.msrb.mxu3 %v14676_v34  ;;  %v14718_v33 = vld [vmem:[#allocation925_spill] sm:$0xff]  ;;  %v4405_v34 = vpop.f32.mrf.mxu1  ;;  %v14733_v19 = vld [vmem:[#allocation883_spill] sm:$0xff] }
 0x8e3   :  { %5180 = vmatpush.msrb.mxu0 %v14677_v36  ;;  %5199 = vmatpush.msrb.mxu1 %v14678_v47  ;;  %v14719_v36 = vld [vmem:[#allocation955_spill] sm:$0xff]  ;;  %v14720_v47 = vld [vmem:[#allocation989_spill] sm:$0xff] }
 0x8e4   :  { %5220 = vmatpush.msrb.mxu2 %v14679_v48  ;;  %5239 = vmatpush.msrb.mxu3 %v14680_v10  ;;  %v14722_v48 = vld [vmem:[#allocation923_spill] sm:$0xff] }
 0x8e5   :  { %5181 = vmatpush.msrb.mxu0 %v14681_v45  ;;  %5200 = vmatpush.msrb.mxu1 %v14682_v18  ;;  %v14724_v45 = vld [vmem:[#allocation987_spill] sm:$0xff] }
 0x8e6   :  { %5221 = vmatpush.msrb.mxu2 %v14683_v20  ;;  %5240 = vmatpush.msrb.mxu3 %v14684_v17  ;;  %v14725_v20 = vld [vmem:[#allocation887_spill] sm:$0xff]  ;;  %v14726_v17 = vld [vmem:[#allocation921_spill] sm:$0xff] }
 0x8e7   :  { %5182 = vmatpush.msrb.mxu0 %v14685_v58  ;;  %5201 = vmatpush.msrb.mxu1 %v14686_v2  ;;  %v14728_v58 = vld [vmem:[#allocation985_spill] sm:$0xff]  ;;  %v14735_v15 = vld [vmem:[#allocation947_spill] sm:$0xff] }
 0x8e8   :  { %5222 = vmatpush.msrb.mxu2 %v14687_v35  ;;  %5241 = vmatpush.msrb.mxu3 %v14688_v9  ;;  %v14730_v35 = vld [vmem:[#allocation919_spill] sm:$0xff]  ;;  %v4445_v9 = vpop.f32.mrf.mxu3 }
 0x8e9   :  { %5183 = vmatpush.msrb.mxu0 %v14689_v7  ;;  %5202 = vmatpush.msrb.mxu1 %v14690_v14  ;;  %v14731_v7 = vld [vmem:[#allocation949_spill] sm:$0xff]  ;;  %v14732_v14 = vld [vmem:[#allocation983_spill] sm:$0xff] }
 0x8ea   :  { %5223 = vmatpush.msrb.mxu2 %v14691_v13  ;;  %5242 = vmatpush.msrb.mxu3 %v14692_v53  ;;  %v14734_v13 = vld [vmem:[#allocation917_spill] sm:$0xff]  ;;  %v4465_v53 = vpop.f32.mrf.mxu0  ;;  %v14740_v29 = vld [vmem:[#allocation979_spill] sm:$0xff] }
 0x8eb   :  { %5184 = vmatmul.f32.vlgmr.msrb.gmra.mxu0 %v4003_v12  ;;  %5224 = vmatmul.f32.vlgmr.msrb.gmra.mxu2 %v4005_v21  ;;  %v14697_v12 = vld [vmem:[#allocation901_spill] sm:$0xff]  ;;  %v4345_v21 = vpop.f32.mrf.mxu2 }
 0x8ec   :  { %5248 = vmatpush.msra.mxu0 %v14693_v22  ;;  %5288 = vmatpush.msra.mxu2 %v14694_v24  ;;  %v4346_v50 = vadd.f32 %v4345_v21, %v4326_v42  ;;  %v14736_v22 = vld [vmem:[#allocation981_spill] sm:$0xff] }
 0x8ed   :  { %5203 = vmatpush.msrb.mxu1 %v14695_v27  ;;  %5243 = vmatpush.msrb.mxu3 %v14696_v6  ;;  %v14738_v27 = vld [vmem:[#allocation915_spill] sm:$0xff]  ;;  %v14739_v6 = vld [vmem:[#allocation945_spill] sm:$0xff] }
 0x8ee   :  { %5204 = vmatmul.f32.vlgmr.msrb.gmra.mxu1 %v4004_v25  ;;  %5244 = vmatmul.f32.vlgmr.msrb.gmra.mxu3 %v4006_v0  ;;  %v14704_v25 = vld [vmem:[#allocation997_spill] sm:$0xff]  ;;  %v4366_v62 = vadd.f32 %v4365_v56, %v4346_v50  ;;  %v14748_v50 = vld [vmem:[#allocation975_spill] sm:$0xff] }
 0x8ef   :  { %5249 = vmatpush.msra.mxu0 %v14697_v12  ;;  %5268 = vmatpush.msra.mxu1 %v14698_v30  ;;  %v14705_v0 = vld [vmem:[#allocation897_spill] sm:$0xff]  ;;  %v14741_v30 = vld [vmem:[#allocation879_spill] sm:$0xff] }
 0x8f0   :  { %5289 = vmatpush.msra.mxu2 %v14699_v43  ;;  %5308 = vmatpush.msra.mxu3 %v14700_v31  ;;  %v4386_v49 = vadd.f32 %v4385_v28, %v4366_v62  ;;  %v14742_v21 = vld [vmem:[#allocation913_spill] sm:$0xff]  ;;  %v4485_v43 = vpop.f32.mrf.mxu1  ;;  %v14743_v31 = vld [vmem:[#allocation943_spill] sm:$0xff] }
 0x8f1   :  { %5250 = vmatpush.msra.mxu0 %v14701_v41  ;;  %5269 = vmatpush.msra.mxu1 %v14702_v4  ;;  %v14744_v42 = vld [vmem:[#allocation977_spill] sm:$0xff]  ;;  %v14746_v4 = vld [vmem:[#allocation911_spill] sm:$0xff] }
 0x8f2   :  { %5290 = vmatpush.msra.mxu2 %v14703_v46  ;;  %5309 = vmatpush.msra.mxu3 %v14704_v25  ;;  %v4406_v18 = vadd.f32 %v4405_v34, %v4386_v49  ;;  %v14745_v41 = vld [vmem:[#allocation877_spill] sm:$0xff]  ;;  %v14754_v28 = vld [vmem:[#allocation907_spill] sm:$0xff] }
 0x8f3   :  { %5251 = vmatpush.msra.mxu0 %v14705_v0  ;;  %5270 = vmatpush.msra.mxu1 %v14706_v51  ;;  %v4425_v10 = vpop.f32.mrf.mxu2  ;;  %v14747_v25 = vld [vmem:[#allocation941_spill] sm:$0xff]  ;;  %v14749_v51 = vld [vmem:[#allocation875_spill] sm:$0xff] }
 0x8f4   :  { %5291 = vmatpush.msra.mxu2 %v14707_v59  ;;  %5310 = vmatpush.msra.mxu3 %v14708_v61  ;;  %v4426_v2 = vadd.f32 %v4425_v10, %v4406_v18  ;;  %v14750_v56 = vld [vmem:[#allocation909_spill] sm:$0xff]  ;;  %v14751_v59 = vld [vmem:[#allocation939_spill] sm:$0xff] }
 0x8f5   :  { %5252 = vmatpush.msra.mxu0 %v14709_v52  ;;  %5271 = vmatpush.msra.mxu1 %v14710_v38  ;;  %v14752_v61 = vld [vmem:[#allocation973_spill] sm:$0xff] }
 0x8f6   :  { %5292 = vmatpush.msra.mxu2 %v14711_v39  ;;  %5311 = vmatpush.msra.mxu3 %v14712_v54  ;;  %v4446_v24 = vadd.f32 %v4445_v9, %v4426_v2  ;;  %v14753_v38 = vld [vmem:[#allocation873_spill] sm:$0xff]  ;;  %v4525_v54 = vpop.f32.mrf.mxu3 }
 0x8f7   :  { %5253 = vmatpush.msra.mxu0 %v14713_v8  ;;  %5272 = vmatpush.msra.mxu1 %v14714_v44  ;;  %v5345_v39 = vld [vmem:[%s12760_s7 + $0x78] sm:$0xff]  ;;  %v14756_v8 = vld [vmem:[#allocation971_spill] sm:$0xff]  ;;  %v5338_v10 = vld [vmem:[%s12760_s7 + $0x40] sm:$0xff] }
 0x8f8   :  { %5293 = vmatpush.msra.mxu2 %v14715_v57  ;;  %5312 = vmatpush.msra.mxu3 %v14716_v23  ;;  %v4466_v12 = vadd.f32 %v4465_v53, %v4446_v24  ;;  %v14755_v62 = vld [vmem:[#allocation937_spill] sm:$0xff]  ;;  %v5344_v44 = vld [vmem:[%s12760_s7 + $0x70] sm:$0xff]  ;;  %v4545_v57 = vpop.f32.mrf.mxu0  ;;  %v4565_v34 = vpop.f32.mrf.mxu1  ;;  %v5331_v53 = vld [vmem:[%s12760_s7 + $0x8] sm:$0xff]  ;;  %v4045_v24 = vperm.slane %v12467_v60, 1 }
 0x8f9   :  { %5254 = vmatpush.msra.mxu0 %v14717_v3  ;;  %5273 = vmatpush.msra.mxu1 %v14718_v33  ;;  %v14757_v23 = vld [vmem:[#allocation905_spill] sm:$0xff] }
 0x8fa   :  { %5294 = vmatpush.msra.mxu2 %v14719_v36  ;;  %5313 = vmatpush.msra.mxu3 %v14720_v47  ;;  %v4486_v0 = vadd.f32 %v4485_v43, %v4466_v12  ;;  %v14758_v3 = vld [vmem:[#allocation969_spill] sm:$0xff] }
 0x8fb   :  { %5255 = vmatpush.msra.mxu0 %v14721_v40  ;;  %5274 = vmatpush.msra.mxu1 %v14722_v48  ;;  %v4505_v46 = vpop.f32.mrf.mxu2  ;;  %v5342_v33 = vld [vmem:[%s12760_s7 + $0x60] sm:$0xff]  ;;  %v5341_v36 = vld [vmem:[%s12760_s7 + $0x58] sm:$0xff]  ;;  %v5339_v40 = vld [vmem:[%s12760_s7 + $0x48] sm:$0xff] }
 0x8fc   :  { %5295 = vmatpush.msra.mxu2 %v14723_v55  ;;  %5314 = vmatpush.msra.mxu3 %v14724_v45  ;;  %v4506_v52 = vadd.f32 %v4505_v46, %v4486_v0  ;;  %v5337_v18 = vld [vmem:[%s12760_s7 + $0x38] sm:$0xff] }
 0x8fd   :  { %5256 = vmatpush.msra.mxu0 %v14725_v20  ;;  %5275 = vmatpush.msra.mxu1 %v14726_v17  ;;  %v5336_v17 = vld [vmem:[%s12760_s7 + $0x30] sm:$0xff] }
 0x8fe   :  { %5296 = vmatpush.msra.mxu2 %v14727_v1  ;;  %5315 = vmatpush.msra.mxu3 %v14728_v58  ;;  %v4526_v49 = vadd.f32 %v4525_v54, %v4506_v52  ;;  %v4605_v48 = vpop.f32.mrf.mxu3  ;;  %v5335_v58 = vld [vmem:[%s12760_s7 + $0x28] sm:$0xff]  ;;  %v5360_v52 = vld [vmem:[%s12760_s7 + $0xf0] sm:$0xff] }
 0x8ff   :  { %5257 = vmatpush.msra.mxu0 %v14729_v37  ;;  %5276 = vmatpush.msra.mxu1 %v14730_v35  ;;  %v5334_v35 = vld [vmem:[%s12760_s7 + $0x20] sm:$0xff] }
 0x900   :  { %5297 = vmatpush.msra.mxu2 %v14731_v7  ;;  %5316 = vmatpush.msra.mxu3 %v14732_v14  ;;  %v4625_v55 = vpop.f32.mrf.mxu0  ;;  %v4645_v1 = vpop.f32.mrf.mxu1  ;;  %v5333_v7 = vld [vmem:[%s12760_s7 + $0x18] sm:$0xff] }
 0x901   :  { %5258 = vmatpush.msra.mxu0 %v14733_v19  ;;  %5277 = vmatpush.msra.mxu1 %v14734_v13  ;;  %v5332_v19 = vld [vmem:[%s12760_s7 + $0x10] sm:$0xff] }
 0x902   :  { %5298 = vmatpush.msra.mxu2 %v14735_v15  ;;  %5317 = vmatpush.msra.mxu3 %v14736_v22  ;;  %v5330_v15 = vld [vmem:[%s12760_s7] sm:$0xff] }
 0x903   :  { %5259 = vmatpush.msra.mxu0 %v14737_v26  ;;  %5278 = vmatpush.msra.mxu1 %v14738_v27 }
 0x904   :  { %5299 = vmatpush.msra.mxu2 %v14739_v6  ;;  %5318 = vmatpush.msra.mxu3 %v14740_v29 }
 0x905   :  { %5260 = vmatpush.msra.mxu0 %v14741_v30  ;;  %5279 = vmatpush.msra.mxu1 %v14742_v21 }
 0x906   :  { %5300 = vmatpush.msra.mxu2 %v14743_v31  ;;  %5319 = vmatpush.msra.mxu3 %v14744_v42  ;;  %v4685_v14 = vpop.f32.mrf.mxu3 }
 0x907   :  { %5261 = vmatpush.msra.mxu0 %v14745_v41  ;;  %5280 = vmatpush.msra.mxu1 %v14746_v4 }
 0x908   :  { %5301 = vmatpush.msra.mxu2 %v14747_v25  ;;  %5320 = vmatpush.msra.mxu3 %v14748_v50  ;;  %v4705_v26 = vpop.f32.mrf.mxu0  ;;  %v4725_v6 = vpop.f32.mrf.mxu1 }
 0x909   :  { %5262 = vmatpush.msra.mxu0 %v14749_v51  ;;  %5281 = vmatpush.msra.mxu1 %v14750_v56  ;;  %v4706_v27 = vadd.f32 %v4705_v26, %v4045_v24 }
 0x90a   :  { %5302 = vmatpush.msra.mxu2 %v14751_v59  ;;  %5321 = vmatpush.msra.mxu3 %v14752_v61  ;;  %v5361_v61 = vld [vmem:[%s12760_s7 + $0xf8] sm:$0xff] }
 0x90b   :  { %5263 = vmatpush.msra.mxu0 %v14753_v38  ;;  %5282 = vmatpush.msra.mxu1 %v14754_v28  ;;  %v4726_v29 = vadd.f32 %v4725_v6, %v4706_v27  ;;  %v5359_v28 = vld [vmem:[%s12760_s7 + $0xe8] sm:$0xff] }
 0x90c   :  { %5303 = vmatpush.msra.mxu2 %v14755_v62  ;;  %5322 = vmatpush.msra.mxu3 %v14756_v8  ;;  %v5358_v62 = vld [vmem:[%s12760_s7 + $0xe0] sm:$0xff] }
 0x90d   :  { %5264 = vmatmul.f32.vlgmr.msra.gmra.mxu0 %v4007_v32  ;;  %5304 = vmatmul.f32.vlgmr.msra.gmra.mxu2 %v4009_v5  ;;  %v5343_v32 = vld [vmem:[%s12760_s7 + $0x68] sm:$0xff]  ;;  %v4546_v5 = vadd.f32 %v4545_v57, %v4526_v49 }
 0x90e   :  { %5363 = vmatpush.msrb.mxu0 %v5345_v39  ;;  %5283 = vmatpush.msra.mxu1 %v14757_v23  ;;  %v4765_v21 = vpop.f32.mrf.mxu3  ;;  %v5356_v23 = vld [vmem:[%s12760_s7 + $0xd0] sm:$0xff] }
 0x90f   :  { %5323 = vmatpush.msra.mxu3 %v14758_v3  ;;  %5284 = vmatmul.f32.vlgmr.msra.gmra.mxu1 %v4008_v11  ;;  %v4585_v11 = vpop.f32.mrf.mxu2  ;;  %v4566_v47 = vadd.f32 %v4565_v34, %v4546_v5 }
 0x910   :  { %5324 = vmatmul.f32.vlgmr.msra.gmra.mxu3 %v4010_v16  ;;  %5364 = vmatpush.msrb.mxu0 %v5344_v44  ;;  %v4785_v31 = vpop.f32.mrf.mxu0  ;;  %v4805_v41 = vpop.f32.mrf.mxu1  ;;  %v5357_v44 = vld [vmem:[%s12760_s7 + $0xd8] sm:$0xff] }
 0x911   :  { %v4586_v16 = vadd.f32 %v4585_v11, %v4566_v47  ;;  %5383 = vmatpush.msrb.mxu1 %v5361_v61 }
 0x912   :  { %5365 = vmatpush.msrb.mxu0 %v5343_v32  ;;  %v5355_v32 = vld [vmem:[%s12760_s7 + $0xc8] sm:$0xff] }
 0x913   :  { %v4606_v45 = vadd.f32 %v4605_v48, %v4586_v16  ;;  %5384 = vmatpush.msrb.mxu1 %v5360_v52 }
 0x914   :  { %5366 = vmatpush.msrb.mxu0 %v5342_v33  ;;  %v5354_v33 = vld [vmem:[%s12760_s7 + $0xc0] sm:$0xff] }
 0x915   :  { %v4626_v20 = vadd.f32 %v4625_v55, %v4606_v45  ;;  %5385 = vmatpush.msrb.mxu1 %v5359_v28  ;;  %v5352_v55 = vld [vmem:[%s12760_s7 + $0xb0] sm:$0xff] }
 0x916   :  { %5367 = vmatpush.msrb.mxu0 %v5341_v36  ;;  %v4845_v50 = vpop.f32.mrf.mxu3  ;;  %v5353_v36 = vld [vmem:[%s12760_s7 + $0xb8] sm:$0xff] }
 0x917   :  { %v4665_v2 = vpop.f32.mrf.mxu2  ;;  %v4646_v37 = vadd.f32 %v4645_v1, %v4626_v20  ;;  %5386 = vmatpush.msrb.mxu1 %v5358_v62 }
 0x918   :  { %5368 = vmatpush.msrb.mxu0 %v5340_v63  ;;  %v4865_v0 = vpop.f32.mrf.mxu0  ;;  %v4885_v60 = vpop.f32.mrf.mxu1 }
 0x919   :  { %v4666_v9 = vadd.f32 %v4665_v2, %v4646_v37  ;;  %5387 = vmatpush.msrb.mxu1 %v5357_v44  ;;  %v5349_v2 = vld [vmem:[%s12760_s7 + $0x98] sm:$0xff] }
 0x91a   :  { %5369 = vmatpush.msrb.mxu0 %v5339_v40 }
 0x91b   :  { %v4686_v13 = vadd.f32 %v4685_v14, %v4666_v9  ;;  %5388 = vmatpush.msrb.mxu1 %v5356_v23  ;;  %v5347_v14 = vld [vmem:[%s12760_s7 + $0x88] sm:$0xff] }
 0x91c   :  { %5370 = vmatpush.msrb.mxu0 %v5338_v10 }
 0x91d   :  { %v5328_v22 = vmax.f32 %v4686_v13, 0.0  ;;  %5389 = vmatpush.msrb.mxu1 %v5355_v32  ;;  %v5346_v13 = vld [vmem:[%s12760_s7 + $0x80] sm:$0xff] }
 0x91e   :  { %5371 = vmatpush.msrb.mxu0 %v5337_v18  ;;  %v4925_v54 = vpop.f32.mrf.mxu3  ;;  %v5351_v18 = vld [vmem:[%s12760_s7 + $0xa8] sm:$0xff] }
 0x91f   :  { %v4745_v12 = vpop.f32.mrf.mxu2  ;;  %5390 = vmatpush.msrb.mxu1 %v5354_v33 }
 0x920   :  { %5372 = vmatpush.msrb.mxu0 %v5336_v17  ;;  %v4746_v30 = vadd.f32 %v4745_v12, %v4726_v29  ;;  %v4945_v8 = vpop.f32.mrf.mxu0  ;;  %v4965_v3 = vpop.f32.mrf.mxu1  ;;  %v5350_v17 = vld [vmem:[%s12760_s7 + $0xa0] sm:$0xff] }
 0x921   :  { %5391 = vmatpush.msrb.mxu1 %v5353_v36 }
 0x922   :  { %5373 = vmatpush.msrb.mxu0 %v5335_v58  ;;  %v4766_v43 = vadd.f32 %v4765_v21, %v4746_v30 }
 0x923   :  { %5392 = vmatpush.msrb.mxu1 %v5352_v55 }
 0x924   :  { %5374 = vmatpush.msrb.mxu0 %v5334_v35  ;;  %v4786_v42 = vadd.f32 %v4785_v31, %v4766_v43  ;;  %v5348_v35 = vld [vmem:[%s12760_s7 + $0x90] sm:$0xff] }
 0x925   :  { %5393 = vmatpush.msrb.mxu1 %v5351_v18 }
 0x926   :  { %5375 = vmatpush.msrb.mxu0 %v5333_v7  ;;  %v4806_v4 = vadd.f32 %v4805_v41, %v4786_v42  ;;  %v5005_v47 = vpop.f32.mrf.mxu3 }
 0x927   :  { %v4825_v46 = vpop.f32.mrf.mxu2  ;;  %5394 = vmatpush.msrb.mxu1 %v5350_v17 }
 0x928   :  { %5376 = vmatpush.msrb.mxu0 %v5332_v19  ;;  %v4826_v25 = vadd.f32 %v4825_v46, %v4806_v4  ;;  %v5025_v63 = vpop.f32.mrf.mxu0  ;;  %v5045_v48 = vpop.f32.mrf.mxu1 }
 0x929   :  { %5395 = vmatpush.msrb.mxu1 %v5349_v2 }
 0x92a   :  { %5377 = vmatpush.msrb.mxu0 %v5331_v53  ;;  %v4846_v51 = vadd.f32 %v4845_v50, %v4826_v25 }
 0x92b   :  { %5396 = vmatpush.msrb.mxu1 %v5348_v35 }
 0x92c   :  { %5378 = vmatpush.msrb.mxu0 %v5330_v15  ;;  %v4866_v56 = vadd.f32 %v4865_v0, %v4846_v51 }
 0x92d   :  { %5379 = vmatmul.f32.vlgmr.msrb.gmra.mxu0 %v5328_v22  ;;  %5397 = vmatpush.msrb.mxu1 %v5347_v14 }
 0x92e   :  { %v4886_v38 = vadd.f32 %v4885_v60, %v4866_v56  ;;  %v5085_v1 = vpop.f32.mrf.mxu3  ;;  %v5362_v56 = vld [vmem:[%s12761_s8] sm:$0x1] }
 0x92f   :  { %v4905_v59 = vpop.f32.mrf.mxu2  ;;  %5398 = vmatpush.msrb.mxu1 %v5346_v13 }
 0x930   :  { %v4906_v39 = vadd.f32 %v4905_v59, %v4886_v38 }
 0x932   :  { %v4926_v57 = vadd.f32 %v4925_v54, %v4906_v39 }
 0x934   :  { %v4946_v49 = vadd.f32 %v4945_v8, %v4926_v57 }
 0x936   :  { %v4966_v34 = vadd.f32 %v4965_v3, %v4946_v49 }
 0x937   :  { %v4985_v5 = vpop.f32.mrf.mxu2 }
 0x938   :  { %v4986_v11 = vadd.f32 %v4985_v5, %v4966_v34 }
 0x93a   :  { %v5006_v16 = vadd.f32 %v5005_v47, %v4986_v11 }
 0x93c   :  { %v5026_v40 = vadd.f32 %v5025_v63, %v5006_v16 }
 0x93e   :  { %v5046_v45 = vadd.f32 %v5045_v48, %v5026_v40 }
 0x93f   :  { %v5065_v10 = vpop.f32.mrf.mxu2 }
 0x940   :  { %v5066_v20 = vadd.f32 %v5065_v10, %v5046_v45 }
 0x942   :  { %v5086_v37 = vadd.f32 %v5085_v1, %v5066_v20 }
 0x946   :  { %v5105_v58 = vpop.f32.mrf.mxu0 }
 0x947   :  { %v5106_v9 = vadd.f32 %v5105_v58, %v5086_v37 }
 0x949   :  { %v5125_v7 = vpop.f32.mrf.mxu1 }
 0x94a   :  { %v5126_v53 = vadd.f32 %v5125_v7, %v5106_v9 }
 0x94c   :  { %v5145_v19 = vpop.f32.mrf.mxu2 }
 0x94d   :  { %v5146_v15 = vadd.f32 %v5145_v19, %v5126_v53 }
 0x94f   :  { %v5165_v22 = vpop.f32.mrf.mxu3 }
 0x950   :  { %v5166_v26 = vadd.f32 %v5165_v22, %v5146_v15 }
 0x968   :  { %v5185_v24 = vpop.f32.mrf.mxu0 }
 0x969   :  { %v5186_v27 = vadd.f32 %v5185_v24, %v5166_v26 }
 0x96b   :  { %v5205_v6 = vpop.f32.mrf.mxu1 }
 0x96c   :  { %v5206_v12 = vadd.f32 %v5205_v6, %v5186_v27 }
 0x96e   :  { %v5225_v29 = vpop.f32.mrf.mxu2 }
 0x96f   :  { %v5226_v30 = vadd.f32 %v5225_v29, %v5206_v12 }
 0x971   :  { %v5245_v21 = vpop.f32.mrf.mxu3 }
 0x972   :  { %v5246_v43 = vadd.f32 %v5245_v21, %v5226_v30 }
 0x98a   :  { %v5265_v31 = vpop.f32.mrf.mxu0 }
 0x98b   :  { %v5266_v42 = vadd.f32 %v5265_v31, %v5246_v43 }
 0x98c   :  { %v5285_v41 = vpop.f32.mrf.mxu1 }
 0x98d   :  { %v5286_v4 = vadd.f32 %v5285_v41, %v5266_v42 }
 0x990   :  { %v5305_v46 = vpop.f32.mrf.mxu2 }
 0x991   :  { %v5306_v25 = vadd.f32 %v5305_v46, %v5286_v4 }
 0x993   :  { %v5325_v50 = vpop.f32.mrf.mxu3 }
 0x994   :  { %v5326_v0 = vadd.f32 %v5325_v50, %v5306_v25 }
 0x996   :  { %v5329_v51 = vmax.f32 %v5326_v0, 0.0 }
 0x998   :  { %5399 = vmatmul.f32.vlgmr.msrb.gmra.mxu1 %v5329_v51 }
 0x9aa   :  { %v5380_v60 = vpop.f32.mrf.mxu0 }
 0x9ab   :  { %v5381_v59 = vadd.f32 %v5380_v60, %v5362_v56 }
 0xa15   :  { %v5400_v61 = vpop.f32.mrf.mxu1 }
 0xa16   :  { %v5401_v52 = vadd.f32 %v5400_v61, %v5381_v59 }
 0xa18   :  { %5404 = vst.msk [vmem:[#allocation6] sm:$0x1] %vm5403_vm4, %v5401_v52 }
 0xa19   :  { %5415 = dma.vmem_to_hbm [thread:$0]  %s5411_s25, 16, %s5413_s5, [#allocation7]  }
 0xa1a   :  { %5541 = dma.done.wait [#allocation7], 16  }
 0xa1b   :  { %5542 = vsyncadd [#allocation7], 4294967280 }
 0xa1c   :  { %5420 = vsyncpa [#allocation7], 1 }
 0xa1d   :  { %5421 = vsyncmov [#allocation5] }
 0xa20   :  { %s5422_s8 = vpop.sfrf %5421 }
 0xa21   :  { %p5431_p0 = scmp.ne.s32.totalorder %s5422_s8, 0 }
 0xa23   :  { %5426 = shalt.err (%p5431_p0)  }

</bundles_post_ra>
